<compile_context>
chip_gen: v7x
topology: tpu7x:2x2x1
jax: 0.10.0
libtpu: 0.0.40
codegen_flags: <defaults>
</compile_context>

<pallas_src>
import functools

import jax
import jax.numpy as jnp
import numpy as np
from jax import lax
from jax.experimental import pallas as pl
from jax.experimental.pallas import tpu as pltpu

LEAKY_SLOPE = 0.1          # darknet 'leaky' activation slope
POOL_KS = (5, 9, 13)       # SPP kernel sizes (stride=1, padding=k//2)
_HALO = 8                  # halo rows per side for the H-tiled path (>= 13//2)
_NEG_INF = float("-inf")


def _leaky(x):
    return jnp.where(x >= 0, x, LEAKY_SLOPE * x)


# --------------------------------------------------------------------------
# In-kernel building blocks
# --------------------------------------------------------------------------
def _pool5(a3, wmasks, neg2, use_roll):
    """5x5 stride-1 'same' max-pool (-inf padding) of a (H_ext, W, C) map.

    H direction: 2 rows of -inf padding along the (cheap) major axis + 5
    static slices.  W direction: pltpu.roll along the flattened row axis
    (XLU slot) with precomputed boundary masks; values that would wrap across
    a row / image edge are masked to -inf.
    """
    h_ext, w, c = a3.shape
    # ---- H (row) direction ----
    hp = jnp.concatenate([neg2, a3, neg2], axis=0)          # (h_ext + 4, W, C)
    hmax = hp[0:h_ext]
    for d in range(1, 5):
        hmax = jnp.maximum(hmax, hp[d:d + h_ext])
    # ---- W (column) direction ----
    if use_roll:
        r = h_ext * w
        hmax2d = hmax.reshape(r, c)
        out = hmax
        for d in (-2, -1, 1, 2):
            rolled = pltpu.roll(hmax2d, shift=(-d) % r, axis=0).reshape(h_ext, w, c)
            out = jnp.maximum(out, jnp.where(wmasks[d], rolled, _NEG_INF))
        return out
    # Fallback: -inf pad + sublane slices (slower, always lowers).
    negw = jnp.full((h_ext, 2, c), _NEG_INF, dtype=hmax.dtype)
    wp = jnp.concatenate([negw, hmax, negw], axis=1)         # (h_ext, W + 4, C)
    out = wp[:, 0:w, :]
    for d in range(1, 5):
        out = jnp.maximum(out, wp[:, d:d + w, :])
    return out


def _spp_tail(y3, w2_ref, b2_ref, o_ref, *, row_off, h_out, use_roll):
    """SPPF cascade interleaved with the cv2 partial matmuls + output write.

    y3: (H_ext, W, C_) f32 cv1 output (out-of-image halo rows already -inf).
    Only buffer rows [row_off, row_off + h_out) are written to o_ref.
    """
    h_ext, w, c_ = y3.shape
    cdt = w2_ref.dtype

    wmasks = None
    if use_roll:
        wpos = lax.broadcasted_iota(jnp.int32, (1, w, c_), 1)
        wmasks = {d: jnp.logical_and(wpos + d >= 0, wpos + d < w)
                  for d in (-2, -1, 1, 2)}
    neg2 = jnp.full((2, w, c_), _NEG_INF, dtype=jnp.float32)

    def branch(a3, i):
        m = a3[row_off:row_off + h_out].reshape(h_out * w, c_)
        return jnp.dot(m.astype(cdt), w2_ref[i],
                       preferred_element_type=jnp.float32)

    # cv2 over concat([y, p5, p9, p13]) == sum of per-branch matmuls.
    # Interleaving keeps at most two feature maps live and lets the MXU work
    # overlap the pooling VPU/XLU work.
    acc = branch(y3, 0)
    p = _pool5(y3, wmasks, neg2, use_roll)          # 5x5
    acc += branch(p, 1)
    p = _pool5(p, wmasks, neg2, use_roll)           # == 9x9
    acc += branch(p, 2)
    p = _pool5(p, wmasks, neg2, use_roll)           # == 13x13
    acc += branch(p, 3)

    z = _leaky(acc + b2_ref[...])
    o_ref[...] = z.reshape(o_ref.shape).astype(o_ref.dtype)


def _spp_kernel_single(x_ref, w1_ref, b1_ref, w2_ref, b2_ref, o_ref, *, use_roll):
    # x_ref: (1, H, W, C1); o_ref: (1, H, W, C2); weights already compute-dtype.
    _, h, w, c1 = x_ref.shape
    c_ = w1_ref.shape[1]
    x2d = x_ref[...].reshape(h * w, c1).astype(w1_ref.dtype)
    y = jnp.dot(x2d, w1_ref[...], preferred_element_type=jnp.float32)
    y = _leaky(y + b1_ref[...]).reshape(h, w, c_)
    _spp_tail(y, w2_ref, b2_ref, o_ref, row_off=0, h_out=h, use_roll=use_roll)


def _spp_kernel_tiled(x_top_ref, x_mid_ref, x_bot_ref, w1_ref, b1_ref,
                      w2_ref, b2_ref, o_ref, *, use_roll):
    # x_mid: (1, TH, W, C1); x_top/x_bot: (1, 8, W, C1) halos; o: (1, TH, W, C2).
    _, th, w, c1 = x_mid_ref.shape
    c_ = w1_ref.shape[1]
    cdt = w1_ref.dtype
    h_ext = th + 2 * _HALO

    x_ext = jnp.concatenate(
        [x_top_ref[0].astype(cdt), x_mid_ref[0].astype(cdt),
         x_bot_ref[0].astype(cdt)], axis=0)                   # (h_ext, W, C1)
    y = jnp.dot(x_ext.reshape(h_ext * w, c1), w1_ref[...],
                preferred_element_type=jnp.float32)
    y = _leaky(y + b1_ref[...]).reshape(h_ext, w, c_)

    # Halo rows fetched from outside the image (clamped duplicates at the
    # first / last H tile) must behave as -inf padding for the max-pools.
    t = pl.program_id(1)
    top_bias = jnp.where(t == 0, _NEG_INF, 0.0)
    bot_bias = jnp.where(t == pl.num_programs(1) - 1, _NEG_INF, 0.0)
    y = jnp.concatenate([y[:_HALO] + top_bias,
                         y[_HALO:_HALO + th],
                         y[_HALO + th:] + bot_bias], axis=0)

    _spp_tail(y, w2_ref, b2_ref, o_ref, row_off=_HALO, h_out=th,
              use_roll=use_roll)


# --------------------------------------------------------------------------
# Host-side wrappers
# --------------------------------------------------------------------------
def _pick_block_h(h, block_h):
    """Pick an H tile (multiple of 8 dividing H) or fall back to full H."""
    if (block_h is not None and 0 < block_h < h and h % block_h == 0
            and block_h % _HALO == 0):
        return block_h
    if h % _HALO != 0:
        return h
    for cand in (64, 48, 40, 32):
        if 2 * cand <= h and h % cand == 0:
            return cand
    return h


def _vmem_limit_bytes(rows_in, rows_out, w, c1, c_, c2, in_dtype, cdt):
    """Scoped-VMEM limit derived from actual block sizes (v7x: 64 MiB phys)."""
    it_in = np.dtype(in_dtype).itemsize
    it_c = np.dtype(cdt).itemsize
    io = 2 * (rows_in * w * c1 * it_in + rows_out * w * c2 * it_in)
    weights = 2 * ((c1 * c_ + 4 * c_ * c2) * it_c + 4 * (c_ + c2))
    temps = (rows_in * w * c1 * it_c            # casted cv1 input
             + 3 * rows_in * w * c_ * 4         # live f32 feature maps / temps
             + (rows_in + 4) * w * c_ * 4       # H-pad buffer
             + rows_out * w * c2 * 4)           # f32 accumulator
    est = io + weights + temps
    return int(min(max(2 * est, 32 * 1024 * 1024), 60 * 1024 * 1024))


def spp_pallas_nhwc(x, w1, b1, w2_stacked, b2, *, compute_dtype=jnp.bfloat16,
                    block_h=None):
    """SPP forward on an NHWC activation.  Returns NHWC."""
    n, h, w, c1 = x.shape
    c_ = w1.shape[1]
    nb, _, c2 = w2_stacked.shape
    assert nb == len(POOL_KS) + 1 and w1.shape == (c1, c_)

    w1c = w1.astype(compute_dtype)
    w2c = w2_stacked.astype(compute_dtype)
    b1f = b1.astype(jnp.float32).reshape(1, c_)
    b2f = b2.astype(jnp.float32).reshape(1, c2)
    th = _pick_block_h(h, block_h)

    def run(use_roll):
        if th == h:
            kernel = functools.partial(_spp_kernel_single, use_roll=use_roll)
            vmem = _vmem_limit_bytes(h, h, w, c1, c_, c2, x.dtype, compute_dtype)
            return pl.pallas_call(
                kernel,
                out_shape=jax.ShapeDtypeStruct((n, h, w, c2), x.dtype),
                grid=(n,),
                in_specs=[
                    pl.BlockSpec((1, h, w, c1), lambda i: (i, 0, 0, 0)),
                    pl.BlockSpec((c1, c_), lambda i: (0, 0)),
                    pl.BlockSpec((1, c_), lambda i: (0, 0)),
                    pl.BlockSpec((nb, c_, c2), lambda i: (0, 0, 0)),
                    pl.BlockSpec((1, c2), lambda i: (0, 0)),
                ],
                out_specs=pl.BlockSpec((1, h, w, c2), lambda i: (i, 0, 0, 0)),
                compiler_params=pltpu.CompilerParams(
                    dimension_semantics=("parallel",),
                    vmem_limit_bytes=vmem),
            )(x, w1c, b1f, w2c, b2f)

        num_t = h // th
        r = th // _HALO                 # 8-row blocks per tile
        hb = h // _HALO                 # 8-row blocks in the image
        kernel = functools.partial(_spp_kernel_tiled, use_roll=use_roll)
        vmem = _vmem_limit_bytes(th + 2 * _HALO, th, w, c1, c_, c2,
                                 x.dtype, compute_dtype)
        return pl.pallas_call(
            kernel,
            out_shape=jax.ShapeDtypeStruct((n, h, w, c2), x.dtype),
            grid=(n, num_t),
            in_specs=[
                pl.BlockSpec((1, _HALO, w, c1),
                             lambda i, t: (i, jnp.maximum(t * r - 1, 0), 0, 0)),
                pl.BlockSpec((1, th, w, c1), lambda i, t: (i, t, 0, 0)),
                pl.BlockSpec((1, _HALO, w, c1),
                             lambda i, t: (i, jnp.minimum((t + 1) * r, hb - 1),
                                           0, 0)),
                pl.BlockSpec((c1, c_), lambda i, t: (0, 0)),
                pl.BlockSpec((1, c_), lambda i, t: (0, 0)),
                pl.BlockSpec((nb, c_, c2), lambda i, t: (0, 0, 0)),
                pl.BlockSpec((1, c2), lambda i, t: (0, 0)),
            ],
            out_specs=pl.BlockSpec((1, th, w, c2), lambda i, t: (i, t, 0, 0)),
            compiler_params=pltpu.CompilerParams(
                dimension_semantics=("parallel", "parallel"),
                vmem_limit_bytes=vmem),
        )(x, x, x, w1c, b1f, w2c, b2f)

    try:
        return run(use_roll=True)
    except Exception:
        # Fallback if pltpu.roll fails to lower on this backend: pad-and-slice
        # W-direction pooling (slower, uses only ops from the original kernel).
        return run(use_roll=False)


def spp_pallas(x_nchw, w1, b1, w2_stacked, b2, *, compute_dtype=jnp.bfloat16,
               block_h=None):
    """x_nchw: (N, C1, H, W) -> (N, C2, H, W), matching the PyTorch module.

    NOTE: the two transposes are full HBM round trips; prefer spp_pallas_nhwc
    (NHWC end-to-end) when the surrounding model allows it.
    """
    x = jnp.transpose(x_nchw, (0, 2, 3, 1))
    out = spp_pallas_nhwc(x, w1, b1, w2_stacked, b2,
                          compute_dtype=compute_dtype, block_h=block_h)
    return jnp.transpose(out, (0, 3, 1, 2))


# --------------------------------------------------------------------------
# Parameters (inference-mode BN folded into the 1x1 convs) and reference
# --------------------------------------------------------------------------
def _fold_bn(conv_w_oi, gamma, beta, mean, var, eps=1e-5):
    """Fold inference-mode BatchNorm into a 1x1 conv.  conv_w_oi: (Cout, Cin)."""
    s = gamma / jnp.sqrt(var + eps)
    w = (conv_w_oi * s[:, None]).T            # (Cin, Cout) for right-matmul
    b = (beta - mean * s)[None, :]            # (1, Cout)
    return w.astype(jnp.float32), b.astype(jnp.float32)


def make_params(key, c1, c2):
    c_ = c1 // 2
    n_branch = len(POOL_KS) + 1
    c_cat = c_ * n_branch
    ks = jax.random.split(key, 10)

    cv1_w = 0.2 * jax.random.normal(ks[0], (c_, c1), dtype=jnp.float32)
    g1 = 1.0 + 0.1 * jax.random.normal(ks[1], (c_,), dtype=jnp.float32)
    be1 = 0.1 * jax.random.normal(ks[2], (c_,), dtype=jnp.float32)
    m1 = 0.1 * jax.random.normal(ks[3], (c_,), dtype=jnp.float32)
    v1 = 0.5 + jax.random.uniform(ks[4], (c_,), dtype=jnp.float32)
    w1, b1 = _fold_bn(cv1_w, g1, be1, m1, v1)

    cv2_w = 0.2 * jax.random.normal(ks[5], (c2, c_cat), dtype=jnp.float32)
    g2 = 1.0 + 0.1 * jax.random.normal(ks[6], (c2,), dtype=jnp.float32)
    be2 = 0.1 * jax.random.normal(ks[7], (c2,), dtype=jnp.float32)
    m2 = 0.1 * jax.random.normal(ks[8], (c2,), dtype=jnp.float32)
    v2 = 0.5 + jax.random.uniform(ks[9], (c2,), dtype=jnp.float32)
    w2, b2 = _fold_bn(cv2_w, g2, be2, m2, v2)           # (c_cat, c2), (1, c2)
    w2_stacked = w2.reshape(n_branch, c_, c2)           # per-branch weight chunks
    return w1, b1, w2_stacked, b2


def spp_reference(x_nchw, w1, b1, w2_stacked, b2, compute_dtype=jnp.float32):
    """Plain-JAX reference mirroring the PyTorch forward (for verification).

    compute_dtype mirrors the kernel's matmul-operand rounding (bf16 fast path).
    """
    nb, c_, c2 = w2_stacked.shape
    w2_full = w2_stacked.reshape(nb * c_, c2)
    rnd = lambda a: a.astype(compute_dtype).astype(jnp.float32)
    hi = jax.lax.Precision.HIGHEST
    x = jnp.transpose(x_nchw, (0, 2, 3, 1))
    y = _leaky(jnp.einsum("nhwc,cd->nhwd", rnd(x), rnd(w1), precision=hi) + b1)
    feats = [y]
    for k in POOL_KS:
        p = k // 2
        feats.append(lax.reduce_window(
            y, -jnp.inf, lax.max,
            (1, k, k, 1), (1, 1, 1, 1),
            [(0, 0), (p, p), (p, p), (0, 0)]))
    f = jnp.concatenate(feats, axis=-1)
    z = _leaky(jnp.einsum("nhwc,cd->nhwd", rnd(f), rnd(w2_full), precision=hi)
               + b2)
    return jnp.transpose(z, (0, 3, 1, 2))


if __name__ == "__main__":
    root = jax.random.PRNGKey(0)

    def check(n, c1, c2, h, w, seed):
        kx, kp = jax.random.split(jax.random.fold_in(root, seed))
        x = jax.random.normal(kx, (n, c1, h, w), dtype=jnp.float32)
        params = make_params(kp, c1, c2)
        for cdt in (jnp.float32, jnp.bfloat16):
            out = jax.block_until_ready(
                spp_pallas(x, *params, compute_dtype=cdt))
            assert out.shape == (n, c2, h, w)
            ref = spp_reference(x, *params, compute_dtype=cdt)
            np.testing.assert_allclose(np.asarray(out), np.asarray(ref),
                                       atol=2e-2, rtol=2e-2)

    # Small case: single H tile per batch element.
    check(2, 16, 16, 16, 16, seed=0)
    # Taller case: exercises the halo-tiled path, grid = (N, H // 32).
    check(1, 32, 48, 64, 24, seed=1)
    print("KERNEL_OK")
</pallas_src>

<mosaic_0001>
module attributes {stable_mosaic.version = 11 : i64} {
  func.func @_spp_kernel_single(%arg0: i32, %arg1: memref<1x16x16x16xf32, #tpu.memory_space<vmem>>, %arg2: memref<16x8xf32, #tpu.memory_space<vmem>>, %arg3: memref<1x8xf32, #tpu.memory_space<vmem>>, %arg4: memref<4x8x16xf32, #tpu.memory_space<vmem>>, %arg5: memref<1x16xf32, #tpu.memory_space<vmem>>, %arg6: memref<1x16x16x16xf32, #tpu.memory_space<vmem>>) attributes {dimension_semantics = [#tpu.dimension_semantics<parallel>], iteration_bounds = array<i64: 2>, scalar_prefetch = 0 : i64, scratch_operands = 0 : i64, tpu.core_type = #tpu.core_type<tc>, window_params = [{transform_indices = @transform_0, window_bounds = array<i64: 1, 16, 16, 16>}, {pipeline_mode = #tpu.pipeline_mode<synchronous>, transform_indices = @transform_1, window_bounds = array<i64: 16, 8>}, {pipeline_mode = #tpu.pipeline_mode<synchronous>, transform_indices = @transform_2, window_bounds = array<i64: 1, 8>}, {pipeline_mode = #tpu.pipeline_mode<synchronous>, transform_indices = @transform_3, window_bounds = array<i64: 4, 8, 16>}, {pipeline_mode = #tpu.pipeline_mode<synchronous>, transform_indices = @transform_4, window_bounds = array<i64: 1, 16>}, {transform_indices = @transform_5, window_bounds = array<i64: 1, 16, 16, 16>}]} {
    %c0 = arith.constant 0 : index
    %c0_0 = arith.constant 0 : index
    %c0_1 = arith.constant 0 : index
    %c0_2 = arith.constant 0 : index
    %0 = vector.load %arg1[%c0, %c0_0, %c0_1, %c0_2] : memref<1x16x16x16xf32, #tpu.memory_space<vmem>>, vector<1x16x16x16xf32>
    %1 = vector.shape_cast %0 : vector<1x16x16x16xf32> to vector<256x16xf32>
    %c0_3 = arith.constant 0 : index
    %c0_4 = arith.constant 0 : index
    %2 = vector.load %arg2[%c0_3, %c0_4] : memref<16x8xf32, #tpu.memory_space<vmem>>, vector<16x8xf32>
    %cst = arith.constant dense<0.000000e+00> : vector<256x8xf32>
    %3 = tpu.matmul %1, %2, %cst {dimension_numbers = #tpu.dot_dimension_numbers<[1], [0], [0], [1], [0, 0, 1, 1], [], []>} : vector<256x16xf32>, vector<16x8xf32>, vector<256x8xf32> -> vector<256x8xf32>
    %c0_5 = arith.constant 0 : index
    %c0_6 = arith.constant 0 : index
    %4 = vector.load %arg3[%c0_5, %c0_6] : memref<1x8xf32, #tpu.memory_space<vmem>>, vector<1x8xf32>
    %5 = vector.broadcast %4 : vector<1x8xf32> to vector<256x8xf32>
    %6 = arith.addf %3, %5 : vector<256x8xf32>
    %cst_7 = arith.constant 0.000000e+00 : f32
    %7 = vector.broadcast %cst_7 : f32 to vector<256x8xf32>
    %8 = arith.cmpf oge, %6, %7 : vector<256x8xf32>
    %cst_8 = arith.constant 1.000000e-01 : f32
    %9 = vector.broadcast %cst_8 : f32 to vector<256x8xf32>
    %10 = arith.mulf %9, %6 : vector<256x8xf32>
    %11 = arith.select %8, %6, %10 : vector<256x8xi1>, vector<256x8xf32>
    %12 = vector.shape_cast %11 : vector<256x8xf32> to vector<16x16x8xf32>
    %13 = tpu.iota {dimensions = array<i32: 1>} : vector<1x16x8xi32>
    %c-2_i32 = arith.constant -2 : i32
    %14 = vector.broadcast %c-2_i32 : i32 to vector<1x16x8xi32>
    %15 = arith.addi %13, %14 : vector<1x16x8xi32>
    %c0_i32 = arith.constant 0 : i32
    %16 = vector.broadcast %c0_i32 : i32 to vector<1x16x8xi32>
    %17 = arith.cmpi sge, %15, %16 : vector<1x16x8xi32>
    %c-2_i32_9 = arith.constant -2 : i32
    %18 = vector.broadcast %c-2_i32_9 : i32 to vector<1x16x8xi32>
    %19 = arith.addi %13, %18 : vector<1x16x8xi32>
    %c16_i32 = arith.constant 16 : i32
    %20 = vector.broadcast %c16_i32 : i32 to vector<1x16x8xi32>
    %21 = arith.cmpi slt, %19, %20 : vector<1x16x8xi32>
    %22 = arith.andi %17, %21 : vector<1x16x8xi1>
    %c-1_i32 = arith.constant -1 : i32
    %23 = vector.broadcast %c-1_i32 : i32 to vector<1x16x8xi32>
    %24 = arith.addi %13, %23 : vector<1x16x8xi32>
    %c0_i32_10 = arith.constant 0 : i32
    %25 = vector.broadcast %c0_i32_10 : i32 to vector<1x16x8xi32>
    %26 = arith.cmpi sge, %24, %25 : vector<1x16x8xi32>
    %c-1_i32_11 = arith.constant -1 : i32
    %27 = vector.broadcast %c-1_i32_11 : i32 to vector<1x16x8xi32>
    %28 = arith.addi %13, %27 : vector<1x16x8xi32>
    %c16_i32_12 = arith.constant 16 : i32
    %29 = vector.broadcast %c16_i32_12 : i32 to vector<1x16x8xi32>
    %30 = arith.cmpi slt, %28, %29 : vector<1x16x8xi32>
    %31 = arith.andi %26, %30 : vector<1x16x8xi1>
    %c1_i32 = arith.constant 1 : i32
    %32 = vector.broadcast %c1_i32 : i32 to vector<1x16x8xi32>
    %33 = arith.addi %13, %32 : vector<1x16x8xi32>
    %c0_i32_13 = arith.constant 0 : i32
    %34 = vector.broadcast %c0_i32_13 : i32 to vector<1x16x8xi32>
    %35 = arith.cmpi sge, %33, %34 : vector<1x16x8xi32>
    %c1_i32_14 = arith.constant 1 : i32
    %36 = vector.broadcast %c1_i32_14 : i32 to vector<1x16x8xi32>
    %37 = arith.addi %13, %36 : vector<1x16x8xi32>
    %c16_i32_15 = arith.constant 16 : i32
    %38 = vector.broadcast %c16_i32_15 : i32 to vector<1x16x8xi32>
    %39 = arith.cmpi slt, %37, %38 : vector<1x16x8xi32>
    %40 = arith.andi %35, %39 : vector<1x16x8xi1>
    %c2_i32 = arith.constant 2 : i32
    %41 = vector.broadcast %c2_i32 : i32 to vector<1x16x8xi32>
    %42 = arith.addi %13, %41 : vector<1x16x8xi32>
    %c0_i32_16 = arith.constant 0 : i32
    %43 = vector.broadcast %c0_i32_16 : i32 to vector<1x16x8xi32>
    %44 = arith.cmpi sge, %42, %43 : vector<1x16x8xi32>
    %c2_i32_17 = arith.constant 2 : i32
    %45 = vector.broadcast %c2_i32_17 : i32 to vector<1x16x8xi32>
    %46 = arith.addi %13, %45 : vector<1x16x8xi32>
    %c16_i32_18 = arith.constant 16 : i32
    %47 = vector.broadcast %c16_i32_18 : i32 to vector<1x16x8xi32>
    %48 = arith.cmpi slt, %46, %47 : vector<1x16x8xi32>
    %49 = arith.andi %44, %48 : vector<1x16x8xi1>
    %cst_19 = arith.constant 0xFF800000 : f32
    %50 = vector.broadcast %cst_19 : f32 to vector<2x16x8xf32>
    %51 = vector.shape_cast %12 : vector<16x16x8xf32> to vector<256x8xf32>
    %c0_20 = arith.constant 0 : index
    %c0_21 = arith.constant 0 : index
    %c0_22 = arith.constant 0 : index
    %52 = vector.load %arg4[%c0_20, %c0_21, %c0_22] : memref<4x8x16xf32, #tpu.memory_space<vmem>>, vector<1x8x16xf32>
    %53 = vector.shape_cast %52 : vector<1x8x16xf32> to vector<8x16xf32>
    %cst_23 = arith.constant dense<0.000000e+00> : vector<256x16xf32>
    %54 = tpu.matmul %51, %53, %cst_23 {dimension_numbers = #tpu.dot_dimension_numbers<[1], [0], [0], [1], [0, 0, 1, 1], [], []>} : vector<256x8xf32>, vector<8x16xf32>, vector<256x16xf32> -> vector<256x16xf32>
    %55 = tpu.concatenate %50, %12, %50 in 0 : vector<2x16x8xf32>, vector<16x16x8xf32>, vector<2x16x8xf32> -> vector<20x16x8xf32>
    %56 = vector.extract_strided_slice %55 {offsets = [0, 0, 0], sizes = [16, 16, 8], strides = [1, 1, 1]} : vector<20x16x8xf32> to vector<16x16x8xf32>
    %57 = vector.extract_strided_slice %55 {offsets = [1, 0, 0], sizes = [16, 16, 8], strides = [1, 1, 1]} : vector<20x16x8xf32> to vector<16x16x8xf32>
    %58 = arith.maximumf %56, %57 : vector<16x16x8xf32>
    %59 = vector.extract_strided_slice %55 {offsets = [2, 0, 0], sizes = [16, 16, 8], strides = [1, 1, 1]} : vector<20x16x8xf32> to vector<16x16x8xf32>
    %60 = arith.maximumf %58, %59 : vector<16x16x8xf32>
    %61 = vector.extract_strided_slice %55 {offsets = [3, 0, 0], sizes = [16, 16, 8], strides = [1, 1, 1]} : vector<20x16x8xf32> to vector<16x16x8xf32>
    %62 = arith.maximumf %60, %61 : vector<16x16x8xf32>
    %63 = vector.extract_strided_slice %55 {offsets = [4, 0, 0], sizes = [16, 16, 8], strides = [1, 1, 1]} : vector<20x16x8xf32> to vector<16x16x8xf32>
    %64 = arith.maximumf %62, %63 : vector<16x16x8xf32>
    %65 = vector.shape_cast %64 : vector<16x16x8xf32> to vector<256x8xf32>
    %c2_i32_24 = arith.constant 2 : i32
    %66 = tpu.dynamic_rotate %65 by %c2_i32_24 dim 0 : vector<256x8xf32>, i32 -> vector<256x8xf32>
    %67 = vector.shape_cast %66 : vector<256x8xf32> to vector<16x16x8xf32>
    %cst_25 = arith.constant 0xFF800000 : f32
    %68 = vector.shape_cast %22 : vector<1x16x8xi1> to vector<1x16x8xi1>
    %69 = vector.broadcast %68 : vector<1x16x8xi1> to vector<16x16x8xi1>
    %70 = vector.broadcast %cst_25 : f32 to vector<16x16x8xf32>
    %71 = arith.select %69, %67, %70 : vector<16x16x8xi1>, vector<16x16x8xf32>
    %72 = arith.maximumf %64, %71 : vector<16x16x8xf32>
    %c1_i32_26 = arith.constant 1 : i32
    %73 = tpu.dynamic_rotate %65 by %c1_i32_26 dim 0 : vector<256x8xf32>, i32 -> vector<256x8xf32>
    %74 = vector.shape_cast %73 : vector<256x8xf32> to vector<16x16x8xf32>
    %cst_27 = arith.constant 0xFF800000 : f32
    %75 = vector.shape_cast %31 : vector<1x16x8xi1> to vector<1x16x8xi1>
    %76 = vector.broadcast %75 : vector<1x16x8xi1> to vector<16x16x8xi1>
    %77 = vector.broadcast %cst_27 : f32 to vector<16x16x8xf32>
    %78 = arith.select %76, %74, %77 : vector<16x16x8xi1>, vector<16x16x8xf32>
    %79 = arith.maximumf %72, %78 : vector<16x16x8xf32>
    %c255_i32 = arith.constant 255 : i32
    %80 = tpu.dynamic_rotate %65 by %c255_i32 dim 0 : vector<256x8xf32>, i32 -> vector<256x8xf32>
    %81 = vector.shape_cast %80 : vector<256x8xf32> to vector<16x16x8xf32>
    %cst_28 = arith.constant 0xFF800000 : f32
    %82 = vector.shape_cast %40 : vector<1x16x8xi1> to vector<1x16x8xi1>
    %83 = vector.broadcast %82 : vector<1x16x8xi1> to vector<16x16x8xi1>
    %84 = vector.broadcast %cst_28 : f32 to vector<16x16x8xf32>
    %85 = arith.select %83, %81, %84 : vector<16x16x8xi1>, vector<16x16x8xf32>
    %86 = arith.maximumf %79, %85 : vector<16x16x8xf32>
    %c254_i32 = arith.constant 254 : i32
    %87 = tpu.dynamic_rotate %65 by %c254_i32 dim 0 : vector<256x8xf32>, i32 -> vector<256x8xf32>
    %88 = vector.shape_cast %87 : vector<256x8xf32> to vector<16x16x8xf32>
    %cst_29 = arith.constant 0xFF800000 : f32
    %89 = vector.shape_cast %49 : vector<1x16x8xi1> to vector<1x16x8xi1>
    %90 = vector.broadcast %89 : vector<1x16x8xi1> to vector<16x16x8xi1>
    %91 = vector.broadcast %cst_29 : f32 to vector<16x16x8xf32>
    %92 = arith.select %90, %88, %91 : vector<16x16x8xi1>, vector<16x16x8xf32>
    %93 = arith.maximumf %86, %92 : vector<16x16x8xf32>
    %94 = vector.shape_cast %93 : vector<16x16x8xf32> to vector<256x8xf32>
    %c1 = arith.constant 1 : index
    %c0_30 = arith.constant 0 : index
    %c0_31 = arith.constant 0 : index
    %95 = vector.load %arg4[%c1, %c0_30, %c0_31] : memref<4x8x16xf32, #tpu.memory_space<vmem>>, vector<1x8x16xf32>
    %96 = vector.shape_cast %95 : vector<1x8x16xf32> to vector<8x16xf32>
    %cst_32 = arith.constant dense<0.000000e+00> : vector<256x16xf32>
    %97 = tpu.matmul %94, %96, %cst_32 {dimension_numbers = #tpu.dot_dimension_numbers<[1], [0], [0], [1], [0, 0, 1, 1], [], []>} : vector<256x8xf32>, vector<8x16xf32>, vector<256x16xf32> -> vector<256x16xf32>
    %98 = arith.addf %54, %97 : vector<256x16xf32>
    %99 = tpu.concatenate %50, %93, %50 in 0 : vector<2x16x8xf32>, vector<16x16x8xf32>, vector<2x16x8xf32> -> vector<20x16x8xf32>
    %100 = vector.extract_strided_slice %99 {offsets = [0, 0, 0], sizes = [16, 16, 8], strides = [1, 1, 1]} : vector<20x16x8xf32> to vector<16x16x8xf32>
    %101 = vector.extract_strided_slice %99 {offsets = [1, 0, 0], sizes = [16, 16, 8], strides = [1, 1, 1]} : vector<20x16x8xf32> to vector<16x16x8xf32>
    %102 = arith.maximumf %100, %101 : vector<16x16x8xf32>
    %103 = vector.extract_strided_slice %99 {offsets = [2, 0, 0], sizes = [16, 16, 8], strides = [1, 1, 1]} : vector<20x16x8xf32> to vector<16x16x8xf32>
    %104 = arith.maximumf %102, %103 : vector<16x16x8xf32>
    %105 = vector.extract_strided_slice %99 {offsets = [3, 0, 0], sizes = [16, 16, 8], strides = [1, 1, 1]} : vector<20x16x8xf32> to vector<16x16x8xf32>
    %106 = arith.maximumf %104, %105 : vector<16x16x8xf32>
    %107 = vector.extract_strided_slice %99 {offsets = [4, 0, 0], sizes = [16, 16, 8], strides = [1, 1, 1]} : vector<20x16x8xf32> to vector<16x16x8xf32>
    %108 = arith.maximumf %106, %107 : vector<16x16x8xf32>
    %109 = vector.shape_cast %108 : vector<16x16x8xf32> to vector<256x8xf32>
    %c2_i32_33 = arith.constant 2 : i32
    %110 = tpu.dynamic_rotate %109 by %c2_i32_33 dim 0 : vector<256x8xf32>, i32 -> vector<256x8xf32>
    %111 = vector.shape_cast %110 : vector<256x8xf32> to vector<16x16x8xf32>
    %cst_34 = arith.constant 0xFF800000 : f32
    %112 = vector.shape_cast %22 : vector<1x16x8xi1> to vector<1x16x8xi1>
    %113 = vector.broadcast %112 : vector<1x16x8xi1> to vector<16x16x8xi1>
    %114 = vector.broadcast %cst_34 : f32 to vector<16x16x8xf32>
    %115 = arith.select %113, %111, %114 : vector<16x16x8xi1>, vector<16x16x8xf32>
    %116 = arith.maximumf %108, %115 : vector<16x16x8xf32>
    %c1_i32_35 = arith.constant 1 : i32
    %117 = tpu.dynamic_rotate %109 by %c1_i32_35 dim 0 : vector<256x8xf32>, i32 -> vector<256x8xf32>
    %118 = vector.shape_cast %117 : vector<256x8xf32> to vector<16x16x8xf32>
    %cst_36 = arith.constant 0xFF800000 : f32
    %119 = vector.shape_cast %31 : vector<1x16x8xi1> to vector<1x16x8xi1>
    %120 = vector.broadcast %119 : vector<1x16x8xi1> to vector<16x16x8xi1>
    %121 = vector.broadcast %cst_36 : f32 to vector<16x16x8xf32>
    %122 = arith.select %120, %118, %121 : vector<16x16x8xi1>, vector<16x16x8xf32>
    %123 = arith.maximumf %116, %122 : vector<16x16x8xf32>
    %c255_i32_37 = arith.constant 255 : i32
    %124 = tpu.dynamic_rotate %109 by %c255_i32_37 dim 0 : vector<256x8xf32>, i32 -> vector<256x8xf32>
    %125 = vector.shape_cast %124 : vector<256x8xf32> to vector<16x16x8xf32>
    %cst_38 = arith.constant 0xFF800000 : f32
    %126 = vector.shape_cast %40 : vector<1x16x8xi1> to vector<1x16x8xi1>
    %127 = vector.broadcast %126 : vector<1x16x8xi1> to vector<16x16x8xi1>
    %128 = vector.broadcast %cst_38 : f32 to vector<16x16x8xf32>
    %129 = arith.select %127, %125, %128 : vector<16x16x8xi1>, vector<16x16x8xf32>
    %130 = arith.maximumf %123, %129 : vector<16x16x8xf32>
    %c254_i32_39 = arith.constant 254 : i32
    %131 = tpu.dynamic_rotate %109 by %c254_i32_39 dim 0 : vector<256x8xf32>, i32 -> vector<256x8xf32>
    %132 = vector.shape_cast %131 : vector<256x8xf32> to vector<16x16x8xf32>
    %cst_40 = arith.constant 0xFF800000 : f32
    %133 = vector.shape_cast %49 : vector<1x16x8xi1> to vector<1x16x8xi1>
    %134 = vector.broadcast %133 : vector<1x16x8xi1> to vector<16x16x8xi1>
    %135 = vector.broadcast %cst_40 : f32 to vector<16x16x8xf32>
    %136 = arith.select %134, %132, %135 : vector<16x16x8xi1>, vector<16x16x8xf32>
    %137 = arith.maximumf %130, %136 : vector<16x16x8xf32>
    %138 = vector.shape_cast %137 : vector<16x16x8xf32> to vector<256x8xf32>
    %c2 = arith.constant 2 : index
    %c0_41 = arith.constant 0 : index
    %c0_42 = arith.constant 0 : index
    %139 = vector.load %arg4[%c2, %c0_41, %c0_42] : memref<4x8x16xf32, #tpu.memory_space<vmem>>, vector<1x8x16xf32>
    %140 = vector.shape_cast %139 : vector<1x8x16xf32> to vector<8x16xf32>
    %cst_43 = arith.constant dense<0.000000e+00> : vector<256x16xf32>
    %141 = tpu.matmul %138, %140, %cst_43 {dimension_numbers = #tpu.dot_dimension_numbers<[1], [0], [0], [1], [0, 0, 1, 1], [], []>} : vector<256x8xf32>, vector<8x16xf32>, vector<256x16xf32> -> vector<256x16xf32>
    %142 = arith.addf %98, %141 : vector<256x16xf32>
    %143 = tpu.concatenate %50, %137, %50 in 0 : vector<2x16x8xf32>, vector<16x16x8xf32>, vector<2x16x8xf32> -> vector<20x16x8xf32>
    %144 = vector.extract_strided_slice %143 {offsets = [0, 0, 0], sizes = [16, 16, 8], strides = [1, 1, 1]} : vector<20x16x8xf32> to vector<16x16x8xf32>
    %145 = vector.extract_strided_slice %143 {offsets = [1, 0, 0], sizes = [16, 16, 8], strides = [1, 1, 1]} : vector<20x16x8xf32> to vector<16x16x8xf32>
    %146 = arith.maximumf %144, %145 : vector<16x16x8xf32>
    %147 = vector.extract_strided_slice %143 {offsets = [2, 0, 0], sizes = [16, 16, 8], strides = [1, 1, 1]} : vector<20x16x8xf32> to vector<16x16x8xf32>
    %148 = arith.maximumf %146, %147 : vector<16x16x8xf32>
    %149 = vector.extract_strided_slice %143 {offsets = [3, 0, 0], sizes = [16, 16, 8], strides = [1, 1, 1]} : vector<20x16x8xf32> to vector<16x16x8xf32>
    %150 = arith.maximumf %148, %149 : vector<16x16x8xf32>
    %151 = vector.extract_strided_slice %143 {offsets = [4, 0, 0], sizes = [16, 16, 8], strides = [1, 1, 1]} : vector<20x16x8xf32> to vector<16x16x8xf32>
    %152 = arith.maximumf %150, %151 : vector<16x16x8xf32>
    %153 = vector.shape_cast %152 : vector<16x16x8xf32> to vector<256x8xf32>
    %c2_i32_44 = arith.constant 2 : i32
    %154 = tpu.dynamic_rotate %153 by %c2_i32_44 dim 0 : vector<256x8xf32>, i32 -> vector<256x8xf32>
    %155 = vector.shape_cast %154 : vector<256x8xf32> to vector<16x16x8xf32>
    %cst_45 = arith.constant 0xFF800000 : f32
    %156 = vector.shape_cast %22 : vector<1x16x8xi1> to vector<1x16x8xi1>
    %157 = vector.broadcast %156 : vector<1x16x8xi1> to vector<16x16x8xi1>
    %158 = vector.broadcast %cst_45 : f32 to vector<16x16x8xf32>
    %159 = arith.select %157, %155, %158 : vector<16x16x8xi1>, vector<16x16x8xf32>
    %160 = arith.maximumf %152, %159 : vector<16x16x8xf32>
    %c1_i32_46 = arith.constant 1 : i32
    %161 = tpu.dynamic_rotate %153 by %c1_i32_46 dim 0 : vector<256x8xf32>, i32 -> vector<256x8xf32>
    %162 = vector.shape_cast %161 : vector<256x8xf32> to vector<16x16x8xf32>
    %cst_47 = arith.constant 0xFF800000 : f32
    %163 = vector.shape_cast %31 : vector<1x16x8xi1> to vector<1x16x8xi1>
    %164 = vector.broadcast %163 : vector<1x16x8xi1> to vector<16x16x8xi1>
    %165 = vector.broadcast %cst_47 : f32 to vector<16x16x8xf32>
    %166 = arith.select %164, %162, %165 : vector<16x16x8xi1>, vector<16x16x8xf32>
    %167 = arith.maximumf %160, %166 : vector<16x16x8xf32>
    %c255_i32_48 = arith.constant 255 : i32
    %168 = tpu.dynamic_rotate %153 by %c255_i32_48 dim 0 : vector<256x8xf32>, i32 -> vector<256x8xf32>
    %169 = vector.shape_cast %168 : vector<256x8xf32> to vector<16x16x8xf32>
    %cst_49 = arith.constant 0xFF800000 : f32
    %170 = vector.shape_cast %40 : vector<1x16x8xi1> to vector<1x16x8xi1>
    %171 = vector.broadcast %170 : vector<1x16x8xi1> to vector<16x16x8xi1>
    %172 = vector.broadcast %cst_49 : f32 to vector<16x16x8xf32>
    %173 = arith.select %171, %169, %172 : vector<16x16x8xi1>, vector<16x16x8xf32>
    %174 = arith.maximumf %167, %173 : vector<16x16x8xf32>
    %c254_i32_50 = arith.constant 254 : i32
    %175 = tpu.dynamic_rotate %153 by %c254_i32_50 dim 0 : vector<256x8xf32>, i32 -> vector<256x8xf32>
    %176 = vector.shape_cast %175 : vector<256x8xf32> to vector<16x16x8xf32>
    %cst_51 = arith.constant 0xFF800000 : f32
    %177 = vector.shape_cast %49 : vector<1x16x8xi1> to vector<1x16x8xi1>
    %178 = vector.broadcast %177 : vector<1x16x8xi1> to vector<16x16x8xi1>
    %179 = vector.broadcast %cst_51 : f32 to vector<16x16x8xf32>
    %180 = arith.select %178, %176, %179 : vector<16x16x8xi1>, vector<16x16x8xf32>
    %181 = arith.maximumf %174, %180 : vector<16x16x8xf32>
    %182 = vector.shape_cast %181 : vector<16x16x8xf32> to vector<256x8xf32>
    %c3 = arith.constant 3 : index
    %c0_52 = arith.constant 0 : index
    %c0_53 = arith.constant 0 : index
    %183 = vector.load %arg4[%c3, %c0_52, %c0_53] : memref<4x8x16xf32, #tpu.memory_space<vmem>>, vector<1x8x16xf32>
    %184 = vector.shape_cast %183 : vector<1x8x16xf32> to vector<8x16xf32>
    %cst_54 = arith.constant dense<0.000000e+00> : vector<256x16xf32>
    %185 = tpu.matmul %182, %184, %cst_54 {dimension_numbers = #tpu.dot_dimension_numbers<[1], [0], [0], [1], [0, 0, 1, 1], [], []>} : vector<256x8xf32>, vector<8x16xf32>, vector<256x16xf32> -> vector<256x16xf32>
    %186 = arith.addf %142, %185 : vector<256x16xf32>
    %c0_55 = arith.constant 0 : index
    %c0_56 = arith.constant 0 : index
    %187 = vector.load %arg5[%c0_55, %c0_56] : memref<1x16xf32, #tpu.memory_space<vmem>>, vector<1x16xf32>
    %188 = vector.broadcast %187 : vector<1x16xf32> to vector<256x16xf32>
    %189 = arith.addf %186, %188 : vector<256x16xf32>
    %cst_57 = arith.constant 0.000000e+00 : f32
    %190 = vector.broadcast %cst_57 : f32 to vector<256x16xf32>
    %191 = arith.cmpf oge, %189, %190 : vector<256x16xf32>
    %cst_58 = arith.constant 1.000000e-01 : f32
    %192 = vector.broadcast %cst_58 : f32 to vector<256x16xf32>
    %193 = arith.mulf %192, %189 : vector<256x16xf32>
    %194 = arith.select %191, %189, %193 : vector<256x16xi1>, vector<256x16xf32>
    %195 = vector.shape_cast %194 : vector<256x16xf32> to vector<1x16x16x16xf32>
    %c0_59 = arith.constant 0 : index
    %c0_60 = arith.constant 0 : index
    %c0_61 = arith.constant 0 : index
    %c0_62 = arith.constant 0 : index
    %196 = vector.load %arg6[%c0_59, %c0_60, %c0_61, %c0_62] : memref<1x16x16x16xf32, #tpu.memory_space<vmem>>, vector<1x16x16x16xf32>
    tpu.vector_store %arg6[%c0_59, %c0_60, %c0_61, %c0_62], %195 {strides = array<i32>} : memref<1x16x16x16xf32, #tpu.memory_space<vmem>>, vector<1x16x16x16xf32>,
    return
  }
  func.func @transform_0(%arg0: i32) -> (i32, i32, i32, i32) {
    %c0_i32 = arith.constant 0 : i32
    %c0_i32_0 = arith.constant 0 : i32
    %c0_i32_1 = arith.constant 0 : i32
    %c0_i32_2 = arith.constant 0 : i32
    return %arg0, %c0_i32, %c0_i32_0, %c0_i32_1 : i32, i32, i32, i32
  }
  func.func @transform_1(%arg0: i32) -> (i32, i32) {
    %c0_i32 = arith.constant 0 : i32
    %c0_i32_0 = arith.constant 0 : i32
    %c0_i32_1 = arith.constant 0 : i32
    return %c0_i32, %c0_i32_0 : i32, i32
  }
  func.func @transform_2(%arg0: i32) -> (i32, i32) {
    %c0_i32 = arith.constant 0 : i32
    %c0_i32_0 = arith.constant 0 : i32
    %c0_i32_1 = arith.constant 0 : i32
    return %c0_i32, %c0_i32_0 : i32, i32
  }
  func.func @transform_3(%arg0: i32) -> (i32, i32, i32) {
    %c0_i32 = arith.constant 0 : i32
    %c0_i32_0 = arith.constant 0 : i32
    %c0_i32_1 = arith.constant 0 : i32
    %c0_i32_2 = arith.constant 0 : i32
    return %c0_i32, %c0_i32_0, %c0_i32_1 : i32, i32, i32
  }
  func.func @transform_4(%arg0: i32) -> (i32, i32) {
    %c0_i32 = arith.constant 0 : i32
    %c0_i32_0 = arith.constant 0 : i32
    %c0_i32_1 = arith.constant 0 : i32
    return %c0_i32, %c0_i32_0 : i32, i32
  }
  func.func @transform_5(%arg0: i32) -> (i32, i32, i32, i32) {
    %c0_i32 = arith.constant 0 : i32
    %c0_i32_0 = arith.constant 0 : i32
    %c0_i32_1 = arith.constant 0 : i32
    %c0_i32_2 = arith.constant 0 : i32
    return %arg0, %c0_i32, %c0_i32_0, %c0_i32_1 : i32, i32, i32, i32
  }
}

module attributes {stable_mosaic.version = 11 : i64} {
  func.func @_spp_kernel_single(%arg0: i32, %arg1: memref<1x16x16x16xf32, #tpu.memory_space<vmem>>, %arg2: memref<16x8xf32, #tpu.memory_space<vmem>>, %arg3: memref<1x8xf32, #tpu.memory_space<vmem>>, %arg4: memref<4x8x16xf32, #tpu.memory_space<vmem>>, %arg5: memref<1x16xf32, #tpu.memory_space<vmem>>, %arg6: memref<1x16x16x16xf32, #tpu.memory_space<vmem>>) attributes {dimension_semantics = [#tpu.dimension_semantics<parallel>], iteration_bounds = array<i64: 2>, scalar_prefetch = 0 : i64, scratch_operands = 0 : i64, tpu.core_type = #tpu.core_type<tc>, window_params = [{transform_indices = @transform_0, window_bounds = array<i64: 1, 16, 16, 16>}, {pipeline_mode = #tpu.pipeline_mode<synchronous>, transform_indices = @transform_1, window_bounds = array<i64: 16, 8>}, {pipeline_mode = #tpu.pipeline_mode<synchronous>, transform_indices = @transform_2, window_bounds = array<i64: 1, 8>}, {pipeline_mode = #tpu.pipeline_mode<synchronous>, transform_indices = @transform_3, window_bounds = array<i64: 4, 8, 16>}, {pipeline_mode = #tpu.pipeline_mode<synchronous>, transform_indices = @transform_4, window_bounds = array<i64: 1, 16>}, {transform_indices = @transform_5, window_bounds = array<i64: 1, 16, 16, 16>}]} {
    %c0 = arith.constant 0 : index
    %c0_0 = arith.constant 0 : index
    %c0_1 = arith.constant 0 : index
    %c0_2 = arith.constant 0 : index
    %0 = vector.load %arg1[%c0, %c0_0, %c0_1, %c0_2] : memref<1x16x16x16xf32, #tpu.memory_space<vmem>>, vector<1x16x16x16xf32>
    %1 = vector.shape_cast %0 : vector<1x16x16x16xf32> to vector<256x16xf32>
    %c0_3 = arith.constant 0 : index
    %c0_4 = arith.constant 0 : index
    %2 = vector.load %arg2[%c0_3, %c0_4] : memref<16x8xf32, #tpu.memory_space<vmem>>, vector<16x8xf32>
    %cst = arith.constant dense<0.000000e+00> : vector<256x8xf32>
    %3 = tpu.matmul %1, %2, %cst {dimension_numbers = #tpu.dot_dimension_numbers<[1], [0], [0], [1], [0, 0, 1, 1], [], []>} : vector<256x16xf32>, vector<16x8xf32>, vector<256x8xf32> -> vector<256x8xf32>
    %c0_5 = arith.constant 0 : index
    %c0_6 = arith.constant 0 : index
    %4 = vector.load %arg3[%c0_5, %c0_6] : memref<1x8xf32, #tpu.memory_space<vmem>>, vector<1x8xf32>
    %5 = vector.broadcast %4 : vector<1x8xf32> to vector<256x8xf32>
    %6 = arith.addf %3, %5 : vector<256x8xf32>
    %cst_7 = arith.constant 0.000000e+00 : f32
    %7 = vector.broadcast %cst_7 : f32 to vector<256x8xf32>
    %8 = arith.cmpf oge, %6, %7 : vector<256x8xf32>
    %cst_8 = arith.constant 1.000000e-01 : f32
    %9 = vector.broadcast %cst_8 : f32 to vector<256x8xf32>
    %10 = arith.mulf %9, %6 : vector<256x8xf32>
    %11 = arith.select %8, %6, %10 : vector<256x8xi1>, vector<256x8xf32>
    %12 = vector.shape_cast %11 : vector<256x8xf32> to vector<16x16x8xf32>
    %cst_9 = arith.constant 0xFF800000 : f32
    %13 = vector.broadcast %cst_9 : f32 to vector<2x16x8xf32>
    %14 = vector.shape_cast %12 : vector<16x16x8xf32> to vector<256x8xf32>
    %c0_10 = arith.constant 0 : index
    %c0_11 = arith.constant 0 : index
    %c0_12 = arith.constant 0 : index
    %15 = vector.load %arg4[%c0_10, %c0_11, %c0_12] : memref<4x8x16xf32, #tpu.memory_space<vmem>>, vector<1x8x16xf32>
    %16 = vector.shape_cast %15 : vector<1x8x16xf32> to vector<8x16xf32>
    %cst_13 = arith.constant dense<0.000000e+00> : vector<256x16xf32>
    %17 = tpu.matmul %14, %16, %cst_13 {dimension_numbers = #tpu.dot_dimension_numbers<[1], [0], [0], [1], [0, 0, 1, 1], [], []>} : vector<256x8xf32>, vector<8x16xf32>, vector<256x16xf32> -> vector<256x16xf32>
    %18 = tpu.concatenate %13, %12, %13 in 0 : vector<2x16x8xf32>, vector<16x16x8xf32>, vector<2x16x8xf32> -> vector<20x16x8xf32>
    %19 = vector.extract_strided_slice %18 {offsets = [0, 0, 0], sizes = [16, 16, 8], strides = [1, 1, 1]} : vector<20x16x8xf32> to vector<16x16x8xf32>
    %20 = vector.extract_strided_slice %18 {offsets = [1, 0, 0], sizes = [16, 16, 8], strides = [1, 1, 1]} : vector<20x16x8xf32> to vector<16x16x8xf32>
    %21 = arith.maximumf %19, %20 : vector<16x16x8xf32>
    %22 = vector.extract_strided_slice %18 {offsets = [2, 0, 0], sizes = [16, 16, 8], strides = [1, 1, 1]} : vector<20x16x8xf32> to vector<16x16x8xf32>
    %23 = arith.maximumf %21, %22 : vector<16x16x8xf32>
    %24 = vector.extract_strided_slice %18 {offsets = [3, 0, 0], sizes = [16, 16, 8], strides = [1, 1, 1]} : vector<20x16x8xf32> to vector<16x16x8xf32>
    %25 = arith.maximumf %23, %24 : vector<16x16x8xf32>
    %26 = vector.extract_strided_slice %18 {offsets = [4, 0, 0], sizes = [16, 16, 8], strides = [1, 1, 1]} : vector<20x16x8xf32> to vector<16x16x8xf32>
    %27 = arith.maximumf %25, %26 : vector<16x16x8xf32>
    %cst_14 = arith.constant 0xFF800000 : f32
    %28 = vector.broadcast %cst_14 : f32 to vector<16x2x8xf32>
    %29 = tpu.concatenate %28, %27, %28 in 1 : vector<16x2x8xf32>, vector<16x16x8xf32>, vector<16x2x8xf32> -> vector<16x20x8xf32>
    %30 = vector.extract_strided_slice %29 {offsets = [0, 0, 0], sizes = [16, 16, 8], strides = [1, 1, 1]} : vector<16x20x8xf32> to vector<16x16x8xf32>
    %31 = vector.extract_strided_slice %29 {offsets = [0, 1, 0], sizes = [16, 16, 8], strides = [1, 1, 1]} : vector<16x20x8xf32> to vector<16x16x8xf32>
    %32 = arith.maximumf %30, %31 : vector<16x16x8xf32>
    %33 = vector.extract_strided_slice %29 {offsets = [0, 2, 0], sizes = [16, 16, 8], strides = [1, 1, 1]} : vector<16x20x8xf32> to vector<16x16x8xf32>
    %34 = arith.maximumf %32, %33 : vector<16x16x8xf32>
    %35 = vector.extract_strided_slice %29 {offsets = [0, 3, 0], sizes = [16, 16, 8], strides = [1, 1, 1]} : vector<16x20x8xf32> to vector<16x16x8xf32>
    %36 = arith.maximumf %34, %35 : vector<16x16x8xf32>
    %37 = vector.extract_strided_slice %29 {offsets = [0, 4, 0], sizes = [16, 16, 8], strides = [1, 1, 1]} : vector<16x20x8xf32> to vector<16x16x8xf32>
    %38 = arith.maximumf %36, %37 : vector<16x16x8xf32>
    %39 = vector.shape_cast %38 : vector<16x16x8xf32> to vector<256x8xf32>
    %c1 = arith.constant 1 : index
    %c0_15 = arith.constant 0 : index
    %c0_16 = arith.constant 0 : index
    %40 = vector.load %arg4[%c1, %c0_15, %c0_16] : memref<4x8x16xf32, #tpu.memory_space<vmem>>, vector<1x8x16xf32>
    %41 = vector.shape_cast %40 : vector<1x8x16xf32> to vector<8x16xf32>
    %cst_17 = arith.constant dense<0.000000e+00> : vector<256x16xf32>
    %42 = tpu.matmul %39, %41, %cst_17 {dimension_numbers = #tpu.dot_dimension_numbers<[1], [0], [0], [1], [0, 0, 1, 1], [], []>} : vector<256x8xf32>, vector<8x16xf32>, vector<256x16xf32> -> vector<256x16xf32>
    %43 = arith.addf %17, %42 : vector<256x16xf32>
    %44 = tpu.concatenate %13, %38, %13 in 0 : vector<2x16x8xf32>, vector<16x16x8xf32>, vector<2x16x8xf32> -> vector<20x16x8xf32>
    %45 = vector.extract_strided_slice %44 {offsets = [0, 0, 0], sizes = [16, 16, 8], strides = [1, 1, 1]} : vector<20x16x8xf32> to vector<16x16x8xf32>
    %46 = vector.extract_strided_slice %44 {offsets = [1, 0, 0], sizes = [16, 16, 8], strides = [1, 1, 1]} : vector<20x16x8xf32> to vector<16x16x8xf32>
    %47 = arith.maximumf %45, %46 : vector<16x16x8xf32>
    %48 = vector.extract_strided_slice %44 {offsets = [2, 0, 0], sizes = [16, 16, 8], strides = [1, 1, 1]} : vector<20x16x8xf32> to vector<16x16x8xf32>
    %49 = arith.maximumf %47, %48 : vector<16x16x8xf32>
    %50 = vector.extract_strided_slice %44 {offsets = [3, 0, 0], sizes = [16, 16, 8], strides = [1, 1, 1]} : vector<20x16x8xf32> to vector<16x16x8xf32>
    %51 = arith.maximumf %49, %50 : vector<16x16x8xf32>
    %52 = vector.extract_strided_slice %44 {offsets = [4, 0, 0], sizes = [16, 16, 8], strides = [1, 1, 1]} : vector<20x16x8xf32> to vector<16x16x8xf32>
    %53 = arith.maximumf %51, %52 : vector<16x16x8xf32>
    %cst_18 = arith.constant 0xFF800000 : f32
    %54 = vector.broadcast %cst_18 : f32 to vector<16x2x8xf32>
    %55 = tpu.concatenate %54, %53, %54 in 1 : vector<16x2x8xf32>, vector<16x16x8xf32>, vector<16x2x8xf32> -> vector<16x20x8xf32>
    %56 = vector.extract_strided_slice %55 {offsets = [0, 0, 0], sizes = [16, 16, 8], strides = [1, 1, 1]} : vector<16x20x8xf32> to vector<16x16x8xf32>
    %57 = vector.extract_strided_slice %55 {offsets = [0, 1, 0], sizes = [16, 16, 8], strides = [1, 1, 1]} : vector<16x20x8xf32> to vector<16x16x8xf32>
    %58 = arith.maximumf %56, %57 : vector<16x16x8xf32>
    %59 = vector.extract_strided_slice %55 {offsets = [0, 2, 0], sizes = [16, 16, 8], strides = [1, 1, 1]} : vector<16x20x8xf32> to vector<16x16x8xf32>
    %60 = arith.maximumf %58, %59 : vector<16x16x8xf32>
    %61 = vector.extract_strided_slice %55 {offsets = [0, 3, 0], sizes = [16, 16, 8], strides = [1, 1, 1]} : vector<16x20x8xf32> to vector<16x16x8xf32>
    %62 = arith.maximumf %60, %61 : vector<16x16x8xf32>
    %63 = vector.extract_strided_slice %55 {offsets = [0, 4, 0], sizes = [16, 16, 8], strides = [1, 1, 1]} : vector<16x20x8xf32> to vector<16x16x8xf32>
    %64 = arith.maximumf %62, %63 : vector<16x16x8xf32>
    %65 = vector.shape_cast %64 : vector<16x16x8xf32> to vector<256x8xf32>
    %c2 = arith.constant 2 : index
    %c0_19 = arith.constant 0 : index
    %c0_20 = arith.constant 0 : index
    %66 = vector.load %arg4[%c2, %c0_19, %c0_20] : memref<4x8x16xf32, #tpu.memory_space<vmem>>, vector<1x8x16xf32>
    %67 = vector.shape_cast %66 : vector<1x8x16xf32> to vector<8x16xf32>
    %cst_21 = arith.constant dense<0.000000e+00> : vector<256x16xf32>
    %68 = tpu.matmul %65, %67, %cst_21 {dimension_numbers = #tpu.dot_dimension_numbers<[1], [0], [0], [1], [0, 0, 1, 1], [], []>} : vector<256x8xf32>, vector<8x16xf32>, vector<256x16xf32> -> vector<256x16xf32>
    %69 = arith.addf %43, %68 : vector<256x16xf32>
    %70 = tpu.concatenate %13, %64, %13 in 0 : vector<2x16x8xf32>, vector<16x16x8xf32>, vector<2x16x8xf32> -> vector<20x16x8xf32>
    %71 = vector.extract_strided_slice %70 {offsets = [0, 0, 0], sizes = [16, 16, 8], strides = [1, 1, 1]} : vector<20x16x8xf32> to vector<16x16x8xf32>
    %72 = vector.extract_strided_slice %70 {offsets = [1, 0, 0], sizes = [16, 16, 8], strides = [1, 1, 1]} : vector<20x16x8xf32> to vector<16x16x8xf32>
    %73 = arith.maximumf %71, %72 : vector<16x16x8xf32>
    %74 = vector.extract_strided_slice %70 {offsets = [2, 0, 0], sizes = [16, 16, 8], strides = [1, 1, 1]} : vector<20x16x8xf32> to vector<16x16x8xf32>
    %75 = arith.maximumf %73, %74 : vector<16x16x8xf32>
    %76 = vector.extract_strided_slice %70 {offsets = [3, 0, 0], sizes = [16, 16, 8], strides = [1, 1, 1]} : vector<20x16x8xf32> to vector<16x16x8xf32>
    %77 = arith.maximumf %75, %76 : vector<16x16x8xf32>
    %78 = vector.extract_strided_slice %70 {offsets = [4, 0, 0], sizes = [16, 16, 8], strides = [1, 1, 1]} : vector<20x16x8xf32> to vector<16x16x8xf32>
    %79 = arith.maximumf %77, %78 : vector<16x16x8xf32>
    %cst_22 = arith.constant 0xFF800000 : f32
    %80 = vector.broadcast %cst_22 : f32 to vector<16x2x8xf32>
    %81 = tpu.concatenate %80, %79, %80 in 1 : vector<16x2x8xf32>, vector<16x16x8xf32>, vector<16x2x8xf32> -> vector<16x20x8xf32>
    %82 = vector.extract_strided_slice %81 {offsets = [0, 0, 0], sizes = [16, 16, 8], strides = [1, 1, 1]} : vector<16x20x8xf32> to vector<16x16x8xf32>
    %83 = vector.extract_strided_slice %81 {offsets = [0, 1, 0], sizes = [16, 16, 8], strides = [1, 1, 1]} : vector<16x20x8xf32> to vector<16x16x8xf32>
    %84 = arith.maximumf %82, %83 : vector<16x16x8xf32>
    %85 = vector.extract_strided_slice %81 {offsets = [0, 2, 0], sizes = [16, 16, 8], strides = [1, 1, 1]} : vector<16x20x8xf32> to vector<16x16x8xf32>
    %86 = arith.maximumf %84, %85 : vector<16x16x8xf32>
    %87 = vector.extract_strided_slice %81 {offsets = [0, 3, 0], sizes = [16, 16, 8], strides = [1, 1, 1]} : vector<16x20x8xf32> to vector<16x16x8xf32>
    %88 = arith.maximumf %86, %87 : vector<16x16x8xf32>
    %89 = vector.extract_strided_slice %81 {offsets = [0, 4, 0], sizes = [16, 16, 8], strides = [1, 1, 1]} : vector<16x20x8xf32> to vector<16x16x8xf32>
    %90 = arith.maximumf %88, %89 : vector<16x16x8xf32>
    %91 = vector.shape_cast %90 : vector<16x16x8xf32> to vector<256x8xf32>
    %c3 = arith.constant 3 : index
    %c0_23 = arith.constant 0 : index
    %c0_24 = arith.constant 0 : index
    %92 = vector.load %arg4[%c3, %c0_23, %c0_24] : memref<4x8x16xf32, #tpu.memory_space<vmem>>, vector<1x8x16xf32>
    %93 = vector.shape_cast %92 : vector<1x8x16xf32> to vector<8x16xf32>
    %cst_25 = arith.constant dense<0.000000e+00> : vector<256x16xf32>
    %94 = tpu.matmul %91, %93, %cst_25 {dimension_numbers = #tpu.dot_dimension_numbers<[1], [0], [0], [1], [0, 0, 1, 1], [], []>} : vector<256x8xf32>, vector<8x16xf32>, vector<256x16xf32> -> vector<256x16xf32>
    %95 = arith.addf %69, %94 : vector<256x16xf32>
    %c0_26 = arith.constant 0 : index
    %c0_27 = arith.constant 0 : index
    %96 = vector.load %arg5[%c0_26, %c0_27] : memref<1x16xf32, #tpu.memory_space<vmem>>, vector<1x16xf32>
    %97 = vector.broadcast %96 : vector<1x16xf32> to vector<256x16xf32>
    %98 = arith.addf %95, %97 : vector<256x16xf32>
    %cst_28 = arith.constant 0.000000e+00 : f32
    %99 = vector.broadcast %cst_28 : f32 to vector<256x16xf32>
    %100 = arith.cmpf oge, %98, %99 : vector<256x16xf32>
    %cst_29 = arith.constant 1.000000e-01 : f32
    %101 = vector.broadcast %cst_29 : f32 to vector<256x16xf32>
    %102 = arith.mulf %101, %98 : vector<256x16xf32>
    %103 = arith.select %100, %98, %102 : vector<256x16xi1>, vector<256x16xf32>
    %104 = vector.shape_cast %103 : vector<256x16xf32> to vector<1x16x16x16xf32>
    %c0_30 = arith.constant 0 : index
    %c0_31 = arith.constant 0 : index
    %c0_32 = arith.constant 0 : index
    %c0_33 = arith.constant 0 : index
    %105 = vector.load %arg6[%c0_30, %c0_31, %c0_32, %c0_33] : memref<1x16x16x16xf32, #tpu.memory_space<vmem>>, vector<1x16x16x16xf32>
    tpu.vector_store %arg6[%c0_30, %c0_31, %c0_32, %c0_33], %104 {strides = array<i32>} : memref<1x16x16x16xf32, #tpu.memory_space<vmem>>, vector<1x16x16x16xf32>,
    return
  }
  func.func @transform_0(%arg0: i32) -> (i32, i32, i32, i32) {
    %c0_i32 = arith.constant 0 : i32
    %c0_i32_0 = arith.constant 0 : i32
    %c0_i32_1 = arith.constant 0 : i32
    %c0_i32_2 = arith.constant 0 : i32
    return %arg0, %c0_i32, %c0_i32_0, %c0_i32_1 : i32, i32, i32, i32
  }
  func.func @transform_1(%arg0: i32) -> (i32, i32) {
    %c0_i32 = arith.constant 0 : i32
    %c0_i32_0 = arith.constant 0 : i32
    %c0_i32_1 = arith.constant 0 : i32
    return %c0_i32, %c0_i32_0 : i32, i32
  }
  func.func @transform_2(%arg0: i32) -> (i32, i32) {
    %c0_i32 = arith.constant 0 : i32
    %c0_i32_0 = arith.constant 0 : i32
    %c0_i32_1 = arith.constant 0 : i32
    return %c0_i32, %c0_i32_0 : i32, i32
  }
  func.func @transform_3(%arg0: i32) -> (i32, i32, i32) {
    %c0_i32 = arith.constant 0 : i32
    %c0_i32_0 = arith.constant 0 : i32
    %c0_i32_1 = arith.constant 0 : i32
    %c0_i32_2 = arith.constant 0 : i32
    return %c0_i32, %c0_i32_0, %c0_i32_1 : i32, i32, i32
  }
  func.func @transform_4(%arg0: i32) -> (i32, i32) {
    %c0_i32 = arith.constant 0 : i32
    %c0_i32_0 = arith.constant 0 : i32
    %c0_i32_1 = arith.constant 0 : i32
    return %c0_i32, %c0_i32_0 : i32, i32
  }
  func.func @transform_5(%arg0: i32) -> (i32, i32, i32, i32) {
    %c0_i32 = arith.constant 0 : i32
    %c0_i32_0 = arith.constant 0 : i32
    %c0_i32_1 = arith.constant 0 : i32
    %c0_i32_2 = arith.constant 0 : i32
    return %arg0, %c0_i32, %c0_i32_0, %c0_i32_1 : i32, i32, i32, i32
  }
}

</mosaic_0001>

<bundles_post_ra>
// kernel: tpu_custom_call.1
= control target key start
LH: loop header
LB: loop body
LE: loop exit
PB: predicated region body
PF: predicated region fallthrough
CT: control target
= control target key end

     0   :  { %10 = vsyncpa [#allocation3], 0  ;;  %s8575_s0 = inlined_call_operand.hbm [shape: f32[2,16,16,16], index: 0, kind: input, shape index: {}]   ;;  %s8576_s1 = inlined_call_operand.vmem [shape: f32[16,8], index: 1, kind: input, shape index: {}]   ;;  %s8577_s2 = inlined_call_operand.vmem [shape: f32[1,8], index: 2, kind: input, shape index: {}]   ;;  %s8578_s3 = inlined_call_operand.vmem [shape: f32[4,8,16], index: 3, kind: input, shape index: {}]   ;;  %s8579_s4 = inlined_call_operand.vmem [shape: f32[1,16], index: 4, kind: input, shape index: {}]   ;;  %s8580_s5 = inlined_call_operand.hbm [shape: f32[2,16,16,16], index: 5, kind: output, shape index: {}]  }
   0x1   :  { %12 = vsyncpa [#allocation3 + $0x1], 0 }
   0x2   :  { %13 = vsyncpa [#allocation4], 0 }
   0x3   :  { %15 = vsyncpa [#allocation4 + $0x1], 0  ;;  %s5106_s18 = smov 0   ;;  %s5108_s19 = smov 0  }
   0x4   :  { %s5110_s20 = smov 0   ;;  %s5112_s21 = smov 0  }
   0x5 LB: > { %s5127_s22 = sadd.s32 4294967295, %s5068_s21   ;;  %s4221_s23 = sadd.s32 4294967294, %s5068_s21   ;;  %s5068_s21 = sphi %s5112_s21, %s8893_s21   ;;  %s5064_s20 = sphi %s5110_s20, %s8892_s20   ;;  %s5060_s19 = sphi %s5108_s19, %s8891_s19   ;;  %s5056_s18 = sphi %s5106_s18, %s8890_s18  }
   0x6   : > { %s5131_s24 = sadd.s32 1, %s5068_s21   ;;  %s28_s25 = sadd.s32 1, %s5064_s20 }
   0x7   : > { %s25_s26 = ssub.s32 %s5068_s21, %s5131_s24  ;;  %p35_p0 = scmp.ne.s32.totalorder %s5064_s20, %s5060_s19 }
   0x8   : > { %p26_p1 = scmp.eq.s32.totalorder %s25_s26, 0  ;;  %p36_p2 = scmp.eq.s32.totalorder %s5068_s21, 0 }
   0x9   : > { %p41_p3 = scmp.ne.s32.totalorder %s5060_s19, %s5056_s18  ;;  %p42_p4 = scmp.eq.s32.totalorder %s5127_s22, 0 }
   0xa   : > { %s5143_s27 = scalar_select %p26_p1, %s5064_s20, %s28_s25  }
   0xb   : > { %p5145_p5 = por %p36_p2, %p35_p0  ;;  %p5149_p6 = por %p42_p4, %p41_p3 }
   0xc   : > { %p149_p7 = scmp.eq.s32.totalorder %s5127_s22, 1  ;;  %p155_p8 = scmp.eq.s32.totalorder %s4221_s23, 1 }
   0xd   : > { %p4934_p10 = scmp.lt.s32.totalorder %s5068_s21, 2  ;;  %s187_s7 = sand.u32 1, %s5064_s20  }
   0xe   : > { %p5156_p11 = por %p149_p7, %p35_p0  ;;  %p5160_p12 = por %p155_p8, %p41_p3 }
   0xf   : > { %s4400_s8 = sshll.u32 %s5068_s21, 12  ;;  %s4224_s9 = sshll.u32 %s187_s7, 8 }
  0x10   : > { %s8644_s30 = scalar_select %p5156_p11, 1, 0 }
  0x11   : > { %s8645_s6 = scalar_select %p5160_p12, 1, 0 }
  0x12   : > { %s5169_s12 = scalar_lea.hbm %s8575_s0, %s4400_s8  ;;  %s191_s13 = scalar_lea.vmem [#allocation2], %s4224_s9 }
  0x13   : > { %s198_s14 = sshll.u32 %s191_s13, 4  ;;  %p5173_p13 = pnand %p4934_p10, %p5145_p5  ;;  %s5177_s14 = int_to_ptr.vmem [resolvable:$true] %s198_s14 }
  0x14   : > { %s5179_s16 = scalar_lea.sflag [#allocation3], %s187_s7  ;;  %s4972_s17 = scalar_lea.hbm %s5169_s12, 4096 }
  0x15   : > { %p4973_p0 = scmp.ne.s32.totalorder %s5169_s12, %s4972_s17  ;;  %p4974_p1 = pneg %p5173_p13 }
  0x16   : > { %s4977_s26 = scalar_lea.hbm %s8575_s0, 8192  ;;  %p4978_p4 = scmp.lt.u32.totalorder %s5169_s12, %s8575_s0 }
  0x17   : > { %p4975_p2 = pnand %p4974_p1, %p4973_p0  ;;  %p4979_p5 = scmp.lt.u32.totalorder %s4977_s26, %s4972_s17 }
  0x18   : > { %p4981_p8 = scmp.lt.u32.totalorder %s4972_s17, %s5169_s12 }
  0x19   : > { %p4976_p3 = pneg %p4975_p2  ;;  %p4980_p7 = por %p4979_p5, %p4978_p4 }
  0x1b   : > { %p4982_p10 = por %p4981_p8, %p4980_p7 }
  0x1d   : > { %p4983_p9 = pnand %p4982_p10, %p4976_p3 }
  0x1f   : > { %4986 = shalt.err (!%p4983_p9)
}
  0x20   : > { %s4987_s7 = scalar_lea.vmem %s5177_s14, 4096  ;;  %s5070_s9 = smov [#allocation2]  }
  0x21   : > { %p4988_p0 = scmp.ne.s32.totalorder %s5177_s14, %s4987_s7  ;;  %s4992_s10 = sshll.u32 %s5070_s9, 4  ;;  %s4993_s10 = int_to_ptr.vmem [resolvable:$false] %s4992_s10 }
  0x22   : > { %s4994_s11 = scalar_lea.vmem %s4993_s10, 8192  ;;  %p4995_p11 = scmp.lt.s32.totalorder %s5177_s14, %s4993_s10 }
  0x23   : > { %p4990_p2 = pnand %p4988_p0, %p4974_p1  ;;  %p4996_p4 = scmp.lt.s32.totalorder %s4994_s11, %s4987_s7 }
  0x25   : > { %p4991_p12 = pneg %p4990_p2  ;;  %p4997_p5 = por %p4996_p4, %p4995_p11 }
  0x27   : > { %p4998_p7 = pnand %p4997_p5, %p4991_p12 }
  0x29   : > { %5001 = shalt.err (!%p4998_p7)
}
  0x2a   : > { %s5071_s13 = smov 128   ;;  %s5072_s17 = smov 8  }
  0x2b   : > { %4929 = dma.hbm_to_vmem [thread:$0]  (!%p5173_p13), %s5169_s12, 4096, %s5177_s14, %s5179_s16, %s5071_s13, %s5071_s13, %s5072_s17  }
  0x2c   : > { %p4227_p9 = scmp.ge.s32.totalorder %s5068_s21, 1  ;;  %p206_p1 = scmp.lt.s32.totalorder %s5068_s21, 3 }
  0x2e   : > { %p207_p3 = pnand %p4227_p9, %p206_p1 }
  0x30   : > { %210 = sbr.rel (%p207_p3) target bundleno = 1003 (0x3eb), region = 40 }
  0x37   : > { %s5210_s23 = sand.u32 1, %s5060_s19  }
  0x38   : > { %s4228_s25 = sshll.u32 %s5210_s23, 8  ;;  %s213_s26 = scalar_lea.sflag [#allocation3], %s5210_s23 }
  0x39   : > { %s5216_s28 = scalar_lea.vmem [#allocation2], %s4228_s25 }
  0x3a   : > { %5047 = dma.done.wait (%p5149_p6), %s213_s26, 4096  }
  0x3b   : > { %5049 = vsyncadd (%p5149_p6), %s213_s26, 4294963200  ;;  %vm284_vm0 = vcmask 130048   ;;  %v275_v0 = vld [vmem:[%s8576_s1] sm:$0xff]  ;;  %v276_v1 = vld [vmem:[%s8576_s1 + $0x8] sm:$0xff]  ;;  %v702_v38 = vlaneseq  ;;  %vm1378_vm14 = vcmask 64512   ;;  %s8405_s15 = scalar_lea.vmem [#allocation5], %s4228_s25 }
  0x3c   : > { %v243_v2 = vld [vmem:[%s5216_s28] sm:$0xff]  ;;  %v4820_v3 = vpack.c.bf16 %v276_v1, %v275_v0  ;;  %v244_v4 = vld [vmem:[%s5216_s28 + $0x8] sm:$0xff]  ;;  %v245_v5 = vld [vmem:[%s5216_s28 + $0x10] sm:$0xff]  ;;  %s4401_s25 = sshll.u32 %s5127_s22, 12  ;;  %s4148_s16 = sshll.u32 %s8405_s15, 4  ;;  %s8527_s16 = int_to_ptr.vmem [resolvable:$true] %s4148_s16 }
  0x3d   : > { %4572 = vmatprep.mubr.msk.f32.mxu0 %vm284_vm0, %v243_v2  ;;  %v246_v6 = vld [vmem:[%s5216_s28 + $0x18] sm:$0xff]  ;;  %v247_v7 = vld [vmem:[%s5216_s28 + $0x20] sm:$0xff]  ;;  %v248_v8 = vld [vmem:[%s5216_s28 + $0x28] sm:$0xff]  ;;  %v5314_v42 = vshrl.u32 %v702_v38, 7  ;;  %s8525_s7 = scalar_lea.hbm %s8580_s5, %s4401_s25  ;;  %s4135_s22 = scalar_lea.sflag [#allocation4], %s5210_s23 }
  0x3e   : > { %4821 = vmatprep.subr.bf16.mxu0 %v4820_v3  ;;  %v249_v9 = vld [vmem:[%s5216_s28 + $0x30] sm:$0xff]  ;;  %v250_v10 = vld [vmem:[%s5216_s28 + $0x38] sm:$0xff]  ;;  %v251_v11 = vld [vmem:[%s5216_s28 + $0x40] sm:$0xff]  ;;  %s5002_s9 = scalar_lea.vmem %s8527_s16, 4096  ;;  %p8887_p11 = scmp.ne.s32.totalorder %s8644_s30, 0 }
  0x3f   : > { %4823 = vmatpush3.bf16.msra.mxu0 %v4820_v3  ;;  %v252_v12 = vld [vmem:[%s5216_s28 + $0x48] sm:$0xff]  ;;  %v253_v13 = vld [vmem:[%s5216_s28 + $0x50] sm:$0xff]  ;;  %v254_v14 = vld [vmem:[%s5216_s28 + $0x58] sm:$0xff]  ;;  %v704_v49 = vadd.s32 8, %v5314_v42  ;;  %v5328_v60 = vadd.s32 4294967294, %v5314_v42  ;;  %v5331_v61 = vadd.s32 4294967295, %v5314_v42  ;;  %p5003_p6 = scmp.ne.s32.totalorder %s8527_s16, %s5002_s9 }
  0x40   : > { %v255_v15 = vld [vmem:[%s5216_s28 + $0x60] sm:$0xff]  ;;  %v256_v16 = vld [vmem:[%s5216_s28 + $0x68] sm:$0xff]  ;;  %v257_v17 = vld [vmem:[%s5216_s28 + $0x70] sm:$0xff]  ;;  %vm1142_vm11 = vcmp.lt.s32.totalorder %v5314_v42, 7  ;;  %s5073_s10 = smov [#allocation5]  }
  0x41   : > { %v258_v18 = vld [vmem:[%s5216_s28 + $0x78] sm:$0xff]  ;;  %v259_v19 = vld [vmem:[%s5216_s28 + $0x80] sm:$0xff]  ;;  %v260_v20 = vld [vmem:[%s5216_s28 + $0x88] sm:$0xff]  ;;  %v5336_v0 = vadd.s32 1, %v704_v49  ;;  %p5004_p12 = pnand %p5003_p6, %p8887_p11  ;;  %s5006_s11 = sshll.u32 %s5073_s10, 4  ;;  %s5007_s11 = int_to_ptr.vmem [resolvable:$false] %s5006_s11 }
  0x42   : > { %4573 = vmatmul.mubr.msk.f32.vlgmr.msra.gmra.mrb[0].mxu0 %vm284_vm0, %v244_v4  ;;  %v261_v21 = vld [vmem:[%s5216_s28 + $0x90] sm:$0xff]  ;;  %v262_v22 = vld [vmem:[%s5216_s28 + $0x98] sm:$0xff]  ;;  %v263_v23 = vld [vmem:[%s5216_s28 + $0xa0] sm:$0xff]  ;;  %s5008_s13 = scalar_lea.vmem %s5007_s11, 8192  ;;  %p5009_p8 = scmp.lt.s32.totalorder %s8527_s16, %s5007_s11 }
  0x43   : > { %4575 = vmatprep.mubr.msk.f32.mxu0 %vm284_vm0, %v245_v5  ;;  %v264_v24 = vld [vmem:[%s5216_s28 + $0xa8] sm:$0xff]  ;;  %v265_v25 = vld [vmem:[%s5216_s28 + $0xb0] sm:$0xff]  ;;  %v266_v26 = vld [vmem:[%s5216_s28 + $0xb8] sm:$0xff]  ;;  %p5005_p13 = pneg %p5004_p12  ;;  %p5010_p10 = scmp.lt.s32.totalorder %s5008_s13, %s5002_s9 }
  0x44   : > { %v267_v27 = vld [vmem:[%s5216_s28 + $0xc0] sm:$0xff]  ;;  %v268_v28 = vld [vmem:[%s5216_s28 + $0xc8] sm:$0xff]  ;;  %v269_v29 = vld [vmem:[%s5216_s28 + $0xd0] sm:$0xff] }
  0x45   : > { %v270_v30 = vld [vmem:[%s5216_s28 + $0xd8] sm:$0xff]  ;;  %v271_v31 = vld [vmem:[%s5216_s28 + $0xe0] sm:$0xff]  ;;  %v272_v32 = vld [vmem:[%s5216_s28 + $0xe8] sm:$0xff]  ;;  %p5011_p0 = por %p5010_p10, %p5009_p8 }
  0x46   : > { %4576 = vmatmul.mubr.msk.f32.gmra.mrb[2].mxu0 %vm284_vm0, %v246_v6  ;;  %v273_v33 = vld [vmem:[%s5216_s28 + $0xf0] sm:$0xff]  ;;  %v274_v34 = vld [vmem:[%s5216_s28 + $0xf8] sm:$0xff]  ;;  %v5295_v35 = vld [vmem:[%s8578_s3] sm:$0xff] }
  0x47   : > { %4578 = vmatprep.mubr.msk.f32.mxu0 %vm284_vm0, %v247_v7  ;;  %4824 = vmatprep.subr.mxu1 %v5295_v35  ;;  %v5302_v36 = vld [vmem:[%s8578_s3 + $0x10] sm:$0xff]  ;;  %v4263_v37 = vld [vmem:[%s8578_s3 + $0x8] sm:$0xff]  ;;  %v5312_v40 = vld [vmem:[%s8577_s2] ss:$0 sm:$0xff]  ;;  %p5012_p2 = pnand %p5011_p0, %p5005_p13 }
  0x48   : > { %4825 = vmatpush3.msra.mxu1 %v5295_v35  ;;  %4620 = vmatprep.subr.mxu0 %v4263_v37 }
  0x49   : > { %4720 = vmatprep.subr.mxu1 %v5302_v36  ;;  %4621 = vmatpush3.msra.mxu0 %v4263_v37 }
  0x4a   : > { %4579 = vmatmul.mubr.msk.f32.gmra.mrb[4].mxu0 %vm284_vm0, %v248_v8  ;;  %4670 = vmatprep.subr.mxu0 %v5295_v35 }
  0x4b   : > { %4581 = vmatprep.mubr.msk.f32.mxu0 %vm284_vm0, %v249_v9  ;;  %v5347_v9 = vadd.s32 2, %v704_v49 }
  0x4e   : > { %4582 = vmatmul.mubr.msk.f32.gmra.mrb[6].mxu0 %vm284_vm0, %v250_v10 }
  0x4f   : > { %4584 = vmatprep.mubr.msk.f32.mxu0 %vm284_vm0, %v251_v11 }
  0x52   : > { %4585 = vmatmul.mubr.msk.f32.gmra.mrb[8].mxu0 %vm284_vm0, %v252_v12 }
  0x53   : > { %4587 = vmatprep.mubr.msk.f32.mxu0 %vm284_vm0, %v253_v13 }
  0x56   : > { %4588 = vmatmul.mubr.msk.f32.gmra.mrb[10].mxu0 %vm284_vm0, %v254_v14 }
  0x57   : > { %4590 = vmatprep.mubr.msk.f32.mxu0 %vm284_vm0, %v255_v15 }
  0x5a   : > { %4591 = vmatmul.mubr.msk.f32.gmra.mrb[12].mxu0 %vm284_vm0, %v256_v16 }
  0x5b   : > { %4593 = vmatprep.mubr.msk.f32.mxu0 %vm284_vm0, %v257_v17 }
  0x5e   : > { %4594 = vmatmul.mubr.msk.f32.gmra.mrb[14].mxu0 %vm284_vm0, %v258_v18 }
  0x5f   : > { %4596 = vmatprep.mubr.msk.f32.mxu0 %vm284_vm0, %v259_v19 }
  0x62   : > { %4597 = vmatmul.mubr.msk.f32.gmra.mrb[16].mxu0 %vm284_vm0, %v260_v20 }
  0x63   : > { %4599 = vmatprep.mubr.msk.f32.mxu0 %vm284_vm0, %v261_v21 }
  0x66   : > { %4600 = vmatmul.mubr.msk.f32.gmra.mrb[18].mxu0 %vm284_vm0, %v262_v22 }
  0x67   : > { %4602 = vmatprep.mubr.msk.f32.mxu0 %vm284_vm0, %v263_v23 }
  0x6a   : > { %4603 = vmatmul.mubr.msk.f32.gmra.mrb[20].mxu0 %vm284_vm0, %v264_v24 }
  0x6b   : > { %4605 = vmatprep.mubr.msk.f32.mxu0 %vm284_vm0, %v265_v25 }
  0x6e   : > { %4606 = vmatmul.mubr.msk.f32.gmra.mrb[22].mxu0 %vm284_vm0, %v266_v26 }
  0x6f   : > { %4608 = vmatprep.mubr.msk.f32.mxu0 %vm284_vm0, %v267_v27 }
  0x72   : > { %4609 = vmatmul.mubr.msk.f32.gmra.mrb[24].mxu0 %vm284_vm0, %v268_v28 }
  0x73   : > { %4611 = vmatprep.mubr.msk.f32.mxu0 %vm284_vm0, %v269_v29 }
  0x76   : > { %4612 = vmatmul.mubr.msk.f32.gmra.mrb[26].mxu0 %vm284_vm0, %v270_v30 }
  0x77   : > { %4614 = vmatprep.mubr.msk.f32.mxu0 %vm284_vm0, %v271_v31 }
  0x7a   : > { %4615 = vmatmul.mubr.msk.f32.gmra.mrb[28].mxu0 %vm284_vm0, %v272_v32 }
  0x7b   : > { %4617 = vmatprep.mubr.msk.f32.mxu0 %vm284_vm0, %v273_v33 }
  0x7e   : > { %4618 = vmatmul.mubr.msk.f32.gmra.mrb[30].mxu0 %vm284_vm0, %v274_v34 }
 0x115   : > { %v4574_v39 = vpop.f32.mrb[0].mxu0 }
 0x116   : > { %v447_v41 = vpop.f32.mrb[1].mxu0  ;;  %v453_v43 = vadd.f32 %v4574_v39, %v5312_v40 }
 0x117   : > { %v448_v44 = vadd.f32 %v5312_v40, %v447_v41 }
 0x118   : > { %vm607_vm1 = vcmp.ge.f32.partialorder %v453_v43, 0.0  ;;  %v639_v50 = vmul.f32 0.1, %v453_v43 }
 0x119   : > { %v4577_v45 = vpop.f32.mrb[2].mxu0  ;;  %v638_v52 = vmul.f32 0.1, %v448_v44  ;;  %vm606_vm4 = vcmp.ge.f32.partialorder %v448_v44, 0.0 }
 0x11a   : > { %v463_v46 = vadd.f32 %v4577_v45, %v5312_v40  ;;  %v457_v47 = vpop.f32.mrb[3].mxu0  ;;  %v5334_v62 = vsel %vm607_vm1, %v453_v43, %v639_v50 }
 0x11b   : > { %v458_v48 = vadd.f32 %v5312_v40, %v457_v47  ;;  %8649 = vst [vmem:[#allocation10_spill] sm:$0xff] %v5334_v62  ;;  %v5338_v1 = vsel %vm606_vm4, %v448_v44, %v638_v52  ;;  %vm707_vm4 = vcmp.ge.s32.totalorder %v5328_v60, 0 }
 0x11c   : > { %vm609_vm2 = vcmp.ge.f32.partialorder %v463_v46, 0.0  ;;  %v641_v51 = vmul.f32 0.1, %v463_v46  ;;  %8650 = vst [vmem:[#allocation11_spill] sm:$0xff] %v5338_v1 }
 0x11d   : > { %vm608_vm3 = vcmp.ge.f32.partialorder %v458_v48, 0.0  ;;  %v640_v53 = vmul.f32 0.1, %v458_v48  ;;  %v4580_v54 = vpop.f32.mrb[4].mxu0 }
 0x11e   : > { %v5321_v55 = vsel %vm609_vm2, %v463_v46, %v641_v51  ;;  %v473_v56 = vadd.f32 %v4580_v54, %v5312_v40  ;;  %v467_v57 = vpop.f32.mrb[5].mxu0  ;;  %vm876_vm2 = vcmp.lt.s32.totalorder %v5314_v42, 2 }
 0x11f   : > { %8647 = vst [vmem:[#allocation8_spill] sm:$0xff] %v5321_v55  ;;  %v5324_v58 = vsel %vm608_vm3, %v458_v48, %v640_v53  ;;  %v468_v59 = vadd.f32 %v5312_v40, %v467_v57  ;;  %v739_v2 = vmax.f32 %v5334_v62, %v5321_v55  ;;  %vm1009_vm3 = vcmp.lt.s32.totalorder %v5314_v42, 1 }
 0x120   : > { %8648 = vst [vmem:[#allocation9_spill] sm:$0xff] %v5324_v58  ;;  %vm611_vm5 = vcmp.ge.f32.partialorder %v473_v56, 0.0  ;;  %v643_v63 = vmul.f32 0.1, %v473_v56  ;;  %v738_v5 = vmax.f32 %v5338_v1, %v5324_v58 }
 0x121   : > { %vm610_vm6 = vcmp.ge.f32.partialorder %v468_v59, 0.0  ;;  %v642_v3 = vmul.f32 0.1, %v468_v59  ;;  %v4583_v4 = vpop.f32.mrb[6].mxu0 }
 0x122   : > { %v5344_v6 = vsel %vm611_vm5, %v473_v56, %v643_v63  ;;  %v483_v7 = vadd.f32 %v4583_v4, %v5312_v40  ;;  %v477_v8 = vpop.f32.mrb[7].mxu0  ;;  %vm715_vm5 = vcmp.ge.s32.totalorder %v5331_v61, 0 }
 0x123   : > { %8651 = vst [vmem:[#allocation12_spill] sm:$0xff] %v5344_v6  ;;  %v741_v10 = vmax.f32 %v5321_v55, %v5344_v6  ;;  %v5352_v11 = vmax.f32 %v739_v2, %v5344_v6  ;;  %v5354_v12 = vsel %vm610_vm6, %v468_v59, %v642_v3  ;;  %v478_v13 = vadd.f32 %v5312_v40, %v477_v8 }
 0x124   : > { %8652 = vst [vmem:[#allocation13_spill] sm:$0xff] %v5354_v12  ;;  %v740_v14 = vmax.f32 %v5324_v58, %v5354_v12  ;;  %v5360_v15 = vmax.f32 %v738_v5, %v5354_v12  ;;  %vm613_vm7 = vcmp.ge.f32.partialorder %v483_v7, 0.0  ;;  %v645_v16 = vmul.f32 0.1, %v483_v7 }
 0x125   : > { %vm612_vm8 = vcmp.ge.f32.partialorder %v478_v13, 0.0  ;;  %v644_v18 = vmul.f32 0.1, %v478_v13  ;;  %v4586_v19 = vpop.f32.mrb[8].mxu0  ;;  %v8589_v20 = vrot.slane %v5352_v11, 1  ;;  %vm1275_vm6 = vcmp.lt.s32.totalorder %v5314_v42, 6 }
 0x126   : > { %v5364_v21 = vsel %vm613_vm7, %v483_v7, %v645_v16  ;;  %v493_v22 = vadd.f32 %v4586_v19, %v5312_v40  ;;  %v487_v23 = vpop.f32.mrb[9].mxu0 }
 0x127   : > { %8653 = vst [vmem:[#allocation14_spill] sm:$0xff] %v5364_v21  ;;  %v743_v26 = vmax.f32 %v5344_v6, %v5364_v21  ;;  %v769_v27 = vmax.f32 %v741_v10, %v5364_v21  ;;  %v5374_v28 = vmax.f32 %v5352_v11, %v5364_v21  ;;  %v5376_v29 = vsel %vm612_vm8, %v478_v13, %v644_v18 }
 0x128   : > { %8654 = vst [vmem:[#allocation15_spill] sm:$0xff] %v5376_v29  ;;  %v742_v30 = vmax.f32 %v5354_v12, %v5376_v29  ;;  %v768_v31 = vmax.f32 %v740_v14, %v5376_v29  ;;  %v5383_v32 = vmax.f32 %v5360_v15, %v5376_v29  ;;  %vm615_vm9 = vcmp.ge.f32.partialorder %v493_v22, 0.0 }
 0x129   : > { %v647_v33 = vmul.f32 0.1, %v493_v22  ;;  %v488_v34 = vadd.f32 %v5312_v40, %v487_v23  ;;  %v4589_v37 = vpop.f32.mrb[10].mxu0 }
 0x12a   : > { %v503_v41 = vadd.f32 %v4589_v37, %v5312_v40  ;;  %v497_v43 = vpop.f32.mrb[11].mxu0  ;;  %v8582_v44 = vrot.slane %v5383_v32, 1 }
 0x12b   : > { %v5392_v47 = vsel %vm615_vm9, %v493_v22, %v647_v33  ;;  %vm614_vm10 = vcmp.ge.f32.partialorder %v488_v34, 0.0  ;;  %v646_v48 = vmul.f32 0.1, %v488_v34  ;;  %v498_v49 = vadd.f32 %v5312_v40, %v497_v43 }
 0x12c   : > { %8655 = vst [vmem:[#allocation16_spill] sm:$0xff] %v5392_v47  ;;  %v745_v50 = vmax.f32 %v5364_v21, %v5392_v47  ;;  %v771_v51 = vmax.f32 %v743_v26, %v5392_v47  ;;  %v797_v52 = vmax.f32 %v769_v27, %v5392_v47  ;;  %v5401_v53 = vmax.f32 %v5374_v28, %v5392_v47 }
 0x12d   : > { %v5404_v54 = vsel %vm614_vm10, %v488_v34, %v646_v48  ;;  %vm617_vm12 = vcmp.ge.f32.partialorder %v503_v41, 0.0  ;;  %v649_v56 = vmul.f32 0.1, %v503_v41  ;;  %vm616_vm13 = vcmp.ge.f32.partialorder %v498_v49, 0.0  ;;  %v4592_v57 = vpop.f32.mrb[12].mxu0 }
 0x12e   : > { %8656 = vst [vmem:[#allocation17_spill] sm:$0xff] %v5404_v54  ;;  %v744_v59 = vmax.f32 %v5376_v29, %v5404_v54  ;;  %v770_v63 = vmax.f32 %v742_v30, %v5404_v54  ;;  %v796_v2 = vmax.f32 %v768_v31, %v5404_v54  ;;  %v5412_v3 = vmax.f32 %v5383_v32, %v5404_v54  ;;  %v507_v4 = vpop.f32.mrb[13].mxu0 }
 0x12f   : > { %v5414_v5 = vsel %vm617_vm12, %v503_v41, %v649_v56  ;;  %v648_v7 = vmul.f32 0.1, %v498_v49  ;;  %v513_v8 = vadd.f32 %v4592_v57, %v5312_v40  ;;  %v508_v10 = vadd.f32 %v5312_v40, %v507_v4 }
 0x130   : > { %8657 = vst [vmem:[#allocation18_spill] sm:$0xff] %v5414_v5  ;;  %v747_v13 = vmax.f32 %v5392_v47, %v5414_v5  ;;  %v5421_v14 = vmax.f32 %v745_v50, %v5414_v5  ;;  %v799_v16 = vmax.f32 %v771_v51, %v5414_v5  ;;  %v5425_v18 = vmax.f32 %v797_v52, %v5414_v5 }
 0x131   : > { %v5428_v19 = vsel %vm616_vm13, %v498_v49, %v648_v7  ;;  %vm619_vm15 = vcmp.ge.f32.partialorder %v513_v8, 0.0  ;;  %v651_v22 = vmul.f32 0.1, %v513_v8  ;;  %vm618_vm1 = vcmp.ge.f32.partialorder %v508_v10, 0.0  ;;  %v4595_v23 = vpop.f32.mrb[14].mxu0 }
 0x132   : > { %8658 = vst [vmem:[#allocation19_spill] sm:$0xff] %v5428_v19  ;;  %v8588_v26 = vrot.slane %v5425_v18, 6  ;;  %v8586_v27 = vrot.slane %v5425_v18, 7  ;;  %v746_v30 = vmax.f32 %v5404_v54, %v5428_v19  ;;  %v5435_v31 = vmax.f32 %v744_v59, %v5428_v19  ;;  %v517_v33 = vpop.f32.mrb[15].mxu0 }
 0x133   : > { %v798_v34 = vmax.f32 %v770_v63, %v5428_v19  ;;  %v5441_v37 = vmax.f32 %v796_v2, %v5428_v19  ;;  %v5443_v41 = vsel %vm619_vm15, %v513_v8, %v651_v22  ;;  %v650_v43 = vmul.f32 0.1, %v508_v10 }
 0x134   : > { %8659 = vst [vmem:[#allocation20_spill] sm:$0xff] %v5443_v41  ;;  %v749_v48 = vmax.f32 %v5414_v5, %v5443_v41  ;;  %v5450_v49 = vmax.f32 %v747_v13, %v5443_v41  ;;  %v801_v50 = vmax.f32 %v5421_v14, %v5443_v41  ;;  %v5455_v51 = vmax.f32 %v799_v16, %v5443_v41 }
 0x135   : > { %v5459_v52 = vsel %vm618_vm1, %v508_v10, %v650_v43  ;;  %v523_v56 = vadd.f32 %v4595_v23, %v5312_v40  ;;  %v518_v57 = vadd.f32 %v5312_v40, %v517_v33  ;;  %v4598_v59 = vpop.f32.mrb[16].mxu0  ;;  %v5469_v63 = vsel %vm1142_vm11, %v8589_v20, %v8582_v44 }
 0x136   : > { %8660 = vst [vmem:[#allocation21_spill] sm:$0xff] %v5459_v52  ;;  %v8584_v2 = vrot.slane %v5455_v51, 6  ;;  %v8583_v4 = vrot.slane %v5455_v51, 7  ;;  %v8591_v7 = vrot.slane %v5455_v51, 1  ;;  %v8590_v8 = vrot.slane %v5455_v51, 2  ;;  %v527_v10 = vpop.f32.mrb[17].mxu0 }
 0x137   : > { %v748_v13 = vmax.f32 %v5428_v19, %v5459_v52  ;;  %v5478_v14 = vmax.f32 %v746_v30, %v5459_v52  ;;  %v800_v16 = vmax.f32 %v5435_v31, %v5459_v52  ;;  %v5483_v22 = vmax.f32 %v798_v34, %v5459_v52 }
 0x138   : > { %vm621_vm7 = vcmp.ge.f32.partialorder %v523_v56, 0.0  ;;  %v653_v23 = vmul.f32 0.1, %v523_v56  ;;  %vm620_vm8 = vcmp.ge.f32.partialorder %v518_v57, 0.0  ;;  %v652_v33 = vmul.f32 0.1, %v518_v57 }
 0x139   : > { %v852_v43 = vrot.slane %v5483_v22, 6  ;;  %v985_v44 = vrot.slane %v5483_v22, 7  ;;  %v8585_v17 = vrot.slane %v5483_v22, 1  ;;  %v8587_v25 = vrot.slane %v5483_v22, 2  ;;  %v4601_v30 = vpop.f32.mrb[18].mxu0 }
 0x13a   : > { %v5489_v24 = vsel %vm621_vm7, %v523_v56, %v653_v23  ;;  %v5491_v39 = vsel %vm620_vm8, %v518_v57, %v652_v33  ;;  %v533_v31 = vadd.f32 %v4598_v59, %v5312_v40  ;;  %v528_v34 = vadd.f32 %v5312_v40, %v527_v10  ;;  %v5495_v45 = vpop.f32.mrb[19].mxu0  ;;  %v5519_v59 = vld [vmem:[%s8578_s3 + $0x18] sm:$0xff] }
 0x13b   : > { %v899_v46 = vsel %vm876_vm2, %v852_v43, %v8584_v2  ;;  %v900_v38 = vsel %vm876_vm2, %v8588_v26, %v852_v43  ;;  %v1032_v56 = vsel %vm1009_vm3, %v985_v44, %v8583_v4  ;;  %v1033_v57 = vsel %vm1009_vm3, %v8586_v27, %v985_v44  ;;  %4693 = vmatprep.mubr.msk.f32.mxu1 %vm1378_vm14, %v5491_v39 }
 0x13c   : > { %vm726_vm9 = vcmp.lt.s32.totalorder %v5336_v0, 16  ;;  %v921_v10 = vsel %vm707_vm4, %v900_v38, -inf  ;;  %v954_v23 = vmax.f32 %v5455_v51, %v899_v46  ;;  %v1054_v33 = vsel %vm715_vm5, %v1033_v57, -inf  ;;  %4694 = vmatmul.mubr.msk.f32.vlgmr.msra.gmra.mrb[0].mxu1 %vm1378_vm14, %v5489_v24 }
 0x13d   : > { %v1165_v44 = vsel %vm1142_vm11, %v8585_v17, %v8591_v7  ;;  %vm734_vm10 = vcmp.lt.s32.totalorder %v5347_v9, 16  ;;  %v953_v43 = vmax.f32 %v5483_v22, %v921_v10  ;;  %v1298_v38 = vsel %vm1275_vm6, %v8587_v25, %v8590_v8  ;;  %v4604_v4 = vpop.f32.mrb[20].mxu0  ;;  %4721 = vmatpush3.msra.mxu1 %v5302_v36 }
 0x13e   : > { %v751_v46 = vmax.f32 %v5443_v41, %v5489_v24  ;;  %v5545_v57 = vmax.f32 %v749_v48, %v5489_v24  ;;  %v1087_v2 = vmax.f32 %v954_v23, %v1032_v56  ;;  %v803_v10 = vmax.f32 %v5450_v49, %v5489_v24  ;;  %v547_v25 = vpop.f32.mrb[21].mxu0  ;;  %4770 = vmatprep.subr.mxu1 %v5519_v59 }
 0x13f   : > { %v5551_v17 = vmax.f32 %v801_v50, %v5489_v24  ;;  %v750_v27 = vmax.f32 %v5459_v52, %v5491_v39  ;;  %v1086_v26 = vmax.f32 %v953_v43, %v1054_v33  ;;  %v5557_v48 = vmax.f32 %v748_v13, %v5491_v39 }
 0x140   : > { %v802_v36 = vmax.f32 %v5478_v14, %v5491_v39  ;;  %v5562_v56 = vmax.f32 %v800_v16, %v5491_v39  ;;  %vm623_vm12 = vcmp.ge.f32.partialorder %v533_v31, 0.0  ;;  %v655_v23 = vmul.f32 0.1, %v533_v31 }
 0x141   : > { %v1219_v20 = vmax.f32 %v1086_v26, %v1165_v44  ;;  %v4607_v43 = vpop.f32.mrb[22].mxu0  ;;  %vm622_vm13 = vcmp.ge.f32.partialorder %v528_v34, 0.0  ;;  %v654_v16 = vmul.f32 0.1, %v528_v34  ;;  %v8661_v26 = vrot.slane %v5455_v51, 1 }
 0x142   : > { %v8593_v13 = vrot.slane %v5562_v56, 1  ;;  %v8596_v7 = vrot.slane %v5562_v56, 2  ;;  %v5570_v14 = vsel %vm623_vm12, %v533_v31, %v655_v23  ;;  %v557_v41 = vpop.f32.mrb[23].mxu0 }
 0x143   : > { %v5572_v49 = vmax.f32 %v1219_v20, %v1298_v38  ;;  %v753_v50 = vmax.f32 %v5489_v24, %v5570_v14  ;;  %v779_v33 = vmax.f32 %v751_v46, %v5570_v14  ;;  %v8662_v20 = vrot.slane %v5455_v51, 2 }
 0x144   : > { %v1164_v44 = vsel %vm1142_vm11, %v8661_v26, %v8593_v13  ;;  %v805_v23 = vmax.f32 %v5545_v57, %v5570_v14  ;;  %v5594_v26 = vmax.f32 %v803_v10, %v5570_v14  ;;  %v686_v46 = vsel %vm622_vm13, %v528_v34, %v654_v16 }
 0x145   : > { %v1188_v31 = vsel %vm726_vm9, %v1164_v44, -inf  ;;  %v1297_v38 = vsel %vm1275_vm6, %v8662_v20, %v8596_v7  ;;  %v543_v44 = vadd.f32 %v4601_v30, %v5312_v40  ;;  %v5599_v8 = vpop.f32.mrb[24].mxu0  ;;  %v752_v20 = vmax.f32 %v5491_v39, %v686_v46  ;;  %4696 = vmatprep.mubr.msk.f32.mxu1 %vm1378_vm14, %v686_v46 }
 0x146   : > { %v1220_v13 = vmax.f32 %v1087_v2, %v1188_v31  ;;  %v1321_v24 = vsel %vm734_vm10, %v1297_v38, -inf  ;;  %v778_v7 = vmax.f32 %v750_v27, %v686_v46  ;;  %v567_v57 = vpop.f32.mrb[25].mxu0  ;;  %v804_v2 = vmax.f32 %v5557_v48, %v686_v46  ;;  %4697 = vmatmul.mubr.msk.f32.gmra.mrb[2].mxu1 %vm1378_vm14, %v5570_v14 }
 0x147   : > { %v5608_v31 = vmax.f32 %v802_v36, %v686_v46  ;;  %vm625_vm15 = vcmp.ge.f32.partialorder %v543_v44, 0.0  ;;  %v657_v30 = vmul.f32 0.1, %v543_v44  ;;  %v538_v34 = vadd.f32 %v5312_v40, %v5495_v45 }
 0x148   : > { %v5605_v10 = vmax.f32 %v1220_v13, %v1321_v24  ;;  %v553_v39 = vadd.f32 %v4604_v4, %v5312_v40  ;;  %v548_v27 = vadd.f32 %v5312_v40, %v547_v25  ;;  %v563_v48 = vadd.f32 %v4607_v43, %v5312_v40 }
 0x149   : > { %v558_v36 = vadd.f32 %v5312_v40, %v557_v41  ;;  %v4613_v38 = vpop.f32.mrb[26].mxu0  ;;  %v689_v24 = vsel %vm625_vm15, %v543_v44, %v657_v30  ;;  %vm624_vm1 = vcmp.ge.f32.partialorder %v538_v34, 0.0  ;;  %v656_v5 = vmul.f32 0.1, %v538_v34 }
 0x14a   : > { %vm627_vm7 = vcmp.ge.f32.partialorder %v553_v39, 0.0  ;;  %v577_v52 = vpop.f32.mrb[27].mxu0  ;;  %v755_v45 = vmax.f32 %v5570_v14, %v689_v24  ;;  %v781_v19 = vmax.f32 %v753_v50, %v689_v24  ;;  %v807_v4 = vmax.f32 %v779_v33, %v689_v24 }
 0x14b   : > { %v5621_v47 = vmax.f32 %v805_v23, %v689_v24  ;;  %v688_v25 = vsel %vm624_vm1, %v538_v34, %v656_v5  ;;  %v659_v16 = vmul.f32 0.1, %v553_v39  ;;  %vm626_vm8 = vcmp.ge.f32.partialorder %v548_v27, 0.0 }
 0x14c   : > { %v658_v13 = vmul.f32 0.1, %v548_v27  ;;  %v754_v54 = vmax.f32 %v686_v46, %v688_v25  ;;  %v780_v44 = vmax.f32 %v752_v20, %v688_v25  ;;  %4699 = vmatprep.mubr.msk.f32.mxu1 %vm1378_vm14, %v688_v25  ;;  %v806_v21 = vmax.f32 %v778_v7, %v688_v25 }
 0x14d   : > { %v5626_v30 = vpop.f32.mrb[28].mxu0  ;;  %v5628_v14 = vmax.f32 %v804_v2, %v688_v25  ;;  %v691_v50 = vsel %vm627_vm7, %v553_v39, %v659_v16  ;;  %4700 = vmatmul.mubr.msk.f32.gmra.mrb[4].mxu1 %vm1378_vm14, %v689_v24  ;;  %vm629_vm12 = vcmp.ge.f32.partialorder %v563_v48, 0.0  ;;  %vm628_vm13 = vcmp.ge.f32.partialorder %v558_v36, 0.0 }
 0x14e   : > { %v690_v33 = vsel %vm626_vm8, %v548_v27, %v658_v13  ;;  %v5632_v5 = vpop.f32.mrb[29].mxu0  ;;  %v757_v23 = vmax.f32 %v689_v24, %v691_v50  ;;  %v783_v34 = vmax.f32 %v755_v45, %v691_v50  ;;  %v809_v43 = vmax.f32 %v781_v19, %v691_v50 }
 0x14f   : > { %v5634_v41 = vmax.f32 %v807_v4, %v691_v50  ;;  %4702 = vmatprep.mubr.msk.f32.mxu1 %vm1378_vm14, %v690_v33  ;;  %v756_v20 = vmax.f32 %v688_v25, %v690_v33  ;;  %v782_v2 = vmax.f32 %v754_v54, %v690_v33  ;;  %v808_v16 = vmax.f32 %v780_v44, %v690_v33 }
 0x150   : > { %v5641_v13 = vmax.f32 %v806_v21, %v690_v33  ;;  %v661_v19 = vmul.f32 0.1, %v563_v48  ;;  %v660_v45 = vmul.f32 0.1, %v558_v36  ;;  %v573_v54 = vadd.f32 %v5599_v8, %v5312_v40 }
 0x151   : > { %v5643_v24 = vpop.f32.mrb[30].mxu0  ;;  %4703 = vmatmul.mubr.msk.f32.gmra.mrb[6].mxu1 %vm1378_vm14, %v691_v50  ;;  %v568_v27 = vadd.f32 %v5312_v40, %v567_v57  ;;  %v583_v7 = vadd.f32 %v4613_v38, %v5312_v40  ;;  %v578_v46 = vadd.f32 %v5312_v40, %v577_v52 }
 0x152   : > { %v597_v44 = vpop.f32.mrb[31].mxu0  ;;  %v5651_v21 = vsel %vm629_vm12, %v563_v48, %v661_v19  ;;  %v5653_v39 = vsel %vm628_vm13, %v558_v36, %v660_v45  ;;  %vm631_vm15 = vcmp.ge.f32.partialorder %v573_v54, 0.0 }
 0x153   : > { %v759_v29 = vmax.f32 %v691_v50, %v5651_v21  ;;  %v785_v4 = vmax.f32 %v757_v23, %v5651_v21  ;;  %v811_v25 = vmax.f32 %v783_v34, %v5651_v21  ;;  %v5661_v6 = vmax.f32 %v809_v43, %v5651_v21  ;;  %4705 = vmatprep.mubr.msk.f32.mxu1 %vm1378_vm14, %v5653_v39 }
 0x154   : > { %v758_v8 = vmax.f32 %v690_v33, %v5653_v39  ;;  %v784_v57 = vmax.f32 %v756_v20, %v5653_v39  ;;  %v810_v48 = vmax.f32 %v782_v2, %v5653_v39  ;;  %v5669_v52 = vmax.f32 %v808_v16, %v5653_v39 }
 0x155   : > { %4706 = vmatmul.mubr.msk.f32.gmra.mrb[8].mxu1 %vm1378_vm14, %v5651_v21  ;;  %v663_v43 = vmul.f32 0.1, %v573_v54  ;;  %vm630_vm1 = vcmp.ge.f32.partialorder %v568_v27, 0.0  ;;  %v662_v23 = vmul.f32 0.1, %v568_v27  ;;  %vm633_vm7 = vcmp.ge.f32.partialorder %v583_v7, 0.0 }
 0x156   : > { %v665_v20 = vmul.f32 0.1, %v583_v7  ;;  %vm632_vm8 = vcmp.ge.f32.partialorder %v578_v46, 0.0 }
 0x157   : > { %v5677_v34 = vsel %vm631_vm15, %v573_v54, %v663_v43  ;;  %v694_v45 = vsel %vm630_vm1, %v568_v27, %v662_v23 }
 0x158   : > { %v787_v2 = vmax.f32 %v759_v29, %v5677_v34  ;;  %v813_v16 = vmax.f32 %v785_v4, %v5677_v34  ;;  %v5682_v19 = vmax.f32 %v811_v25, %v5677_v34  ;;  %v786_v38 = vmax.f32 %v758_v8, %v694_v45  ;;  %4708 = vmatprep.mubr.msk.f32.mxu1 %vm1378_vm14, %v694_v45 }
 0x159   : > { %v812_v36 = vmax.f32 %v784_v57, %v694_v45  ;;  %v5684_v50 = vmax.f32 %v810_v48, %v694_v45  ;;  %v5686_v33 = vsel %vm633_vm7, %v583_v7, %v665_v20  ;;  %v664_v4 = vmul.f32 0.1, %v578_v46  ;;  %4709 = vmatmul.mubr.msk.f32.gmra.mrb[10].mxu1 %vm1378_vm14, %v5677_v34 }
 0x15a   : > { %v5692_v29 = vmax.f32 %v813_v16, %v5686_v33  ;;  %v593_v7 = vadd.f32 %v5626_v30, %v5312_v40  ;;  %v815_v8 = vmax.f32 %v787_v2, %v5686_v33  ;;  %v588_v20 = vadd.f32 %v5312_v40, %v5632_v5 }
 0x15b   : > { %v696_v23 = vsel %vm632_vm8, %v578_v46, %v664_v4  ;;  %v603_v2 = vadd.f32 %v5643_v24, %v5312_v40  ;;  %v598_v46 = vadd.f32 %v5312_v40, %v597_v44  ;;  %v760_v48 = vmax.f32 %v5653_v39, %v694_v45 }
 0x15c   : > { %v5706_v16 = vmax.f32 %v812_v36, %v696_v23  ;;  %vm635_vm12 = vcmp.ge.f32.partialorder %v593_v7, 0.0  ;;  %v667_v43 = vmul.f32 0.1, %v593_v7  ;;  %v814_v54 = vmax.f32 %v786_v38, %v696_v23  ;;  %4711 = vmatprep.mubr.msk.f32.mxu1 %vm1378_vm14, %v696_v23 }
 0x15d   : > { %vm634_vm13 = vcmp.ge.f32.partialorder %v588_v20, 0.0  ;;  %v666_v30 = vmul.f32 0.1, %v588_v20  ;;  %4712 = vmatmul.mubr.msk.f32.gmra.mrb[12].mxu1 %vm1378_vm14, %v5686_v33  ;;  %vm637_vm15 = vcmp.ge.f32.partialorder %v603_v2, 0.0  ;;  %v669_v25 = vmul.f32 0.1, %v603_v2 }
 0x15e   : > { %v699_v36 = vsel %vm635_vm12, %v593_v7, %v667_v43  ;;  %vm636_vm1 = vcmp.ge.f32.partialorder %v598_v46, 0.0  ;;  %v668_v24 = vmul.f32 0.1, %v598_v46  ;;  %v762_v12 = vmax.f32 %v694_v45, %v696_v23 }
 0x15f   : > { %v5717_v38 = vmax.f32 %v815_v8, %v699_v36  ;;  %v698_v57 = vsel %vm634_vm13, %v588_v20, %v666_v30  ;;  %v788_v5 = vmax.f32 %v760_v48, %v696_v23  ;;  %v701_v4 = vsel %vm637_vm15, %v603_v2, %v669_v25 }
 0x160   : > { %v5719_v27 = vmax.f32 %v814_v54, %v698_v57  ;;  %4714 = vmatprep.mubr.msk.f32.mxu1 %vm1378_vm14, %v698_v57  ;;  %v764_v39 = vmax.f32 %v696_v23, %v698_v57  ;;  %v700_v30 = vsel %vm636_vm1, %v598_v46, %v668_v24  ;;  %v790_v45 = vmax.f32 %v762_v12, %v698_v57 }
 0x161   : > { %4715 = vmatmul.mubr.msk.f32.gmra.mrb[14].mxu1 %vm1378_vm14, %v699_v36  ;;  %v761_v44 = vmax.f32 %v5651_v21, %v5677_v34  ;;  %v763_v43 = vmax.f32 %v5677_v34, %v5686_v33  ;;  %v765_v8 = vmax.f32 %v5686_v33, %v699_v36  ;;  %v816_v7 = vmax.f32 %v788_v5, %v698_v57 }
 0x162   : > { %v5731_v40 = vmax.f32 %v764_v39, %v700_v30  ;;  %4717 = vmatprep.mubr.msk.f32.mxu1 %vm1378_vm14, %v700_v30  ;;  %v5739_v54 = vmax.f32 %v790_v45, %v700_v30  ;;  %v8664_v12 = vrot.slane %v5352_v11, 1  ;;  %v8665_v25 = vrot.slane %v5360_v15, 1 }
 0x163   : > { %v8666_v21 = vrot.slane %v5383_v32, 2  ;;  %v8667_v23 = vrot.slane %v5352_v11, 2  ;;  %v5762_v24 = vmax.f32 %v816_v7, %v700_v30  ;;  %v5769_v20 = vmax.f32 %v765_v8, %v701_v4 }
 0x164   : > { %8663 = vst [vmem:[#allocation22_spill] sm:$0xff] %v5739_v54  ;;  %v5748_v48 = vsel %vm1142_vm11, %v8665_v25, %v8664_v12  ;;  %v8604_v57 = vrot.slane %v5731_v40, 6  ;;  %v8670_v7 = vrot.slane %v5352_v11, 2  ;;  %v8671_v30 = vrot.slane %v5360_v15, 2 }
 0x165   : > { %4718 = vmatmul.mubr.msk.f32.gmra.mrb[16].mxu1 %vm1378_vm14, %v701_v4  ;;  %v5756_v34 = vsel %vm1275_vm6, %v8667_v23, %v8666_v21  ;;  %v789_v21 = vmax.f32 %v761_v44, %v5686_v33  ;;  %v791_v23 = vmax.f32 %v763_v43, %v699_v36  ;;  %8668 = vst [vmem:[#allocation23_spill] sm:$0xff] %v5769_v20  ;;  %v870_v2 = vrot.slane %v5762_v24, 6 }
 0x166   : > { %v875_v12 = vrot.slane %v5769_v20, 6  ;;  %v8669_v33 = vrot.slane %v5717_v38, 6  ;;  %v1008_v8 = vrot.slane %v5769_v20, 7  ;;  %v8678_v58 = vrot.slane %v5762_v24, 7 }
 0x167   : > { %v817_v5 = vmax.f32 %v789_v21, %v699_v36  ;;  %v5775_v39 = vmax.f32 %v791_v23, %v701_v4  ;;  %v1306_v36 = vsel %vm1275_vm6, %v8671_v30, %v8670_v7  ;;  %v8675_v30 = vrot.slane %v5731_v40, 1 }
 0x168   : > { %v882_v44 = vsel %vm876_vm2, %v8669_v33, %v870_v2  ;;  %v877_v33 = vsel %vm876_vm2, %v8604_v57, %v875_v12 }
 0x169   : > { %v5793_v21 = vsel %vm707_vm4, %v882_v44, -inf  ;;  %v5795_v23 = vmax.f32 %v817_v5, %v701_v4  ;;  %v8606_v25 = vrot.slane %v5775_v39, 6  ;;  %v976_v46 = vmax.f32 %v5769_v20, %v877_v33 }
 0x16a   : > { %8672 = vst [vmem:[#allocation24_spill] sm:$0xff] %v5793_v21  ;;  %v8608_v7 = vrot.slane %v5775_v39, 7  ;;  %v8673_v4 = vrot.slane %v5739_v54, 6  ;;  %v8674_v33 = vrot.slane %v5739_v54, 7  ;;  %v8676_v55 = vrot.slane %v5775_v39, 1 }
 0x16b   : > { %v8611_v57 = vrot.slane %v5795_v23, 7  ;;  %v8677_v45 = vrot.slane %v5795_v23, 6  ;;  %v8680_v62 = vrot.slane %v5795_v23, 1 }
 0x16c   : > { %v879_v5 = vsel %vm876_vm2, %v8673_v4, %v8606_v25  ;;  %v1012_v44 = vsel %vm1009_vm3, %v8674_v33, %v8608_v7  ;;  %v1144_v4 = vsel %vm1142_vm11, %v8676_v55, %v8675_v30  ;;  %v8679_v7 = vrot.slane %v5739_v54, 1 }
 0x16d   : > { %v974_v43 = vmax.f32 %v5775_v39, %v879_v5  ;;  %v881_v5 = vsel %vm876_vm2, %v870_v2, %v8677_v45  ;;  %v1014_v33 = vsel %vm1009_vm3, %v8678_v58, %v8611_v57  ;;  %v1208_v30 = vsel %vm726_vm9, %v1144_v4, -inf }
 0x16e   : > { %v1146_v55 = vsel %vm1142_vm11, %v8680_v62, %v8679_v7  ;;  %v972_v25 = vmax.f32 %v5795_v23, %v881_v5  ;;  %v8681_v58 = vrot.slane %v5739_v54, 2  ;;  %v8682_v57 = vrot.slane %v5795_v23, 2 }
 0x16f   : > { %v1107_v2 = vmax.f32 %v974_v43, %v1012_v44  ;;  %v1206_v45 = vsel %vm726_vm9, %v1146_v55, -inf  ;;  %v8683_v62 = vrot.slane %v5360_v15, 6  ;;  %v8684_v4 = vrot.slane %v5731_v40, 7 }
 0x170   : > { %v1279_v21 = vsel %vm1275_vm6, %v8682_v57, %v8681_v58  ;;  %v8685_v44 = vrot.slane %v5360_v15, 7  ;;  %v1105_v55 = vmax.f32 %v972_v25, %v1014_v33  ;;  %v8686_v54 = vrot.slane %v5731_v40, 2 }
 0x171   : > { %v908_v7 = vsel %vm876_vm2, %v875_v12, %v8683_v62  ;;  %v1010_v43 = vsel %vm1009_vm3, %v8684_v4, %v1008_v8  ;;  %v1240_v1 = vmax.f32 %v1107_v2, %v1208_v30  ;;  %v8687_v57 = vrot.slane %v5775_v39, 2 }
 0x172   : > { %v1041_v5 = vsel %vm1009_vm3, %v1008_v8, %v8685_v44  ;;  %v1339_v12 = vsel %vm734_vm10, %v1279_v21, -inf  ;;  %v913_v4 = vsel %vm707_vm4, %v908_v7, -inf  ;;  %v1109_v8 = vmax.f32 %v976_v46, %v1010_v43 }
 0x173   : > { %v1277_v58 = vsel %vm1275_vm6, %v8687_v57, %v8686_v54  ;;  %v1046_v25 = vsel %vm715_vm5, %v1041_v5, -inf  ;;  %v1238_v33 = vmax.f32 %v1105_v55, %v1206_v45  ;;  %v945_v2 = vmax.f32 %v5360_v15, %v913_v4 }
 0x174   : > { %v1341_v62 = vsel %vm734_vm10, %v1277_v58, -inf  ;;  %v8689_v54 = vrot.slane %v5360_v15, 1  ;;  %v8690_v44 = vrot.slane %v5769_v20, 1  ;;  %v8691_v7 = vrot.slane %v5360_v15, 2 }
 0x175   : > { %v5884_v30 = vmax.f32 %v1240_v1, %v1341_v62  ;;  %v8692_v5 = vrot.slane %v5769_v20, 2  ;;  %v8693_v46 = vrot.slane %v5352_v11, 6  ;;  %v8694_v45 = vrot.slane %v5360_v15, 6 }
 0x176   : > { %v1174_v21 = vsel %vm1142_vm11, %v8690_v44, %v8689_v54  ;;  %v978_v55 = vrot.slane %v5352_v11, 7  ;;  %v5908_v58 = vmax.f32 %v1238_v33, %v1339_v12  ;;  %v1078_v62 = vmax.f32 %v945_v2, %v1046_v25 }
 0x177   : > { %8688 = vst [vmem:[#allocation25_spill] sm:$0xff] %v5884_v30  ;;  %v1210_v57 = vsel %vm726_vm9, %v1174_v21, -inf  ;;  %v1307_v1 = vsel %vm1275_vm6, %v8692_v5, %v8691_v7  ;;  %v907_v43 = vsel %vm876_vm2, %v8694_v45, %v8693_v46  ;;  %v8695_v21 = vrot.slane %v5360_v15, 7 }
 0x178   : > { %v1242_v4 = vmax.f32 %v1109_v8, %v1210_v57  ;;  %v1343_v54 = vsel %vm734_vm10, %v1307_v1, -inf  ;;  %v946_v44 = vmax.f32 %v5352_v11, %v907_v43  ;;  %v1180_v5 = vsel %vm726_vm9, %v5469_v63, -inf }
 0x179   : > { %v1040_v7 = vsel %vm1009_vm3, %v8695_v21, %v978_v55  ;;  %v1313_v12 = vsel %vm734_vm10, %v5756_v34, -inf  ;;  %v1211_v25 = vmax.f32 %v1078_v62, %v5748_v48  ;;  %v2048_v33 = vmax.f32 %v5908_v58, %v5884_v30 }
 0x17a   : > { %v5924_v8 = vmax.f32 %v1242_v4, %v1343_v54  ;;  %v846_v15 = vrot.slane %v5383_v32, 6  ;;  %v1079_v2 = vmax.f32 %v946_v44, %v1040_v7  ;;  %v979_v57 = vrot.slane %v5383_v32, 7 }
 0x17b   : > { %v1113_v1 = vrot.slane %v5374_v28, 1  ;;  %v1246_v63 = vrot.slane %v5374_v28, 2  ;;  %v5932_v46 = vmax.f32 %v1211_v25, %v1306_v36  ;;  %v8698_v48 = vrot.slane %v5352_v11, 6 }
 0x17c   : > { %8696 = vst [vmem:[#allocation26_spill] sm:$0xff] %v5924_v8  ;;  %v5935_v34 = vmax.f32 %v2048_v33, %v5924_v8  ;;  %v847_v43 = vrot.slane %v5374_v28, 6  ;;  %v1212_v62 = vmax.f32 %v1079_v2, %v1180_v5  ;;  %v1039_v54 = vsel %vm1009_vm3, %v978_v55, %v979_v57 }
 0x17d   : > { %v906_v45 = vsel %vm876_vm2, %v8698_v48, %v846_v15  ;;  %v8699_v36 = vrot.slane %v5383_v32, 1  ;;  %4622 = vmatprep.mubr.msk.f32.mxu0 %vm1378_vm14, %v5932_v46  ;;  %v1048_v21 = vsel %vm715_vm5, %v1039_v54, -inf  ;;  %v8700_v7 = vrot.slane %v5383_v32, 2 }
 0x17e   : > { %8697 = vst [vmem:[#allocation27_spill] sm:$0xff] %v5935_v34  ;;  %v915_v4 = vsel %vm707_vm4, %v906_v45, -inf  ;;  %v905_v55 = vsel %vm876_vm2, %v846_v15, %v847_v43  ;;  %v5961_v25 = vmax.f32 %v1212_v62, %v1313_v12  ;;  %v980_v2 = vrot.slane %v5374_v28, 7 }
 0x17f   : > { %v1171_v44 = vsel %vm1142_vm11, %v8699_v36, %v1113_v1  ;;  %v947_v11 = vmax.f32 %v5383_v32, %v915_v4  ;;  %v1304_v5 = vsel %vm1275_vm6, %v8700_v7, %v1246_v63  ;;  %v948_v33 = vmax.f32 %v5374_v28, %v905_v55 }
 0x180   : > { %v1114_v48 = vrot.slane %v5412_v3, 1  ;;  %v1247_v4 = vrot.slane %v5412_v3, 2  ;;  %v848_v54 = vrot.slane %v5412_v3, 6  ;;  %v981_v32 = vrot.slane %v5412_v3, 7  ;;  %4623 = vmatmul.mubr.msk.f32.vlgmr.msra.gmra.mrb[32].mxu0 %vm1378_vm14, %v5961_v25 }
 0x181   : > { %v1080_v45 = vmax.f32 %v947_v11, %v1048_v21  ;;  %v1038_v12 = vsel %vm1009_vm3, %v979_v57, %v980_v2  ;;  %v1115_v28 = vrot.slane %v5401_v53, 1  ;;  %v1248_v62 = vrot.slane %v5401_v53, 2  ;;  %4671 = vmatpush3.msra.mxu0 %v5295_v35 }
 0x182   : > { %v1170_v15 = vsel %vm1142_vm11, %v1113_v1, %v1114_v48  ;;  %v1081_v11 = vmax.f32 %v948_v33, %v1038_v12  ;;  %v1303_v7 = vsel %vm1275_vm6, %v1246_v63, %v1247_v4  ;;  %v904_v1 = vsel %vm876_vm2, %v847_v43, %v848_v54 }
 0x183   : > { %v1213_v36 = vmax.f32 %v1080_v45, %v1171_v44  ;;  %v1182_v21 = vsel %vm726_vm9, %v1170_v15, -inf  ;;  %v1315_v57 = vsel %vm734_vm10, %v1303_v7, -inf  ;;  %v1037_v55 = vsel %vm1009_vm3, %v980_v2, %v981_v32 }
 0x184   : > { %v1169_v44 = vsel %vm1142_vm11, %v1114_v48, %v1115_v28  ;;  %v1214_v45 = vmax.f32 %v1081_v11, %v1182_v21  ;;  %v917_v63 = vsel %vm707_vm4, %v904_v1, -inf  ;;  %v1050_v35 = vsel %vm715_vm5, %v1037_v55, -inf }
 0x185   : > { %v5990_v33 = vmax.f32 %v1213_v36, %v1304_v5  ;;  %v949_v12 = vmax.f32 %v5412_v3, %v917_v63  ;;  %v1302_v43 = vsel %vm1275_vm6, %v1247_v4, %v1248_v62  ;;  %v849_v15 = vrot.slane %v5401_v53, 6 }
 0x186   : > { %v982_v2 = vrot.slane %v5401_v53, 7  ;;  %v6005_v48 = vmax.f32 %v1214_v45, %v1315_v57  ;;  %v1116_v36 = vrot.slane %v5441_v37, 1  ;;  %v1249_v11 = vrot.slane %v5441_v37, 2 }
 0x187   : > { %4625 = vmatprep.mubr.msk.f32.mxu0 %vm1378_vm14, %v5990_v33  ;;  %v2021_v5 = vmax.f32 %v5932_v46, %v5990_v33  ;;  %v1082_v3 = vmax.f32 %v949_v12, %v1050_v35  ;;  %v903_v4 = vsel %vm876_vm2, %v848_v54, %v849_v15  ;;  %v850_v7 = vrot.slane %v5441_v37, 6 }
 0x188   : > { %v1036_v21 = vsel %vm1009_vm3, %v981_v32, %v982_v2  ;;  %4626 = vmatmul.mubr.msk.f32.gmra.mrb[34].mxu0 %vm1378_vm14, %v6005_v48  ;;  %v2022_v46 = vmax.f32 %v5961_v25, %v6005_v48  ;;  %v950_v57 = vmax.f32 %v5401_v53, %v903_v4  ;;  %v1168_v1 = vsel %vm1142_vm11, %v1115_v28, %v1116_v36 }
 0x189   : > { %v1301_v55 = vsel %vm1275_vm6, %v1248_v62, %v1249_v11  ;;  %v1215_v54 = vmax.f32 %v1082_v3, %v1169_v44  ;;  %v1184_v32 = vsel %vm726_vm9, %v1168_v1, -inf  ;;  %v902_v63 = vsel %vm876_vm2, %v849_v15, %v850_v7 }
 0x18a   : > { %v1317_v45 = vsel %vm734_vm10, %v1301_v55, -inf  ;;  %v1083_v35 = vmax.f32 %v950_v57, %v1036_v21  ;;  %v919_v53 = vsel %vm707_vm4, %v902_v63, -inf  ;;  %v983_v25 = vrot.slane %v5441_v37, 7 }
 0x18b   : > { %v1117_v28 = vrot.slane %v5425_v18, 1  ;;  %v1348_v12 = vmax.f32 %v1215_v54, %v1302_v43  ;;  %v951_v62 = vmax.f32 %v5441_v37, %v919_v53  ;;  %v1250_v44 = vrot.slane %v5425_v18, 2 }
 0x18c   : > { %v8701_v3 = vrot.slane %v5425_v18, 6  ;;  %v1216_v1 = vmax.f32 %v1083_v35, %v1184_v32  ;;  %v1035_v15 = vsel %vm1009_vm3, %v982_v2, %v983_v25  ;;  %v8703_v2 = vrot.slane %v5425_v18, 7 }
 0x18d   : > { %v1167_v21 = vsel %vm1142_vm11, %v1116_v36, %v1117_v28  ;;  %4628 = vmatprep.mubr.msk.f32.mxu0 %vm1378_vm14, %v1348_v12  ;;  %v2023_v37 = vmax.f32 %v5990_v33, %v1348_v12  ;;  %v6046_v43 = vmax.f32 %v2021_v5, %v1348_v12  ;;  %v1052_v55 = vsel %vm715_vm5, %v1035_v15, -inf }
 0x18e   : > { %v901_v4 = vsel %vm876_vm2, %v850_v7, %v8701_v3  ;;  %v1300_v7 = vsel %vm1275_vm6, %v1249_v11, %v1250_v44  ;;  %v1349_v54 = vmax.f32 %v1216_v1, %v1317_v45  ;;  %v1084_v32 = vmax.f32 %v951_v62, %v1052_v55 }
 0x18f   : > { %v952_v57 = vmax.f32 %v5425_v18, %v901_v4  ;;  %8702 = vst [vmem:[#allocation28_spill] sm:$0xff] %v6046_v43  ;;  %v1034_v36 = vsel %vm1009_vm3, %v983_v25, %v8703_v2  ;;  %v8704_v63 = vrot.slane %v5483_v22, 1  ;;  %v8705_v53 = vrot.slane %v5483_v22, 2 }
 0x190   : > { %v2127_v45 = vrot.slane %v6046_v43, 6  ;;  %4629 = vmatmul.mubr.msk.f32.gmra.mrb[36].mxu0 %vm1378_vm14, %v1349_v54  ;;  %v2024_v18 = vmax.f32 %v6005_v48, %v1349_v54  ;;  %v6069_v25 = vmax.f32 %v2022_v46, %v1349_v54  ;;  %v1217_v62 = vmax.f32 %v1084_v32, %v1167_v21 }
 0x191   : > { %v1166_v33 = vsel %vm1142_vm11, %v1117_v28, %v8704_v63  ;;  %v1085_v5 = vmax.f32 %v952_v57, %v1034_v36  ;;  %v1299_v11 = vsel %vm1275_vm6, %v1250_v44, %v8705_v53  ;;  %v8616_v4 = vrot.slane %v5935_v34, 6 }
 0x192   : > { %v1186_v35 = vsel %vm726_vm9, %v1166_v33, -inf  ;;  %v1319_v28 = vsel %vm734_vm10, %v1299_v11, -inf  ;;  %v2255_v22 = vrot.slane %v6046_v43, 7  ;;  %v8615_v1 = vrot.slane %v5935_v34, 7 }
 0x193   : > { %v1218_v3 = vmax.f32 %v1085_v5, %v1186_v35  ;;  %v6076_v44 = vmax.f32 %v1217_v62, %v1300_v7  ;;  %v8617_v15 = vrot.slane %v6046_v43, 1  ;;  %v2384_v57 = vrot.slane %v6069_v25, 1 }
 0x194   : > { %v8618_v48 = vrot.slane %v6046_v43, 2  ;;  %v2190_v21 = vsel %vm876_vm2, %v8616_v4, %v2127_v45  ;;  %v2318_v55 = vsel %vm1009_vm3, %v8615_v1, %v2255_v22  ;;  %v2512_v7 = vrot.slane %v6069_v25, 2 }
 0x195   : > { %v6081_v46 = vmax.f32 %v1218_v3, %v1319_v28  ;;  %4631 = vmatprep.mubr.msk.f32.mxu0 %vm1378_vm14, %v6076_v44  ;;  %v2025_v32 = vmax.f32 %v1348_v12, %v6076_v44  ;;  %v6098_v36 = vmax.f32 %v2023_v37, %v6076_v44  ;;  %v6102_v63 = vmax.f32 %v6046_v43, %v6076_v44 }
 0x196   : > { %v2319_v11 = vsel %vm715_vm5, %v2318_v55, -inf  ;;  %v2573_v55 = vsel %vm1275_vm6, %v8618_v48, %v2512_v7  ;;  %v2256_v4 = vrot.slane %v6069_v25, 7  ;;  %v8707_v53 = vrot.slane %v5455_v51, 6 }
 0x197   : > { %4632 = vmatmul.mubr.msk.f32.gmra.mrb[38].mxu0 %vm1378_vm14, %v6081_v46  ;;  %v2026_v33 = vmax.f32 %v1349_v54, %v6081_v46  ;;  %v6110_v12 = vmax.f32 %v2024_v18, %v6081_v46  ;;  %v6114_v35 = vmax.f32 %v6069_v25, %v6081_v46  ;;  %v6117_v37 = vmax.f32 %v2025_v32, %v5572_v49 }
 0x198   : > { %4634 = vmatprep.mubr.msk.f32.mxu0 %vm1378_vm14, %v5572_v49  ;;  %v2191_v54 = vsel %vm707_vm4, %v2190_v21, -inf  ;;  %v2385_v3 = vrot.slane %v6102_v63, 1  ;;  %v2445_v32 = vsel %vm1142_vm11, %v8617_v15, %v2384_v57  ;;  %v2513_v21 = vrot.slane %v6102_v63, 2 }
 0x199   : > { %v6128_v18 = vmax.f32 %v2026_v33, %v5605_v10  ;;  %v2223_v28 = vmax.f32 %v6046_v43, %v2191_v54  ;;  %v2128_v33 = vrot.slane %v6069_v25, 6  ;;  %v8706_v15 = vrot.slane %v5562_v56, 6 }
 0x19a   : > { %v2444_v54 = vsel %vm1142_vm11, %v2384_v57, %v2385_v3  ;;  %v2572_v48 = vsel %vm1275_vm6, %v2512_v7, %v2513_v21  ;;  %v2317_v43 = vsel %vm1009_vm3, %v2255_v22, %v2256_v4  ;;  %v8713_v34 = vrot.slane %v5562_v56, 6 }
 0x19b   : > { %v2351_v1 = vmax.f32 %v2223_v28, %v2319_v11  ;;  %4635 = vmatmul.mubr.msk.f32.gmra.mrb[40].mxu0 %vm1378_vm14, %v5605_v10  ;;  %v898_v62 = vsel %vm876_vm2, %v8707_v53, %v8706_v15  ;;  %v2189_v11 = vsel %vm876_vm2, %v2127_v45, %v2128_v33  ;;  %v2448_v57 = vsel %vm726_vm9, %v2444_v54, -inf }
 0x19c   : > { %v923_v28 = vsel %vm707_vm4, %v898_v62, -inf  ;;  %v2224_v2 = vmax.f32 %v6069_v25, %v2189_v11  ;;  %v2576_v15 = vsel %vm734_vm10, %v2572_v48, -inf  ;;  %v8708_v53 = vrot.slane %v5562_v56, 7 }
 0x19d   : > { %v2479_v5 = vmax.f32 %v2351_v1, %v2445_v32  ;;  %v955_v7 = vmax.f32 %v5562_v56, %v923_v28  ;;  %v8709_v45 = vrot.slane %v5455_v51, 7  ;;  %v1121_v62 = vrot.slane %v5551_v17, 1 }
 0x19e   : > { %v1254_v1 = vrot.slane %v5551_v17, 2  ;;  %v2352_v32 = vmax.f32 %v2224_v2, %v2317_v43  ;;  %v2129_v48 = vrot.slane %v6102_v63, 6  ;;  %v8710_v28 = vrot.slane %v5562_v56, 1 }
 0x19f   : > { %v1031_v54 = vsel %vm1009_vm3, %v8709_v45, %v8708_v53  ;;  %v6177_v25 = vmax.f32 %v2479_v5, %v2573_v55  ;;  %v8711_v53 = vrot.slane %v5562_v56, 2  ;;  %v2257_v5 = vrot.slane %v6102_v63, 7 }
 0x1a0   : > { %v1056_v22 = vsel %vm715_vm5, %v1031_v54, -inf  ;;  %v1163_v51 = vsel %vm1142_vm11, %v8710_v28, %v1121_v62  ;;  %v2480_v43 = vmax.f32 %v2352_v32, %v2448_v57  ;;  %v2188_v2 = vsel %vm876_vm2, %v2128_v33, %v2129_v48 }
 0x1a1   : > { %v1088_v11 = vmax.f32 %v955_v7, %v1056_v22  ;;  %v1296_v45 = vsel %vm1275_vm6, %v8711_v53, %v1254_v1  ;;  %4722 = vmatprep.mubr.msk.f32.mxu1 %vm1378_vm14, %v6177_v25  ;;  %v2386_v55 = vrot.slane %v6114_v35, 1  ;;  %v2514_v7 = vrot.slane %v6114_v35, 2 }
 0x1a2   : > { %v2193_v22 = vsel %vm707_vm4, %v2188_v2, -inf  ;;  %v2316_v28 = vsel %vm1009_vm3, %v2256_v4, %v2257_v5  ;;  %v8712_v53 = vrot.slane %v5551_v17, 6  ;;  %v6207_v32 = vmax.f32 %v2480_v43, %v2576_v15 }
 0x1a3   : > { %v1221_v54 = vmax.f32 %v1088_v11, %v1163_v51  ;;  %v2225_v33 = vmax.f32 %v6102_v63, %v2193_v22  ;;  %v2321_v11 = vsel %vm715_vm5, %v2316_v28, -inf  ;;  %v2443_v51 = vsel %vm1142_vm11, %v2385_v3, %v2386_v55 }
 0x1a4   : > { %v897_v57 = vsel %vm876_vm2, %v8713_v34, %v8712_v53  ;;  %v2571_v4 = vsel %vm1275_vm6, %v2513_v21, %v2514_v7  ;;  %v8714_v20 = vrot.slane %v5551_v17, 7  ;;  %v8715_v34 = vrot.slane %v5562_v56, 7  ;;  %4723 = vmatmul.mubr.msk.f32.vlgmr.msra.gmra.mrb[18].mxu1 %vm1378_vm14, %v6207_v32 }
 0x1a5   : > { %v6214_v2 = vmax.f32 %v1221_v54, %v1296_v45  ;;  %v956_v8 = vmax.f32 %v5551_v17, %v897_v57  ;;  %v2353_v43 = vmax.f32 %v2225_v33, %v2321_v11  ;;  %v1122_v3 = vrot.slane %v5608_v31, 1  ;;  %4771 = vmatpush3.msra.mxu1 %v5519_v59 }
 0x1a6   : > { %v1030_v15 = vsel %vm1009_vm3, %v8715_v34, %v8714_v20  ;;  %v1255_v45 = vrot.slane %v5608_v31, 2  ;;  %v6231_v21 = vmax.f32 %v6102_v63, %v5572_v49  ;;  %v8716_v20 = vmax.f32 %v6076_v44, %v5572_v49 }
 0x1a7   : > { %4637 = vmatprep.mubr.msk.f32.mxu0 %vm1378_vm14, %v6214_v2  ;;  %v2029_v56 = vmax.f32 %v5572_v49, %v6214_v2  ;;  %v2130_v63 = vrot.slane %v6114_v35, 6  ;;  %v2481_v28 = vmax.f32 %v2353_v43, %v2443_v51  ;;  %v1089_v53 = vmax.f32 %v956_v8, %v1030_v15 }
 0x1a8   : > { %v6242_v54 = vmax.f32 %v8716_v20, %v6214_v2  ;;  %v1162_v59 = vsel %vm1142_vm11, %v1121_v62, %v1122_v3  ;;  %v1295_v57 = vsel %vm1275_vm6, %v1254_v1, %v1255_v45  ;;  %v2258_v34 = vrot.slane %v6114_v35, 7 }
 0x1a9   : > { %v1190_v33 = vsel %vm726_vm9, %v1162_v59, -inf  ;;  %v1323_v44 = vsel %vm734_vm10, %v1295_v57, -inf  ;;  %v2187_v11 = vsel %vm876_vm2, %v2129_v48, %v2130_v63  ;;  %v6258_v20 = vmax.f32 %v2481_v28, %v2571_v4 }
 0x1aa   : > { %v1222_v8 = vmax.f32 %v1089_v53, %v1190_v33  ;;  %v2226_v51 = vmax.f32 %v6114_v35, %v2187_v11  ;;  %v2387_v62 = vrot.slane %v6231_v21, 1  ;;  %v2315_v1 = vsel %vm1009_vm3, %v2257_v5, %v2258_v34 }
 0x1ab   : > { %v2515_v15 = vrot.slane %v6231_v21, 2  ;;  %v8717_v43 = vrot.slane %v5608_v31, 6  ;;  %v8718_v59 = vrot.slane %v5551_v17, 6  ;;  %v8719_v4 = vrot.slane %v5608_v31, 7  ;;  %4725 = vmatprep.mubr.msk.f32.mxu1 %vm1378_vm14, %v6258_v20 }
 0x1ac   : > { %v8720_v28 = vrot.slane %v5551_v17, 7  ;;  %v6281_v57 = vmax.f32 %v1222_v8, %v1323_v44  ;;  %v2354_v33 = vmax.f32 %v2226_v51, %v2315_v1  ;;  %v2442_v11 = vsel %vm1142_vm11, %v2386_v55, %v2387_v62 }
 0x1ad   : > { %v896_v48 = vsel %vm876_vm2, %v8718_v59, %v8717_v43  ;;  %v2450_v43 = vsel %vm726_vm9, %v2442_v11, -inf  ;;  %v2570_v17 = vsel %vm1275_vm6, %v2514_v7, %v2515_v15  ;;  %v8721_v55 = vmax.f32 %v6081_v46, %v5605_v10 }
 0x1ae   : > { %v1029_v53 = vsel %vm1009_vm3, %v8720_v28, %v8719_v4  ;;  %v925_v59 = vsel %vm707_vm4, %v896_v48, -inf  ;;  %4638 = vmatmul.mubr.msk.f32.gmra.mrb[42].mxu0 %vm1378_vm14, %v6281_v57  ;;  %v8722_v51 = vmax.f32 %v6110_v12, %v5605_v10  ;;  %v2482_v48 = vmax.f32 %v2354_v33, %v2450_v43 }
 0x1af   : > { %v1058_v4 = vsel %vm715_vm5, %v1029_v53, -inf  ;;  %v6301_v8 = vmax.f32 %v8721_v55, %v6281_v57  ;;  %v2578_v28 = vsel %vm734_vm10, %v2570_v17, -inf  ;;  %v957_v53 = vmax.f32 %v5608_v31, %v925_v59 }
 0x1b0   : > { %v6309_v1 = vmax.f32 %v8722_v51, %v6281_v57  ;;  %v1123_v11 = vrot.slane %v5594_v26, 1  ;;  %v1256_v7 = vrot.slane %v5594_v26, 2  ;;  %v6320_v44 = vmax.f32 %v6114_v35, %v5605_v10 }
 0x1b1   : > { %v6322_v12 = vmax.f32 %v2482_v48, %v2578_v28  ;;  %v1090_v33 = vmax.f32 %v957_v53, %v1058_v4  ;;  %v2131_v17 = vrot.slane %v6231_v21, 6  ;;  %v2259_v51 = vrot.slane %v6231_v21, 7 }
 0x1b2   : > { %v1161_v43 = vsel %vm1142_vm11, %v1122_v3, %v1123_v11  ;;  %v1294_v59 = vsel %vm1275_vm6, %v1255_v45, %v1256_v7  ;;  %v2388_v55 = vrot.slane %v6320_v44, 1  ;;  %v2516_v5 = vrot.slane %v6320_v44, 2 }
 0x1b3   : > { %4726 = vmatmul.mubr.msk.f32.gmra.mrb[20].mxu1 %vm1378_vm14, %v6322_v12  ;;  %v1223_v4 = vmax.f32 %v1090_v33, %v1161_v43  ;;  %v2186_v3 = vsel %vm876_vm2, %v2130_v63, %v2131_v17  ;;  %v8723_v48 = vrot.slane %v5594_v26, 6  ;;  %v8724_v45 = vrot.slane %v5608_v31, 6 }
 0x1b4   : > { %v2195_v53 = vsel %vm707_vm4, %v2186_v3, -inf  ;;  %v2314_v46 = vsel %vm1009_vm3, %v2258_v34, %v2259_v51  ;;  %v2441_v35 = vsel %vm1142_vm11, %v2387_v62, %v2388_v55  ;;  %v2569_v33 = vsel %vm1275_vm6, %v2515_v15, %v2516_v5 }
 0x1b5   : > { %v895_v28 = vsel %vm876_vm2, %v8724_v45, %v8723_v48  ;;  %v6352_v63 = vmax.f32 %v1223_v4, %v1294_v59  ;;  %v2227_v43 = vmax.f32 %v6231_v21, %v2195_v53  ;;  %v2323_v22 = vsel %vm715_vm5, %v2314_v46, -inf }
 0x1b6   : > { %v958_v48 = vmax.f32 %v5594_v26, %v895_v28  ;;  %v8725_v3 = vrot.slane %v5594_v26, 7  ;;  %v8726_v45 = vrot.slane %v5608_v31, 7  ;;  %v1124_v62 = vrot.slane %v5628_v14, 1 }
 0x1b7   : > { %v1257_v15 = vrot.slane %v5628_v14, 2  ;;  %v8727_v21 = vmax.f32 %v6098_v36, %v5572_v49  ;;  %4640 = vmatprep.mubr.msk.f32.mxu0 %vm1378_vm14, %v6352_v63  ;;  %v6380_v31 = vmax.f32 %v2029_v56, %v6352_v63  ;;  %v8728_v36 = vmax.f32 %v6117_v37, %v6214_v2 }
 0x1b8   : > { %v1028_v34 = vsel %vm1009_vm3, %v8726_v45, %v8725_v3  ;;  %v2355_v53 = vmax.f32 %v2227_v43, %v2323_v22  ;;  %v1160_v45 = vsel %vm1142_vm11, %v1123_v11, %v1124_v62  ;;  %v2132_v43 = vrot.slane %v6320_v44, 6 }
 0x1b9   : > { %v6370_v59 = vmax.f32 %v8727_v21, %v6214_v2  ;;  %v6388_v28 = vmax.f32 %v8728_v36, %v6352_v63  ;;  %v1091_v3 = vmax.f32 %v958_v48, %v1028_v34  ;;  %v1293_v49 = vsel %vm1275_vm6, %v1256_v7, %v1257_v15 }
 0x1ba   : > { %v2483_v36 = vmax.f32 %v2355_v53, %v2441_v35  ;;  %v1192_v22 = vsel %vm726_vm9, %v1160_v45, -inf  ;;  %v1325_v11 = vsel %vm734_vm10, %v1293_v49, -inf  ;;  %v8729_v48 = vrot.slane %v6309_v1, 6 }
 0x1bb   : > { %v2135_v56 = vrot.slane %v6388_v28, 6  ;;  %v1224_v34 = vmax.f32 %v1091_v3, %v1192_v22  ;;  %v2260_v46 = vrot.slane %v6320_v44, 7  ;;  %v2389_v4 = vrot.slane %v6370_v59, 1 }
 0x1bc   : > { %v6413_v53 = vmax.f32 %v2483_v36, %v2569_v33  ;;  %v2185_v45 = vsel %vm876_vm2, %v2131_v17, %v2132_v43  ;;  %v8627_v49 = vrot.slane %v6370_v59, 2  ;;  %v8730_v17 = vmax.f32 %v6177_v25, %v6258_v20 }
 0x1bd   : > { %v2182_v7 = vsel %vm876_vm2, %v8729_v48, %v2135_v56  ;;  %v6419_v21 = vmax.f32 %v1224_v34, %v1325_v11  ;;  %v2228_v3 = vmax.f32 %v6320_v44, %v2185_v45  ;;  %v2313_v22 = vsel %vm1009_vm3, %v2259_v51, %v2260_v46 }
 0x1be   : > { %v2199_v35 = vsel %vm707_vm4, %v2182_v7, -inf  ;;  %4728 = vmatprep.mubr.msk.f32.mxu1 %vm1378_vm14, %v6413_v53  ;;  %v6432_v36 = vmax.f32 %v8730_v17, %v6413_v53  ;;  %v2440_v11 = vsel %vm1142_vm11, %v2388_v55, %v2389_v4  ;;  %v2568_v44 = vsel %vm1275_vm6, %v2516_v5, %v8627_v49 }
 0x1bf   : > { %v2231_v37 = vmax.f32 %v6388_v28, %v2199_v35  ;;  %4641 = vmatmul.mubr.msk.f32.gmra.mrb[44].mxu0 %vm1378_vm14, %v6419_v21  ;;  %v8732_v25 = vmax.f32 %v5605_v10, %v6281_v57  ;;  %v8733_v7 = vmax.f32 %v6128_v18, %v6281_v57  ;;  %v2356_v34 = vmax.f32 %v2228_v3, %v2313_v22 }
 0x1c0   : > { %8731 = vst [vmem:[#allocation29_spill] sm:$0xff] %v6432_v36  ;;  %v2452_v35 = vsel %vm726_vm9, %v2440_v11, -inf  ;;  %v2580_v45 = vsel %vm734_vm10, %v2568_v44, -inf  ;;  %v8734_v10 = vrot.slane %v5628_v14, 6  ;;  %v8735_v17 = vrot.slane %v5594_v26, 6 }
 0x1c1   : > { %v6448_v48 = vmax.f32 %v8732_v25, %v6419_v21  ;;  %v6456_v5 = vmax.f32 %v8733_v7, %v6419_v21  ;;  %v2484_v22 = vmax.f32 %v2356_v34, %v2452_v35  ;;  %v8736_v44 = vrot.slane %v5628_v14, 7 }
 0x1c2   : > { %v894_v25 = vsel %vm876_vm2, %v8735_v17, %v8734_v10  ;;  %v8737_v51 = vrot.slane %v5594_v26, 7  ;;  %v1125_v10 = vrot.slane %v5621_v47, 1  ;;  %v8744_v30 = vrot.slane %v5621_v47, 6 }
 0x1c3   : > { %v8628_v55 = vrot.slane %v6456_v5, 6  ;;  %v2392_v7 = vrot.slane %v6456_v5, 1  ;;  %v927_v11 = vsel %vm707_vm4, %v894_v25, -inf  ;;  %v1258_v25 = vrot.slane %v5621_v47, 2 }
 0x1c4   : > { %v1027_v33 = vsel %vm1009_vm3, %v8737_v51, %v8736_v44  ;;  %v959_v34 = vmax.f32 %v5628_v14, %v927_v11  ;;  %v6493_v18 = vmax.f32 %v2484_v22, %v2580_v45  ;;  %v1159_v51 = vsel %vm1142_vm11, %v1124_v62, %v1125_v10 }
 0x1c5   : > { %v6485_v17 = vsel %vm876_vm2, %v2135_v56, %v8628_v55  ;;  %v1060_v35 = vsel %vm715_vm5, %v1027_v33, -inf  ;;  %v2133_v44 = vrot.slane %v6370_v59, 6  ;;  %v1292_v56 = vsel %vm1275_vm6, %v1257_v15, %v1258_v25 }
 0x1c6   : > { %v2232_v26 = vmax.f32 %v6456_v5, %v6485_v17  ;;  %v1092_v49 = vmax.f32 %v959_v34, %v1060_v35  ;;  %v2261_v33 = vrot.slane %v6370_v59, 7  ;;  %v8738_v11 = vrot.slane %v6388_v28, 7  ;;  %4729 = vmatmul.mubr.msk.f32.gmra.mrb[22].mxu1 %vm1378_vm14, %v6493_v18 }
 0x1c7   : > { %v8739_v55 = vrot.slane %v6309_v1, 7  ;;  %v8740_v22 = vmax.f32 %v6207_v32, %v6322_v12  ;;  %v2184_v17 = vsel %vm876_vm2, %v2132_v43, %v2133_v44  ;;  %v8741_v43 = vrot.slane %v6388_v28, 1 }
 0x1c8   : > { %v1225_v35 = vmax.f32 %v1092_v49, %v1159_v51 }
 0x1c9   : > { %v2310_v45 = vsel %vm1009_vm3, %v8739_v55, %v8738_v11  ;;  %v6517_v15 = vmax.f32 %v8740_v22, %v6493_v18  ;;  %v2197_v55 = vsel %vm707_vm4, %v2184_v17, -inf  ;;  %v2312_v11 = vsel %vm1009_vm3, %v2260_v46, %v2261_v33 }
 0x1ca   : > { %v2327_v34 = vsel %vm715_vm5, %v2310_v45, -inf  ;;  %v2229_v3 = vmax.f32 %v6370_v59, %v2197_v55  ;;  %v2325_v32 = vsel %vm715_vm5, %v2312_v11, -inf  ;;  %v2390_v22 = vrot.slane %v6309_v1, 1 }
 0x1cb   : > { %v2359_v62 = vmax.f32 %v2231_v37, %v2327_v34  ;;  %v2437_v49 = vsel %vm1142_vm11, %v8741_v43, %v2392_v7  ;;  %v6537_v51 = vmax.f32 %v1225_v35, %v1292_v56  ;;  %v2518_v46 = vrot.slane %v6309_v1, 2 }
 0x1cc   : > { %v8742_v37 = vrot.slane %v6456_v5, 2  ;;  %v8743_v17 = vrot.slane %v6388_v28, 2  ;;  %v2357_v55 = vmax.f32 %v2229_v3, %v2325_v32  ;;  %v2439_v11 = vsel %vm1142_vm11, %v2389_v4, %v2390_v22 }
 0x1cd   : > { %v2487_v45 = vmax.f32 %v2359_v62, %v2437_v49  ;;  %v8745_v43 = vrot.slane %v5628_v14, 6  ;;  %v8746_v62 = vrot.slane %v5621_v47, 7  ;;  %v8747_v35 = vrot.slane %v5628_v14, 7  ;;  %4643 = vmatprep.mubr.msk.f32.mxu0 %vm1378_vm14, %v6537_v51 }
 0x1ce   : > { %v2565_v34 = vsel %vm1275_vm6, %v8743_v17, %v8742_v37  ;;  %v8748_v3 = vmax.f32 %v6214_v2, %v6352_v63  ;;  %v8749_v14 = vmax.f32 %v6242_v54, %v6352_v63  ;;  %v2485_v17 = vmax.f32 %v2357_v55, %v2439_v11 }
 0x1cf   : > { %v893_v56 = vsel %vm876_vm2, %v8745_v43, %v8744_v30  ;;  %v1026_v49 = vsel %vm1009_vm3, %v8747_v35, %v8746_v62  ;;  %v8750_v43 = vrot.slane %v6370_v59, 2  ;;  %v6582_v35 = vmax.f32 %v2487_v45, %v2565_v34 }
 0x1d0   : > { %v6568_v32 = vmax.f32 %v8748_v3, %v6537_v51  ;;  %v6576_v37 = vmax.f32 %v8749_v14, %v6537_v51  ;;  %v960_v2 = vmax.f32 %v5621_v47, %v893_v56  ;;  %v1126_v4 = vrot.slane %v5641_v13, 1 }
 0x1d1   : > { %v2567_v62 = vsel %vm1275_vm6, %v8750_v43, %v2518_v46  ;;  %v1259_v54 = vrot.slane %v5641_v13, 2  ;;  %v8752_v59 = vrot.slane %v6309_v1, 6  ;;  %v8753_v45 = vrot.slane %v6456_v5, 7 }
 0x1d2   : > { %v2393_v3 = vrot.slane %v6576_v37, 1  ;;  %v2521_v30 = vrot.slane %v6576_v37, 2  ;;  %v6589_v14 = vmax.f32 %v2485_v17, %v2567_v62  ;;  %v1093_v55 = vmax.f32 %v960_v2, %v1026_v49 }
 0x1d3   : > { %v2183_v11 = vsel %vm876_vm2, %v2133_v44, %v8752_v59  ;;  %v8754_v34 = vrot.slane %v6388_v28, 7  ;;  %v1158_v43 = vsel %vm1142_vm11, %v1125_v10, %v1126_v4  ;;  %v1291_v17 = vsel %vm1275_vm6, %v1258_v25, %v1259_v54 }
 0x1d4   : > { %8751 = vst [vmem:[#allocation30_spill] sm:$0xff] %v6589_v14  ;;  %v2230_v49 = vmax.f32 %v6309_v1, %v2183_v11  ;;  %v8755_v62 = vrot.slane %v6309_v1, 7  ;;  %4731 = vmatprep.mubr.msk.f32.mxu1 %vm1378_vm14, %v6589_v14  ;;  %v2998_v2 = vmax.f32 %v6413_v53, %v6589_v14  ;;  %v8756_v10 = vmax.f32 %v6258_v20, %v6413_v53 }
 0x1d5   : > { %v2309_v56 = vsel %vm1009_vm3, %v8754_v34, %v8753_v45  ;;  %v6624_v1 = vmax.f32 %v6432_v36, %v6589_v14  ;;  %v1327_v11 = vsel %vm734_vm10, %v1291_v17, -inf }
 0x1d6   : > { %v2311_v44 = vsel %vm1009_vm3, %v2261_v33, %v8755_v62  ;;  %v6620_v25 = vmax.f32 %v8756_v10, %v6589_v14  ;;  %v1194_v33 = vsel %vm726_vm9, %v1158_v43, -inf  ;;  %v2360_v34 = vmax.f32 %v2232_v26, %v2309_v56 }
 0x1d7   : > { %v2358_v45 = vmax.f32 %v2230_v49, %v2311_v44  ;;  %v6631_v62 = vmax.f32 %v2998_v2, %v6582_v35  ;;  %v1226_v53 = vmax.f32 %v1093_v55, %v1194_v33  ;;  %v2436_v10 = vsel %vm1142_vm11, %v2392_v7, %v2393_v3 }
 0x1d8   : > { %v8757_v43 = vrot.slane %v6388_v28, 1  ;;  %v2456_v26 = vsel %vm726_vm9, %v2436_v10, -inf  ;;  %v8758_v56 = vrot.slane %v6456_v5, 2  ;;  %v8759_v49 = vrot.slane %v6388_v28, 2 }
 0x1d9   : > { %v6657_v44 = vmax.f32 %v1226_v53, %v1327_v11  ;;  %v2488_v2 = vmax.f32 %v2360_v34, %v2456_v26  ;;  %v8761_v28 = vrot.slane %v5621_v47, 6  ;;  %v8762_v11 = vrot.slane %v5641_v13, 7 }
 0x1da   : > { %v2438_v17 = vsel %vm1142_vm11, %v2390_v22, %v8757_v43  ;;  %v2564_v55 = vsel %vm1275_vm6, %v8758_v56, %v2521_v30  ;;  %v2566_v7 = vsel %vm1275_vm6, %v2518_v46, %v8759_v49  ;;  %v8760_v56 = vrot.slane %v5641_v13, 6 }
 0x1db   : > { %v2454_v22 = vsel %vm726_vm9, %v2438_v17, -inf  ;;  %v2582_v33 = vsel %vm734_vm10, %v2566_v7, -inf  ;;  %v2584_v43 = vsel %vm734_vm10, %v2564_v55, -inf  ;;  %v8763_v53 = vrot.slane %v5621_v47, 7  ;;  %4644 = vmatmul.mubr.msk.f32.gmra.mrb[46].mxu0 %vm1378_vm14, %v6657_v44 }
 0x1dc   : > { %v2486_v10 = vmax.f32 %v2358_v45, %v2454_v22  ;;  %v892_v46 = vsel %vm876_vm2, %v8761_v28, %v8760_v56  ;;  %v2034_v45 = vmax.f32 %v6419_v21, %v6657_v44  ;;  %v8764_v17 = vmax.f32 %v6281_v57, %v6419_v21 }
 0x1dd   : > { %v1025_v34 = vsel %vm1009_vm3, %v8763_v53, %v8762_v11  ;;  %v6689_v49 = vmax.f32 %v2488_v2, %v2584_v43  ;;  %v929_v7 = vsel %vm707_vm4, %v892_v46, -inf  ;;  %v1127_v56 = vrot.slane %v5634_v41, 1 }
 0x1de   : > { %v6685_v26 = vmax.f32 %v8764_v17, %v6657_v44  ;;  %v6691_v47 = vmax.f32 %v2486_v10, %v2582_v33  ;;  %v1062_v22 = vsel %vm715_vm5, %v1025_v34, -inf  ;;  %v961_v28 = vmax.f32 %v5641_v13, %v929_v7 }
 0x1df   : > { %v1260_v57 = vrot.slane %v5634_v41, 2  ;;  %v8766_v11 = vrot.slane %v5634_v41, 6  ;;  %v8767_v53 = vrot.slane %v5641_v13, 6  ;;  %v8768_v33 = vrot.slane %v5634_v41, 7 }
 0x1e0   : > { %8765 = vst [vmem:[#allocation31_spill] sm:$0xff] %v6691_v47  ;;  %v8769_v10 = vrot.slane %v5641_v13, 7  ;;  %4732 = vmatmul.mubr.msk.f32.gmra.mrb[24].mxu1 %vm1378_vm14, %v6691_v47  ;;  %v2999_v46 = vmax.f32 %v6493_v18, %v6691_v47  ;;  %v8770_v17 = vmax.f32 %v6322_v12, %v6493_v18  ;;  %v6726_v13 = vmax.f32 %v6517_v15, %v6691_v47 }
 0x1e1   : > { %v891_v2 = vsel %vm876_vm2, %v8767_v53, %v8766_v11  ;;  %v1094_v11 = vmax.f32 %v961_v28, %v1062_v22  ;;  %v1157_v53 = vsel %vm1142_vm11, %v1126_v4, %v1127_v56  ;;  %4734 = vmatprep.mubr.msk.f32.mxu1 %vm1378_vm14, %v6582_v35  ;;  %v1261_v22 = vrot.slane %v5669_v52, 2 }
 0x1e2   : > { %v1024_v43 = vsel %vm1009_vm3, %v8769_v10, %v8768_v33  ;;  %v6722_v7 = vmax.f32 %v8770_v17, %v6691_v47  ;;  %v1290_v33 = vsel %vm1275_vm6, %v1259_v54, %v1260_v57  ;;  %v962_v10 = vmax.f32 %v5634_v41, %v891_v2 }
 0x1e3   : > { %v6736_v12 = vmax.f32 %v2999_v46, %v6689_v49  ;;  %v1128_v17 = vrot.slane %v5669_v52, 1  ;;  %v1227_v28 = vmax.f32 %v1094_v11, %v1157_v53  ;;  %v8771_v34 = vrot.slane %v5669_v52, 6 }
 0x1e4   : > { %v1095_v4 = vmax.f32 %v962_v10, %v1024_v43  ;;  %v8772_v54 = vrot.slane %v5634_v41, 6  ;;  %v8773_v2 = vrot.slane %v5669_v52, 7  ;;  %v8774_v46 = vrot.slane %v5634_v41, 7  ;;  %4735 = vmatmul.mubr.msk.f32.gmra.mrb[26].mxu1 %vm1378_vm14, %v6689_v49 }
 0x1e5   : > { %v1156_v20 = vsel %vm1142_vm11, %v1127_v56, %v1128_v17  ;;  %v1289_v43 = vsel %vm1275_vm6, %v1260_v57, %v1261_v22  ;;  %v6764_v53 = vmax.f32 %v1227_v28, %v1290_v33  ;;  %v8776_v33 = vmax.f32 %v6352_v63, %v6537_v51 }
 0x1e6   : > { %v890_v59 = vsel %vm876_vm2, %v8772_v54, %v8771_v34  ;;  %v1023_v18 = vsel %vm1009_vm3, %v8774_v46, %v8773_v2  ;;  %v1196_v41 = vsel %vm726_vm9, %v1156_v20, -inf  ;;  %v1329_v56 = vsel %vm734_vm10, %v1289_v43, -inf }
 0x1e7   : > { %v931_v11 = vsel %vm707_vm4, %v890_v59, -inf  ;;  %v1064_v34 = vsel %vm715_vm5, %v1023_v18, -inf  ;;  %v1228_v57 = vmax.f32 %v1095_v4, %v1196_v41  ;;  %v1129_v54 = vrot.slane %v5661_v6, 1  ;;  %4646 = vmatprep.mubr.msk.f32.mxu0 %vm1378_vm14, %v6764_v53 }
 0x1e8   : > { %v963_v10 = vmax.f32 %v5669_v52, %v931_v11  ;;  %v1262_v2 = vrot.slane %v5661_v6, 2  ;;  %v8775_v59 = vmax.f32 %v6301_v8, %v6419_v21  ;;  %v2035_v20 = vmax.f32 %v6537_v51, %v6764_v53 }
 0x1e9   : > { %v6787_v28 = vmax.f32 %v8776_v33, %v6764_v53  ;;  %v2087_v4 = vmax.f32 %v6568_v32, %v6764_v53  ;;  %v8777_v8 = vmax.f32 %v6380_v31, %v6537_v51  ;;  %v6797_v46 = vmax.f32 %v1228_v57, %v1329_v56 }
 0x1ea   : > { %v6777_v18 = vmax.f32 %v8775_v59, %v6657_v44  ;;  %v1096_v43 = vmax.f32 %v963_v10, %v1064_v34  ;;  %v1155_v11 = vsel %vm1142_vm11, %v1128_v17, %v1129_v54  ;;  %v1288_v63 = vsel %vm1275_vm6, %v1261_v22, %v1262_v2 }
 0x1eb   : > { %v6795_v21 = vmax.f32 %v8777_v8, %v6764_v53  ;;  %v2137_v41 = vrot.slane %v6576_v37, 6  ;;  %v2265_v59 = vrot.slane %v6576_v37, 7  ;;  %4647 = vmatmul.mubr.msk.f32.gmra.mrb[48].mxu0 %vm1378_vm14, %v6797_v46  ;;  %v2036_v31 = vmax.f32 %v6657_v44, %v6797_v46 }
 0x1ec   : > { %v2394_v32 = vrot.slane %v6777_v18, 1  ;;  %v2522_v33 = vrot.slane %v6777_v18, 2  ;;  %v6812_v51 = vmax.f32 %v2034_v45, %v6797_v46  ;;  %v1229_v22 = vmax.f32 %v1096_v43, %v1155_v11 }
 0x1ed   : > { %v8778_v34 = vrot.slane %v6456_v5, 6  ;;  %v8779_v10 = vrot.slane %v6456_v5, 7  ;;  %v2395_v47 = vrot.slane %v6795_v21, 1 }
 0x1ee   : > { %v2435_v45 = vsel %vm1142_vm11, %v2393_v3, %v2394_v32  ;;  %v2563_v8 = vsel %vm1275_vm6, %v2521_v30, %v2522_v33  ;;  %v6832_v43 = vmax.f32 %v1229_v22, %v1288_v63  ;;  %v8782_v30 = vrot.slane %v5661_v6, 7 }
 0x1ef   : > { %v2180_v56 = vsel %vm876_vm2, %v8778_v34, %v2137_v41  ;;  %v2308_v57 = vsel %vm1009_vm3, %v8779_v10, %v2265_v59  ;;  %v8780_v34 = vrot.slane %v5661_v6, 6  ;;  %v8781_v10 = vrot.slane %v5669_v52, 6 }
 0x1f0   : > { %v2201_v11 = vsel %vm707_vm4, %v2180_v56, -inf  ;;  %v2329_v5 = vsel %vm715_vm5, %v2308_v57, -inf  ;;  %v8783_v63 = vrot.slane %v5669_v52, 7  ;;  %v1130_v56 = vrot.slane %v5684_v50, 1  ;;  %4649 = vmatprep.mubr.msk.f32.mxu0 %vm1378_vm14, %v6832_v43 }
 0x1f1   : > { %v889_v3 = vsel %vm876_vm2, %v8781_v10, %v8780_v34  ;;  %v2233_v17 = vmax.f32 %v6576_v37, %v2201_v11  ;;  %v6858_v34 = vmax.f32 %v2035_v20, %v6832_v43  ;;  %v6863_v11 = vmax.f32 %v2087_v4, %v6832_v43 }
 0x1f2   : > { %v964_v55 = vmax.f32 %v5661_v6, %v889_v3  ;;  %v1022_v22 = vsel %vm1009_vm3, %v8783_v63, %v8782_v30  ;;  %v1154_v3 = vsel %vm1142_vm11, %v1129_v54, %v1130_v56  ;;  %v1263_v30 = vrot.slane %v5684_v50, 2 }
 0x1f3   : > { %v2361_v52 = vmax.f32 %v2233_v17, %v2329_v5  ;;  %v1198_v63 = vsel %vm726_vm9, %v1154_v3, -inf  ;;  %v2138_v57 = vrot.slane %v6777_v18, 6  ;;  %v2266_v20 = vrot.slane %v6777_v18, 7 }
 0x1f4   : > { %v1097_v10 = vmax.f32 %v964_v55, %v1022_v22  ;;  %v1287_v4 = vsel %vm1275_vm6, %v1262_v2, %v1263_v30  ;;  %v2523_v55 = vrot.slane %v6795_v21, 2  ;;  %v2434_v22 = vsel %vm1142_vm11, %v2394_v32, %v2395_v47 }
 0x1f5   : > { %v2489_v37 = vmax.f32 %v2361_v52, %v2435_v45  ;;  %v1331_v54 = vsel %vm734_vm10, %v1287_v4, -inf  ;;  %v2179_v17 = vsel %vm876_vm2, %v2137_v41, %v2138_v57  ;;  %v2307_v5 = vsel %vm1009_vm3, %v2265_v59, %v2266_v20 }
 0x1f6   : > { %v1230_v14 = vmax.f32 %v1097_v10, %v1198_v63  ;;  %v2234_v2 = vmax.f32 %v6777_v18, %v2179_v17  ;;  %v2458_v52 = vsel %vm726_vm9, %v2434_v22, -inf  ;;  %v2562_v10 = vsel %vm1275_vm6, %v2522_v33, %v2523_v55 }
 0x1f7   : > { %v6884_v3 = vmax.f32 %v2489_v37, %v2563_v8  ;;  %v8784_v41 = vrot.slane %v5684_v50, 6  ;;  %v8785_v63 = vrot.slane %v5661_v6, 6  ;;  %v8786_v32 = vrot.slane %v5684_v50, 7 }
 0x1f8   : > { %v6886_v45 = vmax.f32 %v1230_v14, %v1331_v54  ;;  %v8787_v14 = vrot.slane %v5661_v6, 7  ;;  %v1131_v8 = vrot.slane %v5682_v19, 1  ;;  %v2586_v4 = vsel %vm734_vm10, %v2562_v10, -inf }
 0x1f9   : > { %v888_v59 = vsel %vm876_vm2, %v8785_v63, %v8784_v41  ;;  %4737 = vmatprep.mubr.msk.f32.mxu1 %vm1378_vm14, %v6884_v3  ;;  %v2362_v54 = vmax.f32 %v2234_v2, %v2307_v5  ;;  %v2139_v5 = vrot.slane %v6795_v21, 6  ;;  %v2267_v10 = vrot.slane %v6795_v21, 7 }
 0x1fa   : > { %v1021_v18 = vsel %vm1009_vm3, %v8787_v14, %v8786_v32  ;;  %4650 = vmatmul.mubr.msk.f32.gmra.mrb[50].mxu0 %vm1378_vm14, %v6886_v45  ;;  %v6913_v37 = vmax.f32 %v2036_v31, %v6886_v45  ;;  %v933_v17 = vsel %vm707_vm4, %v888_v59, -inf  ;;  %v1153_v41 = vsel %vm1142_vm11, %v1130_v56, %v1131_v8 }
 0x1fb   : > { %v1066_v22 = vsel %vm715_vm5, %v1021_v18, -inf  ;;  %v965_v63 = vmax.f32 %v5684_v50, %v933_v17  ;;  %v1264_v31 = vrot.slane %v5682_v19, 2  ;;  %v8788_v32 = vmax.f32 %v6448_v48, %v6657_v44 }
 0x1fc   : > { %v2490_v2 = vmax.f32 %v2362_v54, %v2458_v52  ;;  %v8789_v59 = vrot.slane %v5682_v19, 6  ;;  %v8790_v18 = vrot.slane %v5684_v50, 6  ;;  %v8791_v17 = vrot.slane %v5682_v19, 7 }
 0x1fd   : > { %v6931_v14 = vmax.f32 %v8788_v32, %v6797_v46  ;;  %v8792_v6 = vrot.slane %v5684_v50, 7  ;;  %v1098_v44 = vmax.f32 %v965_v63, %v1066_v22  ;;  %v1286_v52 = vsel %vm1275_vm6, %v1263_v30, %v1264_v31 }
 0x1fe   : > { %v887_v56 = vsel %vm876_vm2, %v8790_v18, %v8789_v59  ;;  %v2178_v54 = vsel %vm876_vm2, %v2138_v57, %v2139_v5  ;;  %v6952_v33 = vmax.f32 %v2490_v2, %v2586_v4  ;;  %v2306_v50 = vsel %vm1009_vm3, %v2266_v20, %v2267_v10 }
 0x1ff   : > { %v1020_v48 = vsel %vm1009_vm3, %v8792_v6, %v8791_v17  ;;  %v2396_v32 = vrot.slane %v6931_v14, 1  ;;  %v2203_v59 = vsel %vm707_vm4, %v2178_v54, -inf  ;;  %v2524_v18 = vrot.slane %v6931_v14, 2 }
 0x200   : > { %v1231_v6 = vmax.f32 %v1098_v44, %v1153_v41  ;;  %v2235_v22 = vmax.f32 %v6795_v21, %v2203_v59  ;;  %v2331_v30 = vsel %vm715_vm5, %v2306_v50, -inf  ;;  %4738 = vmatmul.mubr.msk.f32.gmra.mrb[28].mxu1 %vm1378_vm14, %v6952_v33  ;;  %v966_v63 = vmax.f32 %v5682_v19, %v887_v56 }
 0x201   : > { %v2433_v57 = vsel %vm1142_vm11, %v2395_v47, %v2396_v32  ;;  %v2561_v4 = vsel %vm1275_vm6, %v2523_v55, %v2524_v18  ;;  %v1132_v20 = vrot.slane %v5706_v16, 1  ;;  %v1265_v41 = vrot.slane %v5706_v16, 2 }
 0x202   : > { %v6971_v2 = vmax.f32 %v1231_v6, %v1286_v52  ;;  %v2363_v21 = vmax.f32 %v2235_v22, %v2331_v30  ;;  %v2140_v17 = vrot.slane %v6931_v14, 6  ;;  %v2268_v44 = vrot.slane %v6931_v14, 7 }
 0x203   : > { %v1099_v47 = vmax.f32 %v966_v63, %v1020_v48  ;;  %v1152_v54 = vsel %vm1142_vm11, %v1131_v8, %v1132_v20  ;;  %v1285_v55 = vsel %vm1275_vm6, %v1264_v31, %v1265_v41  ;;  %v2397_v56 = vrot.slane %v6863_v11, 1 }
 0x204   : > { %4652 = vmatprep.mubr.msk.f32.mxu0 %vm1378_vm14, %v6971_v2  ;;  %v2039_v52 = vmax.f32 %v6832_v43, %v6971_v2  ;;  %v8793_v59 = vmax.f32 %v6764_v53, %v6832_v43  ;;  %v2091_v8 = vmax.f32 %v6858_v34, %v6971_v2  ;;  %v8794_v31 = vmax.f32 %v6787_v28, %v6832_v43 }
 0x205   : > { %v2491_v6 = vmax.f32 %v2363_v21, %v2433_v57  ;;  %v1200_v22 = vsel %vm726_vm9, %v1152_v54, -inf  ;;  %v1333_v30 = vsel %vm734_vm10, %v1285_v55, -inf  ;;  %v2177_v53 = vsel %vm876_vm2, %v2139_v5, %v2140_v17 }
 0x206   : > { %v6988_v50 = vmax.f32 %v8793_v59, %v6971_v2  ;;  %v6996_v48 = vmax.f32 %v8794_v31, %v6971_v2  ;;  %v1232_v63 = vmax.f32 %v1099_v47, %v1200_v22  ;;  %v2236_v59 = vmax.f32 %v6931_v14, %v2177_v53 }
 0x207   : > { %v2305_v34 = vsel %vm1009_vm3, %v2267_v10, %v2268_v44  ;;  %v2432_v28 = vsel %vm1142_vm11, %v2396_v32, %v2397_v56  ;;  %v7009_v43 = vmax.f32 %v2491_v6, %v2561_v4  ;;  %v2525_v21 = vrot.slane %v6863_v11, 2 }
 0x208   : > { %v2460_v57 = vsel %vm726_vm9, %v2432_v28, -inf  ;;  %v8795_v54 = vrot.slane %v5706_v16, 6  ;;  %v8796_v5 = vrot.slane %v5682_v19, 6  ;;  %v7020_v47 = vmax.f32 %v1232_v63, %v1333_v30 }
 0x209   : > { %v2364_v10 = vmax.f32 %v2236_v59, %v2305_v34  ;;  %v8797_v4 = vrot.slane %v5706_v16, 7  ;;  %v8798_v55 = vrot.slane %v5682_v19, 7  ;;  %4740 = vmatprep.mubr.msk.f32.mxu1 %vm1378_vm14, %v7009_v43  ;;  %v2560_v6 = vsel %vm1275_vm6, %v2524_v18, %v2525_v21 }
 0x20a   : > { %v886_v14 = vsel %vm876_vm2, %v8796_v5, %v8795_v54  ;;  %v1133_v53 = vrot.slane %v5692_v29, 1  ;;  %4653 = vmatmul.mubr.msk.f32.gmra.mrb[52].mxu0 %vm1378_vm14, %v7020_v47  ;;  %v2040_v19 = vmax.f32 %v6886_v45, %v7020_v47  ;;  %v8799_v63 = vmax.f32 %v6797_v46, %v6886_v45 }
 0x20b   : > { %v935_v32 = vsel %vm707_vm4, %v886_v14, -inf  ;;  %v1019_v31 = vsel %vm1009_vm3, %v8798_v55, %v8797_v4  ;;  %v2492_v34 = vmax.f32 %v2364_v10, %v2460_v57  ;;  %v2588_v28 = vsel %vm734_vm10, %v2560_v6, -inf }
 0x20c   : > { %v967_v22 = vmax.f32 %v5706_v16, %v935_v32  ;;  %v1068_v30 = vsel %vm715_vm5, %v1019_v31, -inf  ;;  %v7046_v59 = vmax.f32 %v8799_v63, %v7020_v47  ;;  %v1151_v5 = vsel %vm1142_vm11, %v1132_v20, %v1133_v53 }
 0x20d   : > { %v1266_v14 = vrot.slane %v5692_v29, 2  ;;  %v7055_v32 = vmax.f32 %v2492_v34, %v2588_v28  ;;  %v8800_v4 = vmax.f32 %v6685_v26, %v6797_v46  ;;  %v2141_v31 = vrot.slane %v6863_v11, 6 }
 0x20e   : > { %v1100_v54 = vmax.f32 %v967_v22, %v1068_v30  ;;  %v2269_v57 = vrot.slane %v6863_v11, 7  ;;  %v8801_v20 = vrot.slane %v5692_v29, 6  ;;  %v8802_v22 = vrot.slane %v5706_v16, 6 }
 0x20f   : > { %v7061_v55 = vmax.f32 %v8800_v4, %v6886_v45  ;;  %v1284_v6 = vsel %vm1275_vm6, %v1265_v41, %v1266_v14  ;;  %v8803_v63 = vrot.slane %v5692_v29, 7  ;;  %v8804_v26 = vrot.slane %v5706_v16, 7  ;;  %4741 = vmatmul.mubr.msk.f32.gmra.mrb[30].mxu1 %vm1378_vm14, %v7055_v32 }
 0x210   : > { %v1233_v10 = vmax.f32 %v1100_v54, %v1151_v5  ;;  %v885_v30 = vsel %vm876_vm2, %v8802_v22, %v8801_v20  ;;  %v2176_v41 = vsel %vm876_vm2, %v2140_v17, %v2141_v31  ;;  %v2304_v34 = vsel %vm1009_vm3, %v2268_v44, %v2269_v57 }
 0x211   : > { %v1018_v46 = vsel %vm1009_vm3, %v8804_v26, %v8803_v63  ;;  %v2398_v28 = vrot.slane %v7061_v55, 1  ;;  %v2526_v54 = vrot.slane %v7061_v55, 2  ;;  %v2205_v16 = vsel %vm707_vm4, %v2176_v41, -inf }
 0x212   : > { %v7087_v5 = vmax.f32 %v1233_v10, %v1284_v6  ;;  %v2333_v4 = vsel %vm715_vm5, %v2304_v34, -inf  ;;  %v968_v20 = vmax.f32 %v5692_v29, %v885_v30  ;;  %v2237_v22 = vmax.f32 %v6863_v11, %v2205_v16 }
 0x213   : > { %v2431_v17 = vsel %vm1142_vm11, %v2397_v56, %v2398_v28  ;;  %v2559_v44 = vsel %vm1275_vm6, %v2525_v21, %v2526_v54  ;;  %v8805_v63 = vrot.slane %v5719_v27, 1  ;;  %v8806_v41 = vrot.slane %v5719_v27, 2 }
 0x214   : > { %4655 = vmatprep.mubr.msk.f32.mxu0 %vm1378_vm14, %v7087_v5  ;;  %v7106_v6 = vmax.f32 %v2039_v52, %v7087_v5  ;;  %v2093_v11 = vmax.f32 %v6988_v50, %v7087_v5  ;;  %v7111_v30 = vmax.f32 %v2091_v8, %v7087_v5  ;;  %v1101_v56 = vmax.f32 %v968_v20, %v1018_v46 }
 0x215   : > { %v1150_v10 = vsel %vm1142_vm11, %v1133_v53, %v8805_v63  ;;  %v2365_v26 = vmax.f32 %v2237_v22, %v2333_v4  ;;  %v1283_v53 = vsel %vm1275_vm6, %v1266_v14, %v8806_v41  ;;  %v2142_v34 = vrot.slane %v7061_v55, 6 }
 0x216   : > { %v1202_v21 = vsel %vm726_vm9, %v1150_v10, -inf  ;;  %v1335_v16 = vsel %vm734_vm10, %v1283_v53, -inf  ;;  %v2270_v63 = vrot.slane %v7061_v55, 7  ;;  %v2399_v8 = vrot.slane %v6996_v48, 1 }
 0x217   : > { %v1234_v52 = vmax.f32 %v1101_v56, %v1202_v21  ;;  %v2493_v46 = vmax.f32 %v2365_v26, %v2431_v17  ;;  %v2175_v4 = vsel %vm876_vm2, %v2141_v31, %v2142_v34  ;;  %v2527_v20 = vrot.slane %v6996_v48, 2 }
 0x218   : > { %v8807_v22 = vrot.slane %v5719_v27, 6  ;;  %v8808_v14 = vrot.slane %v5692_v29, 6  ;;  %v2238_v21 = vmax.f32 %v7061_v55, %v2175_v4  ;;  %v2303_v41 = vsel %vm1009_vm3, %v2269_v57, %v2270_v63 }
 0x219   : > { %v7133_v56 = vmax.f32 %v1234_v52, %v1335_v16  ;;  %v2430_v17 = vsel %vm1142_vm11, %v2398_v28, %v2399_v8  ;;  %v7140_v31 = vmax.f32 %v2493_v46, %v2559_v44  ;;  %v2558_v53 = vsel %vm1275_vm6, %v2526_v54, %v2527_v20 }
 0x21a   : > { %v884_v10 = vsel %vm876_vm2, %v8808_v14, %v8807_v22  ;;  %v2462_v26 = vsel %vm726_vm9, %v2430_v17, -inf  ;;  %v2366_v44 = vmax.f32 %v2238_v21, %v2303_v41  ;;  %v2590_v54 = vsel %vm734_vm10, %v2558_v53, -inf }
 0x21b   : > { %v937_v52 = vsel %vm707_vm4, %v884_v10, -inf  ;;  %4656 = vmatmul.mubr.msk.f32.gmra.mrb[54].mxu0 %vm1378_vm14, %v7133_v56  ;;  %v2042_v55 = vmax.f32 %v7020_v47, %v7133_v56  ;;  %v7153_v57 = vmax.f32 %v2040_v19, %v7133_v56  ;;  %4743 = vmatprep.mubr.msk.f32.mxu1 %vm1378_vm14, %v7140_v31  ;;  %v8809_v46 = vrot.slane %v5719_v27, 7 }
 0x21c   : > { %v969_v16 = vmax.f32 %v5719_v27, %v937_v52  ;;  %v8810_v4 = vrot.slane %v5692_v29, 7  ;;  %v8811_v22 = vrot.slane %v5717_v38, 1  ;;  %v8812_v14 = vrot.slane %v5719_v27, 1 }
 0x21d   : > { %v2494_v21 = vmax.f32 %v2366_v44, %v2462_v26  ;;  %v1268_v17 = vrot.slane %v5717_v38, 2  ;;  %v8813_v29 = vmax.f32 %v6812_v51, %v6886_v45  ;;  %v8814_v28 = vrot.slane %v5717_v38, 6 }
 0x21e   : > { %v1017_v19 = vsel %vm1009_vm3, %v8810_v4, %v8809_v46  ;;  %v1149_v10 = vsel %vm1142_vm11, %v8812_v14, %v8811_v22  ;;  %v2143_v46 = vrot.slane %v6996_v48, 6  ;;  %v2271_v4 = vrot.slane %v6996_v48, 7 }
 0x21f   : > { %v1070_v41 = vsel %vm715_vm5, %v1017_v19, -inf  ;;  %v7181_v53 = vmax.f32 %v8813_v29, %v7020_v47  ;;  %v8815_v26 = vrot.slane %v5719_v27, 6  ;;  %v7191_v19 = vmax.f32 %v2494_v21, %v2590_v54 }
 0x220   : > { %v1102_v52 = vmax.f32 %v969_v16, %v1070_v41  ;;  %v8816_v22 = vrot.slane %v5719_v27, 2  ;;  %v2174_v41 = vsel %vm876_vm2, %v2142_v34, %v2143_v46  ;;  %v2302_v29 = vsel %vm1009_vm3, %v2270_v63, %v2271_v4 }
 0x221   : > { %v883_v44 = vsel %vm876_vm2, %v8815_v26, %v8814_v28  ;;  %v2400_v45 = vrot.slane %v7181_v53, 1  ;;  %v2528_v16 = vrot.slane %v7181_v53, 2  ;;  %4744 = vmatmul.mubr.msk.f32.gmra.mrb[0].mxu1 %vm1378_vm14, %v7191_v19  ;;  %v2207_v54 = vsel %vm707_vm4, %v2174_v41, -inf }
 0x222   : > { %v1282_v51 = vsel %vm1275_vm6, %v8816_v22, %v1268_v17  ;;  %v1235_v14 = vmax.f32 %v1102_v52, %v1149_v10  ;;  %v970_v28 = vmax.f32 %v5717_v38, %v883_v44  ;;  %v2335_v21 = vsel %vm715_vm5, %v2302_v29, -inf }
 0x223   : > { %v2429_v10 = vsel %vm1142_vm11, %v2399_v8, %v2400_v45  ;;  %v2557_v34 = vsel %vm1275_vm6, %v2527_v20, %v2528_v16  ;;  %v2239_v63 = vmax.f32 %v6996_v48, %v2207_v54  ;;  %v8817_v26 = vrot.slane %v5717_v38, 7 }
 0x224   : > { %v7214_v52 = vmax.f32 %v1235_v14, %v1282_v51  ;;  %v8818_v44 = vrot.slane %v5719_v27, 7  ;;  %v8819_v41 = vrot.slane %v5762_v24, 1  ;;  %v8820_v29 = vrot.slane %v5717_v38, 1 }
 0x225   : > { %v8821_v48 = vrot.slane %v5762_v24, 2  ;;  %v2144_v27 = vrot.slane %v7181_v53, 6  ;;  %v2367_v54 = vmax.f32 %v2239_v63, %v2335_v21  ;;  %v8822_v50 = vrot.slane %v5762_v24, 7 }
 0x226   : > { %v1016_v22 = vsel %vm1009_vm3, %v8818_v44, %v8817_v26  ;;  %v1148_v8 = vsel %vm1142_vm11, %v8820_v29, %v8819_v41  ;;  %4658 = vmatprep.mubr.msk.f32.mxu0 %vm1378_vm14, %v7214_v52  ;;  %v2095_v14 = vmax.f32 %v7106_v6, %v7214_v52  ;;  %v2401_v41 = vrot.slane %v7111_v30, 1 }
 0x227   : > { %v1103_v18 = vmax.f32 %v970_v28, %v1016_v22  ;;  %v1204_v20 = vsel %vm726_vm9, %v1148_v8, -inf  ;;  %v1281_v51 = vsel %vm1275_vm6, %v1268_v17, %v8821_v48  ;;  %v7244_v28 = vmax.f32 %v2093_v11, %v7214_v52 }
 0x228   : > { %v1337_v26 = vsel %vm734_vm10, %v1281_v51, -inf  ;;  %v2173_v17 = vsel %vm876_vm2, %v2143_v46, %v2144_v27  ;;  %v2272_v22 = vrot.slane %v7181_v53, 7  ;;  %v2495_v29 = vmax.f32 %v2367_v54, %v2429_v10 }
 0x229   : > { %v1236_v44 = vmax.f32 %v1103_v18, %v1204_v20  ;;  %v2240_v6 = vmax.f32 %v7181_v53, %v2173_v17  ;;  %v2529_v8 = vrot.slane %v7111_v30, 2  ;;  %v8823_v11 = vrot.slane %v5717_v38, 7 }
 0x22a   : > { %v2301_v46 = vsel %vm1009_vm3, %v2271_v4, %v2272_v22  ;;  %v2428_v63 = vsel %vm1142_vm11, %v2400_v45, %v2401_v41  ;;  %v7268_v10 = vmax.f32 %v2495_v29, %v2557_v34  ;;  %v8826_v17 = vrot.slane %v5795_v23, 1 }
 0x22b   : > { %v1015_v21 = vsel %vm1009_vm3, %v8823_v11, %v8822_v50  ;;  %v7260_v18 = vmax.f32 %v1236_v44, %v1337_v26  ;;  %v2368_v20 = vmax.f32 %v2240_v6, %v2301_v46  ;;  %v2464_v38 = vsel %vm726_vm9, %v2428_v63, -inf }
 0x22c   : > { %v1072_v53 = vsel %vm715_vm5, %v1015_v21, -inf  ;;  %v2556_v48 = vsel %vm1275_vm6, %v2528_v16, %v2529_v8  ;;  %4746 = vmatprep.mubr.msk.f32.mxu1 %vm1378_vm14, %v7268_v10  ;;  %v8824_v16 = vld [vmem:[#allocation24_spill] sm:$0xff]  ;;  %v8827_v29 = vrot.slane %v5762_v24, 1  ;;  %v8828_v6 = vrot.slane %v5795_v23, 2 }
 0x22d   : > { %4659 = vmatmul.mubr.msk.f32.gmra.mrb[56].mxu0 %vm1378_vm14, %v7260_v18  ;;  %v2044_v4 = vmax.f32 %v7133_v56, %v7260_v18  ;;  %v7279_v45 = vmax.f32 %v2042_v55, %v7260_v18  ;;  %v2096_v34 = vmax.f32 %v7153_v57, %v7260_v18  ;;  %v2592_v51 = vsel %vm734_vm10, %v2556_v48, -inf }
 0x22e   : > { %v2496_v54 = vmax.f32 %v2368_v20, %v2464_v38  ;;  %v8825_v26 = vmax.f32 %v5762_v24, %v8824_v16  ;;  %v1147_v55 = vsel %vm1142_vm11, %v8827_v29, %v8826_v17  ;;  %v8829_v50 = vrot.slane %v5762_v24, 2 }
 0x22f   : > { %v7303_v21 = vmax.f32 %v2044_v4, %v5908_v58  ;;  %v8830_v46 = vmax.f32 %v6913_v37, %v7020_v47  ;;  %v2273_v20 = vrot.slane %v7111_v30, 7  ;;  %v2403_v24 = vrot.slane %v7244_v28, 1 }
 0x230   : > { %v1104_v44 = vmax.f32 %v8825_v26, %v1072_v53  ;;  %v1280_v11 = vsel %vm1275_vm6, %v8829_v50, %v8828_v6  ;;  %v2145_v53 = vrot.slane %v7111_v30, 6  ;;  %v7311_v38 = vmax.f32 %v2496_v54, %v2592_v51 }
 0x231   : > { %v2118_v63 = vmax.f32 %v8830_v46, %v7133_v56  ;;  %v2531_v16 = vrot.slane %v7244_v28, 2  ;;  %v2300_v26 = vsel %vm1009_vm3, %v2272_v22, %v2273_v20 }
 0x232   : > { %v1237_v48 = vmax.f32 %v1104_v44, %v1147_v55  ;;  %v2172_v4 = vsel %vm876_vm2, %v2144_v27, %v2145_v53  ;;  %4747 = vmatmul.mubr.msk.f32.gmra.mrb[2].mxu1 %vm1378_vm14, %v7311_v38  ;;  %v2337_v54 = vsel %vm715_vm5, %v2300_v26, -inf  ;;  %v8833_v26 = vrot.slane %v5795_v23, 6 }
 0x233   : > { %v2402_v17 = vrot.slane %v2118_v63, 1  ;;  %v2530_v37 = vrot.slane %v2118_v63, 2  ;;  %v2209_v51 = vsel %vm707_vm4, %v2172_v4, -inf  ;;  %v2146_v44 = vrot.slane %v2118_v63, 6 }
 0x234   : > { %v7321_v47 = vmax.f32 %v1237_v48, %v1280_v11  ;;  %v2241_v29 = vmax.f32 %v7111_v30, %v2209_v51  ;;  %v2274_v55 = vrot.slane %v2118_v63, 7  ;;  %v8831_v48 = vld [vmem:[#allocation22_spill] sm:$0xff]  ;;  %v8836_v51 = vrot.slane %v5775_v39, 1 }
 0x235   : > { %v2427_v27 = vsel %vm1142_vm11, %v2401_v41, %v2402_v17  ;;  %v2555_v22 = vsel %vm1275_vm6, %v2529_v8, %v2530_v37  ;;  %v2171_v50 = vsel %vm876_vm2, %v2145_v53, %v2146_v44  ;;  %v2426_v11 = vsel %vm1142_vm11, %v2402_v17, %v2403_v24 }
 0x236   : > { %4661 = vmatprep.mubr.msk.f32.mxu0 %vm1378_vm14, %v7321_v47  ;;  %v7335_v6 = vmax.f32 %v2095_v14, %v7321_v47  ;;  %v2554_v30 = vsel %vm1275_vm6, %v2530_v37, %v2531_v16  ;;  %v2369_v41 = vmax.f32 %v2241_v29, %v2337_v54  ;;  %v2242_v8 = vmax.f32 %v2118_v63, %v2171_v50 }
 0x237   : > { %4662 = vmatmul.mubr.msk.f32.gmra.mrb[58].mxu0 %vm1378_vm14, %v5908_v58  ;;  %v2299_v46 = vsel %vm1009_vm3, %v2273_v20, %v2274_v55  ;;  %v2466_v14 = vsel %vm726_vm9, %v2426_v11, -inf  ;;  %v2594_v53 = vsel %vm734_vm10, %v2554_v30, -inf  ;;  %v8832_v4 = vrot.slane %v8831_v48, 6 }
 0x238   : > { %v8834_v37 = vrot.slane %v8831_v48, 7  ;;  %v8835_v63 = vrot.slane %v5795_v23, 7  ;;  %v8837_v54 = vrot.slane %v8831_v48, 1  ;;  %v2497_v50 = vmax.f32 %v2369_v41, %v2427_v27 }
 0x239   : > { %v880_v17 = vsel %vm876_vm2, %v8833_v26, %v8832_v4  ;;  %v2370_v11 = vmax.f32 %v2242_v8, %v2299_v46  ;;  %v8838_v26 = vrot.slane %v5775_v39, 2  ;;  %v8840_v27 = vmax.f32 %v7046_v59, %v7133_v56 }
 0x23a   : > { %v1013_v20 = vsel %vm1009_vm3, %v8835_v63, %v8834_v37  ;;  %v1145_v29 = vsel %vm1142_vm11, %v8837_v54, %v8836_v51  ;;  %v941_v30 = vsel %vm707_vm4, %v880_v17, -inf  ;;  %v8839_v37 = vrot.slane %v8831_v48, 2 }
 0x23b   : > { %v1074_v4 = vsel %vm715_vm5, %v1013_v20, -inf  ;;  %v973_v23 = vmax.f32 %v8831_v48, %v941_v30  ;;  %v2041_v51 = vmax.f32 %v6971_v2, %v7087_v5  ;;  %v7386_v41 = vmax.f32 %v8840_v27, %v7260_v18 }
 0x23c   : > { %v1278_v63 = vsel %vm1275_vm6, %v8839_v37, %v8838_v26  ;;  %v7388_v8 = vmax.f32 %v2497_v50, %v2555_v22  ;;  %v2498_v46 = vmax.f32 %v2370_v11, %v2466_v14  ;;  %v2147_v17 = vrot.slane %v7244_v28, 6 }
 0x23d   : > { %v2275_v20 = vrot.slane %v7244_v28, 7  ;;  %v1106_v48 = vmax.f32 %v973_v23, %v1074_v4  ;;  %v2069_v54 = vmax.f32 %v2041_v51, %v7214_v52  ;;  %v2404_v30 = vrot.slane %v7386_v41, 1 }
 0x23e   : > { %v2532_v2 = vrot.slane %v7386_v41, 2  ;;  %4749 = vmatprep.mubr.msk.f32.mxu1 %vm1378_vm14, %v7388_v8  ;;  %v7397_v59 = vmax.f32 %v2498_v46, %v2594_v53  ;;  %v2170_v56 = vsel %vm876_vm2, %v2146_v44, %v2147_v17  ;;  %v2148_v14 = vrot.slane %v7386_v41, 6 }
 0x23f   : > { %v2298_v22 = vsel %vm1009_vm3, %v2274_v55, %v2275_v20  ;;  %v1239_v50 = vmax.f32 %v1106_v48, %v1145_v29  ;;  %v2097_v11 = vmax.f32 %v2069_v54, %v7321_v47  ;;  %v2211_v4 = vsel %vm707_vm4, %v2170_v56, -inf }
 0x240   : > { %v2339_v23 = vsel %vm715_vm5, %v2298_v22, -inf  ;;  %4750 = vmatmul.mubr.msk.f32.gmra.mrb[4].mxu1 %vm1378_vm14, %v7397_v59  ;;  %v2243_v53 = vmax.f32 %v7244_v28, %v2211_v4  ;;  %v2425_v44 = vsel %vm1142_vm11, %v2403_v24, %v2404_v30  ;;  %v2553_v55 = vsel %vm1275_vm6, %v2531_v16, %v2532_v2 }
 0x241   : > { %v2169_v29 = vsel %vm876_vm2, %v2147_v17, %v2148_v14  ;;  %v1372_v26 = vmax.f32 %v1239_v50, %v1278_v63  ;;  %v2276_v51 = vrot.slane %v7386_v41, 7  ;;  %v2405_v27 = vrot.slane %v7335_v6, 1 }
 0x242   : > { %v2244_v37 = vmax.f32 %v7386_v41, %v2169_v29  ;;  %v2371_v46 = vmax.f32 %v2243_v53, %v2339_v23  ;;  %v2533_v48 = vrot.slane %v7335_v6, 2  ;;  %v8841_v28 = vrot.slane %v5731_v40, 6  ;;  %v8845_v23 = vld [vmem:[#allocation25_spill] sm:$0xff] }
 0x243   : > { %v8842_v24 = vrot.slane %v5775_v39, 6  ;;  %v8843_v54 = vrot.slane %v5731_v40, 7  ;;  %v8844_v63 = vrot.slane %v5775_v39, 7  ;;  %4664 = vmatprep.mubr.msk.f32.mxu0 %vm1378_vm14, %v1372_v26  ;;  %v7435_v41 = vmax.f32 %v2097_v11, %v1372_v26 }
 0x244   : > { %v2297_v56 = vsel %vm1009_vm3, %v2275_v20, %v2276_v51  ;;  %v2424_v22 = vsel %vm1142_vm11, %v2404_v30, %v2405_v27  ;;  %v2499_v4 = vmax.f32 %v2371_v46, %v2425_v44  ;;  %4665 = vmatmul.mubr.msk.f32.gmra.mrb[60].mxu0 %vm1378_vm14, %v8845_v23  ;;  %v2552_v11 = vsel %vm1275_vm6, %v2532_v2, %v2533_v48 }
 0x245   : > { %v878_v16 = vsel %vm876_vm2, %v8842_v24, %v8841_v28  ;;  %v1011_v17 = vsel %vm1009_vm3, %v8844_v63, %v8843_v54  ;;  %v2372_v39 = vmax.f32 %v2244_v37, %v2297_v56  ;;  %v2468_v53 = vsel %vm726_vm9, %v2424_v22, -inf  ;;  %v8846_v28 = vld [vmem:[#allocation23_spill] sm:$0xff] }
 0x246   : > { %v943_v50 = vsel %vm707_vm4, %v878_v16, -inf  ;;  %v2596_v20 = vsel %vm734_vm10, %v2552_v11, -inf  ;;  %v1076_v30 = vsel %vm715_vm5, %v1011_v17, -inf  ;;  %v8847_v44 = vrot.slane %v8846_v28, 1 }
 0x247   : > { %v975_v29 = vmax.f32 %v5731_v40, %v943_v50  ;;  %v8848_v46 = vrot.slane %v5731_v40, 1  ;;  %v7460_v24 = vmax.f32 %v2499_v4, %v2553_v55  ;;  %v2500_v16 = vmax.f32 %v2372_v39, %v2468_v53 }
 0x248   : > { %v8849_v2 = vrot.slane %v8846_v28, 2  ;;  %v8850_v54 = vrot.slane %v5731_v40, 2  ;;  %v2043_v17 = vmax.f32 %v7087_v5, %v7214_v52  ;;  %v2045_v22 = vmax.f32 %v7214_v52, %v7321_v47 }
 0x249   : > { %v1143_v37 = vsel %vm1142_vm11, %v8848_v46, %v8847_v44  ;;  %v1108_v56 = vmax.f32 %v975_v29, %v1076_v30  ;;  %v2047_v50 = vmax.f32 %v7321_v47, %v1372_v26  ;;  %v2122_v55 = vmax.f32 %v2096_v34, %v5908_v58  ;;  %4752 = vmatprep.mubr.msk.f32.mxu1 %vm1378_vm14, %v7460_v24 }
 0x24a   : > { %v1276_v63 = vsel %vm1275_vm6, %v8850_v54, %v8849_v2  ;;  %v7479_v40 = vmax.f32 %v2500_v16, %v2596_v20  ;;  %v2071_v4 = vmax.f32 %v2043_v17, %v7321_v47  ;;  %v2149_v5 = vrot.slane %v7335_v6, 6 }
 0x24b   : > { %v2277_v39 = vrot.slane %v7335_v6, 7  ;;  %v1241_v53 = vmax.f32 %v1108_v56, %v1143_v37  ;;  %v2073_v52 = vmax.f32 %v2045_v22, %v1372_v26  ;;  %v2406_v11 = vrot.slane %v2122_v55, 1 }
 0x24c   : > { %v2534_v29 = vrot.slane %v2122_v55, 2  ;;  %4753 = vmatmul.mubr.msk.f32.gmra.mrb[6].mxu1 %vm1378_vm14, %v7479_v40  ;;  %v2099_v57 = vmax.f32 %v2071_v4, %v1372_v26  ;;  %v2168_v34 = vsel %vm876_vm2, %v2148_v14, %v2149_v5  ;;  %v2150_v30 = vrot.slane %v2122_v55, 6  ;;  %v8852_v4 = vld [vmem:[#allocation11_spill] sm:$0xff] }
 0x24d   : > { %v2296_v20 = vsel %vm1009_vm3, %v2276_v51, %v2277_v39  ;;  %v1374_v47 = vmax.f32 %v1241_v53, %v1276_v63  ;;  %v2213_v28 = vsel %vm707_vm4, %v2168_v34, -inf  ;;  %v2423_v46 = vsel %vm1142_vm11, %v2405_v27, %v2406_v11  ;;  %v8851_v27 = vld [vmem:[#allocation26_spill] sm:$0xff] }
 0x24e   : > { %v2341_v44 = vsel %vm715_vm5, %v2296_v20, -inf  ;;  %v2245_v37 = vmax.f32 %v7335_v6, %v2213_v28  ;;  %v2551_v26 = vsel %vm1275_vm6, %v2533_v48, %v2534_v29  ;;  %v2167_v14 = vsel %vm876_vm2, %v2149_v5, %v2150_v30 }
 0x24f   : > { %v2278_v51 = vrot.slane %v2122_v55, 7  ;;  %4667 = vmatprep.mubr.msk.f32.mxu0 %vm1378_vm14, %v1374_v47  ;;  %v7502_v16 = vmax.f32 %v2047_v50, %v1374_v47  ;;  %v7504_v2 = vmax.f32 %v2073_v52, %v1374_v47  ;;  %v7506_v54 = vmax.f32 %v2099_v57, %v1374_v47 }
 0x250   : > { %v2246_v63 = vmax.f32 %v2122_v55, %v2167_v14  ;;  %v2373_v17 = vmax.f32 %v2245_v37, %v2341_v44  ;;  %4668 = vmatmul.mubr.msk.f32.gmra.mrb[62].mxu0 %vm1378_vm14, %v8851_v27  ;;  %v2407_v48 = vrot.slane %v7435_v41, 1  ;;  %v2535_v56 = vrot.slane %v7435_v41, 2 }
 0x251   : > { %v2295_v6 = vsel %vm1009_vm3, %v2277_v39, %v2278_v51  ;;  %v2153_v22 = vrot.slane %v7506_v54, 6  ;;  %4672 = vmatprep.mubr.msk.f32.mxu0 %vm1378_vm14, %v8852_v4  ;;  %v2098_v55 = vmax.f32 %v7279_v45, %v5908_v58  ;;  %v2151_v5 = vrot.slane %v7435_v41, 6 }
 0x252   : > { %v2374_v50 = vmax.f32 %v2246_v63, %v2295_v6  ;;  %v2501_v53 = vmax.f32 %v2373_v17, %v2423_v46  ;;  %v2422_v52 = vsel %vm1142_vm11, %v2406_v11, %v2407_v48  ;;  %v2550_v39 = vsel %vm1275_vm6, %v2534_v29, %v2535_v56  ;;  %v8853_v46 = vld [vmem:[#allocation10_spill] sm:$0xff] }
 0x253   : > { %v2279_v57 = vrot.slane %v7435_v41, 7  ;;  %v2470_v34 = vsel %vm726_vm9, %v2422_v52, -inf  ;;  %v2598_v20 = vsel %vm734_vm10, %v2550_v39, -inf  ;;  %v2124_v47 = vmax.f32 %v2098_v55, %v8845_v23 }
 0x254   : > { %v2166_v45 = vsel %vm876_vm2, %v2150_v30, %v2151_v5  ;;  %v7532_v28 = vmax.f32 %v2501_v53, %v2551_v26  ;;  %v2502_v44 = vmax.f32 %v2374_v50, %v2470_v34  ;;  %4673 = vmatmul.mubr.msk.f32.vlgmr.msra.gmra.mrb[32].mxu0 %vm1378_vm14, %v8853_v46  ;;  %v8854_v30 = vld [vmem:[#allocation9_spill] sm:$0xff]  ;;  %v2409_v50 = vrot.slane %v7506_v54, 1 }
 0x255   : > { %v2215_v11 = vsel %vm707_vm4, %v2166_v45, -inf  ;;  %v2294_v29 = vsel %vm1009_vm3, %v2278_v51, %v2279_v57  ;;  %v2408_v63 = vrot.slane %v2124_v47, 1  ;;  %v2536_v17 = vrot.slane %v2124_v47, 2  ;;  %4675 = vmatprep.mubr.msk.f32.mxu0 %vm1378_vm14, %v8854_v30 }
 0x256   : > { %v2247_v37 = vmax.f32 %v7435_v41, %v2215_v11  ;;  %v2343_v14 = vsel %vm715_vm5, %v2294_v29, -inf  ;;  %4755 = vmatprep.mubr.msk.f32.mxu1 %vm1378_vm14, %v7532_v28  ;;  %v7547_v26 = vmax.f32 %v2502_v44, %v2598_v20  ;;  %v2152_v6 = vrot.slane %v2124_v47, 6  ;;  %v8855_v11 = vld [vmem:[#allocation8_spill] sm:$0xff]  ;;  %v8856_v29 = vld [vmem:[#allocation13_spill] sm:$0xff] }
 0x257   : > { %v2280_v51 = vrot.slane %v2124_v47, 7  ;;  %v2421_v41 = vsel %vm1142_vm11, %v2407_v48, %v2408_v63  ;;  %v2549_v55 = vsel %vm1275_vm6, %v2535_v56, %v2536_v17  ;;  %v2537_v53 = vrot.slane %v7506_v54, 2 }
 0x258   : > { %v2375_v4 = vmax.f32 %v2247_v37, %v2343_v14  ;;  %4756 = vmatmul.mubr.msk.f32.gmra.mrb[8].mxu1 %vm1378_vm14, %v7547_v26  ;;  %v2165_v52 = vsel %vm876_vm2, %v2151_v5, %v2152_v6  ;;  %v2420_v34 = vsel %vm1142_vm11, %v2408_v63, %v2409_v50  ;;  %v2100_v48 = vmax.f32 %v7303_v21, %v8845_v23 }
 0x259   : > { %v2293_v39 = vsel %vm1009_vm3, %v2279_v57, %v2280_v51  ;;  %v2248_v45 = vmax.f32 %v2124_v47, %v2165_v52  ;;  %v2472_v56 = vsel %vm726_vm9, %v2420_v34, -inf  ;;  %v2548_v44 = vsel %vm1275_vm6, %v2536_v17, %v2537_v53  ;;  %4676 = vmatmul.mubr.msk.f32.gmra.mrb[34].mxu0 %vm1378_vm14, %v8855_v11  ;;  %v8857_v34 = vld [vmem:[#allocation12_spill] sm:$0xff] }
 0x25a   : > { %v2503_v20 = vmax.f32 %v2375_v4, %v2421_v41  ;;  %v2600_v5 = vsel %vm734_vm10, %v2548_v44, -inf  ;;  %v2126_v57 = vmax.f32 %v2100_v48, %v8851_v27  ;;  %v2164_v21 = vsel %vm876_vm2, %v2152_v6, %v2153_v22  ;;  %4678 = vmatprep.mubr.msk.f32.mxu0 %vm1378_vm14, %v8856_v29  ;;  %v8858_v44 = vld [vmem:[#allocation15_spill] sm:$0xff] }
 0x25b   : > { %v2281_v47 = vrot.slane %v7506_v54, 7  ;;  %v2376_v37 = vmax.f32 %v2248_v45, %v2293_v39  ;;  %v2217_v14 = vsel %vm707_vm4, %v2164_v21, -inf  ;;  %v2411_v63 = vrot.slane %v7504_v2, 1 }
 0x25c   : > { %v7581_v46 = vmax.f32 %v2503_v20, %v2549_v55  ;;  %v2249_v17 = vmax.f32 %v7506_v54, %v2217_v14  ;;  %v2410_v4 = vrot.slane %v2126_v57, 1  ;;  %v2538_v6 = vrot.slane %v2126_v57, 2 }
 0x25d   : > { %v2292_v30 = vsel %vm1009_vm3, %v2280_v51, %v2281_v47  ;;  %v2504_v41 = vmax.f32 %v2376_v37, %v2472_v56  ;;  %v2154_v52 = vrot.slane %v2126_v57, 6  ;;  %v2282_v39 = vrot.slane %v2126_v57, 7  ;;  %4679 = vmatmul.mubr.msk.f32.gmra.mrb[36].mxu0 %vm1378_vm14, %v8857_v34 }
 0x25e   : > { %4758 = vmatprep.mubr.msk.f32.mxu1 %vm1378_vm14, %v7581_v46  ;;  %v2345_v55 = vsel %vm715_vm5, %v2292_v30, -inf  ;;  %v2419_v20 = vsel %vm1142_vm11, %v2409_v50, %v2410_v4  ;;  %v2547_v51 = vsel %vm1275_vm6, %v2537_v53, %v2538_v6  ;;  %v2418_v45 = vsel %vm1142_vm11, %v2410_v4, %v2411_v63  ;;  %4681 = vmatprep.mubr.msk.f32.mxu0 %vm1378_vm14, %v8858_v44  ;;  %v8860_v4 = vld [vmem:[#allocation17_spill] sm:$0xff] }
 0x25f   : > { %v2377_v48 = vmax.f32 %v2249_v17, %v2345_v55  ;;  %v7603_v56 = vmax.f32 %v2504_v41, %v2600_v5  ;;  %v2163_v11 = vsel %vm876_vm2, %v2153_v22, %v2154_v52  ;;  %v2291_v21 = vsel %vm1009_vm3, %v2281_v47, %v2282_v39  ;;  %v8859_v17 = vld [vmem:[#allocation14_spill] sm:$0xff] }
 0x260   : > { %v2474_v50 = vsel %vm726_vm9, %v2418_v45, -inf  ;;  %v2250_v29 = vmax.f32 %v2126_v57, %v2163_v11  ;;  %v2539_v37 = vrot.slane %v7504_v2, 2  ;;  %v2046_v14 = vmax.f32 %v7260_v18, %v5908_v58  ;;  %v8861_v11 = vld [vmem:[#allocation16_spill] sm:$0xff] }
 0x261   : > { %v2505_v53 = vmax.f32 %v2377_v48, %v2419_v20  ;;  %4759 = vmatmul.mubr.msk.f32.gmra.mrb[10].mxu1 %vm1378_vm14, %v7603_v56  ;;  %v2155_v54 = vrot.slane %v7504_v2, 6  ;;  %v2283_v22 = vrot.slane %v7504_v2, 7  ;;  %v3014_v5 = vmax.f32 %v7460_v24, %v7532_v28  ;;  %4682 = vmatmul.mubr.msk.f32.gmra.mrb[38].mxu0 %vm1378_vm14, %v8859_v17 }
 0x262   : > { %v2413_v47 = vrot.slane %v7502_v16, 1  ;;  %v2378_v30 = vmax.f32 %v2250_v29, %v2291_v21  ;;  %v2546_v58 = vsel %vm1275_vm6, %v2538_v6, %v2539_v37  ;;  %v2074_v18 = vmax.f32 %v2046_v14, %v8845_v23  ;;  %4684 = vmatprep.mubr.msk.f32.mxu0 %vm1378_vm14, %v8860_v4  ;;  %v8862_v29 = vld [vmem:[#allocation19_spill] sm:$0xff] }
 0x263   : > { %v7625_v57 = vmax.f32 %v2505_v53, %v2547_v51  ;;  %v2602_v41 = vsel %vm734_vm10, %v2546_v58, -inf  ;;  %v2162_v55 = vsel %vm876_vm2, %v2154_v52, %v2155_v54  ;;  %v2290_v34 = vsel %vm1009_vm3, %v2282_v39, %v2283_v22 }
 0x264   : > { %v3042_v48 = vmax.f32 %v3014_v5, %v7581_v46  ;;  %v2506_v6 = vmax.f32 %v2378_v30, %v2474_v50  ;;  %v2102_v23 = vmax.f32 %v2074_v18, %v8851_v27  ;;  %v2219_v20 = vsel %vm707_vm4, %v2162_v55, -inf }
 0x265   : > { %4761 = vmatprep.mubr.msk.f32.mxu1 %vm1378_vm14, %v7625_v57  ;;  %v2347_v51 = vsel %vm715_vm5, %v2290_v34, -inf  ;;  %v2251_v45 = vmax.f32 %v7504_v2, %v2219_v20  ;;  %v2541_v39 = vrot.slane %v7502_v16, 2  ;;  %v3015_v44 = vmax.f32 %v7479_v40, %v7547_v26  ;;  %4685 = vmatmul.mubr.msk.f32.gmra.mrb[40].mxu0 %vm1378_vm14, %v8861_v11 }
 0x266   : > { %v3070_v52 = vmax.f32 %v3042_v48, %v7625_v57  ;;  %v7653_v21 = vmax.f32 %v2506_v6, %v2602_v41  ;;  %v2412_v27 = vrot.slane %v2102_v23, 1  ;;  %v2540_v50 = vrot.slane %v2102_v23, 2  ;;  %4687 = vmatprep.mubr.msk.f32.mxu0 %vm1378_vm14, %v8862_v29  ;;  %v8863_v6 = vld [vmem:[#allocation18_spill] sm:$0xff] }
 0x267   : > { %v2156_v53 = vrot.slane %v2102_v23, 6  ;;  %v2379_v14 = vmax.f32 %v2251_v45, %v2347_v51  ;;  %v2284_v2 = vrot.slane %v2102_v23, 7  ;;  %v3043_v5 = vmax.f32 %v3015_v44, %v7603_v56 }
 0x268   : > { %v2157_v17 = vrot.slane %v7502_v16, 6  ;;  %4762 = vmatmul.mubr.msk.f32.gmra.mrb[12].mxu1 %vm1378_vm14, %v7653_v21  ;;  %v2417_v30 = vsel %vm1142_vm11, %v2411_v63, %v2412_v27  ;;  %v2545_v58 = vsel %vm1275_vm6, %v2539_v37, %v2540_v50  ;;  %v2416_v4 = vsel %vm1142_vm11, %v2412_v27, %v2413_v47 }
 0x269   : > { %v2161_v18 = vsel %vm876_vm2, %v2155_v54, %v2156_v53  ;;  %v2507_v41 = vmax.f32 %v2379_v14, %v2417_v30  ;;  %v2289_v34 = vsel %vm1009_vm3, %v2283_v22, %v2284_v2  ;;  %v2476_v48 = vsel %vm726_vm9, %v2416_v4, -inf  ;;  %4688 = vmatmul.mubr.msk.f32.gmra.mrb[42].mxu0 %vm1378_vm14, %v8863_v6 }
 0x26a   : > { %v2252_v55 = vmax.f32 %v2102_v23, %v2161_v18  ;;  %v2544_v63 = vsel %vm1275_vm6, %v2540_v50, %v2541_v39  ;;  %v3071_v37 = vmax.f32 %v3043_v5, %v7653_v21  ;;  %v2160_v54 = vsel %vm876_vm2, %v2156_v53, %v2157_v17  ;;  %v8864_v23 = vld [vmem:[#allocation21_spill] sm:$0xff]  ;;  %v8865_v50 = vld [vmem:[#allocation27_spill] sm:$0xff]  ;;  %v8866_v18 = vld [vmem:[#allocation20_spill] sm:$0xff] }
 0x26b   : > { %v2285_v20 = vrot.slane %v7502_v16, 7  ;;  %4690 = vmatprep.mubr.msk.f32.mxu0 %vm1378_vm14, %v8864_v23  ;;  %v2635_v22 = vmax.f32 %v2507_v41, %v2545_v58  ;;  %v2604_v45 = vsel %vm734_vm10, %v2544_v63, -inf  ;;  %v2221_v44 = vsel %vm707_vm4, %v2160_v54, -inf }
 0x26c   : > { %v2380_v51 = vmax.f32 %v2252_v55, %v2289_v34  ;;  %v2253_v11 = vmax.f32 %v7502_v16, %v2221_v44  ;;  %v2414_v53 = vrot.slane %v8865_v50, 1  ;;  %v2542_v29 = vrot.slane %v8865_v50, 2  ;;  %v8869_v44 = vld [vmem:[#allocation28_spill] sm:$0xff] }
 0x26d   : > { %v2288_v27 = vsel %vm1009_vm3, %v2284_v2, %v2285_v20  ;;  %4764 = vmatprep.mubr.msk.f32.mxu1 %vm1378_vm14, %v2635_v22  ;;  %v7693_v14 = vmax.f32 %v3070_v52, %v2635_v22  ;;  %v3016_v58 = vmax.f32 %v7532_v28, %v7581_v46  ;;  %4691 = vmatmul.mubr.msk.f32.gmra.mrb[44].mxu0 %vm1378_vm14, %v8866_v18  ;;  %v8868_v23 = vrot.slane %v8865_v50, 7 }
 0x26e   : > { %v2508_v5 = vmax.f32 %v2380_v51, %v2476_v48  ;;  %v2349_v30 = vsel %vm715_vm5, %v2288_v27, -inf  ;;  %v2415_v2 = vsel %vm1142_vm11, %v2413_v47, %v2414_v53  ;;  %v2543_v4 = vsel %vm1275_vm6, %v2541_v39, %v2542_v29 }
 0x26f   : > { %v2381_v16 = vmax.f32 %v2253_v11, %v2349_v30  ;;  %v3018_v52 = vmax.f32 %v7581_v46, %v7625_v57  ;;  %v3020_v55 = vmax.f32 %v7625_v57, %v2635_v22  ;;  %v3044_v34 = vmax.f32 %v3016_v58, %v7625_v57 }
 0x270   : > { %v2636_v41 = vmax.f32 %v2508_v5, %v2604_v45  ;;  %v8867_v48 = vrot.slane %v8865_v50, 6  ;;  %v2287_v39 = vsel %vm1009_vm3, %v2285_v20, %v8868_v23  ;;  %v8870_v11 = vrot.slane %v8869_v44, 1 }
 0x271   : > { %v2509_v63 = vmax.f32 %v2381_v16, %v2415_v2  ;;  %v3046_v54 = vmax.f32 %v3018_v52, %v2635_v22  ;;  %v3072_v45 = vmax.f32 %v3044_v34, %v2635_v22  ;;  %v3017_v22 = vmax.f32 %v7547_v26, %v7603_v56 }
 0x272   : > { %v2159_v6 = vsel %vm876_vm2, %v2157_v17, %v8867_v48  ;;  %4765 = vmatmul.mubr.msk.f32.gmra.mrb[14].mxu1 %vm1378_vm14, %v2636_v41  ;;  %v7719_v51 = vmax.f32 %v3071_v37, %v2636_v41  ;;  %v2446_v27 = vsel %vm1142_vm11, %v2414_v53, %v8870_v11  ;;  %v8871_v17 = vrot.slane %v8869_v44, 2 }
 0x273   : > { %v2254_v47 = vmax.f32 %v8865_v50, %v2159_v6  ;;  %v2637_v30 = vmax.f32 %v2509_v63, %v2543_v4  ;;  %v2478_v20 = vsel %vm726_vm9, %v2446_v27, -inf  ;;  %v3019_v58 = vmax.f32 %v7603_v56, %v7653_v21 }
 0x274   : > { %v2574_v5 = vsel %vm1275_vm6, %v2542_v29, %v8871_v17  ;;  %v3021_v53 = vmax.f32 %v7653_v21, %v2636_v41  ;;  %v3100_v18 = vrot.slane %v6432_v36, 6  ;;  %v3045_v52 = vmax.f32 %v3017_v22, %v7653_v21 }
 0x275   : > { %v2382_v50 = vmax.f32 %v2254_v47, %v2287_v39  ;;  %v2606_v37 = vsel %vm734_vm10, %v2574_v5, -inf  ;;  %4767 = vmatprep.mubr.msk.f32.mxu1 %vm1378_vm14, %v2637_v30  ;;  %v7740_v29 = vmax.f32 %v3020_v55, %v2637_v30  ;;  %v7742_v16 = vmax.f32 %v3046_v54, %v2637_v30 }
 0x276   : > { %v7744_v2 = vmax.f32 %v3072_v45, %v2637_v30  ;;  %v3047_v34 = vmax.f32 %v3019_v58, %v2636_v41  ;;  %v3228_v48 = vrot.slane %v6432_v36, 7  ;;  %v8634_v6 = vrot.slane %v6432_v36, 1 }
 0x277   : > { %8872 = vst [vmem:[#allocation24_spill] sm:$0xff] %v7740_v29  ;;  %v2510_v4 = vmax.f32 %v2382_v50, %v2478_v20  ;;  %v3357_v47 = vrot.slane %v6517_v15, 1  ;;  %v3358_v23 = vrot.slane %v6624_v1, 1  ;;  %v8633_v55 = vrot.slane %v6432_v36, 2 }
 0x278   : > { %v3073_v39 = vmax.f32 %v3045_v52, %v2636_v41  ;;  %v3485_v54 = vrot.slane %v6517_v15, 2  ;;  %v3486_v45 = vrot.slane %v6624_v1, 2  ;;  %v3101_v44 = vrot.slane %v6517_v15, 6 }
 0x279   : > { %v2638_v63 = vmax.f32 %v2510_v4, %v2606_v37  ;;  %v3417_v17 = vsel %vm1142_vm11, %v3357_v47, %v3358_v23  ;;  %v3418_v41 = vsel %vm1142_vm11, %v8634_v6, %v3357_v47 }
 0x27a   : > { %v3545_v30 = vsel %vm1275_vm6, %v3485_v54, %v3486_v45  ;;  %v3546_v50 = vsel %vm1275_vm6, %v8633_v55, %v3485_v54  ;;  %v3162_v20 = vsel %vm876_vm2, %v3100_v18, %v3101_v44  ;;  %v3421_v4 = vsel %vm726_vm9, %v3417_v17, -inf }
 0x27b   : > { %4768 = vmatmul.mubr.msk.f32.gmra.mrb[16].mxu1 %vm1378_vm14, %v2638_v63  ;;  %v7756_v11 = vmax.f32 %v3021_v53, %v2638_v63  ;;  %v7758_v27 = vmax.f32 %v3047_v34, %v2638_v63  ;;  %v7766_v5 = vmax.f32 %v3073_v39, %v2638_v63  ;;  %v3197_v58 = vmax.f32 %v6517_v15, %v3162_v20 }
 0x27c   : > { %v3229_v53 = vrot.slane %v6517_v15, 7  ;;  %v3549_v52 = vsel %vm734_vm10, %v3545_v30, -inf  ;;  %v3102_v34 = vrot.slane %v6624_v1, 6  ;;  %v3230_v63 = vrot.slane %v6624_v1, 7 }
 0x27d   : > { %8873 = vst [vmem:[#allocation22_spill] sm:$0xff] %v7756_v11  ;;  %v8636_v37 = vrot.slane %v7756_v11, 6  ;;  %v8635_v22 = vrot.slane %v7756_v11, 7  ;;  %v3359_v54 = vrot.slane %v6726_v13, 1 }
 0x27e   : > { %v3290_v39 = vsel %vm1009_vm3, %v3228_v48, %v3229_v53 }
 0x27f   : > { %v3163_v47 = vsel %vm876_vm2, %v8636_v37, %v3100_v18  ;;  %v3291_v15 = vsel %vm1009_vm3, %v8635_v22, %v3228_v48  ;;  %v3325_v20 = vmax.f32 %v3197_v58, %v3290_v39  ;;  %v3161_v18 = vsel %vm876_vm2, %v3101_v44, %v3102_v34 }
 0x280   : > { %v3164_v17 = vsel %vm707_vm4, %v3163_v47, -inf  ;;  %v3292_v30 = vsel %vm715_vm5, %v3291_v15, -inf  ;;  %v3166_v6 = vsel %vm707_vm4, %v3161_v18, -inf  ;;  %v3289_v48 = vsel %vm1009_vm3, %v3229_v53, %v3230_v63 }
 0x281   : > { %v3196_v55 = vmax.f32 %v6432_v36, %v3164_v17  ;;  %v3416_v22 = vsel %vm1142_vm11, %v3358_v23, %v3359_v54  ;;  %v3453_v37 = vmax.f32 %v3325_v20, %v3421_v4  ;;  %v3198_v47 = vmax.f32 %v6624_v1, %v3166_v6 }
 0x282   : > { %v3294_v58 = vsel %vm715_vm5, %v3289_v48, -inf  ;;  %v3487_v15 = vrot.slane %v6726_v13, 2  ;;  %v3076_v39 = vmax.f32 %v6624_v1, %v6582_v35  ;;  %v3103_v17 = vrot.slane %v6726_v13, 6 }
 0x283   : > { %v3324_v44 = vmax.f32 %v3196_v55, %v3292_v30  ;;  %v3231_v18 = vrot.slane %v6726_v13, 7  ;;  %v3581_v53 = vmax.f32 %v3453_v37, %v3549_v52  ;;  %v3326_v36 = vmax.f32 %v3198_v47, %v3294_v58 }
 0x284   : > { %v3544_v23 = vsel %vm1275_vm6, %v3486_v45, %v3487_v15  ;;  %v3077_v6 = vmax.f32 %v6726_v13, %v6689_v49  ;;  %v3160_v20 = vsel %vm876_vm2, %v3102_v34, %v3103_v17  ;;  %v3360_v1 = vrot.slane %v3076_v39, 1 }
 0x285   : > { %v3452_v4 = vmax.f32 %v3324_v44, %v3418_v41  ;;  %v3288_v55 = vsel %vm1009_vm3, %v3230_v63, %v3231_v18  ;;  %v3454_v30 = vmax.f32 %v3326_v36, %v3416_v22  ;;  %v3199_v48 = vmax.f32 %v6726_v13, %v3160_v20 }
 0x286   : > { %v3488_v11 = vrot.slane %v3076_v39, 2  ;;  %v3104_v37 = vrot.slane %v3076_v39, 6  ;;  %v3415_v45 = vsel %vm1142_vm11, %v3359_v54, %v3360_v1  ;;  %v3232_v47 = vrot.slane %v3076_v39, 7 }
 0x287   : > { %v3580_v52 = vmax.f32 %v3452_v4, %v3546_v50  ;;  %v3361_v58 = vrot.slane %v3077_v6, 1  ;;  %v3582_v29 = vmax.f32 %v3454_v30, %v3544_v23  ;;  %v3327_v41 = vmax.f32 %v3199_v48, %v3288_v55 }
 0x288   : > { %v3423_v34 = vsel %vm726_vm9, %v3415_v45, -inf  ;;  %v3543_v63 = vsel %vm1275_vm6, %v3487_v15, %v3488_v11  ;;  %v3159_v13 = vsel %vm876_vm2, %v3103_v17, %v3104_v37  ;;  %v3287_v50 = vsel %vm1009_vm3, %v3231_v18, %v3232_v47 }
 0x289   : > { %4772 = vmatprep.mubr.msk.f32.mxu1 %vm1378_vm14, %v3580_v52  ;;  %v3551_v36 = vsel %vm734_vm10, %v3543_v63, -inf  ;;  %v3414_v22 = vsel %vm1142_vm11, %v3360_v1, %v3361_v58  ;;  %v3455_v54 = vmax.f32 %v3327_v41, %v3423_v34  ;;  %v3168_v15 = vsel %vm707_vm4, %v3159_v13, -inf }
 0x28a   : > { %4773 = vmatmul.mubr.msk.f32.vlgmr.msra.gmra.mrb[18].mxu1 %vm1378_vm14, %v3581_v53  ;;  %v3296_v44 = vsel %vm715_vm5, %v3287_v50, -inf  ;;  %v3489_v23 = vrot.slane %v3077_v6, 2  ;;  %v3200_v4 = vmax.f32 %v3076_v39, %v3168_v15  ;;  %v8874_v17 = vmax.f32 %v6620_v25, %v6582_v35 }
 0x28b   : > { %4775 = vmatprep.mubr.msk.f32.mxu1 %vm1378_vm14, %v3582_v29  ;;  %v3105_v20 = vrot.slane %v3077_v6, 6  ;;  %v3233_v55 = vrot.slane %v3077_v6, 7  ;;  %v3583_v1 = vmax.f32 %v3455_v54, %v3551_v36  ;;  %v8875_v30 = vmax.f32 %v6722_v7, %v6689_v49 }
 0x28c   : > { %v3078_v18 = vmax.f32 %v8874_v17, %v6884_v3  ;;  %v3542_v53 = vsel %vm1275_vm6, %v3488_v11, %v3489_v23  ;;  %v3054_v29 = vmax.f32 %v6631_v62, %v6884_v3  ;;  %v3328_v39 = vmax.f32 %v3200_v4, %v3296_v44 }
 0x28d   : > { %v3079_v48 = vmax.f32 %v8875_v30, %v6952_v33  ;;  %v3158_v52 = vsel %vm876_vm2, %v3104_v37, %v3105_v20  ;;  %v3286_v25 = vsel %vm1009_vm3, %v3232_v47, %v3233_v55 }
 0x28e   : > { %v3362_v45 = vrot.slane %v3078_v18, 1  ;;  %4776 = vmatmul.mubr.msk.f32.gmra.mrb[20].mxu1 %vm1378_vm14, %v3583_v1  ;;  %v3201_v41 = vmax.f32 %v3077_v6, %v3158_v52  ;;  %v3490_v11 = vrot.slane %v3078_v18, 2  ;;  %v3106_v34 = vrot.slane %v3078_v18, 6 }
 0x28f   : > { %v3234_v63 = vrot.slane %v3078_v18, 7  ;;  %v3456_v36 = vmax.f32 %v3328_v39, %v3414_v22  ;;  %v3363_v13 = vrot.slane %v3079_v48, 1  ;;  %v3491_v62 = vrot.slane %v3079_v48, 2 }
 0x290   : > { %v3413_v7 = vsel %vm1142_vm11, %v3361_v58, %v3362_v45  ;;  %v3329_v50 = vmax.f32 %v3201_v41, %v3286_v25  ;;  %v3541_v47 = vsel %vm1275_vm6, %v3489_v23, %v3490_v11  ;;  %v3157_v54 = vsel %vm876_vm2, %v3105_v20, %v3106_v34 }
 0x291   : > { %v3425_v37 = vsel %vm726_vm9, %v3413_v7, -inf  ;;  %v3584_v6 = vmax.f32 %v3456_v36, %v3542_v53  ;;  %v3553_v15 = vsel %vm734_vm10, %v3541_v47, -inf  ;;  %v3170_v22 = vsel %vm707_vm4, %v3157_v54, -inf }
 0x292   : > { %v3285_v58 = vsel %vm1009_vm3, %v3233_v55, %v3234_v63  ;;  %v3457_v44 = vmax.f32 %v3329_v50, %v3425_v37  ;;  %v3202_v4 = vmax.f32 %v3078_v18, %v3170_v22  ;;  %v3412_v23 = vsel %vm1142_vm11, %v3362_v45, %v3363_v13  ;;  %v8876_v55 = vld [vmem:[#allocation30_spill] sm:$0xff] }
 0x293   : > { %v3298_v17 = vsel %vm715_vm5, %v3285_v58, -inf  ;;  %4778 = vmatprep.mubr.msk.f32.mxu1 %vm1378_vm14, %v3584_v6  ;;  %v3540_v20 = vsel %vm1275_vm6, %v3490_v11, %v3491_v62  ;;  %v3080_v1 = vmax.f32 %v3054_v29, %v7009_v43  ;;  %v3107_v53 = vrot.slane %v3079_v48, 6 }
 0x294   : > { %v3235_v30 = vrot.slane %v3079_v48, 7  ;;  %v3585_v39 = vmax.f32 %v3457_v44, %v3553_v15  ;;  %v3330_v52 = vmax.f32 %v3202_v4, %v3298_v17  ;;  %v3055_v18 = vmax.f32 %v6736_v12, %v6952_v33 }
 0x295   : > { %v8877_v25 = vmax.f32 %v8876_v55, %v6582_v35  ;;  %v3156_v45 = vsel %vm876_vm2, %v3106_v34, %v3107_v53  ;;  %v3364_v36 = vrot.slane %v3080_v1, 1  ;;  %v3492_v29 = vrot.slane %v3080_v1, 2 }
 0x296   : > { %v3284_v11 = vsel %vm1009_vm3, %v3234_v63, %v3235_v30  ;;  %4779 = vmatmul.mubr.msk.f32.gmra.mrb[22].mxu1 %vm1378_vm14, %v3585_v39  ;;  %v3458_v7 = vmax.f32 %v3330_v52, %v3412_v23  ;;  %v3203_v50 = vmax.f32 %v3079_v48, %v3156_v45  ;;  %v3081_v37 = vmax.f32 %v3055_v18, %v7055_v32 }
 0x297   : > { %v3028_v41 = vmax.f32 %v8877_v25, %v6884_v3  ;;  %v3108_v12 = vrot.slane %v3080_v1, 6  ;;  %v3411_v47 = vsel %vm1142_vm11, %v3363_v13, %v3364_v36  ;;  %v3539_v54 = vsel %vm1275_vm6, %v3491_v62, %v3492_v29 }
 0x298   : > { %v3236_v6 = vrot.slane %v3080_v1, 7  ;;  %v3586_v15 = vmax.f32 %v3458_v7, %v3540_v20  ;;  %v3331_v63 = vmax.f32 %v3203_v50, %v3284_v11  ;;  %v3427_v22 = vsel %vm726_vm9, %v3411_v47, -inf  ;;  %v8878_v7 = vld [vmem:[#allocation31_spill] sm:$0xff] }
 0x299   : > { %v3056_v34 = vmax.f32 %v3028_v41, %v7009_v43  ;;  %v3555_v48 = vsel %vm734_vm10, %v3539_v54, -inf  ;;  %v3155_v58 = vsel %vm876_vm2, %v3107_v53, %v3108_v12  ;;  %v3365_v44 = vrot.slane %v3081_v37, 1 }
 0x29a   : > { %v3283_v13 = vsel %vm1009_vm3, %v3235_v30, %v3236_v6  ;;  %v3493_v4 = vrot.slane %v3081_v37, 2  ;;  %4781 = vmatprep.mubr.msk.f32.mxu1 %vm1378_vm14, %v3586_v15  ;;  %v3459_v62 = vmax.f32 %v3331_v63, %v3427_v22  ;;  %v3172_v17 = vsel %vm707_vm4, %v3155_v58, -inf }
 0x29b   : > { %v3300_v23 = vsel %vm715_vm5, %v3283_v13, -inf  ;;  %v3082_v20 = vmax.f32 %v3056_v34, %v7140_v31  ;;  %v3204_v39 = vmax.f32 %v3080_v1, %v3172_v17  ;;  %v3410_v53 = vsel %vm1142_vm11, %v3364_v36, %v3365_v44 }
 0x29c   : > { %v3538_v30 = vsel %vm1275_vm6, %v3492_v29, %v3493_v4  ;;  %v3109_v52 = vrot.slane %v3081_v37, 6  ;;  %v3587_v18 = vmax.f32 %v3459_v62, %v3555_v48  ;;  %v3237_v55 = vrot.slane %v3081_v37, 7 }
 0x29d   : > { %v3366_v25 = vrot.slane %v3082_v20, 1  ;;  %v3494_v41 = vrot.slane %v3082_v20, 2  ;;  %v3332_v45 = vmax.f32 %v3204_v39, %v3300_v23  ;;  %v8879_v50 = vmax.f32 %v8878_v7, %v6689_v49 }
 0x29e   : > { %v3154_v11 = vsel %vm876_vm2, %v3108_v12, %v3109_v52  ;;  %v3110_v47 = vrot.slane %v3082_v20, 6  ;;  %4782 = vmatmul.mubr.msk.f32.gmra.mrb[24].mxu1 %vm1378_vm14, %v3587_v18  ;;  %v3282_v29 = vsel %vm1009_vm3, %v3236_v6, %v3237_v55  ;;  %v3238_v6 = vrot.slane %v3082_v20, 7 }
 0x29f   : > { %v3029_v1 = vmax.f32 %v8879_v50, %v6952_v33  ;;  %v3205_v36 = vmax.f32 %v3081_v37, %v3154_v11  ;;  %v3409_v54 = vsel %vm1142_vm11, %v3365_v44, %v3366_v25  ;;  %v3537_v34 = vsel %vm1275_vm6, %v3493_v4, %v3494_v41 }
 0x2a0   : > { %v3460_v15 = vmax.f32 %v3332_v45, %v3410_v53  ;;  %v3429_v12 = vsel %vm726_vm9, %v3409_v54, -inf  ;;  %v3557_v63 = vsel %vm734_vm10, %v3537_v34, -inf  ;;  %v3153_v37 = vsel %vm876_vm2, %v3109_v52, %v3110_v47 }
 0x2a1   : > { %v3057_v22 = vmax.f32 %v3029_v1, %v7055_v32  ;;  %v3333_v48 = vmax.f32 %v3205_v36, %v3282_v29  ;;  %v3002_v58 = vmax.f32 %v6582_v35, %v6884_v3  ;;  %v3174_v4 = vsel %vm707_vm4, %v3153_v37, -inf }
 0x2a2   : > { %v3588_v13 = vmax.f32 %v3460_v15, %v3538_v30  ;;  %v3003_v62 = vmax.f32 %v6689_v49, %v6952_v33  ;;  %v3206_v23 = vmax.f32 %v3082_v20, %v3174_v4  ;;  %v3281_v39 = vsel %vm1009_vm3, %v3237_v55, %v3238_v6 }
 0x2a3   : > { %v3083_v44 = vmax.f32 %v3057_v22, %v7191_v19  ;;  %v3461_v17 = vmax.f32 %v3333_v48, %v3429_v12  ;;  %v3030_v53 = vmax.f32 %v3002_v58, %v7009_v43  ;;  %v3302_v35 = vsel %vm715_vm5, %v3281_v39, -inf }
 0x2a4   : > { %4784 = vmatprep.mubr.msk.f32.mxu1 %vm1378_vm14, %v3588_v13  ;;  %v3334_v11 = vmax.f32 %v3206_v23, %v3302_v35  ;;  %v3031_v1 = vmax.f32 %v3003_v62, %v7055_v32 }
 0x2a5   : > { %v3367_v30 = vrot.slane %v3083_v44, 1  ;;  %v3495_v52 = vrot.slane %v3083_v44, 2  ;;  %v3111_v18 = vrot.slane %v3083_v44, 6  ;;  %v3589_v45 = vmax.f32 %v3461_v17, %v3557_v63 }
 0x2a6   : > { %v3058_v7 = vmax.f32 %v3030_v53, %v7140_v31  ;;  %v3239_v49 = vrot.slane %v3083_v44, 7  ;;  %v3059_v15 = vmax.f32 %v3031_v1, %v7191_v19 }
 0x2a7   : > { %v3408_v20 = vsel %vm1142_vm11, %v3366_v25, %v3367_v30  ;;  %v3536_v55 = vsel %vm1275_vm6, %v3494_v41, %v3495_v52  ;;  %v3152_v50 = vsel %vm876_vm2, %v3110_v47, %v3111_v18  ;;  %4785 = vmatmul.mubr.msk.f32.gmra.mrb[26].mxu1 %vm1378_vm14, %v3589_v45  ;;  %v3004_v25 = vmax.f32 %v6884_v3, %v7009_v43 }
 0x2a8   : > { %v3462_v36 = vmax.f32 %v3334_v11, %v3408_v20  ;;  %v3084_v29 = vmax.f32 %v3058_v7, %v7268_v10  ;;  %v3207_v54 = vmax.f32 %v3083_v44, %v3152_v50  ;;  %v3280_v34 = vsel %vm1009_vm3, %v3238_v6, %v3239_v49 }
 0x2a9   : > { %v3005_v41 = vmax.f32 %v6952_v33, %v7055_v32  ;;  %v3006_v47 = vmax.f32 %v7009_v43, %v7140_v31  ;;  %v3085_v37 = vmax.f32 %v3059_v15, %v7311_v38  ;;  %v3032_v6 = vmax.f32 %v3004_v25, %v7140_v31 }
 0x2aa   : > { %v3590_v12 = vmax.f32 %v3462_v36, %v3536_v55  ;;  %v3335_v63 = vmax.f32 %v3207_v54, %v3280_v34  ;;  %v3368_v22 = vrot.slane %v3084_v29, 1  ;;  %v3496_v48 = vrot.slane %v3084_v29, 2 }
 0x2ab   : > { %v3112_v58 = vrot.slane %v3084_v29, 6  ;;  %v3240_v13 = vrot.slane %v3084_v29, 7  ;;  %v3033_v43 = vmax.f32 %v3005_v41, %v7191_v19  ;;  %v3034_v44 = vmax.f32 %v3006_v47, %v7268_v10 }
 0x2ac   : > { %4787 = vmatprep.mubr.msk.f32.mxu1 %vm1378_vm14, %v3590_v12  ;;  %v3407_v3 = vsel %vm1142_vm11, %v3367_v30, %v3368_v22  ;;  %v3535_v33 = vsel %vm1275_vm6, %v3495_v52, %v3496_v48  ;;  %v3369_v30 = vrot.slane %v3085_v37, 1  ;;  %v3497_v45 = vrot.slane %v3085_v37, 2 }
 0x2ad   : > { %v3431_v4 = vsel %vm726_vm9, %v3407_v3, -inf  ;;  %v3559_v62 = vsel %vm734_vm10, %v3535_v33, -inf  ;;  %v3151_v17 = vsel %vm876_vm2, %v3111_v18, %v3112_v58  ;;  %v3279_v23 = vsel %vm1009_vm3, %v3239_v49, %v3240_v13 }
 0x2ae   : > { %v3463_v39 = vmax.f32 %v3335_v63, %v3431_v4  ;;  %v3176_v53 = vsel %vm707_vm4, %v3151_v17, -inf  ;;  %v3304_v35 = vsel %vm715_vm5, %v3279_v23, -inf  ;;  %v3060_v11 = vmax.f32 %v3032_v6, %v7268_v10 }
 0x2af   : > { %v3208_v52 = vmax.f32 %v3084_v29, %v3176_v53  ;;  %v3113_v7 = vrot.slane %v3085_v37, 6  ;;  %v3406_v18 = vsel %vm1142_vm11, %v3368_v22, %v3369_v30  ;;  %v3241_v55 = vrot.slane %v3085_v37, 7 }
 0x2b0   : > { %v3591_v20 = vmax.f32 %v3463_v39, %v3559_v62  ;;  %v3061_v49 = vmax.f32 %v3033_v43, %v7311_v38  ;;  %v3534_v1 = vsel %vm1275_vm6, %v3496_v48, %v3497_v45  ;;  %v3086_v36 = vmax.f32 %v3060_v11, %v7388_v8 }
 0x2b1   : > { %v3336_v50 = vmax.f32 %v3208_v52, %v3304_v35  ;;  %v3150_v29 = vsel %vm876_vm2, %v3112_v58, %v3113_v7  ;;  %v3278_v34 = vsel %vm1009_vm3, %v3240_v13, %v3241_v55  ;;  %v3062_v25 = vmax.f32 %v3034_v44, %v7388_v8 }
 0x2b2   : > { %4788 = vmatmul.mubr.msk.f32.gmra.mrb[28].mxu1 %vm1378_vm14, %v3591_v20  ;;  %v3209_v54 = vmax.f32 %v3085_v37, %v3150_v29  ;;  %v3087_v15 = vmax.f32 %v3061_v49, %v7397_v59  ;;  %v3370_v47 = vrot.slane %v3086_v36, 1  ;;  %v3498_v12 = vrot.slane %v3086_v36, 2 }
 0x2b3   : > { %v3464_v41 = vmax.f32 %v3336_v50, %v3406_v18  ;;  %v3114_v63 = vrot.slane %v3086_v36, 6  ;;  %v3242_v48 = vrot.slane %v3086_v36, 7  ;;  %v3007_v20 = vmax.f32 %v7055_v32, %v7191_v19 }
 0x2b4   : > { %v3337_v22 = vmax.f32 %v3209_v54, %v3278_v34  ;;  %v3371_v6 = vrot.slane %v3087_v15, 1  ;;  %v3499_v3 = vrot.slane %v3087_v15, 2  ;;  %v3405_v58 = vsel %vm1142_vm11, %v3369_v30, %v3370_v47 }
 0x2b5   : > { %v3592_v33 = vmax.f32 %v3464_v41, %v3534_v1  ;;  %v3533_v37 = vsel %vm1275_vm6, %v3497_v45, %v3498_v12  ;;  %v3149_v13 = vsel %vm876_vm2, %v3113_v7, %v3114_v63  ;;  %v3433_v43 = vsel %vm726_vm9, %v3405_v58, -inf }
 0x2b6   : > { %v3561_v44 = vsel %vm734_vm10, %v3533_v37, -inf  ;;  %v3178_v4 = vsel %vm707_vm4, %v3149_v13, -inf  ;;  %v3277_v62 = vsel %vm1009_vm3, %v3241_v55, %v3242_v48  ;;  %v3465_v17 = vmax.f32 %v3337_v22, %v3433_v43 }
 0x2b7   : > { %4790 = vmatprep.mubr.msk.f32.mxu1 %vm1378_vm14, %v3592_v33  ;;  %v3210_v23 = vmax.f32 %v3086_v36, %v3178_v4  ;;  %v3306_v39 = vsel %vm715_vm5, %v3277_v62, -inf  ;;  %v3404_v53 = vsel %vm1142_vm11, %v3370_v47, %v3371_v6  ;;  %v3532_v35 = vsel %vm1275_vm6, %v3498_v12, %v3499_v3 }
 0x2b8   : > { %v3088_v30 = vmax.f32 %v3062_v25, %v7460_v24  ;;  %v3115_v52 = vrot.slane %v3087_v15, 6  ;;  %v3243_v45 = vrot.slane %v3087_v15, 7  ;;  %v3593_v11 = vmax.f32 %v3465_v17, %v3561_v44 }
 0x2b9   : > { %v3338_v7 = vmax.f32 %v3210_v23, %v3306_v39  ;;  %v3008_v18 = vmax.f32 %v7140_v31, %v7268_v10  ;;  %v3035_v54 = vmax.f32 %v3007_v20, %v7311_v38  ;;  %v3009_v13 = vmax.f32 %v7191_v19, %v7311_v38 }
 0x2ba   : > { %v3148_v55 = vsel %vm876_vm2, %v3114_v63, %v3115_v52  ;;  %v3276_v49 = vsel %vm1009_vm3, %v3242_v48, %v3243_v45  ;;  %v3372_v50 = vrot.slane %v3088_v30, 1  ;;  %v3500_v1 = vrot.slane %v3088_v30, 2  ;;  %4791 = vmatmul.mubr.msk.f32.gmra.mrb[30].mxu1 %vm1378_vm14, %v3593_v11 }
 0x2bb   : > { %v3466_v36 = vmax.f32 %v3338_v7, %v3404_v53  ;;  %v3211_v29 = vmax.f32 %v3087_v15, %v3148_v55  ;;  %v3116_v34 = vrot.slane %v3088_v30, 6  ;;  %v3244_v25 = vrot.slane %v3088_v30, 7 }
 0x2bc   : > { %v3403_v32 = vsel %vm1142_vm11, %v3371_v6, %v3372_v50  ;;  %v3531_v31 = vsel %vm1275_vm6, %v3499_v3, %v3500_v1  ;;  %v3036_v41 = vmax.f32 %v3008_v18, %v7388_v8  ;;  %v3063_v22 = vmax.f32 %v3035_v54, %v7397_v59 }
 0x2bd   : > { %v3594_v47 = vmax.f32 %v3466_v36, %v3532_v35  ;;  %v3339_v12 = vmax.f32 %v3211_v29, %v3276_v49  ;;  %v3435_v63 = vsel %vm726_vm9, %v3403_v32, -inf  ;;  %v3563_v15 = vsel %vm734_vm10, %v3531_v31, -inf }
 0x2be   : > { %v3147_v48 = vsel %vm876_vm2, %v3115_v52, %v3116_v34  ;;  %v3275_v6 = vsel %vm1009_vm3, %v3243_v45, %v3244_v25  ;;  %v3064_v3 = vmax.f32 %v3036_v41, %v7460_v24  ;;  %v3089_v43 = vmax.f32 %v3063_v22, %v7479_v40 }
 0x2bf   : > { %4793 = vmatprep.mubr.msk.f32.mxu1 %vm1378_vm14, %v3594_v47  ;;  %v3467_v33 = vmax.f32 %v3339_v12, %v3435_v63  ;;  %v3180_v58 = vsel %vm707_vm4, %v3147_v48, -inf  ;;  %v3308_v37 = vsel %vm715_vm5, %v3275_v6, -inf  ;;  %v3010_v62 = vmax.f32 %v7268_v10, %v7388_v8  ;;  %v8095_v47 = vpop.f32.mrb[46].mxu0 }
 0x2c0   : > { %v3212_v44 = vmax.f32 %v3088_v30, %v3180_v58  ;;  %v3090_v4 = vmax.f32 %v3064_v3, %v7532_v28  ;;  %v3037_v23 = vmax.f32 %v3009_v13, %v7397_v59  ;;  %v3011_v39 = vmax.f32 %v7311_v38, %v7397_v59  ;;  %v8097_v48 = vpop.f32.mrb[47].mxu0 }
 0x2c1   : > { %v3595_v17 = vmax.f32 %v3467_v33, %v3563_v15  ;;  %v3012_v53 = vmax.f32 %v7388_v8, %v7460_v24  ;;  %v3373_v52 = vrot.slane %v3089_v43, 1  ;;  %v3501_v19 = vrot.slane %v3089_v43, 2 }
 0x2c2   : > { %v3340_v35 = vmax.f32 %v3212_v44, %v3308_v37  ;;  %v3117_v45 = vrot.slane %v3089_v43, 6  ;;  %v3245_v30 = vrot.slane %v3089_v43, 7  ;;  %v3374_v11 = vrot.slane %v3090_v4, 1 }
 0x2c3   : > { %4794 = vmatmul.mubr.msk.f32.gmra.mrb[0].mxu1 %vm1378_vm14, %v3595_v17  ;;  %v3502_v7 = vrot.slane %v3090_v4, 2  ;;  %v3065_v10 = vmax.f32 %v3037_v23, %v7479_v40  ;;  %v3402_v20 = vsel %vm1142_vm11, %v3372_v50, %v3373_v52  ;;  %v3530_v38 = vsel %vm1275_vm6, %v3500_v1, %v3501_v19 }
 0x2c4   : > { %v3146_v8 = vsel %vm876_vm2, %v3116_v34, %v3117_v45  ;;  %v3118_v18 = vrot.slane %v3090_v4, 6  ;;  %v3468_v55 = vmax.f32 %v3340_v35, %v3402_v20  ;;  %v3274_v36 = vsel %vm1009_vm3, %v3244_v25, %v3245_v30 }
 0x2c5   : > { %v3213_v49 = vmax.f32 %v3089_v43, %v3146_v8  ;;  %v3401_v29 = vsel %vm1142_vm11, %v3373_v52, %v3374_v11  ;;  %v3529_v50 = vsel %vm1275_vm6, %v3501_v19, %v3502_v7  ;;  %v3091_v1 = vmax.f32 %v3065_v10, %v7547_v26 }
 0x2c6   : > { %v3437_v54 = vsel %vm726_vm9, %v3401_v29, -inf  ;;  %v3145_v34 = vsel %vm876_vm2, %v3117_v45, %v3118_v18  ;;  %v3596_v32 = vmax.f32 %v3468_v55, %v3530_v38  ;;  %v3565_v41 = vsel %vm734_vm10, %v3529_v50, -inf }
 0x2c7   : > { %v3341_v31 = vmax.f32 %v3213_v49, %v3274_v36  ;;  %v3182_v25 = vsel %vm707_vm4, %v3145_v34, -inf  ;;  %v3246_v63 = vrot.slane %v3090_v4, 7  ;;  %v3375_v15 = vrot.slane %v3091_v1, 1 }
 0x2c8   : > { %v3214_v12 = vmax.f32 %v3090_v4, %v3182_v25  ;;  %v3503_v22 = vrot.slane %v3091_v1, 2  ;;  %4796 = vmatprep.mubr.msk.f32.mxu1 %vm1378_vm14, %v3596_v32  ;;  %v3038_v3 = vmax.f32 %v3010_v62, %v7460_v24  ;;  %v3119_v33 = vrot.slane %v3091_v1, 6 }
 0x2c9   : > { %v3469_v6 = vmax.f32 %v3341_v31, %v3437_v54  ;;  %v3247_v58 = vrot.slane %v3091_v1, 7  ;;  %v3273_v37 = vsel %vm1009_vm3, %v3245_v30, %v3246_v63  ;;  %v3400_v13 = vsel %vm1142_vm11, %v3374_v11, %v3375_v15 }
 0x2ca   : > { %v3528_v43 = vsel %vm1275_vm6, %v3502_v7, %v3503_v22  ;;  %v3039_v44 = vmax.f32 %v3011_v39, %v7479_v40  ;;  %v3310_v17 = vsel %vm715_vm5, %v3273_v37, -inf  ;;  %v3066_v23 = vmax.f32 %v3038_v3, %v7532_v28  ;;  %v8148_v3 = vpop.f32.mrb[48].mxu0 }
 0x2cb   : > { %v3597_v4 = vmax.f32 %v3469_v6, %v3565_v41  ;;  %v3144_v24 = vsel %vm876_vm2, %v3118_v18, %v3119_v33  ;;  %v3342_v62 = vmax.f32 %v3214_v12, %v3310_v17  ;;  %v3272_v52 = vsel %vm1009_vm3, %v3246_v63, %v3247_v58 }
 0x2cc   : > { %v3215_v35 = vmax.f32 %v3091_v1, %v3144_v24  ;;  %v3067_v19 = vmax.f32 %v3039_v44, %v7547_v26  ;;  %v3092_v39 = vmax.f32 %v3066_v23, %v7581_v46  ;;  %v3040_v45 = vmax.f32 %v3012_v53, %v7532_v28 }
 0x2cd   : > { %4797 = vmatmul.mubr.msk.f32.gmra.mrb[2].mxu1 %vm1378_vm14, %v3597_v4  ;;  %v3013_v30 = vmax.f32 %v7397_v59, %v7479_v40  ;;  %v3380_v11 = vrot.slane %v7693_v14, 1  ;;  %v3470_v7 = vmax.f32 %v3342_v62, %v3400_v13  ;;  %v3508_v38 = vrot.slane %v7693_v14, 2 }
 0x2ce   : > { %v3343_v10 = vmax.f32 %v3215_v35, %v3272_v52  ;;  %v3093_v20 = vmax.f32 %v3067_v19, %v7603_v56  ;;  %v3376_v8 = vrot.slane %v3092_v39, 1  ;;  %v3504_v18 = vrot.slane %v3092_v39, 2 }
 0x2cf   : > { %v3120_v55 = vrot.slane %v3092_v39, 6  ;;  %v3248_v49 = vrot.slane %v3092_v39, 7  ;;  %v3598_v36 = vmax.f32 %v3470_v7, %v3528_v43  ;;  %v3068_v28 = vmax.f32 %v3040_v45, %v7581_v46  ;;  %v8152_v43 = vpop.f32.mrb[49].mxu0 }
 0x2d0   : > { %v3377_v29 = vrot.slane %v3093_v20, 1  ;;  %v3505_v54 = vrot.slane %v3093_v20, 2  ;;  %v3399_v59 = vsel %vm1142_vm11, %v3375_v15, %v3376_v8  ;;  %v3527_v40 = vsel %vm1275_vm6, %v3503_v22, %v3504_v18 }
 0x2d1   : > { %v3143_v53 = vsel %vm876_vm2, %v3119_v33, %v3120_v55  ;;  %v3271_v50 = vsel %vm1009_vm3, %v3247_v58, %v3248_v49  ;;  %4799 = vmatprep.mubr.msk.f32.mxu1 %vm1378_vm14, %v3598_v36  ;;  %v3439_v1 = vsel %vm726_vm9, %v3399_v59, -inf  ;;  %v3567_v46 = vsel %vm734_vm10, %v3527_v40, -inf }
 0x2d2   : > { %v3184_v34 = vsel %vm707_vm4, %v3143_v53, -inf  ;;  %v3312_v32 = vsel %vm715_vm5, %v3271_v50, -inf  ;;  %v3471_v31 = vmax.f32 %v3343_v10, %v3439_v1  ;;  %v3398_v25 = vsel %vm1142_vm11, %v3376_v8, %v3377_v29 }
 0x2d3   : > { %v3216_v41 = vmax.f32 %v3092_v39, %v3184_v34  ;;  %v3526_v12 = vsel %vm1275_vm6, %v3504_v18, %v3505_v54  ;;  %v3094_v63 = vmax.f32 %v3068_v28, %v7625_v57  ;;  %v3121_v15 = vrot.slane %v3093_v20, 6 }
 0x2d4   : > { %v3249_v22 = vrot.slane %v3093_v20, 7  ;;  %v3041_v6 = vmax.f32 %v3013_v30, %v7547_v26  ;;  %v3599_v33 = vmax.f32 %v3471_v31, %v3567_v46  ;;  %v3124_v37 = vrot.slane %v7693_v14, 6 }
 0x2d5   : > { %v3344_v58 = vmax.f32 %v3216_v41, %v3312_v32  ;;  %v3252_v13 = vrot.slane %v7693_v14, 7  ;;  %v3142_v44 = vsel %vm876_vm2, %v3120_v55, %v3121_v15  ;;  %v3378_v4 = vrot.slane %v3094_v63, 1 }
 0x2d6   : > { %v3270_v57 = vsel %vm1009_vm3, %v3248_v49, %v3249_v22  ;;  %v3506_v17 = vrot.slane %v3094_v63, 2  ;;  %4800 = vmatmul.mubr.msk.f32.gmra.mrb[4].mxu1 %vm1378_vm14, %v3599_v33  ;;  %v3217_v23 = vmax.f32 %v3093_v20, %v3142_v44  ;;  %v3069_v24 = vmax.f32 %v3041_v6, %v7603_v56 }
 0x2d7   : > { %v3472_v26 = vmax.f32 %v3344_v58, %v3398_v25  ;;  %v3122_v62 = vrot.slane %v3094_v63, 6  ;;  %v3397_v35 = vsel %vm1142_vm11, %v3377_v29, %v3378_v4  ;;  %v3250_v19 = vrot.slane %v3094_v63, 7 }
 0x2d8   : > { %v3525_v52 = vsel %vm1275_vm6, %v3505_v54, %v3506_v17  ;;  %v3381_v39 = vrot.slane %v7719_v51, 1  ;;  %v3345_v30 = vmax.f32 %v3217_v23, %v3270_v57  ;;  %v3441_v7 = vsel %vm726_vm9, %v3397_v35, -inf }
 0x2d9   : > { %v3600_v45 = vmax.f32 %v3472_v26, %v3526_v12  ;;  %v3569_v10 = vsel %vm734_vm10, %v3525_v52, -inf  ;;  %v3095_v56 = vmax.f32 %v3069_v24, %v7653_v21  ;;  %v3141_v20 = vsel %vm876_vm2, %v3121_v15, %v3122_v62  ;;  %v8206_v15 = vpop.f32.mrb[50].mxu0 }
 0x2da   : > { %v3269_v8 = vsel %vm1009_vm3, %v3249_v22, %v3250_v19  ;;  %v3394_v18 = vsel %vm1142_vm11, %v3380_v11, %v3381_v39  ;;  %v3473_v55 = vmax.f32 %v3345_v30, %v3441_v7  ;;  %v3186_v49 = vsel %vm707_vm4, %v3141_v20, -inf  ;;  %v8214_v44 = vpop.f32.mrb[51].mxu0 }
 0x2db   : > { %4802 = vmatprep.mubr.msk.f32.mxu1 %vm1378_vm14, %v3600_v45  ;;  %v3314_v21 = vsel %vm715_vm5, %v3269_v8, -inf  ;;  %v3509_v36 = vrot.slane %v7719_v51, 2  ;;  %v3218_v29 = vmax.f32 %v3094_v63, %v3186_v49  ;;  %v3379_v54 = vrot.slane %v3095_v56, 1 }
 0x2dc   : > { %v3507_v28 = vrot.slane %v3095_v56, 2  ;;  %v3123_v59 = vrot.slane %v3095_v56, 6  ;;  %v3601_v40 = vmax.f32 %v3473_v55, %v3569_v10  ;;  %v3251_v53 = vrot.slane %v3095_v56, 7 }
 0x2dd   : > { %v3522_v50 = vsel %vm1275_vm6, %v3508_v38, %v3509_v36  ;;  %v3125_v1 = vrot.slane %v7719_v51, 6  ;;  %v3346_v46 = vmax.f32 %v3218_v29, %v3314_v21  ;;  %v3396_v34 = vsel %vm1142_vm11, %v3378_v4, %v3379_v54 }
 0x2de   : > { %v3524_v32 = vsel %vm1275_vm6, %v3506_v17, %v3507_v28  ;;  %v3140_v31 = vsel %vm876_vm2, %v3122_v62, %v3123_v59  ;;  %4803 = vmatmul.mubr.msk.f32.gmra.mrb[6].mxu1 %vm1378_vm14, %v3601_v40  ;;  %v3268_v25 = vsel %vm1009_vm3, %v3250_v19, %v3251_v53  ;;  %v3395_v12 = vsel %vm1142_vm11, %v3379_v54, %v3380_v11 }
 0x2df   : > { %v3219_v41 = vmax.f32 %v3095_v56, %v3140_v31  ;;  %v3523_v63 = vsel %vm1275_vm6, %v3507_v28, %v3508_v38  ;;  %v3474_v22 = vmax.f32 %v3346_v46, %v3396_v34  ;;  %v3443_v6 = vsel %vm726_vm9, %v3395_v12, -inf }
 0x2e0   : > { %v3571_v33 = vsel %vm734_vm10, %v3523_v63, -inf  ;;  %v3139_v58 = vsel %vm876_vm2, %v3123_v59, %v3124_v37  ;;  %v3267_v38 = vsel %vm1009_vm3, %v3251_v53, %v3252_v13  ;;  %v3138_v4 = vsel %vm876_vm2, %v3124_v37, %v3125_v1 }
 0x2e1   : > { %v3347_v11 = vmax.f32 %v3219_v41, %v3268_v25  ;;  %v3188_v57 = vsel %vm707_vm4, %v3139_v58, -inf  ;;  %v3602_v17 = vmax.f32 %v3474_v22, %v3524_v32  ;;  %v3316_v23 = vsel %vm715_vm5, %v3267_v38, -inf }
 0x2e2   : > { %v3220_v26 = vmax.f32 %v7693_v14, %v3188_v57  ;;  %v3221_v24 = vmax.f32 %v7719_v51, %v3138_v4  ;;  %v3253_v35 = vrot.slane %v7719_v51, 7  ;;  %v3382_v52 = vrot.slane %v7744_v2, 1 }
 0x2e3   : > { %v3475_v62 = vmax.f32 %v3347_v11, %v3443_v6  ;;  %v3510_v19 = vrot.slane %v7744_v2, 2  ;;  %4805 = vmatprep.mubr.msk.f32.mxu1 %vm1378_vm14, %v3602_v17  ;;  %v3126_v37 = vrot.slane %v7744_v2, 6  ;;  %v3254_v30 = vrot.slane %v7744_v2, 7 }
 0x2e4   : > { %v3348_v45 = vmax.f32 %v3220_v26, %v3316_v23  ;;  %v3383_v7 = vrot.slane %v7766_v5, 1  ;;  %v3266_v56 = vsel %vm1009_vm3, %v3252_v13, %v3253_v35  ;;  %v3393_v51 = vsel %vm1142_vm11, %v3381_v39, %v3382_v52 }
 0x2e5   : > { %v3603_v10 = vmax.f32 %v3475_v62, %v3571_v33  ;;  %v3521_v20 = vsel %vm1275_vm6, %v3509_v36, %v3510_v19  ;;  %v3349_v55 = vmax.f32 %v3221_v24, %v3266_v56  ;;  %v3445_v49 = vsel %vm726_vm9, %v3393_v51, -inf }
 0x2e6   : > { %v3476_v8 = vmax.f32 %v3348_v45, %v3394_v18  ;;  %v3573_v21 = vsel %vm734_vm10, %v3521_v20, -inf  ;;  %v3137_v14 = vsel %vm876_vm2, %v3125_v1, %v3126_v37  ;;  %v3265_v13 = vsel %vm1009_vm3, %v3253_v35, %v3254_v30  ;;  %v8295_v35 = vpop.f32.mrb[52].mxu0 }
 0x2e7   : > { %4806 = vmatmul.mubr.msk.f32.gmra.mrb[8].mxu1 %vm1378_vm14, %v3603_v10  ;;  %v3392_v39 = vsel %vm1142_vm11, %v3382_v52, %v3383_v7  ;;  %v3511_v18 = vrot.slane %v7766_v5, 2  ;;  %v3477_v29 = vmax.f32 %v3349_v55, %v3445_v49  ;;  %v3190_v54 = vsel %vm707_vm4, %v3137_v14, -inf  ;;  %v8880_v10 = vld [vmem:[#allocation24_spill] sm:$0xff] }
 0x2e8   : > { %v3604_v36 = vmax.f32 %v3476_v8, %v3522_v50  ;;  %v3318_v28 = vsel %vm715_vm5, %v3265_v13, -inf  ;;  %v3222_v59 = vmax.f32 %v7744_v2, %v3190_v54  ;;  %v3127_v53 = vrot.slane %v7766_v5, 6 }
 0x2e9   : > { %v3520_v40 = vsel %vm1275_vm6, %v3510_v19, %v3511_v18  ;;  %v3255_v1 = vrot.slane %v7766_v5, 7  ;;  %v3605_v46 = vmax.f32 %v3477_v29, %v3573_v21  ;;  %v3384_v50 = vrot.slane %v7742_v16, 1 }
 0x2ea   : > { %4808 = vmatprep.mubr.msk.f32.mxu1 %vm1378_vm14, %v3604_v36  ;;  %v3512_v34 = vrot.slane %v7742_v16, 2  ;;  %v3128_v32 = vrot.slane %v7742_v16, 6  ;;  %v3350_v31 = vmax.f32 %v3222_v59, %v3318_v28  ;;  %v3136_v2 = vsel %vm876_vm2, %v3126_v37, %v3127_v53  ;;  %v8300_v37 = vpop.f32.mrb[53].mxu0  ;;  %v8881_v28 = vld [vmem:[#allocation22_spill] sm:$0xff] }
 0x2eb   : > { %v3264_v41 = vsel %vm1009_vm3, %v3254_v30, %v3255_v1  ;;  %v3256_v25 = vrot.slane %v7742_v16, 7  ;;  %4809 = vmatmul.mubr.msk.f32.gmra.mrb[10].mxu1 %vm1378_vm14, %v3605_v46  ;;  %v3223_v12 = vmax.f32 %v7766_v5, %v3136_v2  ;;  %v3391_v63 = vsel %vm1142_vm11, %v3383_v7, %v3384_v50 }
 0x2ec   : > { %v3519_v22 = vsel %vm1275_vm6, %v3511_v18, %v3512_v34  ;;  %v3135_v6 = vsel %vm876_vm2, %v3127_v53, %v3128_v32  ;;  %v3478_v33 = vmax.f32 %v3350_v31, %v3392_v39  ;;  %v3447_v58 = vsel %vm726_vm9, %v3391_v63, -inf }
 0x2ed   : > { %v3575_v11 = vsel %vm734_vm10, %v3519_v22, -inf  ;;  %v3192_v57 = vsel %vm707_vm4, %v3135_v6, -inf  ;;  %v3351_v5 = vmax.f32 %v3223_v12, %v3264_v41  ;;  %v3263_v4 = vsel %vm1009_vm3, %v3255_v1, %v3256_v25  ;;  %v8884_v12 = vld [vmem:[#allocation29_spill] sm:$0xff] }
 0x2ee   : > { %v3224_v38 = vmax.f32 %v7742_v16, %v3192_v57  ;;  %v3385_v17 = vrot.slane %v7758_v27, 1  ;;  %v3606_v26 = vmax.f32 %v3478_v33, %v3520_v40  ;;  %v3320_v23 = vsel %vm715_vm5, %v3263_v4, -inf }
 0x2ef   : > { %v3513_v24 = vrot.slane %v7758_v27, 2  ;;  %v3129_v62 = vrot.slane %v7758_v27, 6  ;;  %v3479_v52 = vmax.f32 %v3351_v5, %v3447_v58  ;;  %v3257_v45 = vrot.slane %v7758_v27, 7 }
 0x2f0   : > { %v3352_v19 = vmax.f32 %v3224_v38, %v3320_v23  ;;  %v3390_v16 = vsel %vm1142_vm11, %v3384_v50, %v3385_v17  ;;  %4811 = vmatprep.mubr.msk.f32.mxu1 %vm1378_vm14, %v3606_v26  ;;  %v3386_v56 = vrot.slane %v8880_v10, 1  ;;  %v3514_v51 = vrot.slane %v8880_v10, 2 }
 0x2f1   : > { %v3518_v30 = vsel %vm1275_vm6, %v3512_v34, %v3513_v24  ;;  %v3134_v7 = vsel %vm876_vm2, %v3128_v32, %v3129_v62  ;;  %v3607_v20 = vmax.f32 %v3479_v52, %v3575_v11  ;;  %v3262_v49 = vsel %vm1009_vm3, %v3256_v25, %v3257_v45 }
 0x2f2   : > { %v3480_v8 = vmax.f32 %v3352_v19, %v3390_v16  ;;  %v3225_v55 = vmax.f32 %v7758_v27, %v3134_v7  ;;  %v3389_v21 = vsel %vm1142_vm11, %v3385_v17, %v3386_v56  ;;  %v3517_v14 = vsel %vm1275_vm6, %v3513_v24, %v3514_v51  ;;  %v8359_v17 = vpop.f32.mrb[54].mxu0 }
 0x2f3   : > { %v3130_v13 = vrot.slane %v8880_v10, 6  ;;  %v3258_v39 = vrot.slane %v8880_v10, 7  ;;  %4812 = vmatmul.mubr.msk.f32.gmra.mrb[12].mxu1 %vm1378_vm14, %v3607_v20  ;;  %v3449_v27 = vsel %vm726_vm9, %v3389_v21, -inf  ;;  %v3387_v59 = vrot.slane %v8881_v28, 1  ;;  %v8363_v24 = vpop.f32.mrb[55].mxu0 }
 0x2f4   : > { %v3608_v18 = vmax.f32 %v3480_v8, %v3518_v30  ;;  %v3353_v36 = vmax.f32 %v3225_v55, %v3262_v49  ;;  %v3515_v1 = vrot.slane %v8881_v28, 2  ;;  %v8882_v46 = vrot.slane %v8881_v28, 6 }
 0x2f5   : > { %v3133_v29 = vsel %vm876_vm2, %v3129_v62, %v3130_v13  ;;  %v3261_v54 = vsel %vm1009_vm3, %v3257_v45, %v3258_v39  ;;  %v3577_v34 = vsel %vm734_vm10, %v3517_v14, -inf  ;;  %v8883_v60 = vrot.slane %v8881_v28, 7 }
 0x2f6   : > { %4814 = vmatprep.mubr.msk.f32.mxu1 %vm1378_vm14, %v3608_v18  ;;  %v3481_v40 = vmax.f32 %v3353_v36, %v3449_v27  ;;  %v3194_v53 = vsel %vm707_vm4, %v3133_v29, -inf  ;;  %v3132_v50 = vsel %vm876_vm2, %v3130_v13, %v8882_v46  ;;  %v3322_v41 = vsel %vm715_vm5, %v3261_v54, -inf  ;;  %v8398_v29 = vld [vmem:[%s8579_s4] ss:$0 sm:$0xff] }
 0x2f7   : > { %v3226_v32 = vmax.f32 %v8880_v10, %v3194_v53  ;;  %v3227_v31 = vmax.f32 %v8881_v28, %v3132_v50  ;;  %v3260_v25 = vsel %vm1009_vm3, %v3258_v39, %v8883_v60  ;;  %v8885_v63 = vrot.slane %v8884_v12, 1 }
 0x2f8   : > { %v3609_v2 = vmax.f32 %v3481_v40, %v3577_v34  ;;  %v3388_v58 = vsel %vm1142_vm11, %v3386_v56, %v3387_v59  ;;  %v8886_v11 = vrot.slane %v8884_v12, 2  ;;  %v3516_v4 = vsel %vm1275_vm6, %v3514_v51, %v3515_v1 }
 0x2f9   : > { %v3419_v22 = vsel %vm1142_vm11, %v3387_v59, %v8885_v63  ;;  %v3354_v6 = vmax.f32 %v3226_v32, %v3322_v41  ;;  %v3355_v33 = vmax.f32 %v3227_v31, %v3260_v25 }
 0x2fa   : > { %4815 = vmatmul.mubr.msk.f32.gmra.mrb[14].mxu1 %vm1378_vm14, %v3609_v2  ;;  %v3451_v61 = vsel %vm726_vm9, %v3419_v22, -inf  ;;  %v3547_v57 = vsel %vm1275_vm6, %v3515_v1, %v8886_v11 }
 0x2fb   : > { %v3482_v5 = vmax.f32 %v3354_v6, %v3388_v58  ;;  %v3483_v38 = vmax.f32 %v3355_v33, %v3451_v61  ;;  %v3579_v23 = vsel %vm734_vm10, %v3547_v57, -inf }
 0x2fd   : > { %v3610_v26 = vmax.f32 %v3482_v5, %v3516_v4  ;;  %v3611_v0 = vmax.f32 %v3483_v38, %v3579_v23 }
 0x2ff   : > { %4817 = vmatprep.mubr.msk.f32.mxu1 %vm1378_vm14, %v3610_v26 }
 0x300   : > { %4818 = vmatmul.mubr.msk.f32.gmra.mrb[16].mxu1 %vm1378_vm14, %v3611_v0  ;;  %v8367_v62 = vpop.f32.mrb[56].mxu0 }
 0x301   : > { %v8369_v52 = vpop.f32.mrb[57].mxu0 }
 0x30a   : > { %v8371_v19 = vpop.f32.mrb[58].mxu0 }
 0x30b   : > { %v8373_v42 = vpop.f32.mrb[59].mxu0 }
 0x317   : > { %v8375_v16 = vpop.f32.mrb[60].mxu0 }
 0x318   : > { %v8377_v45 = vpop.f32.mrb[61].mxu0 }
 0x323   : > { %v8379_v9 = vpop.f32.mrb[62].mxu0 }
 0x324   : > { %v8381_v30 = vpop.f32.mrb[63].mxu0 }
 0x327   : > { %v4674_v7 = vpop.f32.mrb[32].mxu0 }
 0x328   : > { %v1862_v10 = vpop.f32.mrb[33].mxu0 }
 0x32c   : > { %v4677_v56 = vpop.f32.mrb[34].mxu0 }
 0x32d   : > { %v1872_v51 = vpop.f32.mrb[35].mxu0 }
 0x330   : > { %v4680_v20 = vpop.f32.mrb[36].mxu0 }
 0x331   : > { %v1882_v8 = vpop.f32.mrb[37].mxu0 }
 0x334   : > { %v4683_v55 = vpop.f32.mrb[38].mxu0 }
 0x335   : > { %v1892_v49 = vpop.f32.mrb[39].mxu0 }
 0x338   : > { %v8383_v21 = vpop.f32.mrb[40].mxu0 }
 0x339   : > { %v8385_v14 = vpop.f32.mrb[41].mxu0 }
 0x33c   : > { %v8387_v13 = vpop.f32.mrb[42].mxu0 }
 0x33d   : > { %v8389_v39 = vpop.f32.mrb[43].mxu0 }
 0x340   : > { %v8391_v18 = vpop.f32.mrb[44].mxu0 }
 0x341   : > { %v8393_v36 = vpop.f32.mrb[45].mxu0 }
 0x35d   : > { %v4774_v27 = vpop.f32.mrb[18].mxu1 }
 0x35e   : > { %v4826_v54 = vadd.f32 %v4774_v27, %v4674_v7  ;;  %v3776_v28 = vpop.f32.mrb[19].mxu1 }
 0x35f   : > { %v4827_v59 = vadd.f32 %v3776_v28, %v1862_v10 }
 0x360   : > { %v3975_v40 = vadd.f32 %v4826_v54, %v8398_v29 }
 0x361   : > { %v3974_v53 = vadd.f32 %v4827_v59, %v8398_v29  ;;  %v4777_v1 = vpop.f32.mrb[20].mxu1 }
 0x362   : > { %vm4007_vm11 = vcmp.ge.f32.partialorder %v3975_v40, 0.0  ;;  %v4039_v46 = vmul.f32 0.1, %v3975_v40  ;;  %v4828_v50 = vadd.f32 %v4777_v1, %v4677_v56  ;;  %v3786_v34 = vpop.f32.mrb[21].mxu1 }
 0x363   : > { %vm4006_vm14 = vcmp.ge.f32.partialorder %v3974_v53, 0.0  ;;  %v4038_v32 = vmul.f32 0.1, %v3974_v53  ;;  %v4829_v31 = vadd.f32 %v3786_v34, %v1872_v51 }
 0x364   : > { %v4071_v2 = vsel %vm4007_vm11, %v3975_v40, %v4039_v46  ;;  %v3977_v41 = vadd.f32 %v4828_v50, %v8398_v29 }
 0x365   : > { %4103 = vst.msk [vmem:[%s8405_s15 + $0x8] sm:$0xff] %vm284_vm0, %v4071_v2  ;;  %v4070_v60 = vsel %vm4006_vm14, %v3974_v53, %v4038_v32  ;;  %v3976_v25 = vadd.f32 %v4829_v31, %v8398_v29 }
 0x366   : > { %4102 = vst.msk [vmem:[%s8405_s15] sm:$0xff] %vm284_vm0, %v4070_v60  ;;  %vm4009_vm2 = vcmp.ge.f32.partialorder %v3977_v41, 0.0  ;;  %v4041_v12 = vmul.f32 0.1, %v3977_v41 }
 0x367   : > { %vm4008_vm3 = vcmp.ge.f32.partialorder %v3976_v25, 0.0  ;;  %v4040_v63 = vmul.f32 0.1, %v3976_v25 }
 0x368   : > { %v4073_v22 = vsel %vm4009_vm2, %v3977_v41, %v4041_v12 }
 0x369   : > { %4105 = vst.msk [vmem:[%s8405_s15 + $0x18] sm:$0xff] %vm284_vm0, %v4073_v22  ;;  %v4072_v6 = vsel %vm4008_vm3, %v3976_v25, %v4040_v63  ;;  %v4780_v33 = vpop.f32.mrb[22].mxu1 }
 0x36a   : > { %4104 = vst.msk [vmem:[%s8405_s15 + $0x10] sm:$0xff] %vm284_vm0, %v4072_v6  ;;  %v4830_v58 = vadd.f32 %v4780_v33, %v4680_v20  ;;  %v3796_v61 = vpop.f32.mrb[23].mxu1 }
 0x36b   : > { %v4831_v11 = vadd.f32 %v3796_v61, %v1882_v8 }
 0x36c   : > { %v3979_v57 = vadd.f32 %v4830_v58, %v8398_v29 }
 0x36d   : > { %v3978_v5 = vadd.f32 %v4831_v11, %v8398_v29 }
 0x36e   : > { %vm4011_vm4 = vcmp.ge.f32.partialorder %v3979_v57, 0.0  ;;  %v4043_v38 = vmul.f32 0.1, %v3979_v57 }
 0x36f   : > { %vm4010_vm5 = vcmp.ge.f32.partialorder %v3978_v5, 0.0  ;;  %v4042_v4 = vmul.f32 0.1, %v3978_v5 }
 0x370   : > { %v4075_v26 = vsel %vm4011_vm4, %v3979_v57, %v4043_v38 }
 0x371   : > { %4107 = vst.msk [vmem:[%s8405_s15 + $0x28] sm:$0xff] %vm284_vm0, %v4075_v26  ;;  %v4074_v23 = vsel %vm4010_vm5, %v3978_v5, %v4042_v4  ;;  %v4783_v0 = vpop.f32.mrb[24].mxu1 }
 0x372   : > { %4106 = vst.msk [vmem:[%s8405_s15 + $0x20] sm:$0xff] %vm284_vm0, %v4074_v23  ;;  %v4832_v7 = vadd.f32 %v4783_v0, %v4683_v55  ;;  %v3806_v10 = vpop.f32.mrb[25].mxu1 }
 0x373   : > { %v4833_v56 = vadd.f32 %v3806_v10, %v1892_v49 }
 0x374   : > { %v3981_v51 = vadd.f32 %v4832_v7, %v8398_v29 }
 0x375   : > { %v3980_v20 = vadd.f32 %v4833_v56, %v8398_v29 }
 0x376   : > { %vm4013_vm6 = vcmp.ge.f32.partialorder %v3981_v51, 0.0  ;;  %v4045_v8 = vmul.f32 0.1, %v3981_v51 }
 0x377   : > { %vm4012_vm9 = vcmp.ge.f32.partialorder %v3980_v20, 0.0  ;;  %v4044_v27 = vmul.f32 0.1, %v3980_v20 }
 0x378   : > { %v4077_v54 = vsel %vm4013_vm6, %v3981_v51, %v4045_v8 }
 0x379   : > { %4109 = vst.msk [vmem:[%s8405_s15 + $0x38] sm:$0xff] %vm284_vm0, %v4077_v54  ;;  %v4076_v28 = vsel %vm4012_vm9, %v3980_v20, %v4044_v27 }
 0x37a   : > { %v4786_v59 = vpop.f32.mrb[26].mxu1  ;;  %4108 = vst.msk [vmem:[%s8405_s15 + $0x30] sm:$0xff] %vm284_vm0, %v4076_v28 }
 0x37b   : > { %v4834_v55 = vadd.f32 %v4786_v59, %v8383_v21  ;;  %v3816_v49 = vpop.f32.mrb[27].mxu1 }
 0x37c   : > { %v4835_v40 = vadd.f32 %v3816_v49, %v8385_v14 }
 0x37d   : > { %v3983_v53 = vadd.f32 %v4834_v55, %v8398_v29 }
 0x37e   : > { %v3982_v1 = vadd.f32 %v4835_v40, %v8398_v29 }
 0x37f   : > { %vm4015_vm10 = vcmp.ge.f32.partialorder %v3983_v53, 0.0  ;;  %v4047_v46 = vmul.f32 0.1, %v3983_v53 }
 0x380   : > { %vm4014_vm7 = vcmp.ge.f32.partialorder %v3982_v1, 0.0  ;;  %v4046_v50 = vmul.f32 0.1, %v3982_v1 }
 0x381   : > { %v4079_v34 = vsel %vm4015_vm10, %v3983_v53, %v4047_v46 }
 0x382   : > { %4111 = vst.msk [vmem:[%s8405_s15 + $0x48] sm:$0xff] %vm284_vm0, %v4079_v34  ;;  %v4078_v32 = vsel %vm4014_vm7, %v3982_v1, %v4046_v50 }
 0x383   : > { %4110 = vst.msk [vmem:[%s8405_s15 + $0x40] sm:$0xff] %vm284_vm0, %v4078_v32 }
 0x385   : > { %v4789_v21 = vpop.f32.mrb[28].mxu1 }
 0x386   : > { %v4836_v31 = vadd.f32 %v4789_v21, %v8387_v13  ;;  %v3826_v14 = vpop.f32.mrb[29].mxu1 }
 0x387   : > { %v4837_v2 = vadd.f32 %v3826_v14, %v8389_v39 }
 0x388   : > { %v3985_v41 = vadd.f32 %v4836_v31, %v8398_v29 }
 0x389   : > { %v3984_v60 = vadd.f32 %v4837_v2, %v8398_v29 }
 0x38a   : > { %vm4017_vm8 = vcmp.ge.f32.partialorder %v3985_v41, 0.0  ;;  %v4049_v25 = vmul.f32 0.1, %v3985_v41 }
 0x38b   : > { %vm4016_vm12 = vcmp.ge.f32.partialorder %v3984_v60, 0.0  ;;  %v4048_v12 = vmul.f32 0.1, %v3984_v60 }
 0x38c   : > { %v4081_v63 = vsel %vm4017_vm8, %v3985_v41, %v4049_v25 }
 0x38d   : > { %4113 = vst.msk [vmem:[%s8405_s15 + $0x58] sm:$0xff] %vm284_vm0, %v4081_v63  ;;  %v4080_v22 = vsel %vm4016_vm12, %v3984_v60, %v4048_v12  ;;  %v4792_v13 = vpop.f32.mrb[30].mxu1 }
 0x38e   : > { %4112 = vst.msk [vmem:[%s8405_s15 + $0x50] sm:$0xff] %vm284_vm0, %v4080_v22  ;;  %v4838_v6 = vadd.f32 %v4792_v13, %v8391_v18  ;;  %v3836_v39 = vpop.f32.mrb[31].mxu1 }
 0x38f   : > { %v4839_v33 = vadd.f32 %v3836_v39, %v8393_v36 }
 0x390   : > { %v3987_v58 = vadd.f32 %v4838_v6, %v8398_v29 }
 0x391   : > { %v3986_v61 = vadd.f32 %v4839_v33, %v8398_v29 }
 0x392   : > { %vm4019_vm13 = vcmp.ge.f32.partialorder %v3987_v58, 0.0  ;;  %v4051_v11 = vmul.f32 0.1, %v3987_v58 }
 0x393   : > { %vm4018_vm15 = vcmp.ge.f32.partialorder %v3986_v61, 0.0  ;;  %v4050_v57 = vmul.f32 0.1, %v3986_v61 }
 0x394   : > { %v4083_v5 = vsel %vm4019_vm13, %v3987_v58, %v4051_v11 }
 0x395   : > { %4115 = vst.msk [vmem:[%s8405_s15 + $0x68] sm:$0xff] %vm284_vm0, %v4083_v5  ;;  %v4082_v38 = vsel %vm4018_vm15, %v3986_v61, %v4050_v57 }
 0x396   : > { %v4795_v4 = vpop.f32.mrb[0].mxu1  ;;  %4114 = vst.msk [vmem:[%s8405_s15 + $0x60] sm:$0xff] %vm284_vm0, %v4082_v38 }
 0x397   : > { %v4840_v18 = vadd.f32 %v4795_v4, %v8095_v47  ;;  %v3846_v36 = vpop.f32.mrb[1].mxu1 }
 0x398   : > { %v4841_v26 = vadd.f32 %v3846_v36, %v8097_v48 }
 0x399   : > { %v3989_v23 = vadd.f32 %v4840_v18, %v8398_v29 }
 0x39a   : > { %v3988_v0 = vadd.f32 %v4841_v26, %v8398_v29 }
 0x39b   : > { %vm4021_vm1 = vcmp.ge.f32.partialorder %v3989_v23, 0.0  ;;  %v4053_v7 = vmul.f32 0.1, %v3989_v23 }
 0x39c   : > { %vm4020_vm11 = vcmp.ge.f32.partialorder %v3988_v0, 0.0  ;;  %v4052_v10 = vmul.f32 0.1, %v3988_v0 }
 0x39d   : > { %v4085_v56 = vsel %vm4021_vm1, %v3989_v23, %v4053_v7 }
 0x39e   : > { %4117 = vst.msk [vmem:[%s8405_s15 + $0x78] sm:$0xff] %vm284_vm0, %v4085_v56  ;;  %v4084_v51 = vsel %vm4020_vm11, %v3988_v0, %v4052_v10 }
 0x39f   : > { %4116 = vst.msk [vmem:[%s8405_s15 + $0x70] sm:$0xff] %vm284_vm0, %v4084_v51 }
 0x3a0   : > { %v4798_v47 = vpop.f32.mrb[2].mxu1 }
 0x3a1   : > { %v4842_v20 = vadd.f32 %v4798_v47, %v8148_v3  ;;  %v3856_v48 = vpop.f32.mrb[3].mxu1 }
 0x3a2   : > { %v4843_v8 = vadd.f32 %v3856_v48, %v8152_v43 }
 0x3a3   : > { %v3991_v27 = vadd.f32 %v4842_v20, %v8398_v29 }
 0x3a4   : > { %v3990_v54 = vadd.f32 %v4843_v8, %v8398_v29 }
 0x3a5   : > { %vm4023_vm14 = vcmp.ge.f32.partialorder %v3991_v27, 0.0  ;;  %v4055_v28 = vmul.f32 0.1, %v3991_v27 }
 0x3a6   : > { %vm4022_vm2 = vcmp.ge.f32.partialorder %v3990_v54, 0.0  ;;  %v4054_v59 = vmul.f32 0.1, %v3990_v54 }
 0x3a7   : > { %v4087_v55 = vsel %vm4023_vm14, %v3991_v27, %v4055_v28 }
 0x3a8   : > { %4119 = vst.msk [vmem:[%s8405_s15 + $0x88] sm:$0xff] %vm284_vm0, %v4087_v55  ;;  %v4086_v49 = vsel %vm4022_vm2, %v3990_v54, %v4054_v59 }
 0x3a9   : > { %4118 = vst.msk [vmem:[%s8405_s15 + $0x80] sm:$0xff] %vm284_vm0, %v4086_v49  ;;  %v4801_v3 = vpop.f32.mrb[4].mxu1 }
 0x3aa   : > { %v4844_v40 = vadd.f32 %v4801_v3, %v8206_v15  ;;  %v3866_v43 = vpop.f32.mrb[5].mxu1 }
 0x3ab   : > { %v4845_v53 = vadd.f32 %v3866_v43, %v8214_v44 }
 0x3ac   : > { %v3993_v1 = vadd.f32 %v4844_v40, %v8398_v29 }
 0x3ad   : > { %v3992_v46 = vadd.f32 %v4845_v53, %v8398_v29 }
 0x3ae   : > { %vm4025_vm3 = vcmp.ge.f32.partialorder %v3993_v1, 0.0  ;;  %v4057_v50 = vmul.f32 0.1, %v3993_v1 }
 0x3af   : > { %vm4024_vm4 = vcmp.ge.f32.partialorder %v3992_v46, 0.0  ;;  %v4056_v34 = vmul.f32 0.1, %v3992_v46 }
 0x3b0   : > { %v4089_v32 = vsel %vm4025_vm3, %v3993_v1, %v4057_v50 }
 0x3b1   : > { %4121 = vst.msk [vmem:[%s8405_s15 + $0x98] sm:$0xff] %vm284_vm0, %v4089_v32  ;;  %v4088_v21 = vsel %vm4024_vm4, %v3992_v46, %v4056_v34  ;;  %v4804_v31 = vpop.f32.mrb[6].mxu1 }
 0x3b2   : > { %4120 = vst.msk [vmem:[%s8405_s15 + $0x90] sm:$0xff] %vm284_vm0, %v4088_v21  ;;  %v4846_v15 = vadd.f32 %v4804_v31, %v8295_v35  ;;  %v3876_v44 = vpop.f32.mrb[7].mxu1 }
 0x3b3   : > { %v4847_v14 = vadd.f32 %v3876_v44, %v8300_v37 }
 0x3b4   : > { %v3995_v2 = vadd.f32 %v4846_v15, %v8398_v29 }
 0x3b5   : > { %v3994_v41 = vadd.f32 %v4847_v14, %v8398_v29 }
 0x3b6   : > { %vm4027_vm5 = vcmp.ge.f32.partialorder %v3995_v2, 0.0  ;;  %v4059_v60 = vmul.f32 0.1, %v3995_v2 }
 0x3b7   : > { %vm4026_vm6 = vcmp.ge.f32.partialorder %v3994_v41, 0.0  ;;  %v4058_v25 = vmul.f32 0.1, %v3994_v41 }
 0x3b8   : > { %v4091_v12 = vsel %vm4027_vm5, %v3995_v2, %v4059_v60 }
 0x3b9   : > { %4123 = vst.msk [vmem:[%s8405_s15 + $0xa8] sm:$0xff] %vm284_vm0, %v4091_v12  ;;  %v4090_v63 = vsel %vm4026_vm6, %v3994_v41, %v4058_v25 }
 0x3ba   : > { %v4807_v22 = vpop.f32.mrb[8].mxu1  ;;  %4122 = vst.msk [vmem:[%s8405_s15 + $0xa0] sm:$0xff] %vm284_vm0, %v4090_v63 }
 0x3bb   : > { %v4848_v35 = vadd.f32 %v4807_v22, %v8359_v17  ;;  %v3886_v13 = vpop.f32.mrb[9].mxu1 }
 0x3bc   : > { %v4849_v37 = vadd.f32 %v3886_v13, %v8363_v24 }
 0x3bd   : > { %v3997_v6 = vadd.f32 %v4848_v35, %v8398_v29 }
 0x3be   : > { %v3996_v39 = vadd.f32 %v4849_v37, %v8398_v29  ;;  %v4810_v58 = vpop.f32.mrb[10].mxu1 }
 0x3bf   : > { %vm4029_vm9 = vcmp.ge.f32.partialorder %v3997_v6, 0.0  ;;  %v4061_v33 = vmul.f32 0.1, %v3997_v6  ;;  %v4850_v11 = vadd.f32 %v4810_v58, %v8367_v62  ;;  %v3896_v57 = vpop.f32.mrb[11].mxu1 }
 0x3c0   : > { %vm4028_vm10 = vcmp.ge.f32.partialorder %v3996_v39, 0.0  ;;  %v4060_v61 = vmul.f32 0.1, %v3996_v39  ;;  %v4851_v17 = vadd.f32 %v3896_v57, %v8369_v52 }
 0x3c1   : > { %v4093_v5 = vsel %vm4029_vm9, %v3997_v6, %v4061_v33  ;;  %v3999_v38 = vadd.f32 %v4850_v11, %v8398_v29 }
 0x3c2   : > { %4125 = vst.msk [vmem:[%s8405_s15 + $0xb8] sm:$0xff] %vm284_vm0, %v4093_v5  ;;  %v4092_v24 = vsel %vm4028_vm10, %v3996_v39, %v4060_v61  ;;  %v3998_v4 = vadd.f32 %v4851_v17, %v8398_v29 }
 0x3c3   : > { %4124 = vst.msk [vmem:[%s8405_s15 + $0xb0] sm:$0xff] %vm284_vm0, %v4092_v24  ;;  %vm4031_vm7 = vcmp.ge.f32.partialorder %v3999_v38, 0.0  ;;  %v4063_v18 = vmul.f32 0.1, %v3999_v38 }
 0x3c4   : > { %vm4030_vm8 = vcmp.ge.f32.partialorder %v3998_v4, 0.0  ;;  %v4062_v36 = vmul.f32 0.1, %v3998_v4 }
 0x3c5   : > { %v4095_v26 = vsel %vm4031_vm7, %v3999_v38, %v4063_v18 }
 0x3c6   : > { %4127 = vst.msk [vmem:[%s8405_s15 + $0xc8] sm:$0xff] %vm284_vm0, %v4095_v26  ;;  %v4094_v62 = vsel %vm4030_vm8, %v3998_v4, %v4062_v36  ;;  %v4813_v23 = vpop.f32.mrb[12].mxu1 }
 0x3c7   : > { %4126 = vst.msk [vmem:[%s8405_s15 + $0xc0] sm:$0xff] %vm284_vm0, %v4094_v62  ;;  %v4852_v52 = vadd.f32 %v4813_v23, %v8371_v19  ;;  %v3906_v0 = vpop.f32.mrb[13].mxu1 }
 0x3c8   : > { %v4853_v7 = vadd.f32 %v3906_v0, %v8373_v42 }
 0x3c9   : > { %v4001_v10 = vadd.f32 %v4852_v52, %v8398_v29 }
 0x3ca   : > { %v4000_v56 = vadd.f32 %v4853_v7, %v8398_v29 }
 0x3cb   : > { %vm4033_vm12 = vcmp.ge.f32.partialorder %v4001_v10, 0.0  ;;  %v4065_v51 = vmul.f32 0.1, %v4001_v10 }
 0x3cc   : > { %vm4032_vm13 = vcmp.ge.f32.partialorder %v4000_v56, 0.0  ;;  %v4064_v47 = vmul.f32 0.1, %v4000_v56 }
 0x3cd   : > { %v4816_v20 = vpop.f32.mrb[14].mxu1  ;;  %v4097_v48 = vsel %vm4033_vm12, %v4001_v10, %v4065_v51 }
 0x3ce   : > { %v4854_v8 = vadd.f32 %v4816_v20, %v8375_v16  ;;  %v3916_v27 = vpop.f32.mrb[15].mxu1  ;;  %4129 = vst.msk [vmem:[%s8405_s15 + $0xd8] sm:$0xff] %vm284_vm0, %v4097_v48  ;;  %v4096_v19 = vsel %vm4032_vm13, %v4000_v56, %v4064_v47 }
 0x3cf   : > { %v4855_v42 = vadd.f32 %v3916_v27, %v8377_v45  ;;  %4128 = vst.msk [vmem:[%s8405_s15 + $0xd0] sm:$0xff] %vm284_vm0, %v4096_v19 }
 0x3d0   : > { %v4003_v54 = vadd.f32 %v4854_v8, %v8398_v29 }
 0x3d1   : > { %v4002_v28 = vadd.f32 %v4855_v42, %v8398_v29 }
 0x3d2   : > { %vm4035_vm15 = vcmp.ge.f32.partialorder %v4003_v54, 0.0  ;;  %v4067_v59 = vmul.f32 0.1, %v4003_v54 }
 0x3d3   : > { %vm4034_vm1 = vcmp.ge.f32.partialorder %v4002_v28, 0.0  ;;  %v4066_v16 = vmul.f32 0.1, %v4002_v28  ;;  %v4819_v55 = vpop.f32.mrb[16].mxu1 }
 0x3d4   : > { %v4099_v49 = vsel %vm4035_vm15, %v4003_v54, %v4067_v59  ;;  %v4856_v3 = vadd.f32 %v4819_v55, %v8379_v9  ;;  %v3926_v40 = vpop.f32.mrb[17].mxu1 }
 0x3d5   : > { %4131 = vst.msk [vmem:[%s8405_s15 + $0xe8] sm:$0xff] %vm284_vm0, %v4099_v49  ;;  %v4098_v45 = vsel %vm4034_vm1, %v4002_v28, %v4066_v16  ;;  %v4857_v43 = vadd.f32 %v3926_v40, %v8381_v30 }
 0x3d6   : > { %4130 = vst.msk [vmem:[%s8405_s15 + $0xe0] sm:$0xff] %vm284_vm0, %v4098_v45  ;;  %v4005_v53 = vadd.f32 %v4856_v3, %v8398_v29 }
 0x3d7   : > { %v4004_v1 = vadd.f32 %v4857_v43, %v8398_v29 }
 0x3d8   : > { %vm4037_vm11 = vcmp.ge.f32.partialorder %v4005_v53, 0.0  ;;  %v4069_v9 = vmul.f32 0.1, %v4005_v53 }
 0x3d9   : > { %vm4036_vm14 = vcmp.ge.f32.partialorder %v4004_v1, 0.0  ;;  %v4068_v46 = vmul.f32 0.1, %v4004_v1 }
 0x3da   : > { %v4101_v30 = vsel %vm4037_vm11, %v4005_v53, %v4069_v9 }
 0x3db   : > { %4133 = vst.msk [vmem:[%s8405_s15 + $0xf8] sm:$0xff] %vm284_vm0, %v4101_v30  ;;  %v4100_v50 = vsel %vm4036_vm14, %v4004_v1, %v4068_v46 }
 0x3dc   : > { %4132 = vst.msk [vmem:[%s8405_s15 + $0xf0] sm:$0xff] %vm284_vm0, %v4100_v50 }
 0x3dd   : > { %5015 = shalt.err (!%p5012_p2)
}
 0x3de   : > { %s5016_s17 = scalar_lea.hbm %s8525_s7, 4096  ;;  %s5020_s12 = scalar_lea.hbm %s8580_s5, 8192 }
 0x3df   : > { %p5017_p4 = scmp.ne.s32.totalorder %s8525_s7, %s5016_s17  ;;  %p5021_p9 = scmp.lt.u32.totalorder %s8525_s7, %s8580_s5 }
 0x3e0   : > { %p5022_p1 = scmp.lt.u32.totalorder %s5020_s12, %s5016_s17  ;;  %p5024_p6 = scmp.lt.u32.totalorder %s5016_s17, %s8525_s7 }
 0x3e1   : > { %p5018_p5 = pnand %p5017_p4, %p8887_p11 }
 0x3e2   : > { %p5023_p3 = por %p5022_p1, %p5021_p9 }
 0x3e3   : > { %p5019_p7 = pneg %p5018_p5 }
 0x3e4   : > { %p5025_p12 = por %p5024_p6, %p5023_p3 }
 0x3e6   : > { %p5026_p13 = pnand %p5025_p12, %p5019_p7 }
 0x3e8   : > { %5029 = shalt.err (!%p5026_p13)
}
 0x3e9   : > { %s5074_s25 = smov 128   ;;  %s5075_s29 = smov 8  }
 0x3ea   : > { %4924 = dma.vmem_to_hbm [thread:$0]  (%p8887_p11), %s8527_s16, 4096, %s8525_s7, %s4135_s22, %s5074_s25, %s5074_s25, %s5075_s29  }
 0x3eb PF: > { %s4163_s8 = sand.u32 1, %s5056_s18   ;;  %p8888_p8 = scmp.ne.s32.totalorder %s8645_s6, 0 }
 0x3ec   : > { %p8889_p10 = scmp.ge.s32.totalorder %s5068_s21, 2  ;;  %s4164_s9 = scalar_lea.sflag [#allocation4], %s4163_s8 }
 0x3ee   : > { %p4931_p0 = pnand %p8889_p10, %p8888_p8 }
 0x3f0   : > { %5051 = dma.done.wait (!%p4931_p0), %s4164_s9, 4096  }
 0x3f1   : > { %5053 = vsyncadd (!%p4931_p0), %s4164_s9, 4294963200  ;;  %p18_p2 = scmp.ge.s32.totalorder %s5131_s24, 4   ;;  %s8890_s18 = smov %s5060_s19 }
 0x3f2   : > { %s8891_s19 = smov %s5064_s20  ;;  %s8892_s20 = smov %s5143_s27 }
 0x3f3   : > { %s8893_s21 = smov %s5131_s24  ;;  %20 = sbr.rel (!%p18_p2) target bundleno = 5 (0x5), region = 88 }
 0x3fa   :  { %4169 = vsyncpa [#allocation3], 1 }
 0x3fb   :  { %4171 = vsyncpa [#allocation3 + $0x1], 1 }
 0x3fc   :  { %4172 = vsyncpa [#allocation4], 1 }
 0x3fd   :  { %4174 = vsyncpa [#allocation4 + $0x1], 1 }

// kernel: tpu_custom_call.1
= control target key start
LH: loop header
LB: loop body
LE: loop exit
PB: predicated region body
PF: predicated region fallthrough
CT: control target
= control target key end

     0   :  { %10 = vsyncpa [#allocation3], 0  ;;  %s8810_s0 = inlined_call_operand.hbm [shape: f32[2,16,16,16], index: 0, kind: input, shape index: {}]   ;;  %s8811_s1 = inlined_call_operand.vmem [shape: f32[16,8], index: 1, kind: input, shape index: {}]   ;;  %s8812_s2 = inlined_call_operand.vmem [shape: f32[1,8], index: 2, kind: input, shape index: {}]   ;;  %s8813_s3 = inlined_call_operand.vmem [shape: f32[4,8,16], index: 3, kind: input, shape index: {}]   ;;  %s8814_s4 = inlined_call_operand.vmem [shape: f32[1,16], index: 4, kind: input, shape index: {}]   ;;  %s8815_s5 = inlined_call_operand.hbm [shape: f32[2,16,16,16], index: 5, kind: output, shape index: {}]  }
   0x1   :  { %12 = vsyncpa [#allocation3 + $0x1], 0 }
   0x2   :  { %13 = vsyncpa [#allocation4], 0 }
   0x3   :  { %15 = vsyncpa [#allocation4 + $0x1], 0  ;;  %s5826_s18 = smov 0   ;;  %s5828_s19 = smov 0  }
   0x4   :  { %s5830_s20 = smov 0   ;;  %s5832_s21 = smov 0  }
   0x5 LB: > { %s5847_s22 = sadd.s32 4294967295, %s5788_s21   ;;  %s4939_s23 = sadd.s32 4294967294, %s5788_s21   ;;  %s5788_s21 = sphi %s5832_s21, %s9150_s21   ;;  %s5784_s20 = sphi %s5830_s20, %s9149_s20   ;;  %s5780_s19 = sphi %s5828_s19, %s9148_s19   ;;  %s5776_s18 = sphi %s5826_s18, %s9147_s18  }
   0x6   : > { %s5851_s24 = sadd.s32 1, %s5788_s21   ;;  %s28_s25 = sadd.s32 1, %s5784_s20 }
   0x7   : > { %s25_s26 = ssub.s32 %s5788_s21, %s5851_s24  ;;  %p35_p0 = scmp.ne.s32.totalorder %s5784_s20, %s5780_s19 }
   0x8   : > { %p26_p1 = scmp.eq.s32.totalorder %s25_s26, 0  ;;  %p36_p2 = scmp.eq.s32.totalorder %s5788_s21, 0 }
   0x9   : > { %p41_p3 = scmp.ne.s32.totalorder %s5780_s19, %s5776_s18  ;;  %p42_p4 = scmp.eq.s32.totalorder %s5847_s22, 0 }
   0xa   : > { %s5863_s27 = scalar_select %p26_p1, %s5784_s20, %s28_s25  }
   0xb   : > { %p5865_p5 = por %p36_p2, %p35_p0  ;;  %p5869_p6 = por %p42_p4, %p41_p3 }
   0xc   : > { %p149_p7 = scmp.eq.s32.totalorder %s5847_s22, 1  ;;  %p155_p8 = scmp.eq.s32.totalorder %s4939_s23, 1 }
   0xd   : > { %p5652_p10 = scmp.lt.s32.totalorder %s5788_s21, 2  ;;  %s187_s7 = sand.u32 1, %s5784_s20  }
   0xe   : > { %p5876_p11 = por %p149_p7, %p35_p0  ;;  %p5880_p12 = por %p155_p8, %p41_p3 }
   0xf   : > { %s5118_s8 = sshll.u32 %s5788_s21, 12  ;;  %s4942_s9 = sshll.u32 %s187_s7, 8 }
  0x10   : > { %s8882_s30 = scalar_select %p5876_p11, 1, 0 }
  0x11   : > { %s8883_s6 = scalar_select %p5880_p12, 1, 0 }
  0x12   : > { %s5889_s12 = scalar_lea.hbm %s8810_s0, %s5118_s8  ;;  %s191_s13 = scalar_lea.vmem [#allocation2], %s4942_s9 }
  0x13   : > { %s198_s14 = sshll.u32 %s191_s13, 4  ;;  %p5893_p13 = pnand %p5652_p10, %p5865_p5  ;;  %s5897_s14 = int_to_ptr.vmem [resolvable:$true] %s198_s14 }
  0x14   : > { %s5899_s16 = scalar_lea.sflag [#allocation3], %s187_s7  ;;  %s5692_s17 = scalar_lea.hbm %s5889_s12, 4096 }
  0x15   : > { %p5693_p0 = scmp.ne.s32.totalorder %s5889_s12, %s5692_s17  ;;  %p5694_p1 = pneg %p5893_p13 }
  0x16   : > { %s5697_s26 = scalar_lea.hbm %s8810_s0, 8192  ;;  %p5698_p4 = scmp.lt.u32.totalorder %s5889_s12, %s8810_s0 }
  0x17   : > { %p5695_p2 = pnand %p5694_p1, %p5693_p0  ;;  %p5699_p5 = scmp.lt.u32.totalorder %s5697_s26, %s5692_s17 }
  0x18   : > { %p5701_p8 = scmp.lt.u32.totalorder %s5692_s17, %s5889_s12 }
  0x19   : > { %p5696_p3 = pneg %p5695_p2  ;;  %p5700_p7 = por %p5699_p5, %p5698_p4 }
  0x1b   : > { %p5702_p10 = por %p5701_p8, %p5700_p7 }
  0x1d   : > { %p5703_p9 = pnand %p5702_p10, %p5696_p3 }
  0x1f   : > { %5706 = shalt.err (!%p5703_p9)
}
  0x20   : > { %s5707_s7 = scalar_lea.vmem %s5897_s14, 4096  ;;  %s5790_s9 = smov [#allocation2]  }
  0x21   : > { %p5708_p0 = scmp.ne.s32.totalorder %s5897_s14, %s5707_s7  ;;  %s5712_s10 = sshll.u32 %s5790_s9, 4  ;;  %s5713_s10 = int_to_ptr.vmem [resolvable:$false] %s5712_s10 }
  0x22   : > { %s5714_s11 = scalar_lea.vmem %s5713_s10, 8192  ;;  %p5715_p11 = scmp.lt.s32.totalorder %s5897_s14, %s5713_s10 }
  0x23   : > { %p5710_p2 = pnand %p5708_p0, %p5694_p1  ;;  %p5716_p4 = scmp.lt.s32.totalorder %s5714_s11, %s5707_s7 }
  0x25   : > { %p5711_p12 = pneg %p5710_p2  ;;  %p5717_p5 = por %p5716_p4, %p5715_p11 }
  0x27   : > { %p5718_p7 = pnand %p5717_p5, %p5711_p12 }
  0x29   : > { %5721 = shalt.err (!%p5718_p7)
}
  0x2a   : > { %s5791_s13 = smov 128   ;;  %s5792_s17 = smov 8  }
  0x2b   : > { %5647 = dma.hbm_to_vmem [thread:$0]  (!%p5893_p13), %s5889_s12, 4096, %s5897_s14, %s5899_s16, %s5791_s13, %s5791_s13, %s5792_s17  }
  0x2c   : > { %p4945_p9 = scmp.ge.s32.totalorder %s5788_s21, 1  ;;  %p206_p1 = scmp.lt.s32.totalorder %s5788_s21, 3 }
  0x2e   : > { %p207_p3 = pnand %p4945_p9, %p206_p1 }
  0x30   : > { %210 = sbr.rel (%p207_p3) target bundleno = 1054 (0x41e), region = 40 }
  0x37   : > { %s5930_s23 = sand.u32 1, %s5780_s19  }
  0x38   : > { %s4946_s25 = sshll.u32 %s5930_s23, 8  ;;  %s213_s26 = scalar_lea.sflag [#allocation3], %s5930_s23 }
  0x39   : > { %s5936_s28 = scalar_lea.vmem [#allocation2], %s4946_s25 }
  0x3a   : > { %5767 = dma.done.wait (%p5869_p6), %s213_s26, 4096  }
  0x3b   : > { %5769 = vsyncadd (%p5869_p6), %s213_s26, 4294963200  ;;  %vm284_vm0 = vcmask 130048   ;;  %v275_v0 = vld [vmem:[%s8811_s1] sm:$0xff]  ;;  %v276_v1 = vld [vmem:[%s8811_s1 + $0x8] sm:$0xff]  ;;  %vm841_vm7 = vcmask 1041408   ;;  %vm1002_vm11 = vcmask 1046528  }
  0x3c   : > { %v243_v2 = vld [vmem:[%s5936_s28] sm:$0xff]  ;;  %v5538_v3 = vpack.c.bf16 %v276_v1, %v275_v0  ;;  %v244_v4 = vld [vmem:[%s5936_s28 + $0x8] sm:$0xff]  ;;  %v245_v5 = vld [vmem:[%s5936_s28 + $0x10] sm:$0xff]  ;;  %s8633_s7 = scalar_lea.vmem [#allocation5], %s4946_s25  ;;  %s5119_s25 = sshll.u32 %s5847_s22, 12 }
  0x3d   : > { %5290 = vmatprep.mubr.msk.f32.mxu0 %vm284_vm0, %v243_v2  ;;  %v246_v6 = vld [vmem:[%s5936_s28 + $0x18] sm:$0xff]  ;;  %v247_v7 = vld [vmem:[%s5936_s28 + $0x20] sm:$0xff]  ;;  %v248_v8 = vld [vmem:[%s5936_s28 + $0x28] sm:$0xff]  ;;  %s4866_s9 = sshll.u32 %s8633_s7, 4  ;;  %s8760_s13 = scalar_lea.hbm %s8815_s5, %s5119_s25  ;;  %s8762_s9 = int_to_ptr.vmem [resolvable:$true] %s4866_s9 }
  0x3e   : > { %5539 = vmatprep.subr.bf16.mxu0 %v5538_v3  ;;  %v249_v9 = vld [vmem:[%s5936_s28 + $0x30] sm:$0xff]  ;;  %v250_v10 = vld [vmem:[%s5936_s28 + $0x38] sm:$0xff]  ;;  %v251_v11 = vld [vmem:[%s5936_s28 + $0x40] sm:$0xff]  ;;  %s4853_s22 = scalar_lea.sflag [#allocation4], %s5930_s23  ;;  %s5722_s17 = scalar_lea.vmem %s8762_s9, 4096 }
  0x3f   : > { %5541 = vmatpush3.bf16.msra.mxu0 %v5538_v3  ;;  %v252_v12 = vld [vmem:[%s5936_s28 + $0x48] sm:$0xff]  ;;  %v253_v13 = vld [vmem:[%s5936_s28 + $0x50] sm:$0xff]  ;;  %v254_v14 = vld [vmem:[%s5936_s28 + $0x58] sm:$0xff]  ;;  %p5723_p6 = scmp.ne.s32.totalorder %s8762_s9, %s5722_s17  ;;  %p9144_p11 = scmp.ne.s32.totalorder %s8882_s30, 0 }
  0x40   : > { %v255_v15 = vld [vmem:[%s5936_s28 + $0x60] sm:$0xff]  ;;  %v256_v16 = vld [vmem:[%s5936_s28 + $0x68] sm:$0xff]  ;;  %v257_v17 = vld [vmem:[%s5936_s28 + $0x70] sm:$0xff]  ;;  %s5793_s26 = smov [#allocation5]  }
  0x41   : > { %v258_v18 = vld [vmem:[%s5936_s28 + $0x78] sm:$0xff]  ;;  %v259_v19 = vld [vmem:[%s5936_s28 + $0x80] sm:$0xff]  ;;  %v260_v20 = vld [vmem:[%s5936_s28 + $0x88] sm:$0xff]  ;;  %p5724_p12 = pnand %p5723_p6, %p9144_p11 }
  0x42   : > { %5291 = vmatmul.mubr.msk.f32.vlgmr.msra.gmra.mrb[0].mxu0 %vm284_vm0, %v244_v4  ;;  %v261_v21 = vld [vmem:[%s5936_s28 + $0x90] sm:$0xff]  ;;  %v262_v22 = vld [vmem:[%s5936_s28 + $0x98] sm:$0xff]  ;;  %v263_v23 = vld [vmem:[%s5936_s28 + $0xa0] sm:$0xff] }
  0x43   : > { %5293 = vmatprep.mubr.msk.f32.mxu0 %vm284_vm0, %v245_v5  ;;  %v264_v24 = vld [vmem:[%s5936_s28 + $0xa8] sm:$0xff]  ;;  %v265_v25 = vld [vmem:[%s5936_s28 + $0xb0] sm:$0xff]  ;;  %v266_v26 = vld [vmem:[%s5936_s28 + $0xb8] sm:$0xff]  ;;  %p5725_p13 = pneg %p5724_p12 }
  0x44   : > { %v267_v27 = vld [vmem:[%s5936_s28 + $0xc0] sm:$0xff]  ;;  %v268_v28 = vld [vmem:[%s5936_s28 + $0xc8] sm:$0xff]  ;;  %v269_v29 = vld [vmem:[%s5936_s28 + $0xd0] sm:$0xff] }
  0x45   : > { %v270_v30 = vld [vmem:[%s5936_s28 + $0xd8] sm:$0xff]  ;;  %v271_v31 = vld [vmem:[%s5936_s28 + $0xe0] sm:$0xff]  ;;  %v272_v32 = vld [vmem:[%s5936_s28 + $0xe8] sm:$0xff] }
  0x46   : > { %5294 = vmatmul.mubr.msk.f32.gmra.mrb[2].mxu0 %vm284_vm0, %v246_v6  ;;  %v273_v33 = vld [vmem:[%s5936_s28 + $0xf0] sm:$0xff]  ;;  %v274_v34 = vld [vmem:[%s5936_s28 + $0xf8] sm:$0xff]  ;;  %v4981_v35 = vld [vmem:[%s8813_s3 + $0x8] sm:$0xff]  ;;  %s5726_s28 = sshll.u32 %s5793_s26, 4  ;;  %s5727_s28 = int_to_ptr.vmem [resolvable:$false] %s5726_s28 }
  0x47   : > { %5296 = vmatprep.mubr.msk.f32.mxu0 %vm284_vm0, %v247_v7  ;;  %5338 = vmatprep.subr.mxu0 %v4981_v35  ;;  %v6018_v36 = vld [vmem:[%s8813_s3] sm:$0xff]  ;;  %v6026_v37 = vld [vmem:[%s8813_s3 + $0x10] sm:$0xff]  ;;  %s5728_s12 = scalar_lea.vmem %s5727_s28, 8192  ;;  %p5729_p8 = scmp.lt.s32.totalorder %s8762_s9, %s5727_s28 }
  0x48   : > { %5339 = vmatpush3.msra.mxu0 %v4981_v35  ;;  %5542 = vmatprep.subr.mxu1 %v6018_v36  ;;  %v6032_v39 = vld [vmem:[%s8812_s2] ss:$0 sm:$0xff]  ;;  %p5730_p10 = scmp.lt.s32.totalorder %s5728_s12, %s5722_s17 }
  0x49   : > { %5388 = vmatprep.subr.mxu0 %v6018_v36  ;;  %5543 = vmatpush3.msra.mxu1 %v6018_v36 }
  0x4a   : > { %5297 = vmatmul.mubr.msk.f32.gmra.mrb[4].mxu0 %vm284_vm0, %v248_v8  ;;  %5438 = vmatprep.subr.mxu1 %v6026_v37  ;;  %p5731_p0 = por %p5730_p10, %p5729_p8 }
  0x4b   : > { %5299 = vmatprep.mubr.msk.f32.mxu0 %vm284_vm0, %v249_v9 }
  0x4c   : > { %p5732_p2 = pnand %p5731_p0, %p5725_p13 }
  0x4e   : > { %5300 = vmatmul.mubr.msk.f32.gmra.mrb[6].mxu0 %vm284_vm0, %v250_v10 }
  0x4f   : > { %5302 = vmatprep.mubr.msk.f32.mxu0 %vm284_vm0, %v251_v11 }
  0x52   : > { %5303 = vmatmul.mubr.msk.f32.gmra.mrb[8].mxu0 %vm284_vm0, %v252_v12 }
  0x53   : > { %5305 = vmatprep.mubr.msk.f32.mxu0 %vm284_vm0, %v253_v13 }
  0x56   : > { %5306 = vmatmul.mubr.msk.f32.gmra.mrb[10].mxu0 %vm284_vm0, %v254_v14 }
  0x57   : > { %5308 = vmatprep.mubr.msk.f32.mxu0 %vm284_vm0, %v255_v15 }
  0x5a   : > { %5309 = vmatmul.mubr.msk.f32.gmra.mrb[12].mxu0 %vm284_vm0, %v256_v16 }
  0x5b   : > { %5311 = vmatprep.mubr.msk.f32.mxu0 %vm284_vm0, %v257_v17 }
  0x5e   : > { %5312 = vmatmul.mubr.msk.f32.gmra.mrb[14].mxu0 %vm284_vm0, %v258_v18 }
  0x5f   : > { %5314 = vmatprep.mubr.msk.f32.mxu0 %vm284_vm0, %v259_v19 }
  0x62   : > { %5315 = vmatmul.mubr.msk.f32.gmra.mrb[16].mxu0 %vm284_vm0, %v260_v20 }
  0x63   : > { %5317 = vmatprep.mubr.msk.f32.mxu0 %vm284_vm0, %v261_v21 }
  0x66   : > { %5318 = vmatmul.mubr.msk.f32.gmra.mrb[18].mxu0 %vm284_vm0, %v262_v22 }
  0x67   : > { %5320 = vmatprep.mubr.msk.f32.mxu0 %vm284_vm0, %v263_v23 }
  0x6a   : > { %5321 = vmatmul.mubr.msk.f32.gmra.mrb[20].mxu0 %vm284_vm0, %v264_v24 }
  0x6b   : > { %5323 = vmatprep.mubr.msk.f32.mxu0 %vm284_vm0, %v265_v25 }
  0x6e   : > { %5324 = vmatmul.mubr.msk.f32.gmra.mrb[22].mxu0 %vm284_vm0, %v266_v26 }
  0x6f   : > { %5326 = vmatprep.mubr.msk.f32.mxu0 %vm284_vm0, %v267_v27 }
  0x72   : > { %5327 = vmatmul.mubr.msk.f32.gmra.mrb[24].mxu0 %vm284_vm0, %v268_v28 }
  0x73   : > { %5329 = vmatprep.mubr.msk.f32.mxu0 %vm284_vm0, %v269_v29 }
  0x76   : > { %5330 = vmatmul.mubr.msk.f32.gmra.mrb[26].mxu0 %vm284_vm0, %v270_v30 }
  0x77   : > { %5332 = vmatprep.mubr.msk.f32.mxu0 %vm284_vm0, %v271_v31 }
  0x7a   : > { %5333 = vmatmul.mubr.msk.f32.gmra.mrb[28].mxu0 %vm284_vm0, %v272_v32 }
  0x7b   : > { %5335 = vmatprep.mubr.msk.f32.mxu0 %vm284_vm0, %v273_v33 }
  0x7e   : > { %5336 = vmatmul.mubr.msk.f32.gmra.mrb[30].mxu0 %vm284_vm0, %v274_v34 }
 0x115   : > { %v5292_v38 = vpop.f32.mrb[0].mxu0 }
 0x116   : > { %v447_v40 = vpop.f32.mrb[1].mxu0  ;;  %v453_v41 = vadd.f32 %v5292_v38, %v6032_v39 }
 0x117   : > { %v448_v42 = vadd.f32 %v6032_v39, %v447_v40 }
 0x118   : > { %vm607_vm1 = vcmp.ge.f32.partialorder %v453_v41, 0.0  ;;  %v639_v47 = vmul.f32 0.1, %v453_v41 }
 0x119   : > { %v5295_v43 = vpop.f32.mrb[2].mxu0  ;;  %v638_v49 = vmul.f32 0.1, %v448_v42  ;;  %vm606_vm4 = vcmp.ge.f32.partialorder %v448_v42, 0.0 }
 0x11a   : > { %v463_v44 = vadd.f32 %v5295_v43, %v6032_v39  ;;  %v457_v45 = vpop.f32.mrb[3].mxu0  ;;  %v6044_v57 = vsel %vm607_vm1, %v453_v41, %v639_v47  ;;  %vm1584_vm1 = vcmask 64512  }
 0x11b   : > { %v458_v46 = vadd.f32 %v6032_v39, %v457_v45  ;;  %8887 = vst [vmem:[#allocation10_spill] sm:$0xff] %v6044_v57  ;;  %v6046_v59 = vsel %vm606_vm4, %v448_v42, %v638_v49 }
 0x11c   : > { %vm609_vm2 = vcmp.ge.f32.partialorder %v463_v44, 0.0  ;;  %v641_v48 = vmul.f32 0.1, %v463_v44  ;;  %8888 = vst [vmem:[#allocation11_spill] sm:$0xff] %v6046_v59 }
 0x11d   : > { %vm608_vm3 = vcmp.ge.f32.partialorder %v458_v46, 0.0  ;;  %v640_v50 = vmul.f32 0.1, %v458_v46  ;;  %v5298_v51 = vpop.f32.mrb[4].mxu0 }
 0x11e   : > { %v6038_v52 = vsel %vm609_vm2, %v463_v44, %v641_v48  ;;  %v473_v53 = vadd.f32 %v5298_v51, %v6032_v39  ;;  %v467_v54 = vpop.f32.mrb[5].mxu0 }
 0x11f   : > { %8885 = vst [vmem:[#allocation8_spill] sm:$0xff] %v6038_v52  ;;  %v6041_v55 = vsel %vm608_vm3, %v458_v46, %v640_v50  ;;  %v468_v56 = vadd.f32 %v6032_v39, %v467_v54  ;;  %v704_v60 = vmax.f32 %v6044_v57, %v6038_v52  ;;  %vm1147_vm3 = vcmask 1045504  }
 0x120   : > { %8886 = vst [vmem:[#allocation9_spill] sm:$0xff] %v6041_v55  ;;  %vm611_vm5 = vcmp.ge.f32.partialorder %v473_v53, 0.0  ;;  %v643_v58 = vmul.f32 0.1, %v473_v53  ;;  %v703_v63 = vmax.f32 %v6046_v59, %v6041_v55 }
 0x121   : > { %vm610_vm6 = vcmp.ge.f32.partialorder %v468_v56, 0.0  ;;  %v642_v61 = vmul.f32 0.1, %v468_v56  ;;  %v5301_v62 = vpop.f32.mrb[6].mxu0 }
 0x122   : > { %v6052_v0 = vsel %vm611_vm5, %v473_v53, %v643_v58  ;;  %v483_v1 = vadd.f32 %v5301_v62, %v6032_v39  ;;  %v477_v2 = vpop.f32.mrb[7].mxu0 }
 0x123   : > { %8889 = vst [vmem:[#allocation12_spill] sm:$0xff] %v6052_v0  ;;  %v732_v3 = vmax.f32 %v704_v60, %v6052_v0  ;;  %v6056_v4 = vsel %vm610_vm6, %v468_v56, %v642_v61  ;;  %v478_v5 = vadd.f32 %v6032_v39, %v477_v2  ;;  %v706_v8 = vmax.f32 %v6038_v52, %v6052_v0 }
 0x124   : > { %8890 = vst [vmem:[#allocation13_spill] sm:$0xff] %v6056_v4  ;;  %v731_v6 = vmax.f32 %v703_v63, %v6056_v4  ;;  %vm613_vm8 = vcmp.ge.f32.partialorder %v483_v1, 0.0  ;;  %v645_v7 = vmul.f32 0.1, %v483_v1  ;;  %v705_v17 = vmax.f32 %v6041_v55, %v6056_v4 }
 0x125   : > { %v843_v9 = vrot.slane %v732_v3, 6  ;;  %v644_v10 = vmul.f32 0.1, %v478_v5  ;;  %v5304_v11 = vpop.f32.mrb[8].mxu0  ;;  %vm612_vm9 = vcmp.ge.f32.partialorder %v478_v5, 0.0  ;;  %vm1292_vm6 = vcmask 1044480  }
 0x126   : > { %v842_v12 = vrot.slane %v731_v6, 6  ;;  %v6062_v13 = vsel %vm613_vm8, %v483_v1, %v645_v7  ;;  %v493_v14 = vadd.f32 %v5304_v11, %v6032_v39  ;;  %v487_v15 = vpop.f32.mrb[9].mxu0  ;;  %vm1437_vm8 = vcmask 1043456  }
 0x127   : > { %8891 = vst [vmem:[#allocation14_spill] sm:$0xff] %v6062_v13  ;;  %v6066_v16 = vsel %vm841_vm7, %v843_v9, -inf  ;;  %v708_v18 = vmax.f32 %v6052_v0, %v6062_v13  ;;  %v760_v19 = vmax.f32 %v732_v3, %v6062_v13  ;;  %v734_v23 = vmax.f32 %v706_v8, %v6062_v13 }
 0x128   : > { %v1006_v20 = vrot.slane %v6066_v16, 1  ;;  %v6079_v25 = vsel %vm841_vm7, -inf, %v842_v12  ;;  %v6081_v27 = vsel %vm612_vm9, %v478_v5, %v644_v10  ;;  %v6084_v29 = vsel %vm841_vm7, %v842_v12, %v843_v9 }
 0x129   : > { %v846_v26 = vrot.slane %v760_v19, 6  ;;  %8892 = vst [vmem:[#allocation15_spill] sm:$0xff] %v6081_v27  ;;  %v5307_v28 = vpop.f32.mrb[10].mxu0  ;;  %v707_v30 = vmax.f32 %v6056_v4, %v6081_v27  ;;  %v759_v31 = vmax.f32 %v731_v6, %v6081_v27  ;;  %vm615_vm10 = vcmp.ge.f32.partialorder %v493_v14, 0.0 }
 0x12a   : > { %v497_v32 = vpop.f32.mrb[11].mxu0  ;;  %v733_v33 = vmax.f32 %v705_v17, %v6081_v27  ;;  %v647_v34 = vmul.f32 0.1, %v493_v14  ;;  %v488_v35 = vadd.f32 %v6032_v39, %v487_v15  ;;  %v503_v38 = vadd.f32 %v5307_v28, %v6032_v39 }
 0x12b   : > { %v6093_v40 = vsel %vm841_vm7, %v846_v26, -inf  ;;  %v845_v41 = vrot.slane %v759_v31, 6  ;;  %v498_v42 = vadd.f32 %v6032_v39, %v497_v32  ;;  %v1003_v43 = vrot.slane %v6079_v25, 1 }
 0x12c   : > { %v6097_v44 = vsel %vm615_vm10, %v493_v14, %v647_v34  ;;  %vm614_vm12 = vcmp.ge.f32.partialorder %v488_v35, 0.0  ;;  %v646_v45 = vmul.f32 0.1, %v488_v35  ;;  %v1004_v47 = vrot.slane %v6084_v29, 1 }
 0x12d   : > { %8893 = vst [vmem:[#allocation16_spill] sm:$0xff] %v6097_v44  ;;  %v5310_v46 = vpop.f32.mrb[12].mxu0  ;;  %v6101_v48 = vsel %vm841_vm7, %v845_v41, %v846_v26  ;;  %v6104_v49 = vsel %vm841_vm7, -inf, %v845_v41  ;;  %v710_v50 = vmax.f32 %v6062_v13, %v6097_v44  ;;  %vm617_vm13 = vcmp.ge.f32.partialorder %v503_v38, 0.0 }
 0x12e   : > { %v507_v51 = vpop.f32.mrb[13].mxu0  ;;  %v736_v53 = vmax.f32 %v708_v18, %v6097_v44  ;;  %v786_v54 = vmax.f32 %v760_v19, %v6097_v44  ;;  %v6110_v56 = vsel %vm614_vm12, %v488_v35, %v646_v45  ;;  %v649_v58 = vmul.f32 0.1, %v503_v38 }
 0x12f   : > { %8894 = vst [vmem:[#allocation17_spill] sm:$0xff] %v6110_v56  ;;  %v762_v60 = vmax.f32 %v734_v23, %v6097_v44  ;;  %v709_v61 = vmax.f32 %v6081_v27, %v6110_v56  ;;  %v735_v62 = vmax.f32 %v707_v30, %v6110_v56  ;;  %v785_v63 = vmax.f32 %v759_v31, %v6110_v56 }
 0x130   : > { %v849_v1 = vrot.slane %v786_v54, 6  ;;  %v6117_v2 = vsel %vm617_vm13, %v503_v38, %v649_v58  ;;  %vm616_vm14 = vcmp.ge.f32.partialorder %v498_v42, 0.0  ;;  %v648_v3 = vmul.f32 0.1, %v498_v42 }
 0x131   : > { %8895 = vst [vmem:[#allocation18_spill] sm:$0xff] %v6117_v2  ;;  %v5313_v5 = vpop.f32.mrb[14].mxu0  ;;  %v761_v6 = vmax.f32 %v733_v33, %v6110_v56  ;;  %v848_v7 = vrot.slane %v785_v63, 6  ;;  %v712_v8 = vmax.f32 %v6097_v44, %v6117_v2  ;;  %v6123_v9 = vmax.f32 %v710_v50, %v6117_v2 }
 0x132   : > { %v517_v10 = vpop.f32.mrb[15].mxu0  ;;  %v764_v11 = vmax.f32 %v736_v53, %v6117_v2  ;;  %v788_v12 = vmax.f32 %v762_v60, %v6117_v2  ;;  %v6127_v14 = vsel %vm616_vm14, %v498_v42, %v648_v3  ;;  %v513_v15 = vadd.f32 %v5310_v46, %v6032_v39 }
 0x133   : > { %8896 = vst [vmem:[#allocation19_spill] sm:$0xff] %v6127_v14  ;;  %v6131_v17 = vsel %vm841_vm7, %v849_v1, -inf  ;;  %v6134_v18 = vsel %vm841_vm7, %v848_v7, %v849_v1  ;;  %v6137_v19 = vsel %vm841_vm7, -inf, %v848_v7  ;;  %v711_v23 = vmax.f32 %v6110_v56, %v6127_v14 }
 0x134   : > { %v852_v26 = vrot.slane %v788_v12, 6  ;;  %v6142_v28 = vmax.f32 %v709_v61, %v6127_v14  ;;  %v787_v30 = vmax.f32 %v761_v6, %v6127_v14  ;;  %vm619_vm15 = vcmp.ge.f32.partialorder %v513_v15, 0.0 }
 0x135   : > { %v6145_v31 = vpop.f32.mrb[16].mxu0  ;;  %v763_v32 = vmax.f32 %v735_v62, %v6127_v14  ;;  %v651_v33 = vmul.f32 0.1, %v513_v15  ;;  %v508_v34 = vadd.f32 %v6032_v39, %v507_v51  ;;  %v523_v35 = vadd.f32 %v5313_v5, %v6032_v39 }
 0x136   : > { %v6150_v38 = vpop.f32.mrb[17].mxu0  ;;  %v6153_v41 = vsel %vm841_vm7, %v852_v26, -inf  ;;  %v851_v42 = vrot.slane %v787_v30, 6  ;;  %v518_v45 = vadd.f32 %v6032_v39, %v517_v10  ;;  %v6157_v46 = vsel %vm1002_vm11, %v1003_v43, %v1004_v47 }
 0x137   : > { %v6161_v54 = vsel %vm619_vm15, %v513_v15, %v651_v33  ;;  %v6166_v51 = vsel %vm1002_vm11, %v1004_v47, %v1006_v20  ;;  %vm618_vm2 = vcmp.ge.f32.partialorder %v508_v34, 0.0  ;;  %v650_v47 = vmul.f32 0.1, %v508_v34 }
 0x138   : > { %8897 = vst [vmem:[#allocation20_spill] sm:$0xff] %v6161_v54  ;;  %v6169_v58 = vsel %vm841_vm7, %v851_v42, %v852_v26  ;;  %v6172_v60 = vsel %vm841_vm7, -inf, %v851_v42  ;;  %v714_v43 = vmax.f32 %v6117_v2, %v6161_v54  ;;  %v6180_v63 = vmax.f32 %v712_v8, %v6161_v54 }
 0x139   : > { %v6176_v61 = vpop.f32.mrb[18].mxu0  ;;  %v790_v20 = vmax.f32 %v764_v11, %v6161_v54  ;;  %vm621_vm4 = vcmp.ge.f32.partialorder %v523_v35, 0.0  ;;  %v653_v3 = vmul.f32 0.1, %v523_v35  ;;  %vm620_vm5 = vcmp.ge.f32.partialorder %v518_v45, 0.0 }
 0x13a   : > { %v6183_v1 = vpop.f32.mrb[19].mxu0  ;;  %v652_v5 = vmul.f32 0.1, %v518_v45  ;;  %v766_v6 = vmax.f32 %v6123_v9, %v6161_v54  ;;  %v6187_v10 = vsel %vm618_vm2, %v508_v34, %v650_v47  ;;  %v1148_v26 = vrot.slane %v6079_v25, 2 }
 0x13b   : > { %v855_v7 = vrot.slane %v790_v20, 6  ;;  %8898 = vst [vmem:[#allocation21_spill] sm:$0xff] %v6187_v10  ;;  %v713_v11 = vmax.f32 %v6127_v14, %v6187_v10  ;;  %v6194_v12 = vmax.f32 %v711_v23, %v6187_v10  ;;  %v789_v15 = vmax.f32 %v763_v32, %v6187_v10 }
 0x13c   : > { %v765_v33 = vmax.f32 %v6142_v28, %v6187_v10  ;;  %v6204_v34 = vsel %vm621_vm4, %v523_v35, %v653_v3  ;;  %v6207_v42 = vsel %vm620_vm5, %v518_v45, %v652_v5  ;;  %v1149_v53 = vrot.slane %v6084_v29, 2 }
 0x13d   : > { %v6198_v30 = vpop.f32.mrb[20].mxu0  ;;  %v958_v9 = vsel %vm841_vm7, %v855_v7, -inf  ;;  %5411 = vmatprep.mubr.msk.f32.mxu1 %vm1584_vm1, %v6207_v42  ;;  %v854_v62 = vrot.slane %v789_v15, 6  ;;  %v6217_v35 = vmax.f32 %v714_v43, %v6204_v34  ;;  %v792_v3 = vmax.f32 %v766_v6, %v6204_v34 }
 0x13e   : > { %v6209_v23 = vpop.f32.mrb[21].mxu0  ;;  %v1026_v32 = vrot.slane %v958_v9, 1  ;;  %v1171_v20 = vrot.slane %v958_v9, 2  ;;  %v1316_v47 = vrot.slane %v958_v9, 3  ;;  %v1461_v50 = vrot.slane %v958_v9, 4  ;;  %5412 = vmatmul.mubr.msk.f32.vlgmr.msra.gmra.mrb[0].mxu1 %vm1584_vm1, %v6204_v34 }
 0x13f   : > { %v6227_v9 = vmax.f32 %v713_v11, %v6207_v42  ;;  %5439 = vmatpush3.msra.mxu1 %v6026_v37  ;;  %v856_v43 = vsel %vm841_vm7, %v854_v62, %v855_v7  ;;  %v942_v28 = vsel %vm841_vm7, -inf, %v854_v62  ;;  %v791_v45 = vmax.f32 %v765_v33, %v6207_v42 }
 0x140   : > { %v1023_v22 = vrot.slane %v942_v28, 1  ;;  %v1024_v5 = vrot.slane %v856_v43, 1  ;;  %v1168_v8 = vrot.slane %v942_v28, 2  ;;  %v1169_v11 = vrot.slane %v856_v43, 2 }
 0x141   : > { %v6230_v15 = vpop.f32.mrb[22].mxu0  ;;  %v1313_v21 = vrot.slane %v942_v28, 3  ;;  %v1314_v2 = vrot.slane %v856_v43, 3  ;;  %v1458_v37 = vrot.slane %v942_v28, 4  ;;  %v1459_v14 = vrot.slane %v856_v43, 4 }
 0x142   : > { %v6237_v6 = vpop.f32.mrb[23].mxu0  ;;  %v1025_v44 = vsel %vm1002_vm11, %v1023_v22, %v1024_v5  ;;  %v1027_v7 = vsel %vm1002_vm11, %v1024_v5, %v1026_v32  ;;  %v1170_v62 = vsel %vm1147_vm3, %v1168_v8, %v1169_v11  ;;  %v1150_v24 = vsel %vm1147_vm3, %v1148_v26, %v1149_v53 }
 0x143   : > { %v1123_v33 = vmax.f32 %v942_v28, %v1025_v44  ;;  %v1124_v13 = vmax.f32 %v856_v43, %v1027_v7  ;;  %v1172_v27 = vsel %vm1147_vm3, %v1169_v11, %v1171_v20  ;;  %v1315_v0 = vsel %vm1292_vm6, %v1313_v21, %v1314_v2 }
 0x144   : > { %v6250_v52 = vsel %vm1292_vm6, %v1314_v2, %v1316_v47  ;;  %v1460_v22 = vsel %vm1437_vm8, %v1458_v37, %v1459_v14  ;;  %v858_v32 = vrot.slane %v792_v3, 6  ;;  %v857_v5 = vrot.slane %v791_v45, 6 }
 0x145   : > { %v6243_v56 = vpop.f32.mrb[24].mxu0  ;;  %v1268_v8 = vmax.f32 %v1123_v33, %v1170_v62  ;;  %v6253_v55 = vmax.f32 %v1124_v13, %v1172_v27  ;;  %v6256_v26 = vsel %vm1437_vm8, %v1459_v14, %v1461_v50  ;;  %v8899_v44 = vrot.slane %v6066_v16, 2 }
 0x146   : > { %v6247_v4 = vpop.f32.mrb[25].mxu0  ;;  %v959_v21 = vsel %vm841_vm7, %v858_v32, -inf  ;;  %v859_v28 = vsel %vm841_vm7, %v857_v5, %v858_v32  ;;  %v943_v2 = vsel %vm841_vm7, -inf, %v857_v5  ;;  %v8900_v47 = vmax.f32 %v6079_v25, %v6157_v46 }
 0x147   : > { %v1152_v20 = vsel %vm1147_vm3, %v1149_v53, %v8899_v44  ;;  %v1413_v13 = vmax.f32 %v1268_v8, %v1315_v0  ;;  %v1031_v27 = vrot.slane %v959_v21, 1  ;;  %v1176_v14 = vrot.slane %v959_v21, 2 }
 0x148   : > { %v1260_v45 = vmax.f32 %v8900_v47, %v1150_v24  ;;  %v1293_v50 = vrot.slane %v6079_v25, 3  ;;  %v1321_v11 = vrot.slane %v959_v21, 3  ;;  %v1028_v37 = vrot.slane %v943_v2, 1 }
 0x149   : > { %v6267_v3 = vpop.f32.mrb[26].mxu0  ;;  %v1029_v7 = vrot.slane %v859_v28, 1  ;;  %v6274_v62 = vmax.f32 %v1413_v13, %v1460_v22  ;;  %v1466_v33 = vrot.slane %v959_v21, 4  ;;  %v1173_v46 = vrot.slane %v943_v2, 2 }
 0x14a   : > { %8901 = vst [vmem:[#allocation22_spill] sm:$0xff] %v6267_v3  ;;  %v6270_v43 = vpop.f32.mrb[27].mxu0  ;;  %v1174_v24 = vrot.slane %v859_v28, 2  ;;  %v1318_v5 = vrot.slane %v943_v2, 3  ;;  %v1319_v8 = vrot.slane %v859_v28, 3  ;;  %v1463_v13 = vrot.slane %v943_v2, 4 }
 0x14b   : > { %8902 = vst [vmem:[#allocation23_spill] sm:$0xff] %v6270_v43  ;;  %v1030_v32 = vsel %vm1002_vm11, %v1028_v37, %v1029_v7  ;;  %v1032_v0 = vsel %vm1002_vm11, %v1029_v7, %v1031_v27  ;;  %v1464_v37 = vrot.slane %v859_v28, 4  ;;  %v1294_v7 = vrot.slane %v6084_v29, 3 }
 0x14c   : > { %v1125_v47 = vmax.f32 %v943_v2, %v1030_v32  ;;  %v1126_v57 = vmax.f32 %v859_v28, %v1032_v0  ;;  %v1175_v53 = vsel %vm1147_vm3, %v1173_v46, %v1174_v24  ;;  %v1177_v59 = vsel %vm1147_vm3, %v1174_v24, %v1176_v14 }
 0x14d   : > { %v6278_v44 = vpop.f32.mrb[28].mxu0  ;;  %v1320_v22 = vsel %vm1292_vm6, %v1318_v5, %v1319_v8  ;;  %v1322_v21 = vsel %vm1292_vm6, %v1319_v8, %v1321_v11  ;;  %v1465_v32 = vsel %vm1437_vm8, %v1463_v13, %v1464_v37  ;;  %v1467_v46 = vsel %vm1437_vm8, %v1464_v37, %v1466_v33 }
 0x14e   : > { %8903 = vst [vmem:[#allocation24_spill] sm:$0xff] %v6278_v44  ;;  %v6282_v43 = vpop.f32.mrb[29].mxu0  ;;  %v1270_v3 = vmax.f32 %v1125_v47, %v1175_v53  ;;  %v1271_v27 = vmax.f32 %v1126_v57, %v1177_v59  ;;  %v1438_v44 = vrot.slane %v6079_v25, 4  ;;  %v1439_v14 = vrot.slane %v6084_v29, 4 }
 0x14f   : > { %8904 = vst [vmem:[#allocation25_spill] sm:$0xff] %v6282_v43  ;;  %v533_v24 = vadd.f32 %v6145_v31, %v6032_v39  ;;  %v1295_v28 = vsel %vm1292_vm6, %v1293_v50, %v1294_v7  ;;  %v8906_v57 = vrot.slane %v6066_v16, 3  ;;  %v8908_v5 = vrot.slane %v6066_v16, 4 }
 0x150   : > { %v1415_v11 = vmax.f32 %v1270_v3, %v1320_v22  ;;  %v1416_v2 = vmax.f32 %v1271_v27, %v1322_v21  ;;  %v1405_v53 = vmax.f32 %v1260_v45, %v1295_v28  ;;  %v1440_v33 = vsel %vm1437_vm8, %v1438_v44, %v1439_v14 }
 0x151   : > { %v6293_v0 = vpop.f32.mrb[30].mxu0  ;;  %v1297_v59 = vsel %vm1292_vm6, %v1294_v7, %v8906_v57  ;;  %v1442_v8 = vsel %vm1437_vm8, %v1439_v14, %v8908_v5  ;;  %vm623_vm9 = vcmp.ge.f32.partialorder %v533_v24, 0.0  ;;  %v655_v47 = vmul.f32 0.1, %v533_v24 }
 0x152   : > { %8905 = vst [vmem:[#allocation26_spill] sm:$0xff] %v6293_v0  ;;  %v6299_v25 = vpop.f32.mrb[31].mxu0  ;;  %v6305_v31 = vmax.f32 %v1415_v11, %v1465_v32  ;;  %v6307_v3 = vmax.f32 %v1416_v2, %v1467_v46  ;;  %v1116_v50 = vmax.f32 %v6084_v29, %v6166_v51  ;;  %v6311_v22 = vmax.f32 %v1405_v53, %v1440_v33 }
 0x153   : > { %8907 = vst [vmem:[#allocation27_spill] sm:$0xff] %v6299_v25  ;;  %v528_v45 = vadd.f32 %v6032_v39, %v6150_v38  ;;  %v1008_v44 = vrot.slane %v6104_v49, 1  ;;  %v1009_v16 = vrot.slane %v6101_v48, 1  ;;  %v6317_v21 = vsel %vm623_vm9, %v533_v24, %v655_v47 }
 0x154   : > { %v1261_v13 = vmax.f32 %v1116_v50, %v1152_v20  ;;  %v1153_v37 = vrot.slane %v6104_v49, 2  ;;  %v1154_v27 = vrot.slane %v6101_v48, 2  ;;  %5340 = vmatprep.mubr.msk.f32.mxu0 %vm1584_vm1, %v6311_v22  ;;  %v8909_v38 = vmax.f32 %v6161_v54, %v6204_v34 }
 0x155   : > { %v8910_v20 = vmax.f32 %v6180_v63, %v6204_v34  ;;  %vm622_vm10 = vcmp.ge.f32.partialorder %v528_v45, 0.0  ;;  %v654_v14 = vmul.f32 0.1, %v528_v45  ;;  %v1010_v24 = vsel %vm1002_vm11, %v1008_v44, %v1009_v16 }
 0x156   : > { %v6329_v51 = vmax.f32 %v8909_v38, %v6317_v21  ;;  %v1406_v46 = vmax.f32 %v1261_v13, %v1297_v59  ;;  %v1117_v2 = vmax.f32 %v6104_v49, %v1010_v24  ;;  %v1155_v28 = vsel %vm1147_vm3, %v1153_v37, %v1154_v27 }
 0x157   : > { %v794_v32 = vmax.f32 %v8910_v20, %v6317_v21  ;;  %v1298_v57 = vrot.slane %v6104_v49, 3  ;;  %v6343_v33 = vsel %vm622_vm10, %v528_v45, %v654_v14  ;;  %v8829_v5 = vrot.slane %v6101_v48, 3 }
 0x158   : > { %v6341_v53 = vmax.f32 %v1406_v46, %v1442_v8  ;;  %v1443_v63 = vrot.slane %v6104_v49, 4  ;;  %v8911_v50 = vmax.f32 %v6187_v10, %v6207_v42  ;;  %5414 = vmatprep.mubr.msk.f32.mxu1 %vm1584_vm1, %v6343_v33  ;;  %v8912_v38 = vmax.f32 %v6194_v12, %v6207_v42 }
 0x159   : > { %v861_v11 = vrot.slane %v794_v32, 6  ;;  %5415 = vmatmul.mubr.msk.f32.gmra.mrb[2].mxu1 %vm1584_vm1, %v6317_v21  ;;  %v1262_v32 = vmax.f32 %v1117_v2, %v1155_v28  ;;  %v1300_v46 = vsel %vm1292_vm6, %v1298_v57, %v8829_v5  ;;  %v1444_v14 = vrot.slane %v6101_v48, 4 }
 0x15a   : > { %v6354_v44 = vmax.f32 %v8911_v50, %v6343_v33  ;;  %5341 = vmatmul.mubr.msk.f32.vlgmr.msra.gmra.mrb[32].mxu0 %vm1584_vm1, %v6341_v53  ;;  %v793_v20 = vmax.f32 %v8912_v38, %v6343_v33  ;;  %v543_v24 = vadd.f32 %v6176_v61, %v6032_v39  ;;  %v1156_v50 = vrot.slane %v6093_v40, 2 }
 0x15b   : > { %v960_v59 = vsel %vm841_vm7, %v861_v11, -inf  ;;  %5389 = vmatpush3.msra.mxu0 %v6018_v36  ;;  %v1301_v8 = vrot.slane %v6093_v40, 3  ;;  %v1407_v38 = vmax.f32 %v1262_v32, %v1300_v46  ;;  %v1445_v2 = vsel %vm1437_vm8, %v1443_v63, %v1444_v14  ;;  %v5079_v63 = vld [vmem:[%s8813_s3 + $0x18] sm:$0xff] }
 0x15c   : > { %v1036_v45 = vrot.slane %v960_v59, 1  ;;  %v1181_v13 = vrot.slane %v960_v59, 2  ;;  %v1326_v49 = vrot.slane %v960_v59, 3  ;;  %v1471_v37 = vrot.slane %v960_v59, 4  ;;  %5488 = vmatprep.subr.mxu1 %v5079_v63 }
 0x15d   : > { %v1011_v59 = vrot.slane %v6093_v40, 1  ;;  %v860_v12 = vrot.slane %v793_v20, 6  ;;  %v1446_v28 = vrot.slane %v6093_v40, 4  ;;  %vm625_vm12 = vcmp.ge.f32.partialorder %v543_v24, 0.0 }
 0x15e   : > { %v657_v57 = vmul.f32 0.1, %v543_v24  ;;  %v1157_v36 = vsel %vm1147_vm3, %v1154_v27, %v1156_v50  ;;  %v6384_v7 = vmax.f32 %v1407_v38, %v1445_v2 }
 0x15f   : > { %v1012_v47 = vsel %vm1002_vm11, %v1009_v16, %v1011_v59  ;;  %v862_v61 = vsel %vm841_vm7, %v860_v12, %v861_v11  ;;  %v944_v5 = vsel %vm841_vm7, -inf, %v860_v12 }
 0x160   : > { %v1118_v29 = vmax.f32 %v6101_v48, %v1012_v47  ;;  %v1033_v20 = vrot.slane %v944_v5, 1  ;;  %v1034_v40 = vrot.slane %v862_v61, 1  ;;  %v1178_v32 = vrot.slane %v944_v5, 2  ;;  %5343 = vmatprep.mubr.msk.f32.mxu0 %vm1584_vm1, %v6384_v7 }
 0x161   : > { %v1179_v46 = vrot.slane %v862_v61, 2  ;;  %v1323_v16 = vrot.slane %v944_v5, 3  ;;  %v1324_v59 = vrot.slane %v862_v61, 3  ;;  %v1468_v27 = vrot.slane %v944_v5, 4 }
 0x162   : > { %v1469_v50 = vrot.slane %v862_v61, 4  ;;  %v1035_v11 = vsel %vm1002_vm11, %v1033_v20, %v1034_v40  ;;  %v1037_v47 = vsel %vm1002_vm11, %v1034_v40, %v1036_v45  ;;  %v2227_v43 = vmax.f32 %v6311_v22, %v6384_v7 }
 0x163   : > { %v1180_v12 = vsel %vm1147_vm3, %v1178_v32, %v1179_v46  ;;  %v1182_v38 = vsel %vm1147_vm3, %v1179_v46, %v1181_v13  ;;  %v1127_v2 = vmax.f32 %v944_v5, %v1035_v11  ;;  %v1128_v54 = vmax.f32 %v862_v61, %v1037_v47 }
 0x164   : > { %v1325_v10 = vsel %vm1292_vm6, %v1323_v16, %v1324_v59  ;;  %v1327_v63 = vsel %vm1292_vm6, %v1324_v59, %v1326_v49  ;;  %v1470_v25 = vsel %vm1437_vm8, %v1468_v27, %v1469_v50  ;;  %v1472_v0 = vsel %vm1437_vm8, %v1469_v50, %v1471_v37 }
 0x165   : > { %v6403_v20 = vsel %vm625_vm12, %v543_v24, %v657_v57  ;;  %v1272_v45 = vmax.f32 %v1127_v2, %v1180_v12  ;;  %v1273_v40 = vmax.f32 %v1128_v54, %v1182_v38  ;;  %v8913_v13 = vmax.f32 %v6204_v34, %v6317_v21 }
 0x166   : > { %v720_v5 = vmax.f32 %v6317_v21, %v6403_v20  ;;  %v772_v37 = vmax.f32 %v6329_v51, %v6403_v20  ;;  %v8914_v61 = vmax.f32 %v6217_v35, %v6317_v21  ;;  %v1263_v57 = vmax.f32 %v1118_v29, %v1157_v36 }
 0x167   : > { %v6411_v49 = vmax.f32 %v8913_v13, %v6403_v20  ;;  %v8915_v54 = vrot.slane %v6101_v48, 3  ;;  %v1417_v46 = vmax.f32 %v1272_v45, %v1325_v10  ;;  %v1418_v16 = vmax.f32 %v1273_v40, %v1327_v63 }
 0x168   : > { %v796_v24 = vmax.f32 %v8914_v61, %v6403_v20  ;;  %v1447_v59 = vsel %vm1437_vm8, %v1444_v14, %v1446_v28  ;;  %v538_v34 = vadd.f32 %v6032_v39, %v6183_v1  ;;  %v1013_v11 = vrot.slane %v6137_v19, 1 }
 0x169   : > { %v1302_v32 = vsel %vm1292_vm6, %v8915_v54, %v1301_v8  ;;  %v1014_v47 = vrot.slane %v6134_v18, 1  ;;  %v6427_v35 = vmax.f32 %v1417_v46, %v1470_v25  ;;  %v6429_v29 = vmax.f32 %v1418_v16, %v1472_v0 }
 0x16a   : > { %v864_v27 = vrot.slane %v796_v24, 6  ;;  %v1408_v50 = vmax.f32 %v1263_v57, %v1302_v32  ;;  %vm624_vm13 = vcmp.ge.f32.partialorder %v538_v34, 0.0  ;;  %v656_v48 = vmul.f32 0.1, %v538_v34 }
 0x16b   : > { %8916 = vst [vmem:[#allocation28_spill] sm:$0xff] %v6427_v35  ;;  %v1015_v14 = vsel %vm1002_vm11, %v1013_v11, %v1014_v47  ;;  %v1158_v1 = vrot.slane %v6137_v19, 2  ;;  %v8917_v28 = vmax.f32 %v6253_v55, %v6250_v52  ;;  %v1159_v52 = vrot.slane %v6134_v18, 2 }
 0x16c   : > { %v6432_v10 = vsel %vm841_vm7, %v864_v27, -inf  ;;  %v6434_v8 = vmax.f32 %v1408_v50, %v1447_v59  ;;  %v6451_v2 = vsel %vm624_vm13, %v538_v34, %v656_v48  ;;  %v1119_v63 = vmax.f32 %v6137_v19, %v1015_v14 }
 0x16d   : > { %v6442_v36 = vmax.f32 %v8917_v28, %v6256_v26  ;;  %v719_v55 = vmax.f32 %v6343_v33, %v6451_v2  ;;  %v8918_v26 = vmax.f32 %v6207_v42, %v6343_v33  ;;  %v771_v40 = vmax.f32 %v6354_v44, %v6451_v2  ;;  %5417 = vmatprep.mubr.msk.f32.mxu1 %vm1584_vm1, %v6451_v2 }
 0x16e   : > { %5344 = vmatmul.mubr.msk.f32.gmra.mrb[34].mxu0 %vm1584_vm1, %v6434_v8  ;;  %v2228_v38 = vmax.f32 %v6341_v53, %v6434_v8  ;;  %v8919_v13 = vmax.f32 %v6227_v9, %v6343_v33  ;;  %v1160_v24 = vsel %vm1147_vm3, %v1158_v1, %v1159_v52  ;;  %v1303_v57 = vrot.slane %v6137_v19, 3  ;;  %5418 = vmatmul.mubr.msk.f32.gmra.mrb[4].mxu1 %vm1584_vm1, %v6403_v20 }
 0x16f   : > { %v6461_v45 = vmax.f32 %v8918_v26, %v6451_v2  ;;  %v1304_v54 = vrot.slane %v6134_v18, 3  ;;  %v1448_v42 = vrot.slane %v6137_v19, 4  ;;  %v1264_v46 = vmax.f32 %v1119_v63, %v1160_v24 }
 0x170   : > { %v795_v61 = vmax.f32 %v8919_v13, %v6451_v2  ;;  %v1449_v16 = vrot.slane %v6134_v18, 4  ;;  %v553_v9 = vadd.f32 %v6198_v30, %v6032_v39  ;;  %v1016_v50 = vrot.slane %v6131_v17, 1 }
 0x171   : > { %v1305_v34 = vsel %vm1292_vm6, %v1303_v57, %v1304_v54  ;;  %v1161_v11 = vrot.slane %v6131_v17, 2  ;;  %v1306_v1 = vrot.slane %v6131_v17, 3  ;;  %v548_v59 = vadd.f32 %v6032_v39, %v6209_v23 }
 0x172   : > { %v863_v32 = vrot.slane %v795_v61, 6  ;;  %v1409_v14 = vmax.f32 %v1264_v46, %v1305_v34  ;;  %v1450_v26 = vsel %vm1437_vm8, %v1448_v42, %v1449_v16  ;;  %vm627_vm14 = vcmp.ge.f32.partialorder %v553_v9, 0.0 }
 0x173   : > { %v1017_v46 = vsel %vm1002_vm11, %v1014_v47, %v1016_v50  ;;  %v1162_v47 = vsel %vm1147_vm3, %v1159_v52, %v1161_v11  ;;  %v1451_v50 = vrot.slane %v6131_v17, 4  ;;  %v1307_v22 = vsel %vm1292_vm6, %v1304_v54, %v1306_v1 }
 0x174   : > { %v6485_v19 = vsel %vm841_vm7, %v863_v32, %v864_v27  ;;  %v6488_v48 = vsel %vm841_vm7, -inf, %v863_v32  ;;  %v6497_v27 = vmax.f32 %v1409_v14, %v1450_v26  ;;  %v659_v32 = vmul.f32 0.1, %v553_v9 }
 0x175   : > { %v1038_v28 = vrot.slane %v6488_v48, 1  ;;  %v8832_v30 = vrot.slane %v6485_v19, 1  ;;  %v1183_v63 = vrot.slane %v6488_v48, 2  ;;  %v8837_v13 = vrot.slane %v6485_v19, 2 }
 0x176   : > { %5346 = vmatprep.mubr.msk.f32.mxu0 %vm1584_vm1, %v6497_v27  ;;  %v2229_v34 = vmax.f32 %v6384_v7, %v6497_v27  ;;  %v6516_v14 = vmax.f32 %v2227_v43, %v6497_v27  ;;  %v6519_v26 = vsel %vm627_vm14, %v553_v9, %v659_v32  ;;  %vm626_vm15 = vcmp.ge.f32.partialorder %v548_v59, 0.0 }
 0x177   : > { %v6502_v24 = vsel %vm1002_vm11, %v1038_v28, %v8832_v30  ;;  %v1120_v28 = vmax.f32 %v6134_v18, %v1017_v46  ;;  %v722_v12 = vmax.f32 %v6403_v20, %v6519_v26  ;;  %v6531_v43 = vmax.f32 %v720_v5, %v6519_v26 }
 0x178   : > { %v1129_v42 = vmax.f32 %v6488_v48, %v6502_v24  ;;  %v774_v18 = vmax.f32 %v6411_v49, %v6519_v26  ;;  %v798_v17 = vmax.f32 %v772_v37, %v6519_v26  ;;  %v658_v9 = vmul.f32 0.1, %v548_v59 }
 0x179   : > { %v1265_v23 = vmax.f32 %v1120_v28, %v1162_v47  ;;  %v1019_v11 = vrot.slane %v6169_v58, 1  ;;  %v1163_v21 = vrot.slane %v6172_v60, 2  ;;  %v1164_v5 = vrot.slane %v6169_v58, 2 }
 0x17a   : > { %v867_v32 = vrot.slane %v798_v17, 6  ;;  %v1452_v54 = vsel %vm1437_vm8, %v1449_v16, %v1451_v50  ;;  %v1308_v1 = vrot.slane %v6172_v60, 3  ;;  %v6546_v52 = vsel %vm626_vm15, %v548_v59, %v658_v9 }
 0x17b   : > { %v1410_v46 = vmax.f32 %v1265_v23, %v1307_v22  ;;  %v8920_v51 = vrot.slane %v6172_v60, 1  ;;  %v1165_v28 = vsel %vm1147_vm3, %v1163_v21, %v1164_v5  ;;  %v1309_v47 = vrot.slane %v6169_v58, 3  ;;  %5420 = vmatprep.mubr.msk.f32.mxu1 %vm1584_vm1, %v6546_v52 }
 0x17c   : > { %v6554_v25 = vsel %vm841_vm7, %v867_v32, -inf  ;;  %v721_v16 = vmax.f32 %v6451_v2, %v6546_v52  ;;  %v6564_v59 = vmax.f32 %v719_v55, %v6546_v52  ;;  %v1453_v23 = vrot.slane %v6172_v60, 4  ;;  %5421 = vmatmul.mubr.msk.f32.gmra.mrb[6].mxu1 %vm1584_vm1, %v6519_v26 }
 0x17d   : > { %v1020_v37 = vsel %vm1002_vm11, %v8920_v51, %v1019_v11  ;;  %v6556_v30 = vmax.f32 %v1410_v46, %v1452_v54  ;;  %v773_v9 = vmax.f32 %v6461_v45, %v6546_v52  ;;  %v797_v21 = vmax.f32 %v771_v40, %v6546_v52 }
 0x17e   : > { %v1121_v54 = vmax.f32 %v6172_v60, %v1020_v37  ;;  %v1454_v51 = vrot.slane %v6169_v58, 4  ;;  %v563_v17 = vadd.f32 %v6230_v15, %v6032_v39  ;;  %v1310_v22 = vsel %vm1292_vm6, %v1308_v1, %v1309_v47 }
 0x17f   : > { %5347 = vmatmul.mubr.msk.f32.gmra.mrb[36].mxu0 %vm1584_vm1, %v6556_v30  ;;  %v2230_v33 = vmax.f32 %v6434_v8, %v6556_v30  ;;  %v6582_v55 = vmax.f32 %v2228_v38, %v6556_v30  ;;  %v866_v38 = vrot.slane %v797_v21, 6  ;;  %v8921_v50 = vrot.slane %v6153_v41, 1 }
 0x180   : > { %v1266_v40 = vmax.f32 %v1121_v54, %v1165_v28  ;;  %v1455_v46 = vsel %vm1437_vm8, %v1453_v23, %v1454_v51  ;;  %v661_v60 = vmul.f32 0.1, %v563_v17  ;;  %v8922_v37 = vrot.slane %v6153_v41, 2 }
 0x181   : > { %v8833_v53 = vrot.slane %v6582_v55, 6  ;;  %v1022_v44 = vsel %vm1002_vm11, %v1019_v11, %v8921_v50  ;;  %v6612_v21 = vsel %vm841_vm7, %v866_v38, %v867_v32  ;;  %v6615_v1 = vsel %vm841_vm7, -inf, %v866_v38 }
 0x182   : > { %v1167_v0 = vsel %vm1147_vm3, %v1164_v5, %v8922_v37  ;;  %vm629_vm2 = vcmp.ge.f32.partialorder %v563_v17, 0.0  ;;  %v1043_v50 = vrot.slane %v6615_v1, 1  ;;  %v1122_v5 = vmax.f32 %v6169_v58, %v1022_v44 }
 0x183   : > { %v6609_v15 = vsel %vm841_vm7, %v8833_v53, -inf  ;;  %v8835_v54 = vrot.slane %v6612_v21, 1  ;;  %v1411_v57 = vmax.f32 %v1266_v40, %v1310_v22  ;;  %v6627_v11 = vsel %vm629_vm2, %v563_v17, %v661_v60 }
 0x184   : > { %v724_v44 = vmax.f32 %v6519_v26, %v6627_v11  ;;  %v6640_v23 = vmax.f32 %v722_v12, %v6627_v11  ;;  %v776_v53 = vmax.f32 %v6531_v43, %v6627_v11  ;;  %v800_v40 = vmax.f32 %v774_v18, %v6627_v11  ;;  %v8931_v26 = vld [vmem:[#allocation25_spill] sm:$0xff] }
 0x185   : > { %v6632_v28 = vsel %vm1002_vm11, %v1043_v50, %v8835_v54  ;;  %v6646_v17 = vmax.f32 %v1411_v57, %v1455_v46  ;;  %v1311_v60 = vrot.slane %v6153_v41, 3  ;;  %v1267_v50 = vmax.f32 %v1122_v5, %v1167_v0 }
 0x186   : > { %v1456_v20 = vrot.slane %v6153_v41, 4  ;;  %v558_v12 = vadd.f32 %v6032_v39, %v6237_v6  ;;  %v573_v38 = vadd.f32 %v6243_v56, %v6032_v39  ;;  %v870_v18 = vrot.slane %v800_v40, 6 }
 0x187   : > { %5349 = vmatprep.mubr.msk.f32.mxu0 %vm1584_vm1, %v6646_v17  ;;  %v2231_v57 = vmax.f32 %v6497_v27, %v6646_v17  ;;  %v2233_v49 = vmax.f32 %v6646_v17, %v6274_v62  ;;  %v6666_v0 = vadd.f32 %v6032_v39, %v6247_v4  ;;  %v6672_v41 = vmax.f32 %v2229_v34, %v6646_v17 }
 0x188   : > { %v1312_v56 = vsel %vm1292_vm6, %v1309_v47, %v1311_v60  ;;  %vm628_vm4 = vcmp.ge.f32.partialorder %v558_v12, 0.0  ;;  %v660_v6 = vmul.f32 0.1, %v558_v12  ;;  %v6682_v39 = vsel %vm841_vm7, %v870_v18, -inf }
 0x189   : > { %v2259_v46 = vmax.f32 %v2231_v57, %v6274_v62  ;;  %v6679_v5 = vmax.f32 %v2233_v49, %v6305_v31  ;;  %v1457_v4 = vsel %vm1437_vm8, %v1454_v51, %v1456_v20  ;;  %v1412_v60 = vmax.f32 %v1267_v50, %v1312_v56 }
 0x18a   : > { %v6692_v57 = vsel %vm628_vm4, %v558_v12, %v660_v6  ;;  %vm631_vm5 = vcmp.ge.f32.partialorder %v573_v38, 0.0  ;;  %v663_v56 = vmul.f32 0.1, %v573_v38  ;;  %vm630_vm9 = vcmp.ge.f32.partialorder %v6666_v0, 0.0  ;;  %v6728_v6 = vld [vmem:[%s8812_s2] ss:$0 sm:$0xff] }
 0x18b   : > { %8923 = vst [vmem:[#allocation29_spill] sm:$0xff] %v6679_v5  ;;  %v2287_v47 = vmax.f32 %v2259_v46, %v6305_v31  ;;  %v723_v49 = vmax.f32 %v6546_v52, %v6692_v57  ;;  %v6700_v51 = vmax.f32 %v721_v16, %v6692_v57  ;;  %v775_v20 = vmax.f32 %v6564_v59, %v6692_v57 }
 0x18c   : > { %v799_v46 = vmax.f32 %v773_v9, %v6692_v57  ;;  %5423 = vmatprep.mubr.msk.f32.mxu1 %vm1584_vm1, %v6692_v57  ;;  %v1557_v12 = vmax.f32 %v1412_v60, %v1457_v4  ;;  %v662_v45 = vmul.f32 0.1, %v6666_v0  ;;  %v8925_v4 = vld [vmem:[#allocation22_spill] sm:$0xff]  ;;  %v6746_v8 = vsel %vm631_vm5, %v573_v38, %v663_v56 }
 0x18d   : > { %5424 = vmatmul.mubr.msk.f32.gmra.mrb[8].mxu1 %vm1584_vm1, %v6627_v11  ;;  %v6715_v2 = vmax.f32 %v2287_v47, %v6427_v35  ;;  %v6732_v47 = vadd.f32 %v6728_v6, %v8925_v4  ;;  %v802_v56 = vmax.f32 %v776_v53, %v6746_v8 }
 0x18e   : > { %v869_v16 = vrot.slane %v799_v46, 6  ;;  %5350 = vmatmul.mubr.msk.f32.gmra.mrb[38].mxu0 %vm1584_vm1, %v1557_v12  ;;  %v2232_v52 = vmax.f32 %v6556_v30, %v1557_v12  ;;  %v2234_v59 = vmax.f32 %v1557_v12, %v6442_v36  ;;  %v2258_v9 = vmax.f32 %v2230_v33, %v1557_v12 }
 0x18f   : > { %8924 = vst [vmem:[#allocation30_spill] sm:$0xff] %v6715_v2  ;;  %v6735_v60 = vmax.f32 %v6582_v55, %v1557_v12  ;;  %5352 = vmatprep.mubr.msk.f32.mxu0 %vm1584_vm1, %v6274_v62  ;;  %vm633_vm10 = vcmp.ge.f32.partialorder %v6732_v47, 0.0 }
 0x190   : > { %v6738_v46 = vsel %vm841_vm7, %v869_v16, %v870_v18  ;;  %v6741_v50 = vsel %vm841_vm7, -inf, %v869_v16  ;;  %v2260_v30 = vmax.f32 %v2232_v52, %v6442_v36  ;;  %v6750_v33 = vmax.f32 %v2234_v59, %v6307_v3 }
 0x191   : > { %v2286_v12 = vmax.f32 %v2258_v9, %v6442_v36  ;;  %v1048_v4 = vrot.slane %v6741_v50, 1  ;;  %v8836_v18 = vrot.slane %v6715_v2, 6  ;;  %v8834_v16 = vrot.slane %v6738_v46, 1 }
 0x192   : > { %8926 = vst [vmem:[#allocation22_spill] sm:$0xff] %v6750_v33  ;;  %v2288_v38 = vmax.f32 %v2260_v30, %v6307_v3  ;;  %5353 = vmatmul.mubr.msk.f32.gmra.mrb[40].mxu0 %vm1584_vm1, %v6442_v36  ;;  %v6776_v30 = vmax.f32 %v724_v44, %v6746_v8  ;;  %v6793_v44 = vsel %vm630_vm9, %v6666_v0, %v662_v45  ;;  %v8928_v0 = vld [vmem:[#allocation23_spill] sm:$0xff]  ;;  %v8929_v45 = vld [vmem:[#allocation24_spill] sm:$0xff]  ;;  %v8935_v33 = vrot.slane %v6488_v48, 4 }
 0x193   : > { %v6762_v52 = vmax.f32 %v2286_v12, %v6307_v3  ;;  %v6770_v9 = vsel %vm1002_vm11, %v1048_v4, %v8834_v16  ;;  %v778_v12 = vmax.f32 %v6640_v23, %v6746_v8  ;;  %5355 = vmatprep.mubr.msk.f32.mxu0 %vm1584_vm1, %v6305_v31  ;;  %v873_v23 = vrot.slane %v802_v56, 6  ;;  %5426 = vmatprep.mubr.msk.f32.mxu1 %vm1584_vm1, %v6793_v44 }
 0x194   : > { %v2314_v4 = vmax.f32 %v2288_v38, %v6429_v29  ;;  %v6796_v58 = vmax.f32 %v723_v49, %v6793_v44  ;;  %v777_v43 = vmax.f32 %v6700_v51, %v6793_v44  ;;  %v801_v53 = vmax.f32 %v775_v20, %v6793_v44  ;;  %5427 = vmatmul.mubr.msk.f32.gmra.mrb[10].mxu1 %vm1584_vm1, %v6746_v8 }
 0x195   : > { %8927 = vst [vmem:[#allocation31_spill] sm:$0xff] %v6762_v52  ;;  %v665_v16 = vmul.f32 0.1, %v6732_v47  ;;  %v578_v49 = vadd.f32 %v6728_v6, %v8928_v0  ;;  %v6812_v51 = vsel %vm841_vm7, %v873_v23, -inf  ;;  %v593_v56 = vadd.f32 %v6728_v6, %v8929_v45 }
 0x196   : > { %v2378_v38 = vrot.slane %v2314_v4, 6  ;;  %5356 = vmatmul.mubr.msk.f32.gmra.mrb[42].mxu0 %vm1584_vm1, %v6307_v3  ;;  %v872_v20 = vrot.slane %v801_v53, 6  ;;  %v1185_v4 = vsel %vm1147_vm3, %v1183_v63, %v8837_v13  ;;  %v588_v59 = vadd.f32 %v6728_v6, %v8931_v26 }
 0x197   : > { %5358 = vmatprep.mubr.msk.f32.mxu0 %vm1584_vm1, %v6427_v35  ;;  %vm632_vm12 = vcmp.ge.f32.partialorder %v578_v49, 0.0  ;;  %vm635_vm13 = vcmp.ge.f32.partialorder %v593_v56, 0.0  ;;  %v8951_v2 = vrot.slane %v6615_v1, 4 }
 0x198   : > { %v6826_v0 = vsel %vm841_vm7, %v8836_v18, %v2378_v38  ;;  %v2481_v27 = vsel %vm841_vm7, %v2378_v38, -inf  ;;  %vm634_vm14 = vcmp.ge.f32.partialorder %v588_v59, 0.0 }
 0x199   : > { %8930 = vst [vmem:[#allocation23_spill] sm:$0xff] %v6826_v0  ;;  %v8838_v45 = vrot.slane %v6826_v0, 1  ;;  %v2548_v34 = vrot.slane %v2481_v27, 1  ;;  %v8839_v7 = vrot.slane %v6826_v0, 2  ;;  %v2692_v40 = vrot.slane %v2481_v27, 2 }
 0x19a   : > { %v8840_v63 = vrot.slane %v6826_v0, 3  ;;  %v2836_v22 = vrot.slane %v2481_v27, 3  ;;  %v8841_v54 = vrot.slane %v6826_v0, 4  ;;  %v2980_v18 = vrot.slane %v2481_v27, 4  ;;  %5359 = vmatmul.mubr.msk.f32.gmra.mrb[44].mxu0 %vm1584_vm1, %v6429_v29 }
 0x19b   : > { %v2549_v38 = vsel %vm1002_vm11, %v8838_v45, %v2548_v34  ;;  %v2693_v26 = vsel %vm1147_vm3, %v8839_v7, %v2692_v40  ;;  %v6854_v34 = vsel %vm841_vm7, %v872_v20, %v873_v23  ;;  %v6858_v40 = vsel %vm841_vm7, -inf, %v872_v20 }
 0x19c   : > { %v2646_v32 = vmax.f32 %v6826_v0, %v2549_v38  ;;  %v2837_v27 = vsel %vm1292_vm6, %v8840_v63, %v2836_v22  ;;  %v2981_v13 = vsel %vm1437_vm8, %v8841_v54, %v2980_v18  ;;  %v8842_v7 = vrot.slane %v6854_v34, 1 }
 0x19d   : > { %v6864_v38 = vsel %vm633_vm10, %v6732_v47, %v665_v16  ;;  %v1053_v63 = vrot.slane %v6858_v40, 1  ;;  %v664_v20 = vmul.f32 0.1, %v578_v49 }
 0x19e   : > { %v2790_v22 = vmax.f32 %v2646_v32, %v2693_v26  ;;  %v804_v45 = vmax.f32 %v778_v12, %v6864_v38  ;;  %v667_v32 = vmul.f32 0.1, %v593_v56  ;;  %v780_v54 = vmax.f32 %v6776_v30, %v6864_v38 }
 0x19f   : > { %v6874_v53 = vsel %vm1002_vm11, %v1053_v63, %v8842_v7  ;;  %v6878_v26 = vsel %vm632_vm12, %v578_v49, %v664_v20  ;;  %v666_v49 = vmul.f32 0.1, %v588_v59 }
 0x1a0   : > { %v2934_v37 = vmax.f32 %v2790_v22, %v2837_v27  ;;  %v876_v16 = vrot.slane %v804_v45, 6  ;;  %v803_v27 = vmax.f32 %v777_v43, %v6878_v26  ;;  %v6885_v22 = vsel %vm635_vm13, %v593_v56, %v667_v32  ;;  %5429 = vmatprep.mubr.msk.f32.mxu1 %vm1584_vm1, %v6878_v26 }
 0x1a1   : > { %v806_v45 = vmax.f32 %v780_v54, %v6885_v22  ;;  %v779_v20 = vmax.f32 %v6796_v58, %v6878_v26  ;;  %5430 = vmatmul.mubr.msk.f32.gmra.mrb[12].mxu1 %vm1584_vm1, %v6864_v38  ;;  %v6901_v7 = vsel %vm634_vm14, %v588_v59, %v666_v49  ;;  %v1274_v54 = vmax.f32 %v1129_v42, %v1185_v4 }
 0x1a2   : > { %v6882_v12 = vmax.f32 %v2934_v37, %v2981_v13  ;;  %v6890_v63 = vsel %vm841_vm7, %v876_v16, -inf  ;;  %v875_v56 = vrot.slane %v803_v27, 6  ;;  %v1329_v13 = vrot.slane %v6485_v19, 3  ;;  %5432 = vmatprep.mubr.msk.f32.mxu1 %vm1584_vm1, %v6901_v7 }
 0x1a3   : > { %v879_v32 = vrot.slane %v806_v45, 6  ;;  %v805_v47 = vmax.f32 %v779_v20, %v6901_v7  ;;  %v1474_v37 = vrot.slane %v6485_v19, 4  ;;  %v2237_v42 = vmax.f32 %v6305_v31, %v6427_v35 }
 0x1a4   : > { %8932 = vst [vmem:[#allocation24_spill] sm:$0xff] %v6882_v12  ;;  %v6913_v27 = vsel %vm841_vm7, %v875_v56, %v876_v16  ;;  %v6916_v59 = vsel %vm841_vm7, -inf, %v875_v56  ;;  %v8933_v16 = vld [vmem:[#allocation26_spill] sm:$0xff]  ;;  %v8934_v58 = vrot.slane %v6488_v48, 3  ;;  %v8937_v48 = vrot.slane %v6485_v19, 1 }
 0x1a5   : > { %v6919_v24 = vsel %vm841_vm7, %v879_v32, -inf  ;;  %5433 = vmatmul.mubr.msk.f32.gmra.mrb[14].mxu1 %vm1584_vm1, %v6885_v22  ;;  %v1058_v4 = vrot.slane %v6916_v59, 1  ;;  %v8845_v45 = vrot.slane %v6913_v27, 1  ;;  %v6930_v20 = vadd.f32 %v6728_v6, %v8933_v16 }
 0x1a6   : > { %v1066_v30 = vrot.slane %v6919_v24, 1  ;;  %v878_v61 = vrot.slane %v805_v47, 6  ;;  %v1330_v43 = vsel %vm1292_vm6, %v8934_v58, %v1329_v13  ;;  %v1475_v5 = vsel %vm1437_vm8, %v8935_v33, %v1474_v37 }
 0x1a7   : > { %v6939_v18 = vsel %vm1002_vm11, %v1058_v4, %v8845_v45  ;;  %v1419_v47 = vmax.f32 %v1274_v54, %v1330_v43  ;;  %v6959_v49 = vmul.f32 0.1, %v6930_v20  ;;  %v8936_v58 = vrot.slane %v6432_v10, 1 }
 0x1a8   : > { %v6953_v4 = vsel %vm841_vm7, %v878_v61, %v879_v32  ;;  %v6956_v23 = vsel %vm841_vm7, -inf, %v878_v61  ;;  %v8938_v61 = vrot.slane %v6432_v10, 2  ;;  %v8943_v32 = vld [vmem:[#allocation27_spill] sm:$0xff]  ;;  %vm637_vm2 = vcmp.ge.f32.partialorder %v6930_v20, 0.0 }
 0x1a9   : > { %v1063_v56 = vrot.slane %v6956_v23, 1  ;;  %v1064_v45 = vrot.slane %v6953_v4, 1  ;;  %v6975_v12 = vmax.f32 %v1419_v47, %v1475_v5  ;;  %v1042_v33 = vsel %vm1002_vm11, %v8937_v48, %v8936_v58 }
 0x1aa   : > { %v8941_v58 = vrot.slane %v6432_v10, 3 }
 0x1ab   : > { %v6970_v43 = vsel %vm1002_vm11, %v1063_v56, %v1064_v45  ;;  %v6973_v54 = vsel %vm1002_vm11, %v1064_v45, %v1066_v30  ;;  %v1130_v56 = vmax.f32 %v6485_v19, %v1042_v33  ;;  %v8939_v30 = vrot.slane %v6485_v19, 2  ;;  %5361 = vmatprep.mubr.msk.f32.mxu0 %vm1584_vm1, %v6975_v12 }
 0x1ac   : > { %v2239_v45 = vmax.f32 %v6427_v35, %v6975_v12  ;;  %v6997_v47 = vmax.f32 %v2237_v42, %v6975_v12  ;;  %v1332_v48 = vsel %vm1292_vm6, %v1329_v13, %v8941_v58  ;;  %v8942_v33 = vrot.slane %v6432_v10, 4 }
 0x1ad   : > { %v1187_v5 = vsel %vm1147_vm3, %v8939_v30, %v8938_v61  ;;  %v2236_v61 = vmax.f32 %v6442_v36, %v6307_v3  ;;  %v2238_v30 = vmax.f32 %v6307_v3, %v6429_v29  ;;  %v598_v35 = vadd.f32 %v6728_v6, %v8943_v32 }
 0x1ae   : > { %8940 = vst [vmem:[#allocation25_spill] sm:$0xff] %v6997_v47  ;;  %v1477_v16 = vsel %vm1437_vm8, %v1474_v37, %v8942_v33  ;;  %v1275_v19 = vmax.f32 %v1130_v56, %v1187_v5  ;;  %v8944_v42 = vrot.slane %v6612_v21, 2  ;;  %v8945_v47 = vrot.slane %v6615_v1, 2 }
 0x1af   : > { %v1334_v10 = vrot.slane %v6612_v21, 3  ;;  %v1479_v37 = vrot.slane %v6612_v21, 4  ;;  %v8946_v56 = vrot.slane %v6554_v25, 1  ;;  %v8947_v5 = vrot.slane %v6612_v21, 1 }
 0x1b0   : > { %v1190_v13 = vsel %vm1147_vm3, %v8945_v47, %v8944_v42  ;;  %v1420_v3 = vmax.f32 %v1275_v19, %v1332_v48  ;;  %v7024_v33 = vmax.f32 %v2236_v61, %v6429_v29  ;;  %vm636_vm15 = vcmp.ge.f32.partialorder %v598_v35, 0.0 }
 0x1b1   : > { %v1047_v58 = vsel %vm1002_vm11, %v8947_v5, %v8946_v56  ;;  %v668_v6 = vmul.f32 0.1, %v598_v35  ;;  %v8949_v32 = vmax.f32 %v6615_v1, %v6632_v28  ;;  %v8950_v42 = vrot.slane %v6615_v1, 3 }
 0x1b2   : > { %8948 = vst [vmem:[#allocation26_spill] sm:$0xff] %v7024_v33  ;;  %v1480_v56 = vsel %vm1437_vm8, %v8951_v2, %v1479_v37  ;;  %v1132_v48 = vmax.f32 %v6612_v21, %v1047_v58  ;;  %v7037_v19 = vmax.f32 %v1420_v3, %v1477_v16  ;;  %v8952_v61 = vrot.slane %v6554_v25, 2 }
 0x1b3   : > { %v1276_v47 = vmax.f32 %v8949_v32, %v1190_v13  ;;  %v1335_v0 = vsel %vm1292_vm6, %v8950_v42, %v1334_v10  ;;  %v8953_v5 = vrot.slane %v6612_v21, 2  ;;  %v8954_v28 = vrot.slane %v6554_v25, 3 }
 0x1b4   : > { %v8955_v32 = vrot.slane %v6554_v25, 4  ;;  %v8956_v58 = vrot.slane %v6738_v46, 2  ;;  %v8957_v16 = vrot.slane %v6741_v50, 2  ;;  %v1339_v21 = vrot.slane %v6738_v46, 3  ;;  %5362 = vmatmul.mubr.msk.f32.gmra.mrb[46].mxu0 %vm1584_vm1, %v7037_v19 }
 0x1b5   : > { %v1192_v52 = vsel %vm1147_vm3, %v8953_v5, %v8952_v61  ;;  %v1337_v13 = vsel %vm1292_vm6, %v1334_v10, %v8954_v28  ;;  %v1421_v42 = vmax.f32 %v1276_v47, %v1335_v0  ;;  %v2240_v10 = vmax.f32 %v6429_v29, %v7037_v19 }
 0x1b6   : > { %v1482_v1 = vsel %vm1437_vm8, %v1479_v37, %v8955_v32  ;;  %v1277_v2 = vmax.f32 %v1132_v48, %v1192_v52  ;;  %v1195_v3 = vsel %vm1147_vm3, %v8957_v16, %v8956_v58  ;;  %v7061_v25 = vmax.f32 %v2238_v30, %v7037_v19 }
 0x1b7   : > { %v8959_v0 = vmax.f32 %v6741_v50, %v6770_v9  ;;  %v7068_v47 = vmax.f32 %v1421_v42, %v1480_v56  ;;  %v8961_v61 = vrot.slane %v6741_v50, 3  ;;  %v1484_v28 = vrot.slane %v6738_v46, 4 }
 0x1b8   : > { %8958 = vst [vmem:[#allocation27_spill] sm:$0xff] %v7061_v25  ;;  %v1422_v48 = vmax.f32 %v1277_v2, %v1337_v13  ;;  %v700_v30 = vsel %vm636_vm15, %v598_v35, %v668_v6  ;;  %v725_v58 = vmax.f32 %v6692_v57, %v6793_v44  ;;  %v727_v16 = vmax.f32 %v6793_v44, %v6878_v26 }
 0x1b9   : > { %v1278_v37 = vmax.f32 %v8959_v0, %v1195_v3  ;;  %8960 = vst [vmem:[#allocation32_spill] sm:$0xff] %v7068_v47  ;;  %v1340_v5 = vsel %vm1292_vm6, %v8961_v61, %v1339_v21  ;;  %5364 = vmatprep.mubr.msk.f32.mxu0 %vm1584_vm1, %v7068_v47  ;;  %v2241_v9 = vmax.f32 %v6975_v12, %v7068_v47  ;;  %v8964_v42 = vrot.slane %v6741_v50, 4 }
 0x1ba   : > { %v7084_v56 = vmax.f32 %v2239_v45, %v7068_v47  ;;  %v7086_v13 = vmax.f32 %v1422_v48, %v1482_v1  ;;  %v729_v57 = vmax.f32 %v6878_v26, %v6901_v7  ;;  %v753_v44 = vmax.f32 %v725_v58, %v6878_v26  ;;  %5435 = vmatprep.mubr.msk.f32.mxu1 %vm1584_vm1, %v700_v30 }
 0x1bb   : > { %v1423_v32 = vmax.f32 %v1278_v37, %v1340_v5  ;;  %v1485_v35 = vsel %vm1437_vm8, %v8964_v42, %v1484_v28  ;;  %v755_v2 = vmax.f32 %v727_v16, %v6901_v7  ;;  %v8967_v3 = vrot.slane %v6682_v39, 1 }
 0x1bc   : > { %8962 = vst [vmem:[#allocation33_spill] sm:$0xff] %v7084_v56  ;;  %8963 = vst [vmem:[#allocation34_spill] sm:$0xff] %v7086_v13  ;;  %5365 = vmatmul.mubr.msk.f32.gmra.mrb[48].mxu0 %vm1584_vm1, %v7086_v13  ;;  %v2242_v45 = vmax.f32 %v7037_v19, %v7086_v13  ;;  %v7103_v50 = vmax.f32 %v2240_v10, %v7086_v13  ;;  %v8968_v26 = vrot.slane %v6738_v46, 1  ;;  %v8970_v58 = vrot.slane %v6682_v39, 2 }
 0x1bd   : > { %v7091_v6 = vmax.f32 %v1423_v32, %v1485_v35  ;;  %v757_v10 = vmax.f32 %v729_v57, %v700_v30  ;;  %v781_v61 = vmax.f32 %v753_v44, %v6901_v7  ;;  %v783_v5 = vmax.f32 %v755_v2, %v700_v30 }
 0x1be   : > { %8966 = vst [vmem:[#allocation36_spill] sm:$0xff] %v7103_v50  ;;  %v1052_v0 = vsel %vm1002_vm11, %v8968_v26, %v8967_v3  ;;  %v8971_v16 = vrot.slane %v6738_v46, 2  ;;  %v8972_v35 = vrot.slane %v6682_v39, 3  ;;  %v701_v7 = vsel %vm637_vm2, %v6930_v20, %v6959_v49 }
 0x1bf   : > { %8965 = vst [vmem:[#allocation35_spill] sm:$0xff] %v7091_v6  ;;  %5367 = vmatprep.mubr.msk.f32.mxu0 %vm1584_vm1, %v7091_v6  ;;  %v7117_v48 = vmax.f32 %v2241_v9, %v7091_v6  ;;  %v1134_v32 = vmax.f32 %v6738_v46, %v1052_v0  ;;  %v807_v26 = vmax.f32 %v781_v61, %v700_v30  ;;  %v887_v1 = vrot.slane %v757_v10, 6 }
 0x1c0   : > { %v1197_v42 = vsel %vm1147_vm3, %v8971_v16, %v8970_v58  ;;  %v1342_v3 = vsel %vm1292_vm6, %v1339_v21, %v8972_v35  ;;  %v8973_v9 = vrot.slane %v6682_v39, 4  ;;  %v884_v44 = vrot.slane %v783_v5, 6  ;;  %5436 = vmatmul.mubr.msk.f32.gmra.mrb[16].mxu1 %vm1584_vm1, %v701_v7 }
 0x1c1   : > { %8969 = vst [vmem:[#allocation37_spill] sm:$0xff] %v7117_v48  ;;  %v1279_v2 = vmax.f32 %v1134_v32, %v1197_v42  ;;  %v726_v46 = vmax.f32 %v6627_v11, %v6746_v8  ;;  %v728_v0 = vmax.f32 %v6746_v8, %v6864_v38  ;;  %v881_v21 = vrot.slane %v807_v26, 6 }
 0x1c2   : > { %v1487_v57 = vsel %vm1437_vm8, %v1484_v28, %v8973_v9  ;;  %v7142_v39 = vsel %vm841_vm7, -inf, %v887_v1  ;;  %v730_v28 = vmax.f32 %v6864_v38, %v6885_v22  ;;  %v8974_v30 = vrot.slane %v6582_v55, 6 }
 0x1c3   : > { %v8975_v49 = vrot.slane %v6516_v14, 6  ;;  %v7154_v11 = vsel %vm841_vm7, -inf, %v884_v44  ;;  %v1424_v61 = vmax.f32 %v1279_v2, %v1342_v3  ;;  %v7159_v5 = vsel %vm841_vm7, -inf, %v881_v21 }
 0x1c4   : > { %v1068_v16 = vrot.slane %v7159_v5, 1  ;;  %v754_v2 = vmax.f32 %v726_v46, %v6864_v38  ;;  %v8977_v52 = vrot.slane %v6516_v14, 6  ;;  %v8979_v9 = vrot.slane %v6609_v15, 1 }
 0x1c5   : > { %v7151_v20 = vsel %vm841_vm7, %v8975_v49, %v8974_v30  ;;  %v7169_v3 = vmax.f32 %v1424_v61, %v1487_v57  ;;  %v756_v30 = vmax.f32 %v728_v0, %v6885_v22  ;;  %v758_v49 = vmax.f32 %v730_v28, %v701_v7 }
 0x1c6   : > { %v7176_v10 = vsel %vm841_vm7, -inf, %v8977_v52  ;;  %v2526_v8 = vrot.slane %v7151_v20, 1  ;;  %v2670_v58 = vrot.slane %v7151_v20, 2  ;;  %v782_v0 = vmax.f32 %v754_v2, %v6885_v22 }
 0x1c7   : > { %8976 = vst [vmem:[#allocation38_spill] sm:$0xff] %v7169_v3  ;;  %5368 = vmatmul.mubr.msk.f32.gmra.mrb[50].mxu0 %vm1584_vm1, %v7169_v3  ;;  %v7185_v38 = vmax.f32 %v2242_v45, %v7169_v3  ;;  %v784_v52 = vmax.f32 %v756_v30, %v701_v7  ;;  %v888_v28 = vrot.slane %v758_v49, 6  ;;  %v2525_v61 = vrot.slane %v7176_v10, 1 }
 0x1c8   : > { %v7194_v55 = vsel %vm1002_vm11, %v2526_v8, %v8979_v9  ;;  %v808_v32 = vmax.f32 %v782_v0, %v701_v7  ;;  %v2669_v26 = vrot.slane %v7176_v10, 2  ;;  %v8980_v45 = vrot.slane %v6609_v15, 2 }
 0x1c9   : > { %8978 = vst [vmem:[#allocation39_spill] sm:$0xff] %v7185_v38  ;;  %v2813_v46 = vrot.slane %v7176_v10, 3  ;;  %v885_v22 = vrot.slane %v784_v52, 6  ;;  %v7204_v2 = vsel %vm841_vm7, %v887_v1, %v888_v28  ;;  %v7207_v30 = vsel %vm841_vm7, %v888_v28, -inf }
 0x1ca   : > { %v7200_v35 = vsel %vm1147_vm3, %v2670_v58, %v8980_v45  ;;  %8981 = vst [vmem:[#allocation40_spill] sm:$0xff] %v7207_v30  ;;  %v2527_v9 = vsel %vm1002_vm11, %v2525_v61, %v2526_v8  ;;  %v882_v49 = vrot.slane %v808_v32, 6  ;;  %v2960_v56 = vrot.slane %v6609_v15, 4 }
 0x1cb   : > { %v7214_v45 = vsel %vm841_vm7, %v884_v44, %v885_v22  ;;  %v7217_v52 = vsel %vm841_vm7, %v885_v22, -inf  ;;  %v2637_v28 = vmax.f32 %v7176_v10, %v2527_v9  ;;  %v2957_v9 = vrot.slane %v7176_v10, 4 }
 0x1cc   : > { %v7222_v57 = vsel %vm841_vm7, %v881_v21, %v882_v49  ;;  %v7225_v8 = vsel %vm841_vm7, %v882_v49, -inf  ;;  %v8853_v32 = vrot.slane %v7214_v45, 1  ;;  %v1076_v61 = vrot.slane %v7217_v52, 1 }
 0x1cd   : > { %v1069_v44 = vrot.slane %v7222_v57, 1  ;;  %v1071_v42 = vrot.slane %v7225_v8, 1  ;;  %v8854_v22 = vrot.slane %v7222_v57, 2  ;;  %v1216_v1 = vrot.slane %v7225_v8, 2 }
 0x1ce   : > { %v7236_v21 = vsel %vm1002_vm11, %v8853_v32, %v1076_v61  ;;  %v8855_v0 = vrot.slane %v7222_v57, 3  ;;  %v1361_v50 = vrot.slane %v7225_v8, 3  ;;  %v2814_v32 = vrot.slane %v7151_v20, 3 }
 0x1cf   : > { %v7242_v7 = vsel %vm1002_vm11, %v1068_v16, %v1069_v44  ;;  %v1072_v37 = vsel %vm1002_vm11, %v1069_v44, %v1071_v42  ;;  %v1217_v48 = vsel %vm1147_vm3, %v8854_v22, %v1216_v1  ;;  %v2671_v1 = vsel %vm1147_vm3, %v2669_v26, %v2670_v58 }
 0x1d0   : > { %v1142_v61 = vmax.f32 %v7222_v57, %v1072_v37  ;;  %v7256_v16 = vsel %vm1292_vm6, %v8855_v0, %v1361_v50  ;;  %v2781_v37 = vmax.f32 %v2637_v28, %v2671_v1  ;;  %v2958_v49 = vrot.slane %v7151_v20, 4 }
 0x1d1   : > { %v8982_v50 = vrot.slane %v6854_v34, 2  ;;  %v8983_v0 = vrot.slane %v6858_v40, 2  ;;  %v1344_v44 = vrot.slane %v6854_v34, 3  ;;  %v8984_v58 = vrot.slane %v6609_v15, 3 }
 0x1d2   : > { %v7261_v22 = vmax.f32 %v1142_v61, %v1217_v48  ;;  %v2815_v48 = vsel %vm1292_vm6, %v2813_v46, %v2814_v32  ;;  %v8985_v10 = vmax.f32 %v6858_v40, %v6874_v53  ;;  %v1489_v61 = vrot.slane %v6854_v34, 4 }
 0x1d3   : > { %v1200_v42 = vsel %vm1147_vm3, %v8983_v0, %v8982_v50  ;;  %v2817_v26 = vsel %vm1292_vm6, %v2814_v32, %v8984_v58  ;;  %v2925_v1 = vmax.f32 %v2781_v37, %v2815_v48  ;;  %v2959_v25 = vsel %vm1437_vm8, %v2957_v9, %v2958_v49 }
 0x1d4   : > { %v1280_v28 = vmax.f32 %v8985_v10, %v1200_v42  ;;  %v2961_v33 = vsel %vm1437_vm8, %v2958_v49, %v2960_v56  ;;  %v8986_v0 = vrot.slane %v6858_v40, 3  ;;  %v8987_v15 = vrot.slane %v6858_v40, 4 }
 0x1d5   : > { %v8988_v58 = vrot.slane %v6812_v51, 1  ;;  %v8989_v53 = vrot.slane %v6854_v34, 1  ;;  %v8990_v37 = vrot.slane %v6812_v51, 2  ;;  %v8991_v9 = vrot.slane %v6854_v34, 2 }
 0x1d6   : > { %v1345_v50 = vsel %vm1292_vm6, %v8986_v0, %v1344_v44  ;;  %v1490_v32 = vsel %vm1437_vm8, %v8987_v15, %v1489_v61  ;;  %v7299_v49 = vmax.f32 %v2925_v1, %v2959_v25  ;;  %v8992_v40 = vrot.slane %v6812_v51, 3 }
 0x1d7   : > { %v1425_v46 = vmax.f32 %v1280_v28, %v1345_v50  ;;  %v1057_v42 = vsel %vm1002_vm11, %v8989_v53, %v8988_v58  ;;  %v1202_v56 = vsel %vm1147_vm3, %v8991_v9, %v8990_v37  ;;  %v8993_v28 = vrot.slane %v6812_v51, 4 }
 0x1d8   : > { %v1136_v48 = vmax.f32 %v6854_v34, %v1057_v42  ;;  %v1347_v10 = vsel %vm1292_vm6, %v1344_v44, %v8992_v40  ;;  %v2638_v15 = vmax.f32 %v7151_v20, %v7194_v55  ;;  %v7314_v58 = vmax.f32 %v6516_v14, %v6646_v17  ;;  %5440 = vmatprep.mubr.msk.f32.mxu1 %vm1584_vm1, %v7299_v49 }
 0x1d9   : > { %v1492_v0 = vsel %vm1437_vm8, %v1489_v61, %v8993_v28  ;;  %v7308_v50 = vmax.f32 %v1425_v46, %v1490_v32  ;;  %v2369_v25 = vrot.slane %v6735_v60, 6  ;;  %v8994_v44 = vrot.slane %v6913_v27, 2 }
 0x1da   : > { %v1281_v34 = vmax.f32 %v1136_v48, %v1202_v56  ;;  %v8995_v51 = vrot.slane %v6916_v59, 2  ;;  %v1349_v1 = vrot.slane %v6913_v27, 3  ;;  %v1494_v20 = vrot.slane %v6913_v27, 4 }
 0x1db   : > { %5370 = vmatprep.mubr.msk.f32.mxu0 %vm1584_vm1, %v7308_v50  ;;  %v2245_v14 = vmax.f32 %v7091_v6, %v7308_v50  ;;  %v8996_v17 = vmax.f32 %v7068_v47, %v7091_v6  ;;  %v2782_v46 = vmax.f32 %v2638_v15, %v7200_v35  ;;  %v2368_v32 = vrot.slane %v7314_v58, 6 }
 0x1dc   : > { %v1205_v61 = vsel %vm1147_vm3, %v8995_v51, %v8994_v44  ;;  %v1426_v53 = vmax.f32 %v1281_v34, %v1347_v10  ;;  %v8998_v42 = vmax.f32 %v6916_v59, %v6939_v18  ;;  %v8999_v9 = vrot.slane %v6916_v59, 3 }
 0x1dd   : > { %v7334_v55 = vmax.f32 %v8996_v17, %v7308_v50  ;;  %v9000_v48 = vrot.slane %v6916_v59, 4  ;;  %v2926_v28 = vmax.f32 %v2782_v46, %v2817_v26  ;;  %v2370_v44 = vsel %vm841_vm7, %v2368_v32, %v2369_v25 }
 0x1de   : > { %v1282_v37 = vmax.f32 %v8998_v42, %v1205_v61  ;;  %v1350_v56 = vsel %vm1292_vm6, %v8999_v9, %v1349_v1  ;;  %v2462_v35 = vsel %vm841_vm7, -inf, %v2368_v32  ;;  %v9001_v15 = vrot.slane %v6890_v63, 1 }
 0x1df   : > { %8997 = vst [vmem:[#allocation41_spill] sm:$0xff] %v7334_v55  ;;  %v1495_v40 = vsel %vm1437_vm8, %v9000_v48, %v1494_v20  ;;  %v9002_v10 = vrot.slane %v6913_v27, 1  ;;  %v7354_v34 = vmax.f32 %v1426_v53, %v1492_v0  ;;  %v2530_v51 = vrot.slane %v2462_v35, 1  ;;  %v5691_v55 = vld [vmem:[%s8813_s3 + $0x18] sm:$0xff] }
 0x1e0   : > { %v2531_v61 = vrot.slane %v2370_v44, 1  ;;  %v2674_v17 = vrot.slane %v2462_v35, 2  ;;  %v7356_v42 = vmax.f32 %v2926_v28, %v2961_v33  ;;  %v2675_v59 = vrot.slane %v2370_v44, 2 }
 0x1e1   : > { %v1062_v18 = vsel %vm1002_vm11, %v9002_v10, %v9001_v15  ;;  %v2818_v9 = vrot.slane %v2462_v35, 3  ;;  %v2819_v26 = vrot.slane %v2370_v44, 3  ;;  %5371 = vmatmul.mubr.msk.f32.gmra.mrb[52].mxu0 %vm1584_vm1, %v7354_v34  ;;  %v2246_v46 = vmax.f32 %v7169_v3, %v7354_v34 }
 0x1e2   : > { %v9003_v32 = vmax.f32 %v7086_v13, %v7169_v3  ;;  %v2532_v33 = vsel %vm1002_vm11, %v2530_v51, %v2531_v61  ;;  %5441 = vmatmul.mubr.msk.f32.vlgmr.msra.gmra.mrb[18].mxu1 %vm1584_vm1, %v7356_v42  ;;  %v2676_v28 = vsel %vm1147_vm3, %v2674_v17, %v2675_v59  ;;  %v2962_v10 = vrot.slane %v2462_v35, 4 }
 0x1e3   : > { %v2639_v48 = vmax.f32 %v2462_v35, %v2532_v33  ;;  %v2820_v15 = vsel %vm1292_vm6, %v2818_v9, %v2819_v26  ;;  %5489 = vmatpush3.msra.mxu1 %v5691_v55  ;;  %v1427_v6 = vmax.f32 %v1282_v37, %v1350_v56  ;;  %v1138_v53 = vmax.f32 %v6913_v27, %v1062_v18 }
 0x1e4   : > { %v7366_v0 = vmax.f32 %v9003_v32, %v7354_v34  ;;  %v2963_v32 = vrot.slane %v2370_v44, 4  ;;  %v9004_v51 = vrot.slane %v6890_v63, 2  ;;  %v9005_v38 = vrot.slane %v6913_v27, 2 }
 0x1e5   : > { %v2783_v3 = vmax.f32 %v2639_v48, %v2676_v28  ;;  %v9006_v17 = vrot.slane %v6890_v63, 3  ;;  %v9007_v9 = vrot.slane %v6890_v63, 4  ;;  %v2478_v55 = vsel %vm841_vm7, %v2369_v25, -inf }
 0x1e6   : > { %v1207_v33 = vsel %vm1147_vm3, %v9005_v38, %v9004_v51  ;;  %v2964_v37 = vsel %vm1437_vm8, %v2962_v10, %v2963_v32  ;;  %v7392_v56 = vmax.f32 %v1427_v6, %v1495_v40  ;;  %v2533_v13 = vrot.slane %v2478_v55, 1 }
 0x1e7   : > { %v1352_v35 = vsel %vm1292_vm6, %v1349_v1, %v9006_v17  ;;  %v1497_v47 = vsel %vm1437_vm8, %v1494_v20, %v9007_v9  ;;  %v1283_v18 = vmax.f32 %v1138_v53, %v1207_v33  ;;  %v2927_v27 = vmax.f32 %v2783_v3, %v2820_v15 }
 0x1e8   : > { %v2677_v30 = vrot.slane %v2478_v55, 2  ;;  %v2821_v38 = vrot.slane %v2478_v55, 3  ;;  %v2965_v48 = vrot.slane %v2478_v55, 4  ;;  %5373 = vmatprep.mubr.msk.f32.mxu0 %vm1584_vm1, %v7392_v56  ;;  %v7397_v1 = vmax.f32 %v2245_v14, %v7392_v56 }
 0x1e9   : > { %v1428_v63 = vmax.f32 %v1283_v18, %v1352_v35  ;;  %v2534_v20 = vsel %vm1002_vm11, %v2531_v61, %v2533_v13  ;;  %v2309_v25 = vmax.f32 %v7314_v58, %v6274_v62  ;;  %v7402_v6 = vmax.f32 %v2927_v27, %v2964_v37 }
 0x1ea   : > { %v2640_v40 = vmax.f32 %v2370_v44, %v2534_v20  ;;  %v2678_v3 = vsel %vm1147_vm3, %v2675_v59, %v2677_v30  ;;  %v2822_v53 = vsel %vm1292_vm6, %v2819_v26, %v2821_v38  ;;  %v2966_v15 = vsel %vm1437_vm8, %v2963_v32, %v2965_v48 }
 0x1eb   : > { %v7406_v28 = vmax.f32 %v1428_v63, %v1497_v47  ;;  %v2310_v14 = vmax.f32 %v6735_v60, %v6442_v36  ;;  %v2371_v10 = vrot.slane %v2309_v25, 6  ;;  %5443 = vmatprep.mubr.msk.f32.mxu1 %vm1584_vm1, %v7402_v6  ;;  %v3456_v13 = vmax.f32 %v7299_v49, %v7402_v6 }
 0x1ec   : > { %v2784_v58 = vmax.f32 %v2640_v40, %v2678_v3  ;;  %v9008_v44 = vrot.slane %v6953_v4, 2  ;;  %v9009_v30 = vrot.slane %v6956_v23, 2  ;;  %v9010_v61 = vrot.slane %v6953_v4, 3 }
 0x1ed   : > { %v9011_v59 = vrot.slane %v6956_v23, 3  ;;  %5374 = vmatmul.mubr.msk.f32.gmra.mrb[54].mxu0 %vm1584_vm1, %v7406_v28  ;;  %v7428_v60 = vmax.f32 %v2246_v46, %v7406_v28  ;;  %v2372_v32 = vrot.slane %v2310_v14, 6  ;;  %v2463_v51 = vsel %vm841_vm7, -inf, %v2371_v10 }
 0x1ee   : > { %v1210_v47 = vsel %vm1147_vm3, %v9009_v30, %v9008_v44  ;;  %v2928_v33 = vmax.f32 %v2784_v58, %v2822_v53  ;;  %v2535_v17 = vrot.slane %v2463_v51, 1  ;;  %v2679_v35 = vrot.slane %v2463_v51, 2 }
 0x1ef   : > { %v1355_v36 = vsel %vm1292_vm6, %v9011_v59, %v9010_v61  ;;  %v2823_v9 = vrot.slane %v2463_v51, 3  ;;  %v2373_v55 = vsel %vm841_vm7, %v2371_v10, %v2372_v32  ;;  %v2967_v37 = vrot.slane %v2463_v51, 4 }
 0x1f0   : > { %v9012_v18 = vmax.f32 %v6956_v23, %v6970_v43  ;;  %v9013_v46 = vrot.slane %v6953_v4, 4  ;;  %v9014_v38 = vrot.slane %v6956_v23, 4  ;;  %v7442_v63 = vmax.f32 %v2928_v33, %v2966_v15 }
 0x1f1   : > { %v2536_v20 = vrot.slane %v2373_v55, 1  ;;  %v2680_v25 = vrot.slane %v2373_v55, 2  ;;  %v2824_v40 = vrot.slane %v2373_v55, 3  ;;  %v2968_v3 = vrot.slane %v2373_v55, 4 }
 0x1f2   : > { %v1284_v27 = vmax.f32 %v9012_v18, %v1210_v47  ;;  %v1500_v48 = vsel %vm1437_vm8, %v9014_v38, %v9013_v46  ;;  %v9015_v14 = vrot.slane %v6919_v24, 2  ;;  %v9016_v10 = vmov %v9008_v44  ;;  %5444 = vmatmul.mubr.msk.f32.gmra.mrb[20].mxu1 %vm1584_vm1, %v7442_v63 }
 0x1f3   : > { %v9017_v58 = vrot.slane %v6919_v24, 3  ;;  %v9018_v44 = vmov %v9010_v61  ;;  %v3457_v15 = vmax.f32 %v7356_v42, %v7442_v63  ;;  %v2537_v30 = vsel %vm1002_vm11, %v2535_v17, %v2536_v20 }
 0x1f4   : > { %v1429_v53 = vmax.f32 %v1284_v27, %v1355_v36  ;;  %v1212_v43 = vsel %vm1147_vm3, %v9016_v10, %v9015_v14  ;;  %v2681_v47 = vsel %vm1147_vm3, %v2679_v35, %v2680_v25  ;;  %v2825_v61 = vsel %vm1292_vm6, %v2823_v9, %v2824_v40  ;;  %v9023_v9 = vld [vmem:[#allocation31_spill] sm:$0xff] }
 0x1f5   : > { %v1357_v23 = vsel %vm1292_vm6, %v9018_v44, %v9017_v58  ;;  %v2641_v59 = vmax.f32 %v2463_v51, %v2537_v30  ;;  %v2969_v36 = vsel %vm1437_vm8, %v2967_v37, %v2968_v3  ;;  %v9019_v18 = vmax.f32 %v6953_v4, %v6973_v54 }
 0x1f6   : > { %v7462_v33 = vmax.f32 %v1429_v53, %v1500_v48  ;;  %v9020_v46 = vrot.slane %v6919_v24, 4  ;;  %v9021_v38 = vrot.slane %v6953_v4, 4  ;;  %v2479_v17 = vsel %vm841_vm7, %v2372_v32, -inf }
 0x1f7   : > { %v1285_v27 = vmax.f32 %v9019_v18, %v1212_v43  ;;  %v9022_v51 = vmax.f32 %v6672_v41, %v6274_v62  ;;  %v2375_v37 = vrot.slane %v9023_v9, 6  ;;  %v2785_v48 = vmax.f32 %v2641_v59, %v2681_v47 }
 0x1f8   : > { %v1502_v42 = vsel %vm1437_vm8, %v9021_v38, %v9020_v46  ;;  %5376 = vmatprep.mubr.msk.f32.mxu0 %vm1584_vm1, %v7462_v33  ;;  %v2538_v53 = vrot.slane %v2479_v17, 1  ;;  %v2682_v24 = vrot.slane %v2479_v17, 2  ;;  %v2826_v14 = vrot.slane %v2479_v17, 3 }
 0x1f9   : > { %v2311_v35 = vmax.f32 %v9022_v51, %v6305_v31  ;;  %v1430_v54 = vmax.f32 %v1285_v27, %v1357_v23  ;;  %v2970_v4 = vrot.slane %v2479_v17, 4  ;;  %v1141_v32 = vmax.f32 %v7159_v5, %v7242_v7 }
 0x1fa   : > { %v2929_v43 = vmax.f32 %v2785_v48, %v2825_v61  ;;  %v2539_v41 = vsel %vm1002_vm11, %v2536_v20, %v2538_v53  ;;  %v2683_v44 = vsel %vm1147_vm3, %v2680_v25, %v2682_v24  ;;  %v2827_v47 = vsel %vm1292_vm6, %v2824_v40, %v2826_v14 }
 0x1fb   : > { %v2374_v10 = vrot.slane %v2311_v35, 6  ;;  %v7482_v58 = vmax.f32 %v1430_v54, %v1502_v42  ;;  %v2642_v30 = vmax.f32 %v2373_v55, %v2539_v41  ;;  %v2971_v23 = vsel %vm1437_vm8, %v2968_v3, %v2970_v4 }
 0x1fc   : > { %v7491_v18 = vmax.f32 %v2929_v43, %v2969_v36  ;;  %v9025_v49 = vrot.slane %v7222_v57, 2  ;;  %v9027_v14 = vrot.slane %v7222_v57, 3  ;;  %v9028_v4 = vrot.slane %v7159_v5, 3 }
 0x1fd   : > { %v7489_v59 = vsel %vm841_vm7, %v2374_v10, %v2375_v37  ;;  %5377 = vmatmul.mubr.msk.f32.gmra.mrb[56].mxu0 %vm1584_vm1, %v7482_v58  ;;  %v2464_v20 = vsel %vm841_vm7, -inf, %v2374_v10  ;;  %v2786_v55 = vmax.f32 %v2642_v30, %v2683_v44  ;;  %v9029_v43 = vrot.slane %v7222_v57, 4 }
 0x1fe   : > { %9024 = vst [vmem:[#allocation31_spill] sm:$0xff] %v7491_v18  ;;  %v2541_v25 = vrot.slane %v7489_v59, 1  ;;  %v2540_v61 = vrot.slane %v2464_v20, 1  ;;  %v2684_v40 = vrot.slane %v2464_v20, 2  ;;  %v2685_v3 = vrot.slane %v7489_v59, 2  ;;  %5446 = vmatprep.mubr.msk.f32.mxu1 %vm1584_vm1, %v7491_v18 }
 0x1ff   : > { %v3458_v36 = vmax.f32 %v7402_v6, %v7491_v18  ;;  %v7508_v27 = vmax.f32 %v3456_v13, %v7491_v18  ;;  %v2828_v46 = vrot.slane %v2464_v20, 3  ;;  %v2829_v38 = vrot.slane %v7489_v59, 3 }
 0x200   : > { %v2930_v42 = vmax.f32 %v2786_v55, %v2827_v47  ;;  %v2542_v17 = vsel %vm1002_vm11, %v2540_v61, %v2541_v25  ;;  %v2686_v51 = vsel %vm1147_vm3, %v2684_v40, %v2685_v3  ;;  %v2972_v35 = vrot.slane %v2464_v20, 4 }
 0x201   : > { %v2643_v48 = vmax.f32 %v2464_v20, %v2542_v17  ;;  %v2830_v54 = vsel %vm1292_vm6, %v2828_v46, %v2829_v38  ;;  %v2973_v53 = vrot.slane %v7489_v59, 4  ;;  %v9026_v6 = vrot.slane %v7159_v5, 2 }
 0x202   : > { %v7516_v24 = vmax.f32 %v2930_v42, %v2971_v23  ;;  %v1360_v10 = vsel %vm1292_vm6, %v9028_v4, %v9027_v14  ;;  %v9030_v41 = vrot.slane %v7159_v5, 4  ;;  %v1432_v20 = vmax.f32 %v7261_v22, %v7256_v16 }
 0x203   : > { %v1215_v13 = vsel %vm1147_vm3, %v9026_v6, %v9025_v49  ;;  %v2787_v30 = vmax.f32 %v2643_v48, %v2686_v51  ;;  %v2974_v47 = vsel %vm1437_vm8, %v2972_v35, %v2973_v53  ;;  %v9031_v5 = vrot.slane %v7225_v8, 4 }
 0x204   : > { %v1505_v44 = vsel %vm1437_vm8, %v9030_v41, %v9029_v43  ;;  %v1286_v23 = vmax.f32 %v1141_v32, %v1215_v13  ;;  %5447 = vmatmul.mubr.msk.f32.gmra.mrb[22].mxu1 %vm1584_vm1, %v7516_v24  ;;  %v3459_v55 = vmax.f32 %v7442_v63, %v7516_v24  ;;  %v7541_v61 = vmax.f32 %v3457_v15, %v7516_v24 }
 0x205   : > { %v9032_v40 = vmov %v9029_v43  ;;  %v2480_v32 = vsel %vm841_vm7, %v2375_v37, -inf  ;;  %v2931_v42 = vmax.f32 %v2787_v30, %v2830_v54  ;;  %v9033_v8 = vrot.slane %v7214_v45, 1 }
 0x206   : > { %v1507_v46 = vsel %vm1437_vm8, %v9032_v40, %v9031_v5  ;;  %v1431_v17 = vmax.f32 %v1286_v23, %v1360_v10  ;;  %v2543_v16 = vrot.slane %v2480_v32, 1  ;;  %v8869_v51 = vrot.slane %v7541_v61, 6 }
 0x207   : > { %v7549_v22 = vmax.f32 %v1432_v20, %v1507_v46  ;;  %v2687_v35 = vrot.slane %v2480_v32, 2  ;;  %v2831_v63 = vrot.slane %v2480_v32, 3  ;;  %v2975_v48 = vrot.slane %v2480_v32, 4 }
 0x208   : > { %v7552_v15 = vmax.f32 %v2931_v42, %v2974_v47  ;;  %v7554_v49 = vmax.f32 %v1431_v17, %v1505_v44  ;;  %v2544_v57 = vsel %vm1002_vm11, %v2541_v25, %v2543_v16  ;;  %v9034_v37 = vrot.slane %v7154_v11, 1  ;;  %v9039_v42 = vld [vmem:[#allocation30_spill] sm:$0xff] }
 0x209   : > { %v7565_v6 = vsel %vm841_vm7, %v8869_v51, -inf  ;;  %v2644_v13 = vmax.f32 %v7489_v59, %v2544_v57  ;;  %v2688_v14 = vsel %vm1147_vm3, %v2685_v3, %v2687_v35  ;;  %v2832_v4 = vsel %vm1292_vm6, %v2829_v38, %v2831_v63 }
 0x20a   : > { %v1075_v54 = vsel %vm1002_vm11, %v9034_v37, %v9033_v8  ;;  %5449 = vmatprep.mubr.msk.f32.mxu1 %vm1584_vm1, %v7552_v15  ;;  %5379 = vmatprep.mubr.msk.f32.mxu0 %vm1584_vm1, %v7554_v49  ;;  %v7580_v59 = vmax.f32 %v3458_v36, %v7552_v15  ;;  %v2976_v38 = vsel %vm1437_vm8, %v2973_v53, %v2975_v48  ;;  %v9035_v30 = vrot.slane %v7214_v45, 2 }
 0x20b   : > { %5380 = vmatmul.mubr.msk.f32.gmra.mrb[58].mxu0 %vm1584_vm1, %v7549_v22  ;;  %v2788_v3 = vmax.f32 %v2644_v13, %v2688_v14  ;;  %v1143_v44 = vmax.f32 %v7154_v11, %v1075_v54  ;;  %v9036_v47 = vrot.slane %v7154_v11, 2  ;;  %v9037_v20 = vrot.slane %v7214_v45, 3 }
 0x20c   : > { %v9038_v5 = vrot.slane %v7154_v11, 3  ;;  %v1509_v40 = vrot.slane %v7214_v45, 4  ;;  %v2247_v46 = vmax.f32 %v7308_v50, %v7392_v56  ;;  %v9040_v17 = vrot.slane %v9039_v42, 6 }
 0x20d   : > { %v1220_v23 = vsel %vm1147_vm3, %v9036_v47, %v9035_v30  ;;  %v2932_v53 = vmax.f32 %v2788_v3, %v2832_v4  ;;  %v1144_v35 = vmax.f32 %v7214_v45, %v7236_v21  ;;  %v9041_v63 = vrot.slane %v7154_v11, 4 }
 0x20e   : > { %v1365_v36 = vsel %vm1292_vm6, %v9038_v5, %v9037_v20  ;;  %v1288_v32 = vmax.f32 %v1143_v44, %v1220_v23  ;;  %v2465_v16 = vsel %vm841_vm7, -inf, %v9040_v17  ;;  %v2275_v57 = vmax.f32 %v2247_v46, %v7462_v33  ;;  %v9043_v44 = vld [vmem:[#allocation23_spill] sm:$0xff] }
 0x20f   : > { %v1510_v48 = vsel %vm1437_vm8, %v9041_v63, %v1509_v40  ;;  %v2545_v8 = vrot.slane %v2465_v16, 1  ;;  %v2689_v37 = vrot.slane %v2465_v16, 2  ;;  %v7608_v54 = vmax.f32 %v2932_v53, %v2976_v38 }
 0x210   : > { %v1433_v13 = vmax.f32 %v1288_v32, %v1365_v36  ;;  %v2833_v14 = vrot.slane %v2465_v16, 3  ;;  %v2977_v4 = vrot.slane %v2465_v16, 4  ;;  %v2303_v3 = vmax.f32 %v2275_v57, %v7554_v49  ;;  %v9048_v36 = vld [vmem:[#allocation24_spill] sm:$0xff] }
 0x211   : > { %9042 = vst [vmem:[#allocation30_spill] sm:$0xff] %v7608_v54  ;;  %v9044_v30 = vrot.slane %v9043_v44, 1  ;;  %v9045_v21 = vrot.slane %v9043_v44, 2  ;;  %v9046_v23 = vrot.slane %v7217_v52, 2  ;;  %v9047_v20 = vrot.slane %v7214_v45, 2  ;;  %5450 = vmatmul.mubr.msk.f32.gmra.mrb[24].mxu1 %vm1584_vm1, %v7608_v54 }
 0x212   : > { %v3461_v5 = vmax.f32 %v7516_v24, %v7608_v54  ;;  %v7629_v53 = vmax.f32 %v3459_v55, %v7608_v54  ;;  %v7633_v32 = vmax.f32 %v7541_v61, %v7608_v54  ;;  %v1578_v42 = vmax.f32 %v1433_v13, %v1510_v48 }
 0x213   : > { %v2547_v47 = vsel %vm1002_vm11, %v2545_v8, %v9044_v30  ;;  %v2691_v11 = vsel %vm1147_vm3, %v2689_v37, %v9045_v21  ;;  %v1222_v38 = vsel %vm1147_vm3, %v9047_v20, %v9046_v23  ;;  %v9050_v63 = vrot.slane %v9043_v44, 3 }
 0x214   : > { %9049 = vst [vmem:[#allocation23_spill] sm:$0xff] %v7629_v53  ;;  %v2645_v17 = vmax.f32 %v2465_v16, %v2547_v47  ;;  %v9051_v8 = vrot.slane %v9043_v44, 4  ;;  %v7642_v37 = vmax.f32 %v3461_v5, %v9048_v36  ;;  %v1289_v30 = vmax.f32 %v1144_v35, %v1222_v38  ;;  %5382 = vmatprep.mubr.msk.f32.mxu0 %vm1584_vm1, %v1578_v42  ;;  %v9088_v53 = vld [vmem:[#allocation14_spill] sm:$0xff] }
 0x215   : > { %v2835_v57 = vsel %vm1292_vm6, %v2833_v14, %v9050_v63  ;;  %v9053_v55 = vrot.slane %v7217_v52, 3  ;;  %v9054_v21 = vrot.slane %v7214_v45, 3  ;;  %v9055_v16 = vrot.slane %v7217_v52, 4 }
 0x216   : > { %v2979_v24 = vsel %vm1437_vm8, %v2977_v4, %v9051_v8  ;;  %9052 = vst [vmem:[#allocation24_spill] sm:$0xff] %v7642_v37  ;;  %v7653_v13 = vmax.f32 %v2303_v3, %v1578_v42  ;;  %v2789_v14 = vmax.f32 %v2645_v17, %v2691_v11  ;;  %v2248_v4 = vmax.f32 %v7354_v34, %v7406_v28 }
 0x217   : > { %v1367_v23 = vsel %vm1292_vm6, %v9054_v21, %v9053_v55  ;;  %v1512_v48 = vsel %vm1437_vm8, %v1509_v40, %v9055_v16  ;;  %v9056_v35 = vrot.slane %v7204_v2, 1  ;;  %v9057_v44 = vrot.slane %v7142_v39, 1 }
 0x218   : > { %v1434_v47 = vmax.f32 %v1289_v30, %v1367_v23  ;;  %v1224_v52 = vrot.slane %v7204_v2, 2  ;;  %v1368_v40 = vrot.slane %v7142_v39, 3  ;;  %v8870_v3 = vrot.slane %v7653_v13, 6 }
 0x219   : > { %v1080_v45 = vsel %vm1002_vm11, %v9057_v44, %v9056_v35  ;;  %v2933_v38 = vmax.f32 %v2789_v14, %v2835_v57  ;;  %v2276_v11 = vmax.f32 %v2248_v4, %v7482_v58  ;;  %v1369_v5 = vrot.slane %v7204_v2, 3 }
 0x21a   : > { %v1145_v20 = vmax.f32 %v7142_v39, %v1080_v45  ;;  %v7668_v17 = vmax.f32 %v1434_v47, %v1512_v48  ;;  %v9058_v63 = vrot.slane %v7142_v39, 2  ;;  %v1513_v30 = vrot.slane %v7142_v39, 4  ;;  %v9059_v45 = vld [vmem:[#allocation29_spill] sm:$0xff]  ;;  %v9060_v47 = vld [vmem:[#allocation28_spill] sm:$0xff] }
 0x21b   : > { %v1514_v55 = vrot.slane %v7204_v2, 4  ;;  %v7678_v21 = vsel %vm841_vm7, -inf, %v8870_v3  ;;  %v7680_v57 = vmax.f32 %v2933_v38, %v2979_v24  ;;  %v2304_v23 = vmax.f32 %v2276_v11, %v7549_v22 }
 0x21c   : > { %v1225_v8 = vsel %vm1147_vm3, %v9058_v63, %v1224_v52  ;;  %5383 = vmatmul.mubr.msk.f32.gmra.mrb[60].mxu0 %vm1584_vm1, %v7668_v17  ;;  %v1370_v48 = vsel %vm1292_vm6, %v1368_v40, %v1369_v5  ;;  %v2249_v14 = vmax.f32 %v7392_v56, %v7462_v33  ;;  %v2251_v4 = vmax.f32 %v7462_v33, %v7554_v49  ;;  %v9062_v63 = vld [vmem:[#allocation22_spill] sm:$0xff] }
 0x21d   : > { %v1290_v16 = vmax.f32 %v1145_v20, %v1225_v8  ;;  %v1515_v39 = vsel %vm1437_vm8, %v1513_v30, %v1514_v55  ;;  %5452 = vmatprep.mubr.msk.f32.mxu1 %vm1584_vm1, %v7680_v57  ;;  %v7696_v24 = vmax.f32 %v2304_v23, %v7668_v17  ;;  %v2253_v44 = vmax.f32 %v7554_v49, %v1578_v42  ;;  %v9064_v23 = vld [vmem:[#allocation40_spill] sm:$0xff] }
 0x21e   : > { %v9061_v20 = vmax.f32 %v9059_v45, %v9060_v47  ;;  %5453 = vmatmul.mubr.msk.f32.gmra.mrb[26].mxu1 %vm1584_vm1, %v9048_v36  ;;  %v2277_v38 = vmax.f32 %v2249_v14, %v7554_v49  ;;  %v2279_v11 = vmax.f32 %v2251_v4, %v1578_v42  ;;  %v9063_v8 = vmax.f32 %v9062_v63, %v6429_v29 }
 0x21f   : > { %v1435_v35 = vmax.f32 %v1290_v16, %v1370_v48  ;;  %v9065_v16 = vrot.slane %v9064_v23, 1  ;;  %v9066_v48 = vrot.slane %v7204_v2, 1  ;;  %v9067_v4 = vrot.slane %v9064_v23, 2 }
 0x220   : > { %v2315_v40 = vmax.f32 %v9061_v20, %v6975_v12  ;;  %v2316_v30 = vmax.f32 %v9063_v8, %v7037_v19  ;;  %v2305_v25 = vmax.f32 %v2277_v38, %v1578_v42  ;;  %v9068_v29 = vrot.slane %v9064_v23, 3 }
 0x221   : > { %v1082_v46 = vsel %vm1002_vm11, %v9066_v48, %v9065_v16  ;;  %v1580_v20 = vmax.f32 %v1435_v35, %v1515_v39  ;;  %v1227_v10 = vsel %vm1147_vm3, %v1224_v52, %v9067_v4  ;;  %v2235_v45 = vmax.f32 %v6274_v62, %v6305_v31 }
 0x222   : > { %v2380_v41 = vrot.slane %v2315_v40, 6  ;;  %v1146_v43 = vmax.f32 %v7204_v2, %v1082_v46  ;;  %v2381_v14 = vrot.slane %v2316_v30, 6  ;;  %v1372_v63 = vsel %vm1292_vm6, %v1369_v5, %v9068_v29 }
 0x223   : > { %5385 = vmatprep.mubr.msk.f32.mxu0 %vm1584_vm1, %v1580_v20  ;;  %v7724_v8 = vmax.f32 %v2253_v44, %v1580_v20  ;;  %v2307_v16 = vmax.f32 %v2279_v11, %v1580_v20  ;;  %v7727_v40 = vmax.f32 %v2305_v25, %v1580_v20 }
 0x224   : > { %v2466_v39 = vsel %vm841_vm7, -inf, %v2380_v41  ;;  %v1291_v35 = vmax.f32 %v1146_v43, %v1227_v10  ;;  %v2382_v46 = vsel %vm841_vm7, %v2380_v41, %v2381_v14 }
 0x225   : > { %v2550_v42 = vrot.slane %v2466_v39, 1  ;;  %v2694_v38 = vrot.slane %v2466_v39, 2  ;;  %v2407_v30 = vrot.slane %v2307_v16, 6  ;;  %v8871_v52 = vrot.slane %v7724_v8, 6 }
 0x226   : > { %v2551_v48 = vrot.slane %v2382_v46, 1  ;;  %v2695_v4 = vrot.slane %v2382_v46, 2  ;;  %v2404_v5 = vrot.slane %v7727_v40, 6  ;;  %v2838_v29 = vrot.slane %v2466_v39, 3 }
 0x227   : > { %v2839_v44 = vrot.slane %v2382_v46, 3  ;;  %v2982_v9 = vrot.slane %v2466_v39, 4  ;;  %v7733_v11 = vsel %vm841_vm7, -inf, %v2407_v30  ;;  %v7738_v10 = vsel %vm841_vm7, -inf, %v8871_v52 }
 0x228   : > { %v2552_v25 = vsel %vm1002_vm11, %v2550_v42, %v2551_v48  ;;  %v2696_v43 = vsel %vm1147_vm3, %v2694_v38, %v2695_v4  ;;  %v7743_v41 = vsel %vm841_vm7, -inf, %v2404_v5  ;;  %v2983_v40 = vrot.slane %v2382_v46, 4 }
 0x229   : > { %v2647_v20 = vmax.f32 %v2466_v39, %v2552_v25  ;;  %v2840_v16 = vsel %vm1292_vm6, %v2838_v29, %v2839_v44  ;;  %v1436_v7 = vmax.f32 %v1291_v35, %v1372_v63  ;;  %v1516_v42 = vrot.slane %v9064_v23, 4 }
 0x22a   : > { %v2984_v26 = vsel %vm1437_vm8, %v2982_v9, %v2983_v40  ;;  %v2250_v38 = vmax.f32 %v7406_v28, %v7482_v58  ;;  %v2252_v39 = vmax.f32 %v7482_v58, %v7549_v22  ;;  %v2254_v29 = vmax.f32 %v7549_v22, %v7668_v17 }
 0x22b   : > { %v2791_v52 = vmax.f32 %v2647_v20, %v2696_v43  ;;  %v2482_v25 = vsel %vm841_vm7, %v2381_v14, -inf  ;;  %v1517_v9 = vsel %vm1437_vm8, %v1514_v55, %v1516_v42 }
 0x22c   : > { %v2278_v23 = vmax.f32 %v2250_v38, %v7549_v22  ;;  %v2553_v35 = vrot.slane %v2482_v25, 1  ;;  %v1581_v43 = vmax.f32 %v1436_v7, %v1517_v9  ;;  %v2280_v20 = vmax.f32 %v2252_v39, %v7668_v17  ;;  %v9077_v9 = vld [vmem:[#allocation27_spill] sm:$0xff] }
 0x22d   : > { %v2935_v63 = vmax.f32 %v2791_v52, %v2840_v16  ;;  %v2697_v3 = vrot.slane %v2482_v25, 2  ;;  %v2841_v51 = vrot.slane %v2482_v25, 3  ;;  %v2985_v62 = vrot.slane %v2482_v25, 4 }
 0x22e   : > { %v2306_v14 = vmax.f32 %v2278_v23, %v7668_v17  ;;  %v2554_v37 = vsel %vm1002_vm11, %v2551_v48, %v2553_v35  ;;  %5386 = vmatmul.mubr.msk.f32.gmra.mrb[62].mxu0 %vm1584_vm1, %v1581_v43  ;;  %v7770_v31 = vmax.f32 %v2254_v29, %v1581_v43  ;;  %v2308_v2 = vmax.f32 %v2280_v20, %v1581_v43  ;;  %v9070_v17 = vld [vmem:[#allocation11_spill] sm:$0xff] }
 0x22f   : > { %v7765_v54 = vmax.f32 %v2935_v63, %v2984_v26  ;;  %v2648_v55 = vmax.f32 %v2382_v46, %v2554_v37  ;;  %v2698_v52 = vsel %vm1147_vm3, %v2695_v4, %v2697_v3  ;;  %v2842_v26 = vsel %vm1292_vm6, %v2839_v44, %v2841_v51  ;;  %5390 = vmatprep.mubr.msk.f32.mxu0 %vm1584_vm1, %v9070_v17  ;;  %v9071_v46 = vld [vmem:[#allocation34_spill] sm:$0xff]  ;;  %v9074_v51 = vld [vmem:[#allocation32_spill] sm:$0xff]  ;;  %v9075_v44 = vld [vmem:[#allocation25_spill] sm:$0xff] }
 0x230   : > { %v2332_v7 = vmax.f32 %v2306_v14, %v1581_v43  ;;  %v2986_v16 = vsel %vm1437_vm8, %v2983_v40, %v2985_v62  ;;  %v2408_v42 = vrot.slane %v2308_v2, 6  ;;  %v2263_v37 = vmax.f32 %v2235_v45, %v9060_v47  ;;  %v9072_v4 = vld [vmem:[#allocation26_spill] sm:$0xff] }
 0x231   : > { %9069 = vst [vmem:[#allocation29_spill] sm:$0xff] %v7765_v54  ;;  %5455 = vmatprep.mubr.msk.f32.mxu1 %vm1584_vm1, %v7765_v54  ;;  %v2792_v39 = vmax.f32 %v2648_v55, %v2698_v52  ;;  %v9073_v29 = vmax.f32 %v9072_v4, %v7037_v19  ;;  %v2293_v40 = vmax.f32 %v9075_v44, %v9074_v51  ;;  %v9076_v63 = vld [vmem:[#allocation38_spill] sm:$0xff] }
 0x232   : > { %v2405_v3 = vrot.slane %v2332_v7, 6  ;;  %v9078_v23 = vmax.f32 %v9077_v9, %v9071_v46  ;;  %v7793_v43 = vsel %vm841_vm7, %v2407_v30, %v2408_v42  ;;  %v7796_v20 = vsel %vm841_vm7, %v2408_v42, -inf  ;;  %v9079_v14 = vld [vmem:[#allocation10_spill] sm:$0xff]  ;;  %v9080_v30 = vld [vmem:[#allocation9_spill] sm:$0xff] }
 0x233   : > { %v2318_v25 = vmax.f32 %v9073_v29, %v9071_v46  ;;  %v2936_v47 = vmax.f32 %v2792_v39, %v2842_v26  ;;  %v2291_v45 = vmax.f32 %v2263_v37, %v6975_v12  ;;  %5391 = vmatmul.mubr.msk.f32.vlgmr.msra.gmra.mrb[32].mxu0 %vm1584_vm1, %v9079_v14  ;;  %v9083_v29 = vld [vmem:[#allocation8_spill] sm:$0xff]  ;;  %v9085_v14 = vld [vmem:[#allocation13_spill] sm:$0xff]  ;;  %v9087_v26 = vld [vmem:[#allocation15_spill] sm:$0xff] }
 0x234   : > { %v2320_v35 = vmax.f32 %v9078_v23, %v9076_v63  ;;  %v7802_v19 = vsel %vm841_vm7, %v2404_v5, %v2405_v3  ;;  %v7805_v62 = vsel %vm841_vm7, %v2405_v3, -inf  ;;  %5393 = vmatprep.mubr.msk.f32.mxu0 %vm1584_vm1, %v9080_v30  ;;  %v9082_v3 = vld [vmem:[#allocation35_spill] sm:$0xff] }
 0x235   : > { %v2384_v55 = vrot.slane %v2318_v25, 6  ;;  %v7816_v42 = vmax.f32 %v2936_v47, %v2986_v16  ;;  %v2317_v39 = vmax.f32 %v2291_v45, %v9074_v51  ;;  %v2319_v46 = vmax.f32 %v2293_v40, %v9082_v3  ;;  %v9084_v25 = vld [vmem:[#allocation33_spill] sm:$0xff] }
 0x236   : > { %v2387_v4 = vrot.slane %v2320_v35, 6  ;;  %v2295_v44 = vmax.f32 %v9084_v25, %v9082_v3 }
 0x237   : > { %9081 = vst [vmem:[#allocation28_spill] sm:$0xff] %v7816_v42  ;;  %v2483_v37 = vsel %vm841_vm7, %v2384_v55, -inf  ;;  %5394 = vmatmul.mubr.msk.f32.gmra.mrb[34].mxu0 %vm1584_vm1, %v9083_v29  ;;  %5456 = vmatmul.mubr.msk.f32.gmra.mrb[28].mxu1 %vm1584_vm1, %v7816_v42  ;;  %v2383_v9 = vrot.slane %v2317_v39, 6  ;;  %v2386_v45 = vrot.slane %v2319_v46, 6 }
 0x238   : > { %v2558_v23 = vrot.slane %v2483_v37, 1  ;;  %v2702_v16 = vrot.slane %v2483_v37, 2  ;;  %v2846_v47 = vrot.slane %v2483_v37, 3  ;;  %5396 = vmatprep.mubr.msk.f32.mxu0 %vm1584_vm1, %v9085_v14  ;;  %v2990_v51 = vrot.slane %v2483_v37, 4  ;;  %v9086_v37 = vld [vmem:[#allocation12_spill] sm:$0xff] }
 0x239   : > { %v7830_v40 = vsel %vm841_vm7, %v2387_v4, -inf  ;;  %v7833_v35 = vmax.f32 %v2295_v44, %v7308_v50  ;;  %v2385_v30 = vsel %vm841_vm7, %v2383_v9, %v2384_v55  ;;  %v2467_v3 = vsel %vm841_vm7, -inf, %v2383_v9 }
 0x23a   : > { %v2563_v39 = vrot.slane %v7830_v40, 1  ;;  %v2707_v29 = vrot.slane %v7830_v40, 2  ;;  %v2555_v25 = vrot.slane %v2467_v3, 1  ;;  %v2556_v38 = vrot.slane %v2385_v30, 1 }
 0x23b   : > { %v2699_v2 = vrot.slane %v2467_v3, 2  ;;  %v2700_v14 = vrot.slane %v2385_v30, 2  ;;  %5397 = vmatmul.mubr.msk.f32.gmra.mrb[36].mxu0 %vm1584_vm1, %v9086_v37  ;;  %v2843_v46 = vrot.slane %v2467_v3, 3  ;;  %v2844_v17 = vrot.slane %v2385_v30, 3 }
 0x23c   : > { %v2987_v5 = vrot.slane %v2467_v3, 4  ;;  %v2988_v44 = vrot.slane %v2385_v30, 4  ;;  %5399 = vmatprep.mubr.msk.f32.mxu0 %vm1584_vm1, %v9087_v26  ;;  %v2557_v55 = vsel %vm1002_vm11, %v2555_v25, %v2556_v38  ;;  %v2559_v7 = vsel %vm1002_vm11, %v2556_v38, %v2558_v23 }
 0x23d   : > { %v2701_v9 = vsel %vm1147_vm3, %v2699_v2, %v2700_v14  ;;  %v2703_v12 = vsel %vm1147_vm3, %v2700_v14, %v2702_v16  ;;  %v2649_v52 = vmax.f32 %v2467_v3, %v2557_v55  ;;  %v2845_v48 = vsel %vm1292_vm6, %v2843_v46, %v2844_v17  ;;  %v9089_v3 = vld [vmem:[#allocation17_spill] sm:$0xff] }
 0x23e   : > { %v2989_v37 = vsel %vm1437_vm8, %v2987_v5, %v2988_v44  ;;  %v2650_v18 = vmax.f32 %v2385_v30, %v2559_v7  ;;  %v2847_v42 = vsel %vm1292_vm6, %v2844_v17, %v2846_v47  ;;  %v2991_v54 = vsel %vm1437_vm8, %v2988_v44, %v2990_v51 }
 0x23f   : > { %v2388_v26 = vsel %vm841_vm7, %v2386_v45, %v2387_v4  ;;  %v2468_v25 = vsel %vm841_vm7, -inf, %v2386_v45  ;;  %5400 = vmatmul.mubr.msk.f32.gmra.mrb[38].mxu0 %vm1584_vm1, %v9088_v53  ;;  %v2793_v38 = vmax.f32 %v2649_v52, %v2701_v9  ;;  %v9090_v52 = vld [vmem:[#allocation16_spill] sm:$0xff] }
 0x240   : > { %v2794_v2 = vmax.f32 %v2650_v18, %v2703_v12  ;;  %v2560_v23 = vrot.slane %v2468_v25, 1  ;;  %v2561_v16 = vrot.slane %v2388_v26, 1  ;;  %5402 = vmatprep.mubr.msk.f32.mxu0 %vm1584_vm1, %v9089_v3  ;;  %v2704_v5 = vrot.slane %v2468_v25, 2 }
 0x241   : > { %v2705_v7 = vrot.slane %v2388_v26, 2  ;;  %v2848_v30 = vrot.slane %v2468_v25, 3  ;;  %v2849_v17 = vrot.slane %v2388_v26, 3  ;;  %v2937_v47 = vmax.f32 %v2793_v38, %v2845_v48 }
 0x242   : > { %v2938_v51 = vmax.f32 %v2794_v2, %v2847_v42  ;;  %v2562_v4 = vsel %vm1002_vm11, %v2560_v23, %v2561_v16  ;;  %v2992_v14 = vrot.slane %v2468_v25, 4  ;;  %v2993_v18 = vrot.slane %v2388_v26, 4  ;;  %v9091_v42 = vld [vmem:[#allocation19_spill] sm:$0xff] }
 0x243   : > { %v2651_v45 = vmax.f32 %v2468_v25, %v2562_v4  ;;  %v2706_v46 = vsel %vm1147_vm3, %v2704_v5, %v2705_v7  ;;  %v2850_v53 = vsel %vm1292_vm6, %v2848_v30, %v2849_v17  ;;  %5403 = vmatmul.mubr.msk.f32.gmra.mrb[40].mxu0 %vm1584_vm1, %v9090_v52  ;;  %v7862_v12 = vmax.f32 %v2937_v47, %v2989_v37  ;;  %v9095_v30 = vld [vmem:[#allocation39_spill] sm:$0xff] }
 0x244   : > { %v7864_v44 = vmax.f32 %v2938_v51, %v2991_v54  ;;  %v2564_v55 = vsel %vm1002_vm11, %v2561_v16, %v2563_v39  ;;  %v2708_v48 = vsel %vm1147_vm3, %v2705_v7, %v2707_v29  ;;  %5405 = vmatprep.mubr.msk.f32.mxu0 %vm1584_vm1, %v9091_v42  ;;  %v2994_v25 = vsel %vm1437_vm8, %v2992_v14, %v2993_v18  ;;  %v9092_v54 = vld [vmem:[#allocation36_spill] sm:$0xff]  ;;  %v9094_v16 = vld [vmem:[#allocation37_spill] sm:$0xff] }
 0x245   : > { %v2795_v9 = vmax.f32 %v2651_v45, %v2706_v46  ;;  %v2652_v38 = vmax.f32 %v2388_v26, %v2564_v55  ;;  %v2851_v2 = vrot.slane %v7830_v40, 3  ;;  %5458 = vmatprep.mubr.msk.f32.mxu1 %vm1584_vm1, %v7862_v12  ;;  %v2995_v37 = vrot.slane %v7830_v40, 4 }
 0x246   : > { %v9093_v39 = vmax.f32 %v9092_v54, %v9076_v63  ;;  %v2389_v29 = vrot.slane %v7833_v35, 6  ;;  %v2297_v3 = vmax.f32 %v9094_v16, %v7308_v50  ;;  %5459 = vmatmul.mubr.msk.f32.gmra.mrb[30].mxu1 %vm1584_vm1, %v7864_v44  ;;  %v9096_v40 = vmax.f32 %v9095_v30, %v7354_v34  ;;  %v9097_v50 = vld [vmem:[#allocation18_spill] sm:$0xff] }
 0x247   : > { %v2939_v26 = vmax.f32 %v2795_v9, %v2850_v53  ;;  %v2796_v5 = vmax.f32 %v2652_v38, %v2708_v48  ;;  %v2852_v7 = vsel %vm1292_vm6, %v2849_v17, %v2851_v2  ;;  %v2996_v63 = vsel %vm1437_vm8, %v2993_v18, %v2995_v37  ;;  %5406 = vmatmul.mubr.msk.f32.gmra.mrb[42].mxu0 %vm1584_vm1, %v9097_v50  ;;  %v9098_v53 = vld [vmem:[#allocation21_spill] sm:$0xff] }
 0x248   : > { %v2322_v23 = vmax.f32 %v9093_v39, %v7354_v34  ;;  %v2324_v47 = vmax.f32 %v9096_v40, %v7406_v28  ;;  %v2469_v35 = vsel %vm841_vm7, -inf, %v2389_v29  ;;  %v2323_v4 = vmax.f32 %v2297_v3, %v7392_v56  ;;  %5408 = vmatprep.mubr.msk.f32.mxu0 %vm1584_vm1, %v9098_v53  ;;  %v9099_v39 = vld [vmem:[#allocation20_spill] sm:$0xff] }
 0x249   : > { %v7894_v14 = vmax.f32 %v2939_v26, %v2994_v25  ;;  %v2940_v45 = vmax.f32 %v2796_v5, %v2852_v7  ;;  %v2565_v46 = vrot.slane %v2469_v35, 1  ;;  %v2709_v17 = vrot.slane %v2469_v35, 2 }
 0x24a   : > { %v2390_v51 = vrot.slane %v2322_v23, 6  ;;  %v2853_v52 = vrot.slane %v2469_v35, 3  ;;  %v2997_v18 = vrot.slane %v2469_v35, 4  ;;  %v2392_v50 = vrot.slane %v2323_v4, 6 }
 0x24b   : > { %5461 = vmatprep.mubr.msk.f32.mxu1 %vm1584_vm1, %v7894_v14  ;;  %v7902_v48 = vmax.f32 %v2940_v45, %v2996_v63  ;;  %5409 = vmatmul.mubr.msk.f32.gmra.mrb[44].mxu0 %vm1584_vm1, %v9099_v39  ;;  %v9102_v4 = vmax.f32 %v7428_v60, %v7482_v58 }
 0x24c   : > { %v2391_v34 = vsel %vm841_vm7, %v2389_v29, %v2390_v51  ;;  %v2485_v55 = vsel %vm841_vm7, %v2390_v51, -inf }
 0x24d   : > { %v2566_v42 = vrot.slane %v2391_v34, 1  ;;  %v2710_v9 = vrot.slane %v2391_v34, 2  ;;  %v2854_v25 = vrot.slane %v2391_v34, 3  ;;  %v2998_v38 = vrot.slane %v2391_v34, 4  ;;  %5462 = vmatmul.mubr.msk.f32.gmra.mrb[0].mxu1 %vm1584_vm1, %v7902_v48 }
 0x24e   : > { %v2568_v2 = vrot.slane %v2485_v55, 1  ;;  %v2712_v37 = vrot.slane %v2485_v55, 2  ;;  %v2856_v54 = vrot.slane %v2485_v55, 3  ;;  %v3000_v3 = vrot.slane %v2485_v55, 4 }
 0x24f   : > { %v2567_v23 = vsel %vm1002_vm11, %v2565_v46, %v2566_v42  ;;  %v2711_v29 = vsel %vm1147_vm3, %v2709_v17, %v2710_v9  ;;  %v2855_v16 = vsel %vm1292_vm6, %v2853_v52, %v2854_v25  ;;  %v2999_v5 = vsel %vm1437_vm8, %v2997_v18, %v2998_v38  ;;  %v9100_v17 = vld [vmem:[#allocation41_spill] sm:$0xff] }
 0x250   : > { %v2653_v26 = vmax.f32 %v2469_v35, %v2567_v23  ;;  %v2569_v7 = vsel %vm1002_vm11, %v2566_v42, %v2568_v2  ;;  %v2713_v30 = vsel %vm1147_vm3, %v2710_v9, %v2712_v37  ;;  %v2857_v63 = vsel %vm1292_vm6, %v2854_v25, %v2856_v54 }
 0x251   : > { %v2654_v40 = vmax.f32 %v2391_v34, %v2569_v7  ;;  %v3001_v51 = vsel %vm1437_vm8, %v2998_v38, %v3000_v3  ;;  %v2393_v46 = vrot.slane %v2324_v47, 6  ;;  %v2299_v53 = vmax.f32 %v9100_v17, %v7392_v56 }
 0x252   : > { %v2797_v45 = vmax.f32 %v2653_v26, %v2711_v29  ;;  %v9101_v35 = vmax.f32 %v7366_v0, %v7406_v28  ;;  %v2470_v55 = vsel %vm841_vm7, -inf, %v2392_v50  ;;  %v2301_v34 = vmax.f32 %v7397_v1, %v7462_v33 }
 0x253   : > { %v2798_v18 = vmax.f32 %v2654_v40, %v2713_v30  ;;  %v7929_v42 = vmax.f32 %v9102_v4, %v7549_v22  ;;  %v2394_v56 = vsel %vm841_vm7, %v2392_v50, %v2393_v46  ;;  %v2570_v9 = vrot.slane %v2470_v55, 1 }
 0x254   : > { %v2326_v52 = vmax.f32 %v9101_v35, %v7482_v58  ;;  %v2941_v47 = vmax.f32 %v2797_v45, %v2855_v16  ;;  %v2714_v25 = vrot.slane %v2470_v55, 2  ;;  %v2571_v0 = vrot.slane %v2394_v56, 1 }
 0x255   : > { %v2942_v38 = vmax.f32 %v2798_v18, %v2857_v63  ;;  %v2715_v28 = vrot.slane %v2394_v56, 2  ;;  %v2858_v2 = vrot.slane %v2470_v55, 3  ;;  %v2859_v54 = vrot.slane %v2394_v56, 3 }
 0x256   : > { %v7932_v37 = vmax.f32 %v2941_v47, %v2999_v5  ;;  %v3002_v39 = vrot.slane %v2470_v55, 4  ;;  %v3003_v1 = vrot.slane %v2394_v56, 4  ;;  %v2572_v60 = vsel %vm1002_vm11, %v2570_v9, %v2571_v0 }
 0x257   : > { %v7934_v23 = vmax.f32 %v2942_v38, %v3001_v51  ;;  %v2716_v58 = vsel %vm1147_vm3, %v2714_v25, %v2715_v28  ;;  %v2486_v22 = vsel %vm841_vm7, %v2393_v46, -inf  ;;  %v2655_v29 = vmax.f32 %v2470_v55, %v2572_v60 }
 0x258   : > { %5464 = vmatprep.mubr.msk.f32.mxu1 %vm1584_vm1, %v7932_v37  ;;  %v2860_v16 = vsel %vm1292_vm6, %v2858_v2, %v2859_v54  ;;  %v3004_v3 = vsel %vm1437_vm8, %v3002_v39, %v3003_v1  ;;  %v2573_v26 = vrot.slane %v2486_v22, 1  ;;  %v2717_v5 = vrot.slane %v2486_v22, 2 }
 0x259   : > { %5465 = vmatmul.mubr.msk.f32.gmra.mrb[2].mxu1 %vm1584_vm1, %v7934_v23  ;;  %v2861_v7 = vrot.slane %v2486_v22, 3  ;;  %v3005_v30 = vrot.slane %v2486_v22, 4  ;;  %v2325_v40 = vmax.f32 %v2299_v53, %v7462_v33  ;;  %v2799_v63 = vmax.f32 %v2655_v29, %v2716_v58 }
 0x25a   : > { %v2574_v51 = vsel %vm1002_vm11, %v2571_v0, %v2573_v26  ;;  %v2396_v50 = vrot.slane %v2326_v52, 6  ;;  %v2327_v45 = vmax.f32 %v2301_v34, %v7554_v49  ;;  %v2718_v17 = vsel %vm1147_vm3, %v2715_v28, %v2717_v5 }
 0x25b   : > { %v2656_v46 = vmax.f32 %v2394_v56, %v2574_v51  ;;  %v2862_v35 = vsel %vm1292_vm6, %v2859_v54, %v2861_v7  ;;  %v3006_v18 = vsel %vm1437_vm8, %v3003_v1, %v3005_v30  ;;  %v2943_v55 = vmax.f32 %v2799_v63, %v2860_v16 }
 0x25c   : > { %v2395_v4 = vrot.slane %v2325_v40, 6  ;;  %v2487_v47 = vsel %vm841_vm7, %v2396_v50, -inf  ;;  %v2398_v9 = vrot.slane %v2327_v45, 6 }
 0x25d   : > { %v2800_v25 = vmax.f32 %v2656_v46, %v2718_v17  ;;  %v2578_v33 = vrot.slane %v2487_v47, 1  ;;  %v2722_v53 = vrot.slane %v2487_v47, 2  ;;  %v2866_v38 = vrot.slane %v2487_v47, 3 }
 0x25e   : > { %v7952_v0 = vmax.f32 %v2943_v55, %v3004_v3  ;;  %v2397_v49 = vsel %vm841_vm7, %v2395_v4, %v2396_v50  ;;  %v2471_v52 = vsel %vm841_vm7, -inf, %v2395_v4  ;;  %v3010_v34 = vrot.slane %v2487_v47, 4 }
 0x25f   : > { %v2944_v56 = vmax.f32 %v2800_v25, %v2862_v35  ;;  %v2575_v28 = vrot.slane %v2471_v52, 1  ;;  %v2576_v2 = vrot.slane %v2397_v49, 1  ;;  %v2719_v54 = vrot.slane %v2471_v52, 2 }
 0x260   : > { %5467 = vmatprep.mubr.msk.f32.mxu1 %vm1584_vm1, %v7952_v0  ;;  %v2720_v39 = vrot.slane %v2397_v49, 2  ;;  %v2863_v1 = vrot.slane %v2471_v52, 3  ;;  %v2864_v60 = vrot.slane %v2397_v49, 3  ;;  %v3007_v58 = vrot.slane %v2471_v52, 4 }
 0x261   : > { %v7958_v22 = vmax.f32 %v2944_v56, %v3006_v18  ;;  %v2577_v29 = vsel %vm1002_vm11, %v2575_v28, %v2576_v2  ;;  %v3008_v16 = vrot.slane %v2397_v49, 4  ;;  %v2579_v3 = vsel %vm1002_vm11, %v2576_v2, %v2578_v33 }
 0x262   : > { %v2657_v26 = vmax.f32 %v2471_v52, %v2577_v29  ;;  %v2721_v5 = vsel %vm1147_vm3, %v2719_v54, %v2720_v39  ;;  %v2865_v7 = vsel %vm1292_vm6, %v2863_v1, %v2864_v60  ;;  %v2658_v30 = vmax.f32 %v2397_v49, %v2579_v3 }
 0x263   : > { %5468 = vmatmul.mubr.msk.f32.gmra.mrb[4].mxu1 %vm1584_vm1, %v7958_v22  ;;  %v3009_v40 = vsel %vm1437_vm8, %v3007_v58, %v3008_v16  ;;  %v2723_v63 = vsel %vm1147_vm3, %v2720_v39, %v2722_v53  ;;  %v2867_v51 = vsel %vm1292_vm6, %v2864_v60, %v2866_v38  ;;  %v3011_v50 = vsel %vm1437_vm8, %v3008_v16, %v3010_v34 }
 0x264   : > { %v2801_v45 = vmax.f32 %v2657_v26, %v2721_v5  ;;  %v2802_v46 = vmax.f32 %v2658_v30, %v2723_v63  ;;  %v2399_v17 = vrot.slane %v7929_v42, 6  ;;  %v2472_v35 = vsel %vm841_vm7, -inf, %v2398_v9 }
 0x265   : > { %v2580_v18 = vrot.slane %v2472_v35, 1  ;;  %v2724_v55 = vrot.slane %v2472_v35, 2  ;;  %v2868_v4 = vrot.slane %v2472_v35, 3  ;;  %v3012_v47 = vrot.slane %v2472_v35, 4 }
 0x266   : > { %v2945_v25 = vmax.f32 %v2801_v45, %v2865_v7  ;;  %v2946_v33 = vmax.f32 %v2802_v46, %v2867_v51  ;;  %v2400_v49 = vsel %vm841_vm7, %v2398_v9, %v2399_v17  ;;  %v2488_v53 = vsel %vm841_vm7, %v2399_v17, -inf }
 0x267   : > { %v2581_v52 = vrot.slane %v2400_v49, 1  ;;  %v2725_v38 = vrot.slane %v2400_v49, 2  ;;  %v2869_v56 = vrot.slane %v2400_v49, 3  ;;  %v3013_v34 = vrot.slane %v2400_v49, 4 }
 0x268   : > { %v7974_v28 = vmax.f32 %v2945_v25, %v3009_v40  ;;  %v7976_v2 = vmax.f32 %v2946_v33, %v3011_v50  ;;  %v2583_v42 = vrot.slane %v2488_v53, 1  ;;  %v2727_v54 = vrot.slane %v2488_v53, 2 }
 0x269   : > { %v2582_v39 = vsel %vm1002_vm11, %v2580_v18, %v2581_v52  ;;  %v2726_v1 = vsel %vm1147_vm3, %v2724_v55, %v2725_v38  ;;  %v2870_v60 = vsel %vm1292_vm6, %v2868_v4, %v2869_v56  ;;  %v3014_v9 = vsel %vm1437_vm8, %v3012_v47, %v3013_v34 }
 0x26a   : > { %5470 = vmatprep.mubr.msk.f32.mxu1 %vm1584_vm1, %v7974_v28  ;;  %v2659_v58 = vmax.f32 %v2472_v35, %v2582_v39  ;;  %v2584_v29 = vsel %vm1002_vm11, %v2581_v52, %v2583_v42  ;;  %v2728_v16 = vsel %vm1147_vm3, %v2725_v38, %v2727_v54  ;;  %v2871_v3 = vrot.slane %v2488_v53, 3 }
 0x26b   : > { %5471 = vmatmul.mubr.msk.f32.gmra.mrb[6].mxu1 %vm1584_vm1, %v7976_v2  ;;  %v2660_v26 = vmax.f32 %v2400_v49, %v2584_v29  ;;  %v3015_v5 = vrot.slane %v2488_v53, 4  ;;  %v9103_v7 = vrot.slane %v7696_v24, 6  ;;  %v9104_v30 = vrot.slane %v7653_v13, 6 }
 0x26c   : > { %v2729_v63 = vrot.slane %v7678_v21, 2  ;;  %v2803_v51 = vmax.f32 %v2659_v58, %v2726_v1  ;;  %v2872_v50 = vsel %vm1292_vm6, %v2869_v56, %v2871_v3  ;;  %v2873_v18 = vrot.slane %v7678_v21, 3 }
 0x26d   : > { %v2403_v40 = vsel %vm841_vm7, %v9104_v30, %v9103_v7  ;;  %v2804_v17 = vmax.f32 %v2660_v26, %v2728_v16  ;;  %v3016_v35 = vsel %vm1437_vm8, %v3013_v34, %v3015_v5  ;;  %v9105_v47 = vrot.slane %v7678_v21, 1 }
 0x26e   : > { %v2586_v45 = vrot.slane %v2403_v40, 1  ;;  %v2730_v46 = vrot.slane %v2403_v40, 2  ;;  %v2874_v55 = vrot.slane %v2403_v40, 3  ;;  %v2947_v4 = vmax.f32 %v2803_v51, %v2870_v60 }
 0x26f   : > { %v3017_v33 = vrot.slane %v7678_v21, 4  ;;  %v2948_v49 = vmax.f32 %v2804_v17, %v2872_v50  ;;  %v3018_v38 = vrot.slane %v2403_v40, 4  ;;  %v9106_v34 = vmov %v9103_v7 }
 0x270   : > { %v2587_v13 = vsel %vm1002_vm11, %v9105_v47, %v2586_v45  ;;  %v2731_v25 = vsel %vm1147_vm3, %v2729_v63, %v2730_v46  ;;  %v2875_v52 = vsel %vm1292_vm6, %v2873_v18, %v2874_v55  ;;  %v8004_v56 = vmax.f32 %v2947_v4, %v3014_v9 }
 0x271   : > { %v2661_v53 = vmax.f32 %v7678_v21, %v2587_v13  ;;  %v2489_v42 = vsel %vm841_vm7, %v9106_v34, -inf  ;;  %v9107_v54 = vrot.slane %v7802_v19, 1  ;;  %v9108_v39 = vrot.slane %v7743_v41, 1 }
 0x272   : > { %v9109_v60 = vrot.slane %v7802_v19, 2  ;;  %v9110_v58 = vrot.slane %v7743_v41, 2  ;;  %v8019_v29 = vmax.f32 %v2948_v49, %v3016_v35  ;;  %v3019_v16 = vsel %vm1437_vm8, %v3017_v33, %v3018_v38  ;;  %5473 = vmatprep.mubr.msk.f32.mxu1 %vm1584_vm1, %v8004_v56 }
 0x273   : > { %v2592_v1 = vsel %vm1002_vm11, %v9108_v39, %v9107_v54  ;;  %v2805_v9 = vmax.f32 %v2661_v53, %v2731_v25  ;;  %v2588_v24 = vrot.slane %v2489_v42, 1  ;;  %v2732_v3 = vrot.slane %v2489_v42, 2 }
 0x274   : > { %v2736_v21 = vsel %vm1147_vm3, %v9110_v58, %v9109_v60  ;;  %v2876_v26 = vrot.slane %v2489_v42, 3  ;;  %v3020_v5 = vrot.slane %v2489_v42, 4  ;;  %v2663_v7 = vmax.f32 %v7743_v41, %v2592_v1  ;;  %5474 = vmatmul.mubr.msk.f32.gmra.mrb[8].mxu1 %vm1584_vm1, %v8019_v29 }
 0x275   : > { %v2949_v30 = vmax.f32 %v2805_v9, %v2875_v52  ;;  %v2589_v63 = vsel %vm1002_vm11, %v2586_v45, %v2588_v24  ;;  %v2879_v51 = vrot.slane %v7802_v19, 3  ;;  %v3022_v50 = vrot.slane %v7743_v41, 4 }
 0x276   : > { %v2662_v17 = vmax.f32 %v2403_v40, %v2589_v63  ;;  %v2733_v35 = vsel %vm1147_vm3, %v2730_v46, %v2732_v3  ;;  %v2877_v18 = vsel %vm1292_vm6, %v2874_v55, %v2876_v26  ;;  %v3021_v4 = vsel %vm1437_vm8, %v3018_v38, %v3020_v5 }
 0x277   : > { %v8033_v47 = vmax.f32 %v2949_v30, %v3019_v16  ;;  %v2807_v13 = vmax.f32 %v2663_v7, %v2736_v21  ;;  %v9111_v25 = vrot.slane %v7743_v41, 3  ;;  %v3023_v45 = vrot.slane %v7802_v19, 4 }
 0x278   : > { %v2806_v49 = vmax.f32 %v2662_v17, %v2733_v35  ;;  %v9112_v53 = vrot.slane %v7805_v62, 1  ;;  %v9113_v40 = vmov %v9107_v54  ;;  %v9114_v55 = vrot.slane %v7805_v62, 2 }
 0x279   : > { %v2880_v33 = vsel %vm1292_vm6, %v9111_v25, %v2879_v51  ;;  %v9115_v52 = vmov %v9109_v60  ;;  %v9116_v34 = vrot.slane %v7805_v62, 3  ;;  %5476 = vmatprep.mubr.msk.f32.mxu1 %vm1584_vm1, %v8033_v47  ;;  %v3024_v54 = vsel %vm1437_vm8, %v3022_v50, %v3023_v45 }
 0x27a   : > { %v2594_v46 = vsel %vm1002_vm11, %v9113_v40, %v9112_v53  ;;  %v2738_v38 = vsel %vm1147_vm3, %v9115_v52, %v9114_v55  ;;  %v2951_v42 = vmax.f32 %v2807_v13, %v2880_v33  ;;  %v9117_v1 = vrot.slane %v7805_v62, 4 }
 0x27b   : > { %v2882_v41 = vsel %vm1292_vm6, %v2879_v51, %v9116_v34  ;;  %v2664_v39 = vmax.f32 %v7802_v19, %v2594_v46  ;;  %v2950_v58 = vmax.f32 %v2806_v49, %v2877_v18  ;;  %v2595_v21 = vrot.slane %v7733_v11, 1 }
 0x27c   : > { %v3026_v60 = vsel %vm1437_vm8, %v3023_v45, %v9117_v1  ;;  %v2596_v9 = vrot.slane %v7793_v43, 1  ;;  %v2739_v16 = vrot.slane %v7733_v11, 2  ;;  %v8062_v24 = vmax.f32 %v2951_v42, %v3024_v54 }
 0x27d   : > { %v2808_v3 = vmax.f32 %v2664_v39, %v2738_v38  ;;  %v2740_v26 = vrot.slane %v7793_v43, 2  ;;  %v2883_v5 = vrot.slane %v7733_v11, 3  ;;  %v8066_v7 = vmax.f32 %v2950_v58, %v3021_v4 }
 0x27e   : > { %v2597_v19 = vsel %vm1002_vm11, %v2595_v21, %v2596_v9  ;;  %v2884_v62 = vrot.slane %v7793_v43, 3  ;;  %v3027_v30 = vrot.slane %v7733_v11, 4  ;;  %v3028_v17 = vrot.slane %v7793_v43, 4 }
 0x27f   : > { %v2952_v63 = vmax.f32 %v2808_v3, %v2882_v41  ;;  %v2665_v51 = vmax.f32 %v7733_v11, %v2597_v19  ;;  %v2741_v50 = vsel %vm1147_vm3, %v2739_v16, %v2740_v26  ;;  %5477 = vmatmul.mubr.msk.f32.gmra.mrb[10].mxu1 %vm1584_vm1, %v8066_v7  ;;  %v9118_v18 = vrot.slane %v7796_v20, 1 }
 0x280   : > { %v2885_v35 = vsel %vm1292_vm6, %v2883_v5, %v2884_v62  ;;  %v2742_v13 = vrot.slane %v7796_v20, 2  ;;  %v2886_v25 = vrot.slane %v7796_v20, 3  ;;  %5479 = vmatprep.mubr.msk.f32.mxu1 %vm1584_vm1, %v8062_v24  ;;  %v3029_v45 = vsel %vm1437_vm8, %v3027_v30, %v3028_v17 }
 0x281   : > { %v2599_v4 = vsel %vm1002_vm11, %v2596_v9, %v9118_v18  ;;  %v8084_v11 = vmax.f32 %v2952_v63, %v3026_v60  ;;  %v2809_v33 = vmax.f32 %v2665_v51, %v2741_v50  ;;  %v3030_v46 = vrot.slane %v7796_v20, 4 }
 0x282   : > { %v2666_v49 = vmax.f32 %v7793_v43, %v2599_v4  ;;  %v2743_v53 = vsel %vm1147_vm3, %v2740_v26, %v2742_v13  ;;  %v2887_v40 = vsel %vm1292_vm6, %v2884_v62, %v2886_v25  ;;  %v9119_v55 = vrot.slane %v7770_v31, 6 }
 0x283   : > { %v9120_v52 = vrot.slane %v7724_v8, 6  ;;  %v2953_v34 = vmax.f32 %v2809_v33, %v2885_v35  ;;  %v2600_v42 = vrot.slane %v7738_v10, 1  ;;  %5480 = vmatmul.mubr.msk.f32.gmra.mrb[12].mxu1 %vm1584_vm1, %v8084_v11  ;;  %v3031_v43 = vsel %vm1437_vm8, %v3028_v17, %v3030_v46 }
 0x284   : > { %v2810_v41 = vmax.f32 %v2666_v49, %v2743_v53  ;;  %v2744_v39 = vrot.slane %v7738_v10, 2  ;;  %v2888_v20 = vrot.slane %v7738_v10, 3  ;;  %v3032_v3 = vrot.slane %v7738_v10, 4 }
 0x285   : > { %v2412_v38 = vsel %vm841_vm7, %v9120_v52, %v9119_v55  ;;  %v8102_v60 = vmax.f32 %v2953_v34, %v3029_v45  ;;  %v3478_v62 = vmax.f32 %v8004_v56, %v8033_v47  ;;  %v3480_v30 = vmax.f32 %v8033_v47, %v8062_v24 }
 0x286   : > { %v2601_v54 = vrot.slane %v2412_v38, 1  ;;  %v2745_v1 = vrot.slane %v2412_v38, 2  ;;  %v2954_v8 = vmax.f32 %v2810_v41, %v2887_v40  ;;  %v2889_v21 = vrot.slane %v2412_v38, 3 }
 0x287   : > { %v3033_v26 = vrot.slane %v2412_v38, 4  ;;  %5482 = vmatprep.mubr.msk.f32.mxu1 %vm1584_vm1, %v8102_v60  ;;  %v9121_v50 = vmov %v9119_v55  ;;  %v3506_v35 = vmax.f32 %v3478_v62, %v8062_v24  ;;  %v3508_v18 = vmax.f32 %v3480_v30, %v8102_v60 }
 0x288   : > { %v2602_v58 = vsel %vm1002_vm11, %v2600_v42, %v2601_v54  ;;  %v2746_v16 = vsel %vm1147_vm3, %v2744_v39, %v2745_v1  ;;  %v8110_v5 = vmax.f32 %v2954_v8, %v3031_v43  ;;  %v2890_v19 = vsel %vm1292_vm6, %v2888_v20, %v2889_v21 }
 0x289   : > { %v2667_v9 = vmax.f32 %v7738_v10, %v2602_v58  ;;  %v3034_v51 = vsel %vm1437_vm8, %v3032_v3, %v3033_v26  ;;  %v3482_v10 = vmax.f32 %v8062_v24, %v8102_v60  ;;  %v2492_v17 = vsel %vm841_vm7, %v9121_v50, -inf }
 0x28a   : > { %5483 = vmatmul.mubr.msk.f32.gmra.mrb[14].mxu1 %vm1584_vm1, %v8110_v5  ;;  %v2603_v4 = vrot.slane %v2492_v17, 1  ;;  %v2747_v13 = vrot.slane %v2492_v17, 2  ;;  %v2891_v33 = vrot.slane %v2492_v17, 3  ;;  %v3035_v45 = vrot.slane %v2492_v17, 4 }
 0x28b   : > { %v2811_v63 = vmax.f32 %v2667_v9, %v2746_v16  ;;  %v3479_v49 = vmax.f32 %v8019_v29, %v8066_v7  ;;  %v3534_v53 = vmax.f32 %v3506_v35, %v8102_v60  ;;  %v3481_v46 = vmax.f32 %v8066_v7, %v8084_v11 }
 0x28c   : > { %v2604_v31 = vsel %vm1002_vm11, %v2601_v54, %v2603_v4  ;;  %v2748_v40 = vsel %vm1147_vm3, %v2745_v1, %v2747_v13  ;;  %v2892_v34 = vsel %vm1292_vm6, %v2889_v21, %v2891_v33  ;;  %v3036_v41 = vsel %vm1437_vm8, %v3033_v26, %v3035_v45 }
 0x28d   : > { %v2955_v25 = vmax.f32 %v2811_v63, %v2890_v19  ;;  %v2668_v52 = vmax.f32 %v2412_v38, %v2604_v31  ;;  %v3483_v42 = vmax.f32 %v8084_v11, %v8110_v5  ;;  %v3507_v43 = vmax.f32 %v3479_v49, %v8084_v11 }
 0x28e   : > { %v3509_v39 = vmax.f32 %v3481_v46, %v8110_v5  ;;  %v9122_v54 = vrot.slane %v7541_v61, 6  ;;  %v9123_v1 = vrot.slane %v7508_v27, 6  ;;  %v9126_v35 = vrot.slane %v7565_v6, 2 }
 0x28f   : > { %v3099_v55 = vmax.f32 %v2955_v25, %v3034_v51  ;;  %v2812_v21 = vmax.f32 %v2668_v52, %v2748_v40  ;;  %v3535_v9 = vmax.f32 %v3507_v43, %v8110_v5  ;;  %v9127_v43 = vrot.slane %v7565_v6, 3 }
 0x290   : > { %v3596_v20 = vsel %vm841_vm7, %v9123_v1, %v9122_v54  ;;  %v9124_v16 = vmov %v9123_v1 }
 0x291   : > { %5485 = vmatprep.mubr.msk.f32.mxu1 %vm1584_vm1, %v3099_v55  ;;  %v8146_v38 = vmax.f32 %v3482_v10, %v3099_v55  ;;  %v3536_v8 = vmax.f32 %v3508_v18, %v3099_v55  ;;  %v8148_v58 = vmax.f32 %v3534_v53, %v3099_v55  ;;  %v3690_v3 = vsel %vm841_vm7, -inf, %v9124_v16 }
 0x292   : > { %v3755_v26 = vrot.slane %v3596_v20, 1  ;;  %v3899_v61 = vrot.slane %v3596_v20, 2  ;;  %v2956_v63 = vmax.f32 %v2812_v21, %v2892_v34  ;;  %v3754_v51 = vrot.slane %v3690_v3, 1 }
 0x293   : > { %v8879_v19 = vrot.slane %v8148_v58, 6  ;;  %v8155_v62 = vrot.slane %v3536_v8, 6  ;;  %v8878_v30 = vrot.slane %v8146_v38, 6  ;;  %v9125_v10 = vrot.slane %v7565_v6, 1 }
 0x294   : > { %v3898_v17 = vrot.slane %v3690_v3, 2  ;;  %v3902_v18 = vsel %vm1147_vm3, %v3899_v61, %v9126_v35  ;;  %v3100_v33 = vmax.f32 %v2956_v63, %v3036_v41  ;;  %v3756_v45 = vsel %vm1002_vm11, %v3754_v51, %v3755_v26 }
 0x295   : > { %v3758_v50 = vsel %vm1002_vm11, %v3755_v26, %v9125_v10  ;;  %v8167_v4 = vsel %vm841_vm7, -inf, %v8879_v19  ;;  %v8171_v13 = vsel %vm841_vm7, -inf, %v8155_v62  ;;  %v8176_v25 = vsel %vm841_vm7, -inf, %v8878_v30 }
 0x296   : > { %v3900_v49 = vsel %vm1147_vm3, %v3898_v17, %v3899_v61  ;;  %v4042_v53 = vrot.slane %v3690_v3, 3  ;;  %v4043_v31 = vrot.slane %v3596_v20, 3  ;;  %5486 = vmatmul.mubr.msk.f32.gmra.mrb[16].mxu1 %vm1584_vm1, %v3100_v33  ;;  %v8181_v40 = vmax.f32 %v3483_v42, %v3100_v33 }
 0x297   : > { %v3537_v46 = vmax.f32 %v3509_v39, %v3100_v33  ;;  %v8183_v55 = vmax.f32 %v3535_v9, %v3100_v33  ;;  %v3866_v52 = vmax.f32 %v3690_v3, %v3756_v45  ;;  %v4186_v54 = vrot.slane %v3690_v3, 4 }
 0x298   : > { %v4044_v34 = vsel %vm1292_vm6, %v4042_v53, %v4043_v31  ;;  %v4046_v41 = vsel %vm1292_vm6, %v4043_v31, %v9127_v43  ;;  %v4187_v1 = vrot.slane %v3596_v20, 4  ;;  %v4189_v9 = vrot.slane %v7565_v6, 4 }
 0x299   : > { %v8190_v21 = vrot.slane %v3537_v46, 6  ;;  %v4010_v42 = vmax.f32 %v3866_v52, %v3900_v49  ;;  %v3867_v26 = vmax.f32 %v3596_v20, %v3758_v50  ;;  %v3512_v61 = vmax.f32 %v7508_v27, %v7552_v15  ;;  %v9128_v27 = vld [vmem:[#allocation23_spill] sm:$0xff] }
 0x29a   : > { %v4188_v39 = vsel %vm1437_vm8, %v4186_v54, %v4187_v1  ;;  %v3598_v51 = vrot.slane %v7633_v32, 6  ;;  %v3539_v3 = vmax.f32 %v7633_v32, %v9048_v36  ;;  %v3514_v10 = vmax.f32 %v7580_v59, %v7680_v57 }
 0x29b   : > { %v4154_v63 = vmax.f32 %v4010_v42, %v4044_v34  ;;  %v4190_v17 = vsel %vm1437_vm8, %v4187_v1, %v4189_v9  ;;  %v4011_v35 = vmax.f32 %v3867_v26, %v3902_v18  ;;  %v3597_v33 = vrot.slane %v3512_v61, 6 }
 0x29c   : > { %v3538_v45 = vmax.f32 %v3512_v61, %v7680_v57  ;;  %v3707_v20 = vsel %vm841_vm7, %v3598_v51, -inf  ;;  %v3601_v50 = vrot.slane %v3539_v3, 6  ;;  %v3515_v49 = vmax.f32 %v9128_v27, %v9048_v36 }
 0x29d   : > { %v4298_v6 = vmax.f32 %v4154_v63, %v4188_v39  ;;  %v4155_v53 = vmax.f32 %v4011_v35, %v4046_v41  ;;  %v3599_v31 = vsel %vm841_vm7, %v3597_v33, %v3598_v51  ;;  %v3691_v32 = vsel %vm841_vm7, -inf, %v3597_v33 }
 0x29e   : > { %v3762_v46 = vrot.slane %v3707_v20, 1  ;;  %v3759_v59 = vrot.slane %v3691_v32, 1  ;;  %v3760_v18 = vrot.slane %v3599_v31, 1  ;;  %v3903_v52 = vrot.slane %v3691_v32, 2 }
 0x29f   : > { %5490 = vmatprep.mubr.msk.f32.mxu1 %vm1584_vm1, %v4298_v6  ;;  %v3904_v34 = vrot.slane %v3599_v31, 2  ;;  %v4299_v43 = vmax.f32 %v4155_v53, %v4190_v17  ;;  %v4047_v54 = vrot.slane %v3691_v32, 3  ;;  %v4048_v1 = vrot.slane %v3599_v31, 3 }
 0x2a0   : > { %v4191_v42 = vrot.slane %v3691_v32, 4  ;;  %v3761_v39 = vsel %vm1002_vm11, %v3759_v59, %v3760_v18  ;;  %v4192_v41 = vrot.slane %v3599_v31, 4  ;;  %v3763_v26 = vsel %vm1002_vm11, %v3760_v18, %v3762_v46 }
 0x2a1   : > { %v3905_v9 = vsel %vm1147_vm3, %v3903_v52, %v3904_v34  ;;  %5491 = vmatmul.mubr.msk.f32.vlgmr.msra.gmra.mrb[18].mxu1 %vm1584_vm1, %v4299_v43  ;;  %v3868_v61 = vmax.f32 %v3691_v32, %v3761_v39  ;;  %v4049_v63 = vsel %vm1292_vm6, %v4047_v54, %v4048_v1  ;;  %v3869_v51 = vmax.f32 %v3599_v31, %v3763_v26  ;;  %v9129_v52 = vld [vmem:[#allocation29_spill] sm:$0xff] }
 0x2a2   : > { %v3906_v3 = vrot.slane %v3707_v20, 2  ;;  %v4193_v35 = vsel %vm1437_vm8, %v4191_v42, %v4192_v41  ;;  %v4050_v17 = vrot.slane %v3707_v20, 3  ;;  %v4194_v33 = vrot.slane %v3707_v20, 4 }
 0x2a3   : > { %v3600_v6 = vrot.slane %v3538_v45, 6  ;;  %v4012_v27 = vmax.f32 %v3868_v61, %v3905_v9  ;;  %v3708_v59 = vsel %vm841_vm7, %v3601_v50, -inf  ;;  %v3540_v30 = vmax.f32 %v3514_v10, %v9129_v52 }
 0x2a4   : > { %v3907_v53 = vsel %vm1147_vm3, %v3904_v34, %v3906_v3  ;;  %v4051_v18 = vsel %vm1292_vm6, %v4048_v1, %v4050_v17  ;;  %v4195_v32 = vsel %vm1437_vm8, %v4192_v41, %v4194_v33  ;;  %v3767_v17 = vrot.slane %v3708_v59, 1 }
 0x2a5   : > { %v4013_v46 = vmax.f32 %v3869_v51, %v3907_v53  ;;  %v3602_v31 = vsel %vm841_vm7, %v3600_v6, %v3601_v50  ;;  %v4156_v43 = vmax.f32 %v4012_v27, %v4049_v63  ;;  %v3692_v54 = vsel %vm841_vm7, -inf, %v3600_v6 }
 0x2a6   : > { %v3765_v42 = vrot.slane %v3602_v31, 1  ;;  %v3909_v20 = vrot.slane %v3602_v31, 2  ;;  %v3764_v39 = vrot.slane %v3692_v54, 1  ;;  %v3908_v9 = vrot.slane %v3692_v54, 2 }
 0x2a7   : > { %v4157_v45 = vmax.f32 %v4013_v46, %v4051_v18  ;;  %v4052_v34 = vrot.slane %v3692_v54, 3  ;;  %v4300_v26 = vmax.f32 %v4156_v43, %v4193_v35  ;;  %v4053_v61 = vrot.slane %v3602_v31, 3  ;;  %v9130_v46 = vld [vmem:[#allocation28_spill] sm:$0xff] }
 0x2a8   : > { %v4196_v3 = vrot.slane %v3692_v54, 4  ;;  %v4197_v10 = vrot.slane %v3602_v31, 4  ;;  %v3766_v1 = vsel %vm1002_vm11, %v3764_v39, %v3765_v42  ;;  %v3910_v41 = vsel %vm1147_vm3, %v3908_v9, %v3909_v20 }
 0x2a9   : > { %v4301_v51 = vmax.f32 %v4157_v45, %v4195_v32  ;;  %5493 = vmatprep.mubr.msk.f32.mxu1 %vm1584_vm1, %v4300_v26  ;;  %v3870_v50 = vmax.f32 %v3692_v54, %v3766_v1  ;;  %v4054_v63 = vsel %vm1292_vm6, %v4052_v34, %v4053_v61  ;;  %v3911_v6 = vrot.slane %v3708_v59, 2  ;;  %v9131_v26 = vld [vmem:[#allocation31_spill] sm:$0xff] }
 0x2aa   : > { %v4198_v33 = vsel %vm1437_vm8, %v4196_v3, %v4197_v10  ;;  %v3768_v35 = vsel %vm1002_vm11, %v3765_v42, %v3767_v17  ;;  %v4055_v27 = vrot.slane %v3708_v59, 3  ;;  %v4199_v53 = vrot.slane %v3708_v59, 4 }
 0x2ab   : > { %5494 = vmatmul.mubr.msk.f32.gmra.mrb[20].mxu1 %vm1584_vm1, %v4301_v51  ;;  %v3541_v18 = vmax.f32 %v3515_v49, %v9130_v46  ;;  %v4014_v32 = vmax.f32 %v3870_v50, %v3910_v41  ;;  %v3871_v43 = vmax.f32 %v3602_v31, %v3768_v35  ;;  %v3912_v45 = vsel %vm1147_vm3, %v3909_v20, %v3911_v6  ;;  %v9133_v49 = vld [vmem:[#allocation24_spill] sm:$0xff]  ;;  %v8242_v35 = vpop.f32.mrb[46].mxu0 }
 0x2ac   : > { %v3603_v39 = vrot.slane %v3540_v30, 6  ;;  %v4056_v54 = vsel %vm1292_vm6, %v4053_v61, %v4055_v27  ;;  %v4200_v9 = vsel %vm1437_vm8, %v4197_v10, %v4199_v53  ;;  %v9132_v3 = vmax.f32 %v9131_v26, %v7552_v15 }
 0x2ad   : > { %v3604_v34 = vrot.slane %v3541_v18, 6  ;;  %v4158_v42 = vmax.f32 %v4014_v32, %v4054_v63  ;;  %v4015_v1 = vmax.f32 %v3871_v43, %v3912_v45  ;;  %v3517_v31 = vmax.f32 %v9133_v49, %v9130_v46  ;;  %v8245_v32 = vpop.f32.mrb[47].mxu0 }
 0x2ae   : > { %v3488_v51 = vmax.f32 %v9132_v3, %v7680_v57  ;;  %v3693_v59 = vsel %vm841_vm7, -inf, %v3603_v39 }
 0x2af   : > { %v3605_v20 = vsel %vm841_vm7, %v3603_v39, %v3604_v34  ;;  %v3769_v30 = vrot.slane %v3693_v59, 1  ;;  %v3913_v41 = vrot.slane %v3693_v59, 2  ;;  %v4057_v61 = vrot.slane %v3693_v59, 3 }
 0x2b0   : > { %v4302_v17 = vmax.f32 %v4158_v42, %v4198_v33  ;;  %v4159_v10 = vmax.f32 %v4015_v1, %v4056_v54  ;;  %v3770_v50 = vrot.slane %v3605_v20, 1  ;;  %v3914_v6 = vrot.slane %v3605_v20, 2  ;;  %v8250_v54 = vpop.f32.mrb[48].mxu0 }
 0x2b1   : > { %v4058_v27 = vrot.slane %v3605_v20, 3  ;;  %v4201_v53 = vrot.slane %v3693_v59, 4  ;;  %v4202_v63 = vrot.slane %v3605_v20, 4  ;;  %v3709_v18 = vsel %vm841_vm7, %v3604_v34, -inf  ;;  %v8254_v49 = vpop.f32.mrb[49].mxu0 }
 0x2b2   : > { %5496 = vmatprep.mubr.msk.f32.mxu1 %vm1584_vm1, %v4302_v17  ;;  %v4303_v43 = vmax.f32 %v4159_v10, %v4200_v9  ;;  %v3771_v45 = vsel %vm1002_vm11, %v3769_v30, %v3770_v50  ;;  %v3915_v39 = vsel %vm1147_vm3, %v3913_v41, %v3914_v6  ;;  %v3772_v33 = vrot.slane %v3709_v18, 1  ;;  %v8259_v41 = vpop.f32.mrb[50].mxu0 }
 0x2b3   : > { %v3872_v26 = vmax.f32 %v3693_v59, %v3771_v45  ;;  %v4059_v3 = vsel %vm1292_vm6, %v4057_v61, %v4058_v27  ;;  %v4203_v42 = vsel %vm1437_vm8, %v4201_v53, %v4202_v63  ;;  %v3916_v1 = vrot.slane %v3709_v18, 2  ;;  %v8263_v53 = vpop.f32.mrb[51].mxu0 }
 0x2b4   : > { %5497 = vmatmul.mubr.msk.f32.gmra.mrb[22].mxu1 %vm1584_vm1, %v4303_v43  ;;  %v3773_v34 = vsel %vm1002_vm11, %v3770_v50, %v3772_v33  ;;  %v4060_v9 = vrot.slane %v3709_v18, 3  ;;  %v4204_v17 = vrot.slane %v3709_v18, 4  ;;  %v3516_v30 = vmax.f32 %v3488_v51, %v9129_v52  ;;  %9134 = vst [vmem:[#allocation22_spill] sm:$0xff] %v8263_v53 }
 0x2b5   : > { %v4016_v10 = vmax.f32 %v3872_v26, %v3915_v39  ;;  %v3873_v16 = vmax.f32 %v3605_v20, %v3773_v34  ;;  %v3917_v59 = vsel %vm1147_vm3, %v3914_v6, %v3916_v1  ;;  %v3543_v61 = vmax.f32 %v3517_v31, %v7864_v44  ;;  %v9135_v20 = vld [vmem:[#allocation30_spill] sm:$0xff] }
 0x2b6   : > { %v4061_v45 = vsel %vm1292_vm6, %v4058_v27, %v4060_v9  ;;  %v4205_v43 = vsel %vm1437_vm8, %v4202_v63, %v4204_v17  ;;  %v3542_v50 = vmax.f32 %v3516_v30, %v7862_v12  ;;  %v3462_v18 = vmax.f32 %v7552_v15, %v7680_v57 }
 0x2b7   : > { %v4160_v51 = vmax.f32 %v4016_v10, %v4059_v3  ;;  %v4017_v33 = vmax.f32 %v3873_v16, %v3917_v59  ;;  %v3607_v19 = vrot.slane %v3543_v61, 6  ;;  %v9136_v6 = vmax.f32 %v9135_v20, %v9048_v36 }
 0x2b8   : > { %v3606_v31 = vrot.slane %v3542_v50, 6  ;;  %v3490_v26 = vmax.f32 %v3462_v18, %v9129_v52  ;;  %v3464_v27 = vmax.f32 %v7680_v57, %v9129_v52  ;;  %v3465_v63 = vmax.f32 %v9048_v36, %v9130_v46 }
 0x2b9   : > { %v3491_v39 = vmax.f32 %v9136_v6, %v9130_v46  ;;  %v4304_v1 = vmax.f32 %v4160_v51, %v4203_v42  ;;  %v4161_v34 = vmax.f32 %v4017_v33, %v4061_v45  ;;  %v3710_v15 = vsel %vm841_vm7, %v3607_v19, -inf }
 0x2ba   : > { %v3608_v3 = vsel %vm841_vm7, %v3606_v31, %v3607_v19  ;;  %v3694_v9 = vsel %vm841_vm7, -inf, %v3606_v31  ;;  %v3777_v17 = vrot.slane %v3710_v15, 1  ;;  %v3921_v30 = vrot.slane %v3710_v15, 2 }
 0x2bb   : > { %v3519_v16 = vmax.f32 %v3491_v39, %v7864_v44  ;;  %5499 = vmatprep.mubr.msk.f32.mxu1 %vm1584_vm1, %v4304_v1  ;;  %v4305_v10 = vmax.f32 %v4161_v34, %v4205_v43  ;;  %v3774_v59 = vrot.slane %v3694_v9, 1  ;;  %v3775_v57 = vrot.slane %v3608_v3, 1 }
 0x2bc   : > { %v3918_v61 = vrot.slane %v3694_v9, 2  ;;  %v3919_v50 = vrot.slane %v3608_v3, 2  ;;  %v4062_v36 = vrot.slane %v3694_v9, 3  ;;  %v4063_v42 = vrot.slane %v3608_v3, 3 }
 0x2bd   : > { %v4206_v45 = vrot.slane %v3694_v9, 4  ;;  %5500 = vmatmul.mubr.msk.f32.gmra.mrb[24].mxu1 %vm1584_vm1, %v4305_v10  ;;  %v3776_v18 = vsel %vm1002_vm11, %v3774_v59, %v3775_v57  ;;  %v4207_v51 = vrot.slane %v3608_v3, 4  ;;  %v3778_v19 = vsel %vm1002_vm11, %v3775_v57, %v3777_v17 }
 0x2be   : > { %v4065_v33 = vrot.slane %v3710_v15, 3  ;;  %v3874_v20 = vmax.f32 %v3694_v9, %v3776_v18  ;;  %v3920_v6 = vsel %vm1147_vm3, %v3918_v61, %v3919_v50  ;;  %v4064_v43 = vsel %vm1292_vm6, %v4062_v36, %v4063_v42 }
 0x2bf   : > { %v3875_v39 = vmax.f32 %v3608_v3, %v3778_v19  ;;  %v4208_v31 = vsel %vm1437_vm8, %v4206_v45, %v4207_v51  ;;  %v3922_v1 = vsel %vm1147_vm3, %v3919_v50, %v3921_v30  ;;  %v4209_v8 = vrot.slane %v3710_v15, 4 }
 0x2c0   : > { %v4066_v34 = vsel %vm1292_vm6, %v4063_v42, %v4065_v33  ;;  %v4018_v10 = vmax.f32 %v3874_v20, %v3920_v6  ;;  %v3518_v59 = vmax.f32 %v3490_v26, %v7862_v12  ;;  %v3545_v17 = vmax.f32 %v3519_v16, %v7902_v48 }
 0x2c1   : > { %v4019_v53 = vmax.f32 %v3875_v39, %v3922_v1  ;;  %v4210_v9 = vsel %vm1437_vm8, %v4207_v51, %v4209_v8  ;;  %v3492_v57 = vmax.f32 %v3464_v27, %v7862_v12  ;;  %v3493_v61 = vmax.f32 %v3465_v63, %v7864_v44 }
 0x2c2   : > { %v3466_v3 = vmax.f32 %v9129_v52, %v7862_v12  ;;  %v4162_v36 = vmax.f32 %v4018_v10, %v4064_v43  ;;  %v3544_v50 = vmax.f32 %v3518_v59, %v7894_v14  ;;  %v3610_v15 = vrot.slane %v3545_v17, 6 }
 0x2c3   : > { %v4163_v30 = vmax.f32 %v4019_v53, %v4066_v34  ;;  %v3520_v42 = vmax.f32 %v3492_v57, %v7894_v14  ;;  %v3521_v26 = vmax.f32 %v3493_v61, %v7902_v48  ;;  %v3467_v16 = vmax.f32 %v9130_v46, %v7864_v44 }
 0x2c4   : > { %v8305_v8 = vmax.f32 %v3466_v3, %v7894_v14  ;;  %v4306_v27 = vmax.f32 %v4162_v36, %v4208_v31  ;;  %v3609_v45 = vrot.slane %v3544_v50, 6  ;;  %v3711_v52 = vsel %vm841_vm7, %v3610_v15, -inf  ;;  %v8318_v36 = vpop.f32.mrb[52].mxu0 }
 0x2c5   : > { %v4307_v63 = vmax.f32 %v4163_v30, %v4210_v9  ;;  %v3782_v18 = vrot.slane %v3711_v52, 1  ;;  %v3926_v53 = vrot.slane %v3711_v52, 2  ;;  %v4070_v51 = vrot.slane %v3711_v52, 3 }
 0x2c6   : > { %v4214_v19 = vrot.slane %v3711_v52, 4  ;;  %5502 = vmatprep.mubr.msk.f32.mxu1 %vm1584_vm1, %v4306_v27  ;;  %v3611_v33 = vsel %vm841_vm7, %v3609_v45, %v3610_v15  ;;  %v3695_v20 = vsel %vm841_vm7, -inf, %v3609_v45  ;;  %v3546_v46 = vmax.f32 %v3520_v42, %v7932_v37 }
 0x2c7   : > { %v3547_v6 = vmax.f32 %v3521_v26, %v7934_v23  ;;  %5503 = vmatmul.mubr.msk.f32.gmra.mrb[26].mxu1 %vm1584_vm1, %v4307_v63  ;;  %v3779_v43 = vrot.slane %v3695_v20, 1  ;;  %v3780_v39 = vrot.slane %v3611_v33, 1  ;;  %v3923_v31 = vrot.slane %v3695_v20, 2  ;;  %v8322_v26 = vpop.f32.mrb[53].mxu0 }
 0x2c8   : > { %v3924_v1 = vrot.slane %v3611_v33, 2  ;;  %v4067_v34 = vrot.slane %v3695_v20, 3  ;;  %v4068_v10 = vrot.slane %v3611_v33, 3  ;;  %v4211_v59 = vrot.slane %v3695_v20, 4 }
 0x2c9   : > { %v4212_v17 = vrot.slane %v3611_v33, 4  ;;  %v3781_v9 = vsel %vm1002_vm11, %v3779_v43, %v3780_v39  ;;  %v3783_v61 = vsel %vm1002_vm11, %v3780_v39, %v3782_v18  ;;  %v3612_v45 = vrot.slane %v3546_v46, 6 }
 0x2ca   : > { %v3925_v57 = vsel %vm1147_vm3, %v3923_v31, %v3924_v1  ;;  %v3927_v3 = vsel %vm1147_vm3, %v3924_v1, %v3926_v53  ;;  %v3876_v30 = vmax.f32 %v3695_v20, %v3781_v9  ;;  %v4069_v50 = vsel %vm1292_vm6, %v4067_v34, %v4068_v10 }
 0x2cb   : > { %v4213_v15 = vsel %vm1437_vm8, %v4211_v59, %v4212_v17  ;;  %v3877_v42 = vmax.f32 %v3611_v33, %v3783_v61  ;;  %v4071_v27 = vsel %vm1292_vm6, %v4068_v10, %v4070_v51  ;;  %v4215_v63 = vsel %vm1437_vm8, %v4212_v17, %v4214_v19 }
 0x2cc   : > { %v3613_v52 = vrot.slane %v3547_v6, 6  ;;  %v4020_v43 = vmax.f32 %v3876_v30, %v3925_v57  ;;  %v3495_v53 = vmax.f32 %v3467_v16, %v7902_v48  ;;  %v3522_v20 = vmax.f32 %v8305_v8, %v7932_v37 }
 0x2cd   : > { %v4021_v18 = vmax.f32 %v3877_v42, %v3927_v3  ;;  %v3696_v31 = vsel %vm841_vm7, -inf, %v3612_v45  ;;  %v3468_v51 = vmax.f32 %v7862_v12, %v7894_v14 }
 0x2ce   : > { %v3614_v39 = vsel %vm841_vm7, %v3612_v45, %v3613_v52  ;;  %v3712_v33 = vsel %vm841_vm7, %v3613_v52, -inf  ;;  %v4164_v1 = vmax.f32 %v4020_v43, %v4069_v50  ;;  %v3784_v46 = vrot.slane %v3696_v31, 1 }
 0x2cf   : > { %v4165_v19 = vmax.f32 %v4021_v18, %v4071_v27  ;;  %v3785_v6 = vrot.slane %v3614_v39, 1  ;;  %v3928_v34 = vrot.slane %v3696_v31, 2  ;;  %v3929_v10 = vrot.slane %v3614_v39, 2  ;;  %v8342_v18 = vpop.f32.mrb[54].mxu0 }
 0x2d0   : > { %v4072_v59 = vrot.slane %v3696_v31, 3  ;;  %v4073_v16 = vrot.slane %v3614_v39, 3  ;;  %v4308_v17 = vmax.f32 %v4164_v1, %v4213_v15  ;;  %v4216_v57 = vrot.slane %v3696_v31, 4 }
 0x2d1   : > { %v4309_v9 = vmax.f32 %v4165_v19, %v4215_v63  ;;  %v3786_v8 = vsel %vm1002_vm11, %v3784_v46, %v3785_v6  ;;  %v3930_v3 = vsel %vm1147_vm3, %v3928_v34, %v3929_v10  ;;  %v4217_v42 = vrot.slane %v3614_v39, 4 }
 0x2d2   : > { %v3878_v61 = vmax.f32 %v3696_v31, %v3786_v8  ;;  %v4074_v30 = vsel %vm1292_vm6, %v4072_v59, %v4073_v16  ;;  %5505 = vmatprep.mubr.msk.f32.mxu1 %vm1584_vm1, %v4308_v17  ;;  %v3787_v12 = vrot.slane %v3712_v33, 1  ;;  %v3931_v50 = vrot.slane %v3712_v33, 2 }
 0x2d3   : > { %v4075_v27 = vrot.slane %v3712_v33, 3  ;;  %v4219_v45 = vrot.slane %v3712_v33, 4  ;;  %5506 = vmatmul.mubr.msk.f32.gmra.mrb[28].mxu1 %vm1584_vm1, %v4309_v9  ;;  %v4218_v15 = vsel %vm1437_vm8, %v4216_v57, %v4217_v42  ;;  %v3523_v63 = vmax.f32 %v3495_v53, %v7934_v23  ;;  %v8348_v33 = vpop.f32.mrb[55].mxu0 }
 0x2d4   : > { %v4022_v52 = vmax.f32 %v3878_v61, %v3930_v3  ;;  %v3548_v43 = vmax.f32 %v3522_v20, %v7952_v0  ;;  %v3788_v31 = vsel %vm1002_vm11, %v3785_v6, %v3787_v12  ;;  %v3932_v1 = vsel %vm1147_vm3, %v3929_v10, %v3931_v50 }
 0x2d5   : > { %v4076_v19 = vsel %vm1292_vm6, %v4073_v16, %v4075_v27  ;;  %v4220_v46 = vsel %vm1437_vm8, %v4217_v42, %v4219_v45  ;;  %v3879_v59 = vmax.f32 %v3614_v39, %v3788_v31  ;;  %v3549_v17 = vmax.f32 %v3523_v63, %v7958_v22 }
 0x2d6   : > { %v4166_v34 = vmax.f32 %v4022_v52, %v4074_v30  ;;  %v3615_v9 = vrot.slane %v3548_v43, 6  ;;  %v3469_v53 = vmax.f32 %v7864_v44, %v7902_v48  ;;  %v3496_v20 = vmax.f32 %v3468_v51, %v7932_v37 }
 0x2d7   : > { %v3470_v6 = vmax.f32 %v7894_v14, %v7932_v37  ;;  %v3471_v10 = vmax.f32 %v7902_v48, %v7934_v23  ;;  %v4023_v8 = vmax.f32 %v3879_v59, %v3932_v1  ;;  %v3616_v57 = vrot.slane %v3549_v17, 6 }
 0x2d8   : > { %v4310_v16 = vmax.f32 %v4166_v34, %v4218_v15  ;;  %v3697_v61 = vsel %vm841_vm7, -inf, %v3615_v9  ;;  %v3497_v14 = vmax.f32 %v3469_v53, %v7934_v23 }
 0x2d9   : > { %v3789_v39 = vrot.slane %v3697_v61, 1  ;;  %v3933_v3 = vrot.slane %v3697_v61, 2  ;;  %v4077_v30 = vrot.slane %v3697_v61, 3  ;;  %v4221_v42 = vrot.slane %v3697_v61, 4 }
 0x2da   : > { %5508 = vmatprep.mubr.msk.f32.mxu1 %vm1584_vm1, %v4310_v16  ;;  %v4167_v44 = vmax.f32 %v4023_v8, %v4076_v19  ;;  %v3617_v51 = vsel %vm841_vm7, %v3615_v9, %v3616_v57  ;;  %v3713_v12 = vsel %vm841_vm7, %v3616_v57, -inf  ;;  %v3524_v8 = vmax.f32 %v3496_v20, %v7952_v0 }
 0x2db   : > { %v3790_v50 = vrot.slane %v3617_v51, 1  ;;  %v3934_v48 = vrot.slane %v3617_v51, 2  ;;  %v4078_v27 = vrot.slane %v3617_v51, 3  ;;  %v4222_v45 = vrot.slane %v3617_v51, 4 }
 0x2dc   : > { %v4311_v52 = vmax.f32 %v4167_v44, %v4220_v46  ;;  %v3792_v15 = vrot.slane %v3713_v12, 1  ;;  %v3936_v63 = vrot.slane %v3713_v12, 2  ;;  %v4080_v43 = vrot.slane %v3713_v12, 3 }
 0x2dd   : > { %v3791_v31 = vsel %vm1002_vm11, %v3789_v39, %v3790_v50  ;;  %v3935_v1 = vsel %vm1147_vm3, %v3933_v3, %v3934_v48  ;;  %v4079_v19 = vsel %vm1292_vm6, %v4077_v30, %v4078_v27  ;;  %v4223_v34 = vsel %vm1437_vm8, %v4221_v42, %v4222_v45  ;;  %v8377_v42 = vpop.f32.mrb[56].mxu0 }
 0x2de   : > { %5509 = vmatmul.mubr.msk.f32.gmra.mrb[30].mxu1 %vm1584_vm1, %v4311_v52  ;;  %v3880_v59 = vmax.f32 %v3697_v61, %v3791_v31  ;;  %v3793_v17 = vsel %vm1002_vm11, %v3790_v50, %v3792_v15  ;;  %v3937_v9 = vsel %vm1147_vm3, %v3934_v48, %v3936_v63  ;;  %v4081_v46 = vsel %vm1292_vm6, %v4078_v27, %v4080_v43  ;;  %v8382_v20 = vpop.f32.mrb[57].mxu0 }
 0x2df   : > { %v3881_v53 = vmax.f32 %v3617_v51, %v3793_v17  ;;  %v4224_v16 = vrot.slane %v3713_v12, 4  ;;  %v3525_v57 = vmax.f32 %v3497_v14, %v7958_v22  ;;  %v3498_v3 = vmax.f32 %v3470_v6, %v7952_v0 }
 0x2e0   : > { %v4024_v39 = vmax.f32 %v3880_v59, %v3935_v1  ;;  %v3499_v30 = vmax.f32 %v3471_v10, %v7958_v22  ;;  %v3472_v61 = vmax.f32 %v7932_v37, %v7952_v0  ;;  %v3550_v51 = vmax.f32 %v3524_v8, %v7974_v28 }
 0x2e1   : > { %v4025_v44 = vmax.f32 %v3881_v53, %v3937_v9  ;;  %v4225_v50 = vsel %vm1437_vm8, %v4222_v45, %v4224_v16  ;;  %v3551_v12 = vmax.f32 %v3525_v57, %v7976_v2  ;;  %v3526_v48 = vmax.f32 %v3498_v3, %v7974_v28 }
 0x2e2   : > { %v4168_v14 = vmax.f32 %v4024_v39, %v4079_v19  ;;  %v3527_v6 = vmax.f32 %v3499_v30, %v7976_v2  ;;  %v3473_v10 = vmax.f32 %v7934_v23, %v7958_v22  ;;  %v3618_v27 = vrot.slane %v3550_v51, 6 }
 0x2e3   : > { %v4169_v37 = vmax.f32 %v4025_v44, %v4081_v46  ;;  %v3619_v52 = vrot.slane %v3551_v12, 6  ;;  %v8389_v15 = vmax.f32 %v3472_v61, %v7974_v28  ;;  %v3552_v63 = vmax.f32 %v3526_v48, %v8004_v56 }
 0x2e4   : > { %v4312_v45 = vmax.f32 %v4168_v14, %v4223_v34  ;;  %v3553_v43 = vmax.f32 %v3527_v6, %v8019_v29  ;;  %v8394_v31 = vmax.f32 %v3473_v10, %v7976_v2  ;;  %v3698_v59 = vsel %vm841_vm7, -inf, %v3618_v27 }
 0x2e5   : > { %v4313_v1 = vmax.f32 %v4169_v37, %v4225_v50  ;;  %v3620_v19 = vsel %vm841_vm7, %v3618_v27, %v3619_v52  ;;  %v3714_v23 = vsel %vm841_vm7, %v3619_v52, -inf  ;;  %v3794_v17 = vrot.slane %v3698_v59, 1 }
 0x2e6   : > { %5511 = vmatprep.mubr.msk.f32.mxu1 %vm1584_vm1, %v4312_v45  ;;  %v3795_v9 = vrot.slane %v3620_v19, 1  ;;  %v3938_v46 = vrot.slane %v3698_v59, 2  ;;  %v3939_v34 = vrot.slane %v3620_v19, 2  ;;  %v4082_v53 = vrot.slane %v3698_v59, 3 }
 0x2e7   : > { %5512 = vmatmul.mubr.msk.f32.gmra.mrb[0].mxu1 %vm1584_vm1, %v4313_v1  ;;  %v4083_v16 = vrot.slane %v3620_v19, 3  ;;  %v4226_v8 = vrot.slane %v3698_v59, 4  ;;  %v4227_v57 = vrot.slane %v3620_v19, 4  ;;  %v3797_v30 = vrot.slane %v3714_v23, 1 }
 0x2e8   : > { %v3796_v39 = vsel %vm1002_vm11, %v3794_v17, %v3795_v9  ;;  %v3940_v3 = vsel %vm1147_vm3, %v3938_v46, %v3939_v34  ;;  %v3941_v61 = vrot.slane %v3714_v23, 2  ;;  %v4085_v12 = vrot.slane %v3714_v23, 3 }
 0x2e9   : > { %v3882_v44 = vmax.f32 %v3698_v59, %v3796_v39  ;;  %v4084_v50 = vsel %vm1292_vm6, %v4082_v53, %v4083_v16  ;;  %v4228_v51 = vsel %vm1437_vm8, %v4226_v8, %v4227_v57  ;;  %v3798_v14 = vsel %vm1002_vm11, %v3795_v9, %v3797_v30 }
 0x2ea   : > { %v3942_v48 = vsel %vm1147_vm3, %v3939_v34, %v3941_v61  ;;  %v4229_v6 = vrot.slane %v3714_v23, 4  ;;  %v3621_v10 = vrot.slane %v3552_v63, 6  ;;  %v3883_v27 = vmax.f32 %v3620_v19, %v3798_v14  ;;  %v8415_v34 = vpop.f32.mrb[58].mxu0 }
 0x2eb   : > { %v4026_v37 = vmax.f32 %v3882_v44, %v3940_v3  ;;  %v4086_v52 = vsel %vm1292_vm6, %v4083_v16, %v4085_v12  ;;  %v3622_v45 = vrot.slane %v3553_v43, 6  ;;  %v3528_v17 = vmax.f32 %v8389_v15, %v8004_v56 }
 0x2ec   : > { %v4230_v1 = vsel %vm1437_vm8, %v4227_v57, %v4229_v6  ;;  %v3699_v59 = vsel %vm841_vm7, -inf, %v3621_v10  ;;  %v3529_v46 = vmax.f32 %v8394_v31, %v8019_v29  ;;  %v4027_v53 = vmax.f32 %v3883_v27, %v3942_v48  ;;  %v8417_v57 = vpop.f32.mrb[59].mxu0 }
 0x2ed   : > { %v4170_v9 = vmax.f32 %v4026_v37, %v4084_v50  ;;  %v3623_v23 = vsel %vm841_vm7, %v3621_v10, %v3622_v45  ;;  %v3799_v63 = vrot.slane %v3699_v59, 1  ;;  %v3943_v16 = vrot.slane %v3699_v59, 2 }
 0x2ee   : > { %v3800_v19 = vrot.slane %v3623_v23, 1  ;;  %v3944_v43 = vrot.slane %v3623_v23, 2  ;;  %v4087_v8 = vrot.slane %v3699_v59, 3  ;;  %v4171_v3 = vmax.f32 %v4027_v53, %v4086_v52 }
 0x2ef   : > { %v4314_v39 = vmax.f32 %v4170_v9, %v4228_v51  ;;  %v4088_v30 = vrot.slane %v3623_v23, 3  ;;  %v4231_v15 = vrot.slane %v3699_v59, 4  ;;  %v4232_v44 = vrot.slane %v3623_v23, 4 }
 0x2f0   : > { %v3801_v61 = vsel %vm1002_vm11, %v3799_v63, %v3800_v19  ;;  %v3945_v31 = vsel %vm1147_vm3, %v3943_v16, %v3944_v43  ;;  %v3715_v50 = vsel %vm841_vm7, %v3622_v45, -inf  ;;  %v4315_v12 = vmax.f32 %v4171_v3, %v4230_v1 }
 0x2f1   : > { %5514 = vmatprep.mubr.msk.f32.mxu1 %vm1584_vm1, %v4314_v39  ;;  %v3884_v14 = vmax.f32 %v3699_v59, %v3801_v61  ;;  %v4089_v48 = vsel %vm1292_vm6, %v4087_v8, %v4088_v30  ;;  %v3802_v6 = vrot.slane %v3715_v50, 1  ;;  %v4233_v10 = vsel %vm1437_vm8, %v4231_v15, %v4232_v44 }
 0x2f2   : > { %v3946_v51 = vrot.slane %v3715_v50, 2  ;;  %v4090_v37 = vrot.slane %v3715_v50, 3  ;;  %v4234_v27 = vrot.slane %v3715_v50, 4  ;;  %5515 = vmatmul.mubr.msk.f32.gmra.mrb[2].mxu1 %vm1584_vm1, %v4315_v12  ;;  %v3554_v53 = vmax.f32 %v3528_v17, %v8033_v47 }
 0x2f3   : > { %v4028_v52 = vmax.f32 %v3884_v14, %v3945_v31  ;;  %v3803_v9 = vsel %vm1002_vm11, %v3800_v19, %v3802_v6  ;;  %v3555_v45 = vmax.f32 %v3529_v46, %v8066_v7  ;;  %v3474_v15 = vmax.f32 %v7952_v0, %v7974_v28 }
 0x2f4   : > { %v3885_v63 = vmax.f32 %v3623_v23, %v3803_v9  ;;  %v3947_v1 = vsel %vm1147_vm3, %v3944_v43, %v3946_v51  ;;  %v4091_v59 = vsel %vm1292_vm6, %v4088_v30, %v4090_v37  ;;  %v4235_v16 = vsel %vm1437_vm8, %v4232_v44, %v4234_v27 }
 0x2f5   : > { %v4172_v8 = vmax.f32 %v4028_v52, %v4089_v48  ;;  %v3624_v39 = vrot.slane %v3554_v53, 6  ;;  %v3625_v3 = vrot.slane %v3555_v45, 6  ;;  %v3475_v19 = vmax.f32 %v7958_v22, %v7976_v2  ;;  %v8447_v53 = vpop.f32.mrb[60].mxu0 }
 0x2f6   : > { %v4029_v61 = vmax.f32 %v3885_v63, %v3947_v1  ;;  %v3476_v17 = vmax.f32 %v7974_v28, %v8004_v56  ;;  %v3477_v46 = vmax.f32 %v7976_v2, %v8019_v29 }
 0x2f7   : > { %v4316_v23 = vmax.f32 %v4172_v8, %v4233_v10  ;;  %v3626_v43 = vsel %vm841_vm7, %v3624_v39, %v3625_v3  ;;  %v3700_v30 = vsel %vm841_vm7, -inf, %v3624_v39  ;;  %v3716_v31 = vsel %vm841_vm7, %v3625_v3, -inf }
 0x2f8   : > { %v4173_v44 = vmax.f32 %v4029_v61, %v4091_v59  ;;  %v3804_v50 = vrot.slane %v3700_v30, 1  ;;  %v3805_v0 = vrot.slane %v3626_v43, 1  ;;  %v3948_v12 = vrot.slane %v3700_v30, 2 }
 0x2f9   : > { %5517 = vmatprep.mubr.msk.f32.mxu1 %vm1584_vm1, %v4316_v23  ;;  %v3949_v22 = vrot.slane %v3626_v43, 2  ;;  %v4092_v14 = vrot.slane %v3700_v30, 3  ;;  %v4093_v48 = vrot.slane %v3626_v43, 3  ;;  %v4236_v28 = vrot.slane %v3700_v30, 4 }
 0x2fa   : > { %v4317_v6 = vmax.f32 %v4173_v44, %v4235_v16  ;;  %v3806_v2 = vsel %vm1002_vm11, %v3804_v50, %v3805_v0  ;;  %v4237_v10 = vrot.slane %v3626_v43, 4  ;;  %v3807_v51 = vrot.slane %v3716_v31, 1  ;;  %v8452_v16 = vpop.f32.mrb[61].mxu0 }
 0x2fb   : > { %v3886_v37 = vmax.f32 %v3700_v30, %v3806_v2  ;;  %v3950_v27 = vsel %vm1147_vm3, %v3948_v12, %v3949_v22  ;;  %v4094_v52 = vsel %vm1292_vm6, %v4092_v14, %v4093_v48  ;;  %v3951_v9 = vrot.slane %v3716_v31, 2 }
 0x2fc   : > { %5518 = vmatmul.mubr.msk.f32.gmra.mrb[4].mxu1 %vm1584_vm1, %v4317_v6  ;;  %v4238_v45 = vsel %vm1437_vm8, %v4236_v28, %v4237_v10  ;;  %v3808_v63 = vsel %vm1002_vm11, %v3805_v0, %v3807_v51  ;;  %v4095_v1 = vrot.slane %v3716_v31, 3  ;;  %v4239_v59 = vrot.slane %v3716_v31, 4 }
 0x2fd   : > { %v4030_v8 = vmax.f32 %v3886_v37, %v3950_v27  ;;  %v3887_v39 = vmax.f32 %v3626_v43, %v3808_v63  ;;  %v3952_v3 = vsel %vm1147_vm3, %v3949_v22, %v3951_v9  ;;  %v3502_v61 = vmax.f32 %v3474_v15, %v8004_v56 }
 0x2fe   : > { %v4096_v23 = vsel %vm1292_vm6, %v4093_v48, %v4095_v1  ;;  %v4240_v30 = vsel %vm1437_vm8, %v4237_v10, %v4239_v59  ;;  %v3503_v44 = vmax.f32 %v3475_v19, %v8019_v29  ;;  %v3504_v50 = vmax.f32 %v3476_v17, %v8033_v47 }
 0x2ff   : > { %v4174_v12 = vmax.f32 %v4030_v8, %v4094_v52  ;;  %v4031_v0 = vmax.f32 %v3887_v39, %v3952_v3  ;;  %v3530_v31 = vmax.f32 %v3502_v61, %v8033_v47  ;;  %v3505_v14 = vmax.f32 %v3477_v46, %v8066_v7 }
 0x300   : > { %v3531_v43 = vmax.f32 %v3503_v44, %v8066_v7  ;;  %v3532_v22 = vmax.f32 %v3504_v50, %v8062_v24  ;;  %v9137_v56 = vrot.slane %v8183_v55, 6  ;;  %v9138_v15 = vrot.slane %v8148_v58, 6 }
 0x301   : > { %v3819_v29 = vrot.slane %v8167_v4, 1  ;;  %v4318_v19 = vmax.f32 %v4174_v12, %v4238_v45  ;;  %v4175_v17 = vmax.f32 %v4031_v0, %v4096_v23  ;;  %v3556_v28 = vmax.f32 %v3530_v31, %v8062_v24 }
 0x302   : > { %v8469_v48 = vsel %vm841_vm7, %v9138_v15, %v9137_v56  ;;  %v3533_v47 = vmax.f32 %v3505_v14, %v8084_v11  ;;  %v3557_v46 = vmax.f32 %v3531_v43, %v8084_v11  ;;  %v3558_v7 = vmax.f32 %v3532_v22, %v8102_v60 }
 0x303   : > { %v3820_v6 = vrot.slane %v8469_v48, 1  ;;  %v3963_v2 = vrot.slane %v8167_v4, 2  ;;  %5520 = vmatprep.mubr.msk.f32.mxu1 %vm1584_vm1, %v4318_v19  ;;  %v4319_v58 = vmax.f32 %v4175_v17, %v4240_v30  ;;  %v3627_v10 = vrot.slane %v3556_v28, 6 }
 0x304   : > { %v3559_v51 = vmax.f32 %v3533_v47, %v8110_v5  ;;  %v3964_v37 = vrot.slane %v8469_v48, 2  ;;  %v3628_v27 = vrot.slane %v3557_v46, 6  ;;  %v3630_v24 = vrot.slane %v3558_v7, 6 }
 0x305   : > { %v8484_v11 = vsel %vm1002_vm11, %v3819_v29, %v3820_v6  ;;  %v4107_v60 = vrot.slane %v8167_v4, 3  ;;  %5521 = vmatmul.mubr.msk.f32.gmra.mrb[6].mxu1 %vm1584_vm1, %v4319_v58  ;;  %v3701_v52 = vsel %vm841_vm7, -inf, %v3627_v10 }
 0x306   : > { %v3631_v9 = vrot.slane %v3559_v51, 6  ;;  %v3892_v45 = vmax.f32 %v8167_v4, %v8484_v11  ;;  %v3965_v5 = vsel %vm1147_vm3, %v3963_v2, %v3964_v37  ;;  %v3629_v63 = vsel %vm841_vm7, %v3627_v10, %v3628_v27  ;;  %v8508_v10 = vpop.f32.mrb[62].mxu0 }
 0x307   : > { %v3809_v1 = vrot.slane %v3701_v52, 1  ;;  %v3953_v59 = vrot.slane %v3701_v52, 2  ;;  %v4097_v8 = vrot.slane %v3701_v52, 3  ;;  %v3810_v39 = vrot.slane %v3629_v63, 1 }
 0x308   : > { %v3954_v3 = vrot.slane %v3629_v63, 2  ;;  %v4098_v61 = vrot.slane %v3629_v63, 3  ;;  %v4241_v23 = vrot.slane %v3701_v52, 4  ;;  %v4242_v30 = vrot.slane %v3629_v63, 4 }
 0x309   : > { %v3717_v44 = vsel %vm841_vm7, %v3628_v27, -inf  ;;  %v8497_v50 = vsel %vm841_vm7, %v3630_v24, %v3631_v9  ;;  %v3702_v12 = vsel %vm841_vm7, -inf, %v3630_v24  ;;  %v3811_v0 = vsel %vm1002_vm11, %v3809_v1, %v3810_v39 }
 0x30a   : > { %v3955_v31 = vsel %vm1147_vm3, %v3953_v59, %v3954_v3  ;;  %v4099_v14 = vsel %vm1292_vm6, %v4097_v8, %v4098_v61  ;;  %v3812_v43 = vrot.slane %v3717_v44, 1  ;;  %v3888_v22 = vmax.f32 %v3701_v52, %v3811_v0  ;;  %v8513_v52 = vpop.f32.mrb[63].mxu0 }
 0x30b   : > { %v4243_v56 = vsel %vm1437_vm8, %v4241_v23, %v4242_v30  ;;  %v3956_v15 = vrot.slane %v3717_v44, 2  ;;  %v4100_v29 = vrot.slane %v3717_v44, 3  ;;  %v4244_v17 = vrot.slane %v3717_v44, 4 }
 0x30c   : > { %v3813_v19 = vsel %vm1002_vm11, %v3810_v39, %v3812_v43  ;;  %v3814_v28 = vrot.slane %v3702_v12, 1  ;;  %v3815_v47 = vrot.slane %v8497_v50, 1  ;;  %v4032_v46 = vmax.f32 %v3888_v22, %v3955_v31  ;;  %v8519_v43 = vpop.f32.mrb[32].mxu0 }
 0x30d   : > { %v3889_v7 = vmax.f32 %v3629_v63, %v3813_v19  ;;  %v3957_v2 = vsel %vm1147_vm3, %v3954_v3, %v3956_v15  ;;  %v4101_v58 = vsel %vm1292_vm6, %v4098_v61, %v4100_v29  ;;  %v4245_v51 = vsel %vm1437_vm8, %v4242_v30, %v4244_v17  ;;  %v8523_v19 = vpop.f32.mrb[33].mxu0 }
 0x30e   : > { %v3816_v27 = vsel %vm1002_vm11, %v3814_v28, %v3815_v47  ;;  %v3958_v24 = vrot.slane %v3702_v12, 2  ;;  %v3959_v11 = vrot.slane %v8497_v50, 2  ;;  %v4176_v1 = vmax.f32 %v4032_v46, %v4099_v14 }
 0x30f   : > { %v4033_v59 = vmax.f32 %v3889_v7, %v3957_v2  ;;  %v3890_v8 = vmax.f32 %v3702_v12, %v3816_v27  ;;  %v4102_v39 = vrot.slane %v3702_v12, 3  ;;  %v4103_v3 = vrot.slane %v8497_v50, 3 }
 0x310   : > { %v3960_v63 = vsel %vm1147_vm3, %v3958_v24, %v3959_v11  ;;  %v4246_v61 = vrot.slane %v3702_v12, 4  ;;  %v4247_v23 = vrot.slane %v8497_v50, 4  ;;  %v4320_v44 = vmax.f32 %v4176_v1, %v4243_v56 }
 0x311   : > { %v4177_v30 = vmax.f32 %v4033_v59, %v4101_v58  ;;  %v4034_v0 = vmax.f32 %v3890_v8, %v3960_v63  ;;  %v3718_v31 = vsel %vm841_vm7, %v3631_v9, -inf  ;;  %v4104_v22 = vsel %vm1292_vm6, %v4102_v39, %v4103_v3 }
 0x312   : > { %v4248_v14 = vsel %vm1437_vm8, %v4246_v61, %v4247_v23  ;;  %v3817_v15 = vrot.slane %v3718_v31, 1  ;;  %v3961_v29 = vrot.slane %v3718_v31, 2  ;;  %5523 = vmatprep.mubr.msk.f32.mxu1 %vm1584_vm1, %v4320_v44  ;;  %v4105_v28 = vrot.slane %v3718_v31, 3 }
 0x313   : > { %v4321_v12 = vmax.f32 %v4177_v30, %v4245_v51  ;;  %v4178_v17 = vmax.f32 %v4034_v0, %v4104_v22  ;;  %v4249_v56 = vrot.slane %v3718_v31, 4  ;;  %v4036_v7 = vmax.f32 %v3892_v45, %v3965_v5  ;;  %v8533_v51 = vpop.f32.mrb[34].mxu0 }
 0x314   : > { %v3818_v46 = vsel %vm1002_vm11, %v3815_v47, %v3817_v15  ;;  %v3962_v9 = vsel %vm1147_vm3, %v3959_v11, %v3961_v29  ;;  %v4108_v2 = vrot.slane %v8469_v48, 3  ;;  %v4106_v24 = vsel %vm1292_vm6, %v4103_v3, %v4105_v28  ;;  %v8543_v8 = vpop.f32.mrb[35].mxu0 }
 0x315   : > { %5524 = vmatmul.mubr.msk.f32.gmra.mrb[8].mxu1 %vm1584_vm1, %v4321_v12  ;;  %v4322_v58 = vmax.f32 %v4178_v17, %v4248_v14  ;;  %v3891_v27 = vmax.f32 %v8497_v50, %v3818_v46  ;;  %v4250_v1 = vsel %vm1437_vm8, %v4247_v23, %v4249_v56  ;;  %v4251_v11 = vrot.slane %v8167_v4, 4  ;;  %v8556_v31 = vpop.f32.mrb[36].mxu0 }
 0x316   : > { %v4109_v47 = vsel %vm1292_vm6, %v4107_v60, %v4108_v2  ;;  %v4252_v45 = vrot.slane %v8469_v48, 4  ;;  %v9139_v5 = vrot.slane %v8183_v55, 6  ;;  %v3638_v4 = vsel %vm841_vm7, %v8155_v62, %v8190_v21  ;;  %v8562_v29 = vpop.f32.mrb[37].mxu0 }
 0x317   : > { %5526 = vmatprep.mubr.msk.f32.mxu1 %vm1584_vm1, %v4322_v58  ;;  %v4035_v50 = vmax.f32 %v3891_v27, %v3962_v9  ;;  %v4180_v39 = vmax.f32 %v4036_v7, %v4109_v47  ;;  %v3824_v62 = vrot.slane %v8171_v13, 1  ;;  %v3825_v17 = vrot.slane %v3638_v4, 1  ;;  %v8572_v27 = vpop.f32.mrb[38].mxu0 }
 0x318   : > { %v3719_v59 = vsel %vm841_vm7, %v9139_v5, -inf  ;;  %v4253_v61 = vsel %vm1437_vm8, %v4251_v11, %v4252_v45  ;;  %v3969_v28 = vrot.slane %v3638_v4, 2  ;;  %v4113_v46 = vrot.slane %v3638_v4, 3 }
 0x319   : > { %v3822_v63 = vrot.slane %v3719_v59, 1  ;;  %v3966_v3 = vrot.slane %v3719_v59, 2  ;;  %v4110_v23 = vrot.slane %v3719_v59, 3  ;;  %v4254_v60 = vrot.slane %v3719_v59, 4 }
 0x31a   : > { %v4179_v44 = vmax.f32 %v4035_v50, %v4106_v24  ;;  %v4324_v55 = vmax.f32 %v4180_v39, %v4253_v61  ;;  %v4256_v9 = vrot.slane %v8171_v13, 4  ;;  %v3720_v58 = vsel %vm841_vm7, %v8190_v21, -inf }
 0x31b   : > { %v3823_v30 = vsel %vm1002_vm11, %v3820_v6, %v3822_v63  ;;  %v3967_v0 = vsel %vm1147_vm3, %v3964_v37, %v3966_v3  ;;  %v4111_v14 = vsel %vm1292_vm6, %v4108_v2, %v4110_v23  ;;  %v4255_v15 = vsel %vm1437_vm8, %v4252_v45, %v4254_v60  ;;  %v8577_v45 = vpop.f32.mrb[39].mxu0 }
 0x31c   : > { %v3893_v22 = vmax.f32 %v8469_v48, %v3823_v30  ;;  %v4323_v12 = vmax.f32 %v4179_v44, %v4250_v1  ;;  %v3968_v6 = vrot.slane %v8171_v13, 2  ;;  %v4112_v37 = vrot.slane %v8171_v13, 3 }
 0x31d   : > { %v3826_v48 = vsel %vm1002_vm11, %v3824_v62, %v3825_v17  ;;  %v4257_v2 = vrot.slane %v3638_v4, 4  ;;  %v3827_v11 = vrot.slane %v3720_v58, 1  ;;  %v3971_v59 = vrot.slane %v3720_v58, 2 }
 0x31e   : > { %v4037_v56 = vmax.f32 %v3893_v22, %v3967_v0  ;;  %5527 = vmatmul.mubr.msk.f32.gmra.mrb[10].mxu1 %vm1584_vm1, %v4323_v12  ;;  %v3970_v7 = vsel %vm1147_vm3, %v3968_v6, %v3969_v28  ;;  %v3894_v1 = vmax.f32 %v8171_v13, %v3826_v48  ;;  %v4114_v47 = vsel %vm1292_vm6, %v4112_v37, %v4113_v46  ;;  %v8589_v0 = vpop.f32.mrb[40].mxu0 }
 0x31f   : > { %5529 = vmatprep.mubr.msk.f32.mxu1 %vm1584_vm1, %v4324_v55  ;;  %v4258_v5 = vsel %vm1437_vm8, %v4256_v9, %v4257_v2  ;;  %v4115_v50 = vrot.slane %v3720_v58, 3  ;;  %v4259_v39 = vrot.slane %v3720_v58, 4  ;;  %v3828_v21 = vsel %vm1002_vm11, %v3825_v17, %v3827_v11 }
 0x320   : > { %v4181_v24 = vmax.f32 %v4037_v56, %v4111_v14  ;;  %v4038_v3 = vmax.f32 %v3894_v1, %v3970_v7  ;;  %v9140_v61 = vrot.slane %v8181_v40, 6  ;;  %v9141_v23 = vrot.slane %v8146_v38, 6  ;;  %v8594_v38 = vpop.f32.mrb[41].mxu0 }
 0x321   : > { %v3895_v60 = vmax.f32 %v3638_v4, %v3828_v21  ;;  %v3972_v44 = vsel %vm1147_vm3, %v3969_v28, %v3971_v59  ;;  %v4116_v55 = vsel %vm1292_vm6, %v4113_v46, %v4115_v50  ;;  %v4260_v30 = vsel %vm1437_vm8, %v4257_v2, %v4259_v39 }
 0x322   : > { %v4325_v63 = vmax.f32 %v4181_v24, %v4255_v15  ;;  %v3641_v13 = vsel %vm841_vm7, %v9141_v23, %v9140_v61  ;;  %v4182_v22 = vmax.f32 %v4038_v3, %v4114_v47  ;;  %v3829_v14 = vrot.slane %v8176_v25, 1  ;;  %v8607_v47 = vpop.f32.mrb[42].mxu0 }
 0x323   : > { %v3830_v15 = vrot.slane %v3641_v13, 1  ;;  %v3973_v62 = vrot.slane %v8176_v25, 2  ;;  %v4039_v12 = vmax.f32 %v3895_v60, %v3972_v44  ;;  %v3974_v4 = vrot.slane %v3641_v13, 2  ;;  %v8609_v39 = vpop.f32.mrb[43].mxu0 }
 0x324   : > { %5530 = vmatmul.mubr.msk.f32.gmra.mrb[12].mxu1 %vm1584_vm1, %v4325_v63  ;;  %v4117_v17 = vrot.slane %v8176_v25, 3  ;;  %v4118_v6 = vrot.slane %v3641_v13, 3  ;;  %v4326_v28 = vmax.f32 %v4182_v22, %v4258_v5  ;;  %v4261_v37 = vrot.slane %v8176_v25, 4  ;;  %v8616_v44 = vpop.f32.mrb[44].mxu0 }
 0x325   : > { %v3831_v56 = vsel %vm1002_vm11, %v3829_v14, %v3830_v15  ;;  %v4262_v46 = vrot.slane %v3641_v13, 4  ;;  %v4183_v9 = vmax.f32 %v4039_v12, %v4116_v55  ;;  %v3975_v7 = vsel %vm1147_vm3, %v3973_v62, %v3974_v4 }
 0x326   : > { %v3896_v48 = vmax.f32 %v8176_v25, %v3831_v56  ;;  %v4119_v2 = vsel %vm1292_vm6, %v4117_v17, %v4118_v6  ;;  %5532 = vmatprep.mubr.msk.f32.mxu1 %vm1584_vm1, %v4326_v28  ;;  %v9142_v24 = vmov %v9140_v61 }
 0x327   : > { %v4263_v58 = vsel %vm1437_vm8, %v4261_v37, %v4262_v46  ;;  %v3721_v1 = vsel %vm841_vm7, %v9142_v24, -inf  ;;  %v4327_v11 = vmax.f32 %v4183_v9, %v4260_v30  ;;  %v8618_v30 = vpop.f32.mrb[45].mxu0 }
 0x328   : > { %v4040_v5 = vmax.f32 %v3896_v48, %v3975_v7  ;;  %v3832_v59 = vrot.slane %v3721_v1, 1  ;;  %v3976_v50 = vrot.slane %v3721_v1, 2  ;;  %v4120_v25 = vrot.slane %v3721_v1, 3 }
 0x329   : > { %v4264_v63 = vrot.slane %v3721_v1, 4  ;;  %5533 = vmatmul.mubr.msk.f32.gmra.mrb[14].mxu1 %vm1584_vm1, %v4327_v11 }
 0x32a   : > { %v4184_v3 = vmax.f32 %v4040_v5, %v4119_v2  ;;  %v3833_v21 = vsel %vm1002_vm11, %v3830_v15, %v3832_v59  ;;  %v3977_v61 = vsel %vm1147_vm3, %v3974_v4, %v3976_v50  ;;  %v4121_v23 = vsel %vm1292_vm6, %v4118_v6, %v4120_v25 }
 0x32b   : > { %v3897_v40 = vmax.f32 %v3641_v13, %v3833_v21  ;;  %v4265_v60 = vsel %vm1437_vm8, %v4262_v46, %v4264_v63  ;;  %v8625_v13 = vld [vmem:[%s8814_s4] ss:$0 sm:$0xff] }
 0x32c   : > { %v4328_v55 = vmax.f32 %v4184_v3, %v4263_v58 }
 0x32d   : > { %v4041_v22 = vmax.f32 %v3897_v40, %v3977_v61 }
 0x32e   : > { %5535 = vmatprep.mubr.msk.f32.mxu1 %vm1584_vm1, %v4328_v55 }
 0x32f   : > { %v4185_v14 = vmax.f32 %v4041_v22, %v4121_v23 }
 0x331   : > { %v4329_v62 = vmax.f32 %v4185_v14, %v4265_v60 }
 0x333   : > { %5536 = vmatmul.mubr.msk.f32.gmra.mrb[16].mxu1 %vm1584_vm1, %v4329_v62 }
 0x374   : > { %v5492_v15 = vpop.f32.mrb[18].mxu1 }
 0x375   : > { %v5544_v12 = vadd.f32 %v5492_v15, %v8519_v43  ;;  %v4494_v4 = vpop.f32.mrb[19].mxu1 }
 0x376   : > { %v5545_v17 = vadd.f32 %v4494_v4, %v8523_v19 }
 0x377   : > { %v4693_v6 = vadd.f32 %v5544_v12, %v8625_v13 }
 0x378   : > { %v4692_v28 = vadd.f32 %v5545_v17, %v8625_v13 }
 0x379   : > { %vm4725_vm7 = vcmp.ge.f32.partialorder %v4693_v6, 0.0  ;;  %v4757_v56 = vmul.f32 0.1, %v4693_v6 }
 0x37a   : > { %vm4724_vm11 = vcmp.ge.f32.partialorder %v4692_v28, 0.0  ;;  %v4756_v37 = vmul.f32 0.1, %v4692_v28 }
 0x37b   : > { %v4789_v46 = vsel %vm4725_vm7, %v4693_v6, %v4757_v56 }
 0x37c   : > { %4821 = vst.msk [vmem:[%s8633_s7 + $0x8] sm:$0xff] %vm284_vm0, %v4789_v46  ;;  %v4788_v43 = vsel %vm4724_vm11, %v4692_v28, %v4756_v37 }
 0x37d   : > { %4820 = vst.msk [vmem:[%s8633_s7] sm:$0xff] %vm284_vm0, %v4788_v43 }
 0x37e   : > { %v5495_v19 = vpop.f32.mrb[20].mxu1 }
 0x37f   : > { %v5546_v9 = vadd.f32 %v5495_v19, %v8533_v51  ;;  %v4504_v48 = vpop.f32.mrb[21].mxu1 }
 0x380   : > { %v5547_v7 = vadd.f32 %v4504_v48, %v8543_v8 }
 0x381   : > { %v4695_v2 = vadd.f32 %v5546_v9, %v8625_v13 }
 0x382   : > { %v4694_v58 = vadd.f32 %v5547_v7, %v8625_v13 }
 0x383   : > { %vm4727_vm1 = vcmp.ge.f32.partialorder %v4695_v2, 0.0  ;;  %v4759_v24 = vmul.f32 0.1, %v4695_v2 }
 0x384   : > { %vm4726_vm3 = vcmp.ge.f32.partialorder %v4694_v58, 0.0  ;;  %v4758_v1 = vmul.f32 0.1, %v4694_v58 }
 0x385   : > { %v4791_v11 = vsel %vm4727_vm1, %v4695_v2, %v4759_v24 }
 0x386   : > { %4823 = vst.msk [vmem:[%s8633_s7 + $0x18] sm:$0xff] %vm284_vm0, %v4791_v11  ;;  %v4790_v5 = vsel %vm4726_vm3, %v4694_v58, %v4758_v1 }
 0x387   : > { %4822 = vst.msk [vmem:[%s8633_s7 + $0x10] sm:$0xff] %vm284_vm0, %v4790_v5  ;;  %v5498_v51 = vpop.f32.mrb[22].mxu1 }
 0x388   : > { %v5548_v59 = vadd.f32 %v5498_v51, %v8556_v31  ;;  %v4514_v8 = vpop.f32.mrb[23].mxu1 }
 0x389   : > { %v5549_v50 = vadd.f32 %v4514_v8, %v8562_v29 }
 0x38a   : > { %v4697_v25 = vadd.f32 %v5548_v59, %v8625_v13 }
 0x38b   : > { %v4696_v63 = vadd.f32 %v5549_v50, %v8625_v13 }
 0x38c   : > { %vm4729_vm6 = vcmp.ge.f32.partialorder %v4697_v25, 0.0  ;;  %v4761_v3 = vmul.f32 0.1, %v4697_v25 }
 0x38d   : > { %vm4728_vm8 = vcmp.ge.f32.partialorder %v4696_v63, 0.0  ;;  %v4760_v21 = vmul.f32 0.1, %v4696_v63 }
 0x38e   : > { %v4793_v61 = vsel %vm4729_vm6, %v4697_v25, %v4761_v3 }
 0x38f   : > { %4825 = vst.msk [vmem:[%s8633_s7 + $0x28] sm:$0xff] %vm284_vm0, %v4793_v61  ;;  %v4792_v40 = vsel %vm4728_vm8, %v4696_v63, %v4760_v21 }
 0x390   : > { %4824 = vst.msk [vmem:[%s8633_s7 + $0x20] sm:$0xff] %vm284_vm0, %v4792_v40  ;;  %v5501_v31 = vpop.f32.mrb[24].mxu1 }
 0x391   : > { %v5550_v23 = vadd.f32 %v5501_v31, %v8572_v27  ;;  %v4524_v29 = vpop.f32.mrb[25].mxu1 }
 0x392   : > { %v5551_v60 = vadd.f32 %v4524_v29, %v8577_v45 }
 0x393   : > { %v4699_v55 = vadd.f32 %v5550_v23, %v8625_v13 }
 0x394   : > { %v4698_v22 = vadd.f32 %v5551_v60, %v8625_v13 }
 0x395   : > { %vm4731_vm4 = vcmp.ge.f32.partialorder %v4699_v55, 0.0  ;;  %v4763_v14 = vmul.f32 0.1, %v4699_v55 }
 0x396   : > { %vm4730_vm5 = vcmp.ge.f32.partialorder %v4698_v22, 0.0  ;;  %v4762_v62 = vmul.f32 0.1, %v4698_v22 }
 0x397   : > { %v4795_v15 = vsel %vm4731_vm4, %v4699_v55, %v4763_v14 }
 0x398   : > { %4827 = vst.msk [vmem:[%s8633_s7 + $0x38] sm:$0xff] %vm284_vm0, %v4795_v15  ;;  %v4794_v12 = vsel %vm4730_vm5, %v4698_v22, %v4762_v62 }
 0x399   : > { %4826 = vst.msk [vmem:[%s8633_s7 + $0x30] sm:$0xff] %vm284_vm0, %v4794_v12 }
 0x39a   : > { %v5504_v27 = vpop.f32.mrb[26].mxu1 }
 0x39b   : > { %v5552_v4 = vadd.f32 %v5504_v27, %v8589_v0  ;;  %v4534_v45 = vpop.f32.mrb[27].mxu1 }
 0x39c   : > { %v5553_v17 = vadd.f32 %v4534_v45, %v8594_v38 }
 0x39d   : > { %v4701_v6 = vadd.f32 %v5552_v4, %v8625_v13 }
 0x39e   : > { %v4700_v28 = vadd.f32 %v5553_v17, %v8625_v13  ;;  %v9143_v17 = vld [vmem:[#allocation22_spill] sm:$0xff] }
 0x39f   : > { %vm4733_vm9 = vcmp.ge.f32.partialorder %v4701_v6, 0.0  ;;  %v4765_v56 = vmul.f32 0.1, %v4701_v6 }
 0x3a0   : > { %vm4732_vm10 = vcmp.ge.f32.partialorder %v4700_v28, 0.0  ;;  %v4764_v37 = vmul.f32 0.1, %v4700_v28 }
 0x3a1   : > { %v4797_v46 = vsel %vm4733_vm9, %v4701_v6, %v4765_v56 }
 0x3a2   : > { %4829 = vst.msk [vmem:[%s8633_s7 + $0x48] sm:$0xff] %vm284_vm0, %v4797_v46  ;;  %v4796_v43 = vsel %vm4732_vm10, %v4700_v28, %v4764_v37 }
 0x3a3   : > { %4828 = vst.msk [vmem:[%s8633_s7 + $0x40] sm:$0xff] %vm284_vm0, %v4796_v43 }
 0x3a6   : > { %v5507_v0 = vpop.f32.mrb[28].mxu1 }
 0x3a7   : > { %v5554_v19 = vadd.f32 %v5507_v0, %v8607_v47  ;;  %v4544_v38 = vpop.f32.mrb[29].mxu1 }
 0x3a8   : > { %v5555_v9 = vadd.f32 %v4544_v38, %v8609_v39 }
 0x3a9   : > { %v4703_v48 = vadd.f32 %v5554_v19, %v8625_v13 }
 0x3aa   : > { %v4702_v7 = vadd.f32 %v5555_v9, %v8625_v13 }
 0x3ab   : > { %vm4735_vm12 = vcmp.ge.f32.partialorder %v4703_v48, 0.0  ;;  %v4767_v2 = vmul.f32 0.1, %v4703_v48 }
 0x3ac   : > { %vm4734_vm13 = vcmp.ge.f32.partialorder %v4702_v7, 0.0  ;;  %v4766_v58 = vmul.f32 0.1, %v4702_v7 }
 0x3ad   : > { %v4799_v24 = vsel %vm4735_vm12, %v4703_v48, %v4767_v2 }
 0x3ae   : > { %4831 = vst.msk [vmem:[%s8633_s7 + $0x58] sm:$0xff] %vm284_vm0, %v4799_v24  ;;  %v4798_v1 = vsel %vm4734_vm13, %v4702_v7, %v4766_v58 }
 0x3af   : > { %4830 = vst.msk [vmem:[%s8633_s7 + $0x50] sm:$0xff] %vm284_vm0, %v4798_v1 }
 0x3b1   : > { %v5510_v47 = vpop.f32.mrb[30].mxu1 }
 0x3b2   : > { %v5556_v11 = vadd.f32 %v5510_v47, %v8616_v44  ;;  %v4554_v39 = vpop.f32.mrb[31].mxu1 }
 0x3b3   : > { %v5557_v5 = vadd.f32 %v4554_v39, %v8618_v30 }
 0x3b4   : > { %v4705_v51 = vadd.f32 %v5556_v11, %v8625_v13 }
 0x3b5   : > { %v4704_v59 = vadd.f32 %v5557_v5, %v8625_v13 }
 0x3b6   : > { %vm4737_vm14 = vcmp.ge.f32.partialorder %v4705_v51, 0.0  ;;  %v4769_v8 = vmul.f32 0.1, %v4705_v51 }
 0x3b7   : > { %vm4736_vm15 = vcmp.ge.f32.partialorder %v4704_v59, 0.0  ;;  %v4768_v50 = vmul.f32 0.1, %v4704_v59 }
 0x3b8   : > { %v4801_v25 = vsel %vm4737_vm14, %v4705_v51, %v4769_v8 }
 0x3b9   : > { %4833 = vst.msk [vmem:[%s8633_s7 + $0x68] sm:$0xff] %vm284_vm0, %v4801_v25  ;;  %v4800_v63 = vsel %vm4736_vm15, %v4704_v59, %v4768_v50 }
 0x3ba   : > { %4832 = vst.msk [vmem:[%s8633_s7 + $0x60] sm:$0xff] %vm284_vm0, %v4800_v63  ;;  %v5513_v44 = vpop.f32.mrb[0].mxu1 }
 0x3bb   : > { %v5558_v3 = vadd.f32 %v5513_v44, %v8242_v35  ;;  %v4564_v30 = vpop.f32.mrb[1].mxu1 }
 0x3bc   : > { %v5559_v21 = vadd.f32 %v4564_v30, %v8245_v32 }
 0x3bd   : > { %v4707_v61 = vadd.f32 %v5558_v3, %v8625_v13 }
 0x3be   : > { %v4706_v40 = vadd.f32 %v5559_v21, %v8625_v13 }
 0x3bf   : > { %vm4739_vm2 = vcmp.ge.f32.partialorder %v4707_v61, 0.0  ;;  %v4771_v31 = vmul.f32 0.1, %v4707_v61 }
 0x3c0   : > { %vm4738_vm7 = vcmp.ge.f32.partialorder %v4706_v40, 0.0  ;;  %v4770_v23 = vmul.f32 0.1, %v4706_v40 }
 0x3c1   : > { %v4803_v29 = vsel %vm4739_vm2, %v4707_v61, %v4771_v31 }
 0x3c2   : > { %4835 = vst.msk [vmem:[%s8633_s7 + $0x78] sm:$0xff] %vm284_vm0, %v4803_v29  ;;  %v4802_v60 = vsel %vm4738_vm7, %v4706_v40, %v4770_v23 }
 0x3c3   : > { %4834 = vst.msk [vmem:[%s8633_s7 + $0x70] sm:$0xff] %vm284_vm0, %v4802_v60 }
 0x3c5   : > { %v5516_v35 = vpop.f32.mrb[2].mxu1 }
 0x3c6   : > { %v5560_v55 = vadd.f32 %v5516_v35, %v8250_v54  ;;  %v4574_v32 = vpop.f32.mrb[3].mxu1 }
 0x3c7   : > { %v5561_v22 = vadd.f32 %v4574_v32, %v8254_v49 }
 0x3c8   : > { %v4709_v14 = vadd.f32 %v5560_v55, %v8625_v13 }
 0x3c9   : > { %v4708_v62 = vadd.f32 %v5561_v22, %v8625_v13 }
 0x3ca   : > { %vm4741_vm11 = vcmp.ge.f32.partialorder %v4709_v14, 0.0  ;;  %v4773_v15 = vmul.f32 0.1, %v4709_v14 }
 0x3cb   : > { %vm4740_vm1 = vcmp.ge.f32.partialorder %v4708_v62, 0.0  ;;  %v4772_v12 = vmul.f32 0.1, %v4708_v62 }
 0x3cc   : > { %v4805_v27 = vsel %vm4741_vm11, %v4709_v14, %v4773_v15 }
 0x3cd   : > { %4837 = vst.msk [vmem:[%s8633_s7 + $0x88] sm:$0xff] %vm284_vm0, %v4805_v27  ;;  %v4804_v4 = vsel %vm4740_vm1, %v4708_v62, %v4772_v12 }
 0x3ce   : > { %4836 = vst.msk [vmem:[%s8633_s7 + $0x80] sm:$0xff] %vm284_vm0, %v4804_v4 }
 0x3cf   : > { %v5519_v54 = vpop.f32.mrb[4].mxu1 }
 0x3d0   : > { %v5562_v45 = vadd.f32 %v5519_v54, %v8259_v41  ;;  %v4584_v49 = vpop.f32.mrb[5].mxu1 }
 0x3d1   : > { %v5563_v6 = vadd.f32 %v4584_v49, %v9143_v17 }
 0x3d2   : > { %v4711_v28 = vadd.f32 %v5562_v45, %v8625_v13 }
 0x3d3   : > { %v4710_v56 = vadd.f32 %v5563_v6, %v8625_v13 }
 0x3d4   : > { %vm4743_vm3 = vcmp.ge.f32.partialorder %v4711_v28, 0.0  ;;  %v4775_v37 = vmul.f32 0.1, %v4711_v28 }
 0x3d5   : > { %vm4742_vm6 = vcmp.ge.f32.partialorder %v4710_v56, 0.0  ;;  %v4774_v46 = vmul.f32 0.1, %v4710_v56 }
 0x3d6   : > { %v4807_v43 = vsel %vm4743_vm3, %v4711_v28, %v4775_v37 }
 0x3d7   : > { %4839 = vst.msk [vmem:[%s8633_s7 + $0x98] sm:$0xff] %vm284_vm0, %v4807_v43  ;;  %v4806_v0 = vsel %vm4742_vm6, %v4710_v56, %v4774_v46 }
 0x3d8   : > { %4838 = vst.msk [vmem:[%s8633_s7 + $0x90] sm:$0xff] %vm284_vm0, %v4806_v0  ;;  %v5522_v41 = vpop.f32.mrb[6].mxu1 }
 0x3d9   : > { %v5564_v19 = vadd.f32 %v5522_v41, %v8318_v36  ;;  %v4594_v38 = vpop.f32.mrb[7].mxu1 }
 0x3da   : > { %v5565_v9 = vadd.f32 %v4594_v38, %v8322_v26 }
 0x3db   : > { %v4713_v48 = vadd.f32 %v5564_v19, %v8625_v13 }
 0x3dc   : > { %v4712_v7 = vadd.f32 %v5565_v9, %v8625_v13 }
 0x3dd   : > { %vm4745_vm8 = vcmp.ge.f32.partialorder %v4713_v48, 0.0  ;;  %v4777_v2 = vmul.f32 0.1, %v4713_v48 }
 0x3de   : > { %vm4744_vm4 = vcmp.ge.f32.partialorder %v4712_v7, 0.0  ;;  %v4776_v58 = vmul.f32 0.1, %v4712_v7 }
 0x3df   : > { %v4809_v24 = vsel %vm4745_vm8, %v4713_v48, %v4777_v2 }
 0x3e0   : > { %4841 = vst.msk [vmem:[%s8633_s7 + $0xa8] sm:$0xff] %vm284_vm0, %v4809_v24  ;;  %v4808_v1 = vsel %vm4744_vm4, %v4712_v7, %v4776_v58 }
 0x3e1   : > { %4840 = vst.msk [vmem:[%s8633_s7 + $0xa0] sm:$0xff] %vm284_vm0, %v4808_v1 }
 0x3e8   : > { %v5525_v36 = vpop.f32.mrb[8].mxu1 }
 0x3e9   : > { %v5566_v47 = vadd.f32 %v5525_v36, %v8342_v18  ;;  %v4604_v26 = vpop.f32.mrb[9].mxu1 }
 0x3ea   : > { %v5567_v11 = vadd.f32 %v4604_v26, %v8348_v33 }
 0x3eb   : > { %v4715_v39 = vadd.f32 %v5566_v47, %v8625_v13 }
 0x3ec   : > { %v4714_v5 = vadd.f32 %v5567_v11, %v8625_v13 }
 0x3ed   : > { %vm4747_vm5 = vcmp.ge.f32.partialorder %v4715_v39, 0.0  ;;  %v4779_v51 = vmul.f32 0.1, %v4715_v39 }
 0x3ee   : > { %vm4746_vm9 = vcmp.ge.f32.partialorder %v4714_v5, 0.0  ;;  %v4778_v59 = vmul.f32 0.1, %v4714_v5 }
 0x3ef   : > { %v4811_v8 = vsel %vm4747_vm5, %v4715_v39, %v4779_v51 }
 0x3f0   : > { %4843 = vst.msk [vmem:[%s8633_s7 + $0xb8] sm:$0xff] %vm284_vm0, %v4811_v8  ;;  %v4810_v50 = vsel %vm4746_vm9, %v4714_v5, %v4778_v59 }
 0x3f1   : > { %v5528_v25 = vpop.f32.mrb[10].mxu1  ;;  %4842 = vst.msk [vmem:[%s8633_s7 + $0xb0] sm:$0xff] %vm284_vm0, %v4810_v50 }
 0x3f2   : > { %v5568_v18 = vadd.f32 %v5528_v25, %v8377_v42  ;;  %v4614_v63 = vpop.f32.mrb[11].mxu1 }
 0x3f3   : > { %v5569_v33 = vadd.f32 %v4614_v63, %v8382_v20 }
 0x3f4   : > { %v4717_v44 = vadd.f32 %v5568_v18, %v8625_v13 }
 0x3f5   : > { %v4716_v3 = vadd.f32 %v5569_v33, %v8625_v13 }
 0x3f6   : > { %vm4749_vm10 = vcmp.ge.f32.partialorder %v4717_v44, 0.0  ;;  %v4781_v30 = vmul.f32 0.1, %v4717_v44 }
 0x3f7   : > { %v5531_v21 = vpop.f32.mrb[12].mxu1  ;;  %vm4748_vm12 = vcmp.ge.f32.partialorder %v4716_v3, 0.0  ;;  %v4780_v61 = vmul.f32 0.1, %v4716_v3 }
 0x3f8   : > { %v5570_v40 = vadd.f32 %v5531_v21, %v8415_v34  ;;  %v4624_v31 = vpop.f32.mrb[13].mxu1  ;;  %v4813_v23 = vsel %vm4749_vm10, %v4717_v44, %v4781_v30 }
 0x3f9   : > { %v5571_v42 = vadd.f32 %v4624_v31, %v8417_v57  ;;  %4845 = vst.msk [vmem:[%s8633_s7 + $0xc8] sm:$0xff] %vm284_vm0, %v4813_v23  ;;  %v4812_v20 = vsel %vm4748_vm12, %v4716_v3, %v4780_v61 }
 0x3fa   : > { %v4719_v29 = vadd.f32 %v5570_v40, %v8625_v13  ;;  %4844 = vst.msk [vmem:[%s8633_s7 + $0xc0] sm:$0xff] %vm284_vm0, %v4812_v20 }
 0x3fb   : > { %v4718_v60 = vadd.f32 %v5571_v42, %v8625_v13 }
 0x3fc   : > { %vm4751_vm13 = vcmp.ge.f32.partialorder %v4719_v29, 0.0  ;;  %v4783_v35 = vmul.f32 0.1, %v4719_v29  ;;  %v5534_v32 = vpop.f32.mrb[14].mxu1 }
 0x3fd   : > { %vm4750_vm14 = vcmp.ge.f32.partialorder %v4718_v60, 0.0  ;;  %v4782_v55 = vmul.f32 0.1, %v4718_v60  ;;  %v5572_v22 = vadd.f32 %v5534_v32, %v8447_v53  ;;  %v4634_v14 = vpop.f32.mrb[15].mxu1 }
 0x3fe   : > { %v4815_v34 = vsel %vm4751_vm13, %v4719_v29, %v4783_v35  ;;  %v5573_v62 = vadd.f32 %v4634_v14, %v8452_v16 }
 0x3ff   : > { %4847 = vst.msk [vmem:[%s8633_s7 + $0xd8] sm:$0xff] %vm284_vm0, %v4815_v34  ;;  %v4814_v57 = vsel %vm4750_vm14, %v4718_v60, %v4782_v55  ;;  %v4721_v15 = vadd.f32 %v5572_v22, %v8625_v13 }
 0x400   : > { %4846 = vst.msk [vmem:[%s8633_s7 + $0xd0] sm:$0xff] %vm284_vm0, %v4814_v57  ;;  %v4720_v12 = vadd.f32 %v5573_v62, %v8625_v13 }
 0x401   : > { %vm4753_vm15 = vcmp.ge.f32.partialorder %v4721_v15, 0.0  ;;  %v4785_v27 = vmul.f32 0.1, %v4721_v15 }
 0x402   : > { %vm4752_vm2 = vcmp.ge.f32.partialorder %v4720_v12, 0.0  ;;  %v4784_v4 = vmul.f32 0.1, %v4720_v12 }
 0x403   : > { %v4817_v54 = vsel %vm4753_vm15, %v4721_v15, %v4785_v27 }
 0x404   : > { %4849 = vst.msk [vmem:[%s8633_s7 + $0xe8] sm:$0xff] %vm284_vm0, %v4817_v54  ;;  %v4816_v45 = vsel %vm4752_vm2, %v4720_v12, %v4784_v4 }
 0x405   : > { %4848 = vst.msk [vmem:[%s8633_s7 + $0xe0] sm:$0xff] %vm284_vm0, %v4816_v45 }
 0x406   : > { %v5537_v53 = vpop.f32.mrb[16].mxu1 }
 0x407   : > { %v5574_v16 = vadd.f32 %v5537_v53, %v8508_v10  ;;  %v4644_v49 = vpop.f32.mrb[17].mxu1 }
 0x408   : > { %v5575_v17 = vadd.f32 %v4644_v49, %v8513_v52 }
 0x409   : > { %v4723_v6 = vadd.f32 %v5574_v16, %v8625_v13 }
 0x40a   : > { %v4722_v28 = vadd.f32 %v5575_v17, %v8625_v13 }
 0x40b   : > { %vm4755_vm7 = vcmp.ge.f32.partialorder %v4723_v6, 0.0  ;;  %v4787_v56 = vmul.f32 0.1, %v4723_v6 }
 0x40c   : > { %vm4754_vm11 = vcmp.ge.f32.partialorder %v4722_v28, 0.0  ;;  %v4786_v37 = vmul.f32 0.1, %v4722_v28 }
 0x40d   : > { %v4819_v10 = vsel %vm4755_vm7, %v4723_v6, %v4787_v56 }
 0x40e   : > { %4851 = vst.msk [vmem:[%s8633_s7 + $0xf8] sm:$0xff] %vm284_vm0, %v4819_v10  ;;  %v4818_v52 = vsel %vm4754_vm11, %v4722_v28, %v4786_v37 }
 0x40f   : > { %4850 = vst.msk [vmem:[%s8633_s7 + $0xf0] sm:$0xff] %vm284_vm0, %v4818_v52 }
 0x410   : > { %5735 = shalt.err (!%p5732_p2)
}
 0x411   : > { %s5736_s14 = scalar_lea.hbm %s8760_s13, 4096  ;;  %s5740_s29 = scalar_lea.hbm %s8815_s5, 8192 }
 0x412   : > { %p5737_p4 = scmp.ne.s32.totalorder %s8760_s13, %s5736_s14  ;;  %p5741_p9 = scmp.lt.u32.totalorder %s8760_s13, %s8815_s5 }
 0x413   : > { %p5742_p1 = scmp.lt.u32.totalorder %s5740_s29, %s5736_s14  ;;  %p5744_p6 = scmp.lt.u32.totalorder %s5736_s14, %s8760_s13 }
 0x414   : > { %p5738_p5 = pnand %p5737_p4, %p9144_p11 }
 0x415   : > { %p5743_p3 = por %p5742_p1, %p5741_p9 }
 0x416   : > { %p5739_p7 = pneg %p5738_p5 }
 0x417   : > { %p5745_p12 = por %p5744_p6, %p5743_p3 }
 0x419   : > { %p5746_p13 = pnand %p5745_p12, %p5739_p7 }
 0x41b   : > { %5749 = shalt.err (!%p5746_p13)
}
 0x41c   : > { %s5794_s25 = smov 128   ;;  %s5795_s10 = smov 8  }
 0x41d   : > { %5642 = dma.vmem_to_hbm [thread:$0]  (%p9144_p11), %s8762_s9, 4096, %s8760_s13, %s4853_s22, %s5794_s25, %s5794_s25, %s5795_s10  }
 0x41e PF: > { %s4881_s11 = sand.u32 1, %s5776_s18   ;;  %p9145_p8 = scmp.ne.s32.totalorder %s8883_s6, 0 }
 0x41f   : > { %p9146_p10 = scmp.ge.s32.totalorder %s5788_s21, 2  ;;  %s4882_s17 = scalar_lea.sflag [#allocation4], %s4881_s11 }
 0x421   : > { %p5649_p0 = pnand %p9146_p10, %p9145_p8 }
 0x423   : > { %5771 = dma.done.wait (!%p5649_p0), %s4882_s17, 4096  }
 0x424   : > { %5773 = vsyncadd (!%p5649_p0), %s4882_s17, 4294963200  ;;  %p18_p2 = scmp.ge.s32.totalorder %s5851_s24, 4   ;;  %s9147_s18 = smov %s5780_s19 }
 0x425   : > { %s9148_s19 = smov %s5784_s20  ;;  %s9149_s20 = smov %s5863_s27 }
 0x426   : > { %s9150_s21 = smov %s5851_s24  ;;  %20 = sbr.rel (!%p18_p2) target bundleno = 5 (0x5), region = 88 }
 0x42d   :  { %4887 = vsyncpa [#allocation3], 1 }
 0x42e   :  { %4889 = vsyncpa [#allocation3 + $0x1], 1 }
 0x42f   :  { %4890 = vsyncpa [#allocation4], 1 }
 0x430   :  { %4892 = vsyncpa [#allocation4 + $0x1], 1 }

</bundles_post_ra>
